<compile_context>
chip_gen: v6e
topology: v6e:2x2x1
jax: 0.10.0
libtpu: 0.0.40
codegen_flags: <defaults>
</compile_context>

<pallas_src>
import functools

import jax
import jax.numpy as jnp
from jax.experimental import pallas as pl
from jax.experimental.pallas import tpu as pltpu

_VMEM_LIMIT = 32 * 1024 * 1024  # safe on v5e/v6e/v7x


# ----------------------------------------------------------------------------
# Fused conv3x3 + bias + ReLU (+ optional fused 2x2 maxpool) kernel
# ----------------------------------------------------------------------------
def _conv3x3_kernel(x_ref, w_ref, b_ref, o_ref, xc_ref, *acc_scratch,
                    pool, flat):
    """One image per grid step.

    x_ref : (1, H+2, W+2, Cin)  zero-padded NHWC input (bf16)
    w_ref : (3, 3*Cin, Cout)    weights, dx folded into K (bf16)
    b_ref : (1, Cout)           bias (f32)
    o_ref : (1, Ho, Wo, Cout)   output (bf16); Ho,Wo = H,W (or halved if pool)
    xc_ref: (H+2, W, 3*Cin)     column-folded input scratch (bf16)
    acc   : (H*W, Cout) f32     accumulator scratch (flat path only)
    """
    hp, wp, cin = x_ref.shape[1], x_ref.shape[2], x_ref.shape[3]
    h, w = hp - 2, wp - 2
    cout = o_ref.shape[3]
    bias = b_ref[...]                                        # (1, Cout) f32

    # Column fold (once per image): xc[:, c, dx*Cin:(dx+1)*Cin] = xp[:, c+dx, :]
    # Hoists every dx sublane shift out of the dy / row loops.
    x = x_ref[0]                                             # (H+2, W+2, Cin)
    xc_ref[...] = jnp.concatenate(
        [x[:, dx:dx + w, :] for dx in range(3)], axis=-1)

    def sel_matrices(wo):
        # Exact 0/1 selection matrices so W-direction pooling runs on the MXU
        # (avoids strided sublane slicing; selection matmul is exact).
        ii = jax.lax.broadcasted_iota(jnp.int32, (wo, w), 0)
        jj = jax.lax.broadcasted_iota(jnp.int32, (wo, w), 1)
        return ((jj == 2 * ii).astype(jnp.float32),
                (jj == 2 * ii + 1).astype(jnp.float32))

    if flat:
        acc_ref = acc_scratch[0]
        # Whole-image conv: 3 large MXU dots over the flattened (H*W, 3*Cin).
        acc_ref[...] = jnp.zeros_like(acc_ref)
        for dy in range(3):
            lhs = xc_ref[dy:dy + h].reshape(h * w, 3 * cin)
            acc_ref[...] += jnp.dot(lhs, w_ref[dy],
                                    preferred_element_type=jnp.float32)

        if not pool:
            y = jnp.maximum(acc_ref[...] + bias, 0.0)
            o_ref[0, :, :, :] = y.reshape(h, w, cout).astype(o_ref.dtype)
        else:
            # Bias + ReLU once over the whole map (commutes with maxpool),
            # then fused 2x2 maxpool per pooled output row.
            acc_ref[...] = jnp.maximum(acc_ref[...] + bias, 0.0)
            ho, wo = h // 2, w // 2
            s_even, s_odd = sel_matrices(wo)

            def body(rp, carry):
                r0 = pl.multiple_of(2 * rp * w, 8)
                r1 = pl.multiple_of((2 * rp + 1) * w, 8)
                hmax = jnp.maximum(acc_ref[pl.ds(r0, w), :],
                                   acc_ref[pl.ds(r1, w), :])     # (W, Cout)
                pooled = jnp.maximum(
                    jnp.dot(s_even, hmax, preferred_element_type=jnp.float32),
                    jnp.dot(s_odd, hmax, preferred_element_type=jnp.float32))
                o_ref[0, rp, :, :] = pooled.astype(o_ref.dtype)
                return carry

            jax.lax.fori_loop(0, ho, body, 0)
    else:
        # Narrow-width fallback (W not a multiple of 16): per-row dots, still
        # only 3 dots/row thanks to the column fold.
        def conv_row(r):
            acc = jnp.zeros((w, cout), jnp.float32)
            for dy in range(3):
                acc = acc + jnp.dot(xc_ref[r + dy, :, :], w_ref[dy],
                                    preferred_element_type=jnp.float32)
            return jnp.maximum(acc + bias, 0.0)

        if not pool:
            def body(r, carry):
                o_ref[0, r, :, :] = conv_row(r).astype(o_ref.dtype)
                return carry

            jax.lax.fori_loop(0, h, body, 0)
        else:
            ho, wo = h // 2, w // 2
            s_even, s_odd = sel_matrices(wo)

            def body(rp, carry):
                hmax = jnp.maximum(conv_row(2 * rp), conv_row(2 * rp + 1))
                pooled = jnp.maximum(
                    jnp.dot(s_even, hmax, preferred_element_type=jnp.float32),
                    jnp.dot(s_odd, hmax, preferred_element_type=jnp.float32))
                o_ref[0, rp, :, :] = pooled.astype(o_ref.dtype)
                return carry

            jax.lax.fori_loop(0, ho, body, 0)


def conv3x3_relu(x, w, b, *, pool=False):
    """3x3 conv (SAME, stride 1) + bias + ReLU, optional fused 2x2 maxpool.

    x: (N, H, W, Cin) bf16 NHWC;  w: (3, 3, Cin, Cout) bf16;  b: (Cout,) f32.
    """
    n, h, wd, cin = x.shape
    cout = w.shape[-1]
    ho, wo = (h // 2, wd // 2) if pool else (h, wd)
    flat = (wd % 16 == 0)                       # all layers at patch_size=128
    xp = jnp.pad(x, ((0, 0), (1, 1), (1, 1), (0, 0)))          # SAME padding
    w_folded = w.reshape(3, 3 * cin, cout)      # fold dx into the K dim

    scratch = [pltpu.VMEM((h + 2, wd, 3 * cin), jnp.bfloat16)]
    if flat:
        scratch.append(pltpu.VMEM((h * wd, cout), jnp.float32))

    return pl.pallas_call(
        functools.partial(_conv3x3_kernel, pool=pool, flat=flat),
        out_shape=jax.ShapeDtypeStruct((n, ho, wo, cout), jnp.bfloat16),
        grid=(n,),
        in_specs=[
            pl.BlockSpec((1, h + 2, wd + 2, cin), lambda i: (i, 0, 0, 0)),
            pl.BlockSpec((3, 3 * cin, cout), lambda i: (0, 0, 0)),
            pl.BlockSpec((1, cout), lambda i: (0, 0)),
        ],
        out_specs=pl.BlockSpec((1, ho, wo, cout), lambda i: (i, 0, 0, 0)),
        scratch_shapes=scratch,
        compiler_params=pltpu.CompilerParams(
            dimension_semantics=("parallel",),
            vmem_limit_bytes=_VMEM_LIMIT),
    )(xp, w_folded, b.reshape(1, cout))


# ----------------------------------------------------------------------------
# K/N-tiled matmul with f32 VMEM accumulator (FC layers)
# ----------------------------------------------------------------------------
def _matmul_bias_kernel(x_ref, w_ref, b_ref, o_ref, acc_ref, *, relu):
    k = pl.program_id(2)

    @pl.when(k == 0)
    def _():
        acc_ref[...] = jnp.zeros_like(acc_ref)

    acc_ref[...] += jnp.dot(x_ref[...], w_ref[...],
                            preferred_element_type=jnp.float32)

    @pl.when(k == pl.num_programs(2) - 1)
    def _():
        y = acc_ref[...] + b_ref[...]
        if relu:
            y = jnp.maximum(y, 0.0)
        o_ref[...] = y.astype(o_ref.dtype)


def _tile(dim, preferred):
    for t in preferred:
        if dim % t == 0:
            return t
    return dim


def matmul_bias(x, w, b, *, relu=False, out_dtype=jnp.float32):
    """y = x @ w + b (optional ReLU). M/N/K tiled; bias+ReLU epilogue in f32."""
    m, k = x.shape
    k2, n = w.shape
    assert k == k2, (k, k2)
    bm = _tile(m, (256, 128))           # M = batch; small in this model
    bn = _tile(n, (512, 256, 128))
    bk = _tile(k, (512, 256, 128))
    grid = (m // bm, n // bn, k // bk)
    return pl.pallas_call(
        functools.partial(_matmul_bias_kernel, relu=relu),
        out_shape=jax.ShapeDtypeStruct((m, n), out_dtype),
        grid=grid,
        in_specs=[
            pl.BlockSpec((bm, bk), lambda i, j, kk: (i, kk)),
            pl.BlockSpec((bk, bn), lambda i, j, kk: (kk, j)),
            pl.BlockSpec((1, bn), lambda i, j, kk: (0, j)),
        ],
        out_specs=pl.BlockSpec((bm, bn), lambda i, j, kk: (i, j)),
        scratch_shapes=[pltpu.VMEM((bm, bn), jnp.float32)],
        compiler_params=pltpu.CompilerParams(
            dimension_semantics=("parallel", "parallel", "arbitrary"),
            vmem_limit_bytes=_VMEM_LIMIT),
    )(x, w, b.reshape(1, n))


# ----------------------------------------------------------------------------
# Model: parameters + forward
# ----------------------------------------------------------------------------
# Canonical HomographyNet filter plan; 2x2 maxpool after layers 1, 3, 5 (0-idx).
_CONV_DEFS = [(2, 64), (64, 64), (64, 64), (64, 64),
              (64, 128), (128, 128), (128, 128), (128, 128)]
_POOL_AFTER = (1, 3, 5)


def init_params(key, patch_size):
    params = {}
    for idx, (cin, cout) in enumerate(_CONV_DEFS):
        key, k1, k2 = jax.random.split(key, 3)
        params[f"conv{idx}_w"] = (0.05 * jax.random.normal(
            k1, (3, 3, cin, cout), jnp.float32)).astype(jnp.bfloat16)
        params[f"conv{idx}_b"] = 0.01 * jax.random.normal(k2, (cout,), jnp.float32)

    fh = fw = patch_size // 8
    fc = _CONV_DEFS[-1][1]
    feat = fc * fh * fw
    key, k1, k2, k3, k4 = jax.random.split(key, 5)
    # fc1 weights are generated in PyTorch NCHW-flatten row order, then the
    # rows are permuted ONCE to NHWC-flatten order so the forward pass can
    # flatten the NHWC activations directly (no per-step activation transpose).
    w_fc1_nchw = 0.05 * jax.random.normal(k1, (feat, 1024), jnp.float32)
    hh, ww, cc = jnp.meshgrid(jnp.arange(fh), jnp.arange(fw), jnp.arange(fc),
                              indexing="ij")
    perm = (cc * (fh * fw) + hh * fw + ww).reshape(-1)
    params["fc1_w"] = w_fc1_nchw[perm].astype(jnp.bfloat16)
    params["fc1_b"] = 0.01 * jax.random.normal(k2, (1024,), jnp.float32)
    params["fc2_w"] = (0.05 * jax.random.normal(
        k3, (1024, 8), jnp.float32)).astype(jnp.bfloat16)
    params["fc2_b"] = 0.01 * jax.random.normal(k4, (8,), jnp.float32)
    return params


def homography_forward(params, a, b):
    """a, b: (N, 1, H, W) float32 (NCHW, like the PyTorch module). Returns (N, 8)."""
    x = jnp.concatenate([a, b], axis=1)                        # (N, 2, H, W)
    x = jnp.transpose(x, (0, 2, 3, 1)).astype(jnp.bfloat16)    # NHWC, bf16 MXU inputs

    for idx in range(len(_CONV_DEFS)):
        x = conv3x3_relu(x, params[f"conv{idx}_w"], params[f"conv{idx}_b"],
                         pool=(idx in _POOL_AFTER))

    n, h, w, c = x.shape
    x = x.reshape(n, h * w * c)              # NHWC flatten; fc1_w rows pre-permuted
    x = matmul_bias(x, params["fc1_w"], params["fc1_b"], relu=True,
                    out_dtype=jnp.bfloat16)
    x = matmul_bias(x, params["fc2_w"], params["fc2_b"], relu=False,
                    out_dtype=jnp.float32)
    return x


if __name__ == "__main__":
    # Small demo shapes (the real module uses patch_size=128; the architecture
    # and kernels are unchanged, only H/W shrink). Both the flat (W % 16 == 0)
    # and narrow-width conv paths get exercised at this size.
    patch_size = 16
    batch = 2

    key = jax.random.PRNGKey(0)
    pkey, akey, bkey = jax.random.split(key, 3)
    params = init_params(pkey, patch_size)
    a = jax.random.normal(akey, (batch, 1, patch_size, patch_size), jnp.float32)
    b = jax.random.normal(bkey, (batch, 1, patch_size, patch_size), jnp.float32)

    fwd = jax.jit(functools.partial(homography_forward, params))
    out = fwd(a, b)
    jax.block_until_ready(out)

    assert out.shape == (batch, 8), out.shape
    assert bool(jnp.all(jnp.isfinite(out)))
    print("KERNEL_OK")
</pallas_src>

<mosaic_0001>
module attributes {stable_mosaic.version = 11 : i64} {
  func.func @_conv3x3_kernel(%arg0: i32, %arg1: memref<1x18x18x2xbf16, #tpu.memory_space<vmem>>, %arg2: memref<3x6x64xbf16, #tpu.memory_space<vmem>>, %arg3: memref<1x64xf32, #tpu.memory_space<vmem>>, %arg4: memref<1x16x16x64xbf16, #tpu.memory_space<vmem>>, %arg5: memref<18x16x6xbf16, #tpu.memory_space<vmem>>, %arg6: memref<256x64xf32, #tpu.memory_space<vmem>>) attributes {dimension_semantics = [#tpu.dimension_semantics<parallel>], iteration_bounds = array<i64: 2>, scalar_prefetch = 0 : i64, scratch_operands = 2 : i64, tpu.core_type = #tpu.core_type<tc>, window_params = [{transform_indices = @transform_0, window_bounds = array<i64: 1, 18, 18, 2>}, {pipeline_mode = #tpu.pipeline_mode<synchronous>, transform_indices = @transform_1, window_bounds = array<i64: 3, 6, 64>}, {pipeline_mode = #tpu.pipeline_mode<synchronous>, transform_indices = @transform_2, window_bounds = array<i64: 1, 64>}, {transform_indices = @transform_3, window_bounds = array<i64: 1, 16, 16, 64>}]} {
    %c0 = arith.constant 0 : index
    %c0_0 = arith.constant 0 : index
    %0 = vector.load %arg3[%c0, %c0_0] : memref<1x64xf32, #tpu.memory_space<vmem>>, vector<1x64xf32>
    %c0_1 = arith.constant 0 : index
    %c0_2 = arith.constant 0 : index
    %c0_3 = arith.constant 0 : index
    %c0_4 = arith.constant 0 : index
    %1 = vector.load %arg1[%c0_1, %c0_2, %c0_3, %c0_4] : memref<1x18x18x2xbf16, #tpu.memory_space<vmem>>, vector<1x18x18x2xbf16>
    %2 = vector.shape_cast %1 : vector<1x18x18x2xbf16> to vector<18x18x2xbf16>
    %3 = vector.extract_strided_slice %2 {offsets = [0, 0, 0], sizes = [18, 16, 2], strides = [1, 1, 1]} : vector<18x18x2xbf16> to vector<18x16x2xbf16>
    %4 = vector.extract_strided_slice %2 {offsets = [0, 1, 0], sizes = [18, 16, 2], strides = [1, 1, 1]} : vector<18x18x2xbf16> to vector<18x16x2xbf16>
    %5 = vector.extract_strided_slice %2 {offsets = [0, 2, 0], sizes = [18, 16, 2], strides = [1, 1, 1]} : vector<18x18x2xbf16> to vector<18x16x2xbf16>
    %6 = tpu.concatenate %3, %4, %5 in 2 : vector<18x16x2xbf16>, vector<18x16x2xbf16>, vector<18x16x2xbf16> -> vector<18x16x6xbf16>
    %c0_5 = arith.constant 0 : index
    %c0_6 = arith.constant 0 : index
    %c0_7 = arith.constant 0 : index
    %7 = vector.load %arg5[%c0_5, %c0_6, %c0_7] : memref<18x16x6xbf16, #tpu.memory_space<vmem>>, vector<18x16x6xbf16>
    tpu.vector_store %arg5[%c0_5, %c0_6, %c0_7], %6 {strides = array<i32>} : memref<18x16x6xbf16, #tpu.memory_space<vmem>>, vector<18x16x6xbf16>,
    %cst = arith.constant 0.000000e+00 : f32
    %8 = vector.broadcast %cst : f32 to vector<256x64xf32>
    %c0_8 = arith.constant 0 : index
    %c0_9 = arith.constant 0 : index
    %9 = vector.load %arg6[%c0_8, %c0_9] : memref<256x64xf32, #tpu.memory_space<vmem>>, vector<256x64xf32>
    tpu.vector_store %arg6[%c0_8, %c0_9], %8 {strides = array<i32>} : memref<256x64xf32, #tpu.memory_space<vmem>>, vector<256x64xf32>,
    %c0_10 = arith.constant 0 : index
    %c0_11 = arith.constant 0 : index
    %c0_12 = arith.constant 0 : index
    %10 = vector.load %arg5[%c0_10, %c0_11, %c0_12] : memref<18x16x6xbf16, #tpu.memory_space<vmem>>, vector<16x16x6xbf16>
    %11 = vector.shape_cast %10 : vector<16x16x6xbf16> to vector<256x6xbf16>
    %c0_13 = arith.constant 0 : index
    %c0_14 = arith.constant 0 : index
    %12 = vector.load %arg6[%c0_13, %c0_14] : memref<256x64xf32, #tpu.memory_space<vmem>>, vector<256x64xf32>
    %c0_15 = arith.constant 0 : index
    %c0_16 = arith.constant 0 : index
    %c0_17 = arith.constant 0 : index
    %13 = vector.load %arg2[%c0_15, %c0_16, %c0_17] : memref<3x6x64xbf16, #tpu.memory_space<vmem>>, vector<1x6x64xbf16>
    %14 = vector.shape_cast %13 : vector<1x6x64xbf16> to vector<6x64xbf16>
    %cst_18 = arith.constant dense<0.000000e+00> : vector<256x64xf32>
    %15 = tpu.matmul %11, %14, %cst_18 {dimension_numbers = #tpu.dot_dimension_numbers<[1], [0], [0], [1], [0, 0, 1, 1], [], []>} : vector<256x6xbf16>, vector<6x64xbf16>, vector<256x64xf32> -> vector<256x64xf32>
    %16 = arith.addf %12, %15 : vector<256x64xf32>
    %c0_19 = arith.constant 0 : index
    %c0_20 = arith.constant 0 : index
    %17 = vector.load %arg6[%c0_19, %c0_20] : memref<256x64xf32, #tpu.memory_space<vmem>>, vector<256x64xf32>
    tpu.vector_store %arg6[%c0_19, %c0_20], %16 {strides = array<i32>} : memref<256x64xf32, #tpu.memory_space<vmem>>, vector<256x64xf32>,
    %c1 = arith.constant 1 : index
    %c0_21 = arith.constant 0 : index
    %c0_22 = arith.constant 0 : index
    %18 = vector.load %arg5[%c1, %c0_21, %c0_22] : memref<18x16x6xbf16, #tpu.memory_space<vmem>>, vector<16x16x6xbf16>
    %19 = vector.shape_cast %18 : vector<16x16x6xbf16> to vector<256x6xbf16>
    %c0_23 = arith.constant 0 : index
    %c0_24 = arith.constant 0 : index
    %20 = vector.load %arg6[%c0_23, %c0_24] : memref<256x64xf32, #tpu.memory_space<vmem>>, vector<256x64xf32>
    %c1_25 = arith.constant 1 : index
    %c0_26 = arith.constant 0 : index
    %c0_27 = arith.constant 0 : index
    %21 = vector.load %arg2[%c1_25, %c0_26, %c0_27] : memref<3x6x64xbf16, #tpu.memory_space<vmem>>, vector<1x6x64xbf16>
    %22 = vector.shape_cast %21 : vector<1x6x64xbf16> to vector<6x64xbf16>
    %cst_28 = arith.constant dense<0.000000e+00> : vector<256x64xf32>
    %23 = tpu.matmul %19, %22, %cst_28 {dimension_numbers = #tpu.dot_dimension_numbers<[1], [0], [0], [1], [0, 0, 1, 1], [], []>} : vector<256x6xbf16>, vector<6x64xbf16>, vector<256x64xf32> -> vector<256x64xf32>
    %24 = arith.addf %20, %23 : vector<256x64xf32>
    %c0_29 = arith.constant 0 : index
    %c0_30 = arith.constant 0 : index
    %25 = vector.load %arg6[%c0_29, %c0_30] : memref<256x64xf32, #tpu.memory_space<vmem>>, vector<256x64xf32>
    tpu.vector_store %arg6[%c0_29, %c0_30], %24 {strides = array<i32>} : memref<256x64xf32, #tpu.memory_space<vmem>>, vector<256x64xf32>,
    %c2 = arith.constant 2 : index
    %c0_31 = arith.constant 0 : index
    %c0_32 = arith.constant 0 : index
    %26 = vector.load %arg5[%c2, %c0_31, %c0_32] : memref<18x16x6xbf16, #tpu.memory_space<vmem>>, vector<16x16x6xbf16>
    %27 = vector.shape_cast %26 : vector<16x16x6xbf16> to vector<256x6xbf16>
    %c0_33 = arith.constant 0 : index
    %c0_34 = arith.constant 0 : index
    %28 = vector.load %arg6[%c0_33, %c0_34] : memref<256x64xf32, #tpu.memory_space<vmem>>, vector<256x64xf32>
    %c2_35 = arith.constant 2 : index
    %c0_36 = arith.constant 0 : index
    %c0_37 = arith.constant 0 : index
    %29 = vector.load %arg2[%c2_35, %c0_36, %c0_37] : memref<3x6x64xbf16, #tpu.memory_space<vmem>>, vector<1x6x64xbf16>
    %30 = vector.shape_cast %29 : vector<1x6x64xbf16> to vector<6x64xbf16>
    %cst_38 = arith.constant dense<0.000000e+00> : vector<256x64xf32>
    %31 = tpu.matmul %27, %30, %cst_38 {dimension_numbers = #tpu.dot_dimension_numbers<[1], [0], [0], [1], [0, 0, 1, 1], [], []>} : vector<256x6xbf16>, vector<6x64xbf16>, vector<256x64xf32> -> vector<256x64xf32>
    %32 = arith.addf %28, %31 : vector<256x64xf32>
    %c0_39 = arith.constant 0 : index
    %c0_40 = arith.constant 0 : index
    %33 = vector.load %arg6[%c0_39, %c0_40] : memref<256x64xf32, #tpu.memory_space<vmem>>, vector<256x64xf32>
    tpu.vector_store %arg6[%c0_39, %c0_40], %32 {strides = array<i32>} : memref<256x64xf32, #tpu.memory_space<vmem>>, vector<256x64xf32>,
    %c0_41 = arith.constant 0 : index
    %c0_42 = arith.constant 0 : index
    %34 = vector.load %arg6[%c0_41, %c0_42] : memref<256x64xf32, #tpu.memory_space<vmem>>, vector<256x64xf32>
    %35 = vector.broadcast %0 : vector<1x64xf32> to vector<256x64xf32>
    %36 = arith.addf %34, %35 : vector<256x64xf32>
    %cst_43 = arith.constant 0.000000e+00 : f32
    %37 = vector.broadcast %cst_43 : f32 to vector<256x64xf32>
    %38 = arith.maximumf %36, %37 : vector<256x64xf32>
    %39 = vector.shape_cast %38 : vector<256x64xf32> to vector<16x16x64xf32>
    %40 = arith.truncf %39 : vector<16x16x64xf32> to vector<16x16x64xbf16>
    %c0_44 = arith.constant 0 : index
    %c0_45 = arith.constant 0 : index
    %c0_46 = arith.constant 0 : index
    %c0_47 = arith.constant 0 : index
    %41 = vector.load %arg4[%c0_44, %c0_45, %c0_46, %c0_47] : memref<1x16x16x64xbf16, #tpu.memory_space<vmem>>, vector<1x16x16x64xbf16>
    %42 = vector.shape_cast %41 : vector<1x16x16x64xbf16> to vector<16x16x64xbf16>
    %43 = vector.shape_cast %40 : vector<16x16x64xbf16> to vector<1x16x16x64xbf16>
    tpu.vector_store %arg4[%c0_44, %c0_45, %c0_46, %c0_47], %43 {strides = array<i32>} : memref<1x16x16x64xbf16, #tpu.memory_space<vmem>>, vector<1x16x16x64xbf16>,
    return
  }
  func.func @transform_0(%arg0: i32) -> (i32, i32, i32, i32) {
    %c0_i32 = arith.constant 0 : i32
    %c0_i32_0 = arith.constant 0 : i32
    %c0_i32_1 = arith.constant 0 : i32
    %c0_i32_2 = arith.constant 0 : i32
    return %arg0, %c0_i32, %c0_i32_0, %c0_i32_1 : i32, i32, i32, i32
  }
  func.func @transform_1(%arg0: i32) -> (i32, i32, i32) {
    %c0_i32 = arith.constant 0 : i32
    %c0_i32_0 = arith.constant 0 : i32
    %c0_i32_1 = arith.constant 0 : i32
    %c0_i32_2 = arith.constant 0 : i32
    return %c0_i32, %c0_i32_0, %c0_i32_1 : i32, i32, i32
  }
  func.func @transform_2(%arg0: i32) -> (i32, i32) {
    %c0_i32 = arith.constant 0 : i32
    %c0_i32_0 = arith.constant 0 : i32
    %c0_i32_1 = arith.constant 0 : i32
    return %c0_i32, %c0_i32_0 : i32, i32
  }
  func.func @transform_3(%arg0: i32) -> (i32, i32, i32, i32) {
    %c0_i32 = arith.constant 0 : i32
    %c0_i32_0 = arith.constant 0 : i32
    %c0_i32_1 = arith.constant 0 : i32
    %c0_i32_2 = arith.constant 0 : i32
    return %arg0, %c0_i32, %c0_i32_0, %c0_i32_1 : i32, i32, i32, i32
  }
}

module attributes {stable_mosaic.version = 11 : i64} {
  func.func @_conv3x3_kernel(%arg0: i32, %arg1: memref<1x18x18x64xbf16, #tpu.memory_space<vmem>>, %arg2: memref<3x192x64xbf16, #tpu.memory_space<vmem>>, %arg3: memref<1x64xf32, #tpu.memory_space<vmem>>, %arg4: memref<1x8x8x64xbf16, #tpu.memory_space<vmem>>, %arg5: memref<18x16x192xbf16, #tpu.memory_space<vmem>>, %arg6: memref<256x64xf32, #tpu.memory_space<vmem>>) attributes {dimension_semantics = [#tpu.dimension_semantics<parallel>], iteration_bounds = array<i64: 2>, scalar_prefetch = 0 : i64, scratch_operands = 2 : i64, tpu.core_type = #tpu.core_type<tc>, window_params = [{transform_indices = @transform_0, window_bounds = array<i64: 1, 18, 18, 64>}, {pipeline_mode = #tpu.pipeline_mode<synchronous>, transform_indices = @transform_1, window_bounds = array<i64: 3, 192, 64>}, {pipeline_mode = #tpu.pipeline_mode<synchronous>, transform_indices = @transform_2, window_bounds = array<i64: 1, 64>}, {transform_indices = @transform_3, window_bounds = array<i64: 1, 8, 8, 64>}]} {
    %c0 = arith.constant 0 : index
    %c0_0 = arith.constant 0 : index
    %0 = vector.load %arg3[%c0, %c0_0] : memref<1x64xf32, #tpu.memory_space<vmem>>, vector<1x64xf32>
    %c0_1 = arith.constant 0 : index
    %c0_2 = arith.constant 0 : index
    %c0_3 = arith.constant 0 : index
    %c0_4 = arith.constant 0 : index
    %1 = vector.load %arg1[%c0_1, %c0_2, %c0_3, %c0_4] : memref<1x18x18x64xbf16, #tpu.memory_space<vmem>>, vector<1x18x18x64xbf16>
    %2 = vector.shape_cast %1 : vector<1x18x18x64xbf16> to vector<18x18x64xbf16>
    %3 = vector.extract_strided_slice %2 {offsets = [0, 0, 0], sizes = [18, 16, 64], strides = [1, 1, 1]} : vector<18x18x64xbf16> to vector<18x16x64xbf16>
    %4 = vector.extract_strided_slice %2 {offsets = [0, 1, 0], sizes = [18, 16, 64], strides = [1, 1, 1]} : vector<18x18x64xbf16> to vector<18x16x64xbf16>
    %5 = vector.extract_strided_slice %2 {offsets = [0, 2, 0], sizes = [18, 16, 64], strides = [1, 1, 1]} : vector<18x18x64xbf16> to vector<18x16x64xbf16>
    %6 = tpu.concatenate %3, %4, %5 in 2 : vector<18x16x64xbf16>, vector<18x16x64xbf16>, vector<18x16x64xbf16> -> vector<18x16x192xbf16>
    %c0_5 = arith.constant 0 : index
    %c0_6 = arith.constant 0 : index
    %c0_7 = arith.constant 0 : index
    %7 = vector.load %arg5[%c0_5, %c0_6, %c0_7] : memref<18x16x192xbf16, #tpu.memory_space<vmem>>, vector<18x16x192xbf16>
    tpu.vector_store %arg5[%c0_5, %c0_6, %c0_7], %6 {strides = array<i32>} : memref<18x16x192xbf16, #tpu.memory_space<vmem>>, vector<18x16x192xbf16>,
    %cst = arith.constant 0.000000e+00 : f32
    %8 = vector.broadcast %cst : f32 to vector<256x64xf32>
    %c0_8 = arith.constant 0 : index
    %c0_9 = arith.constant 0 : index
    %9 = vector.load %arg6[%c0_8, %c0_9] : memref<256x64xf32, #tpu.memory_space<vmem>>, vector<256x64xf32>
    tpu.vector_store %arg6[%c0_8, %c0_9], %8 {strides = array<i32>} : memref<256x64xf32, #tpu.memory_space<vmem>>, vector<256x64xf32>,
    %c0_10 = arith.constant 0 : index
    %c0_11 = arith.constant 0 : index
    %c0_12 = arith.constant 0 : index
    %10 = vector.load %arg5[%c0_10, %c0_11, %c0_12] : memref<18x16x192xbf16, #tpu.memory_space<vmem>>, vector<16x16x192xbf16>
    %11 = vector.shape_cast %10 : vector<16x16x192xbf16> to vector<256x192xbf16>
    %c0_13 = arith.constant 0 : index
    %c0_14 = arith.constant 0 : index
    %12 = vector.load %arg6[%c0_13, %c0_14] : memref<256x64xf32, #tpu.memory_space<vmem>>, vector<256x64xf32>
    %c0_15 = arith.constant 0 : index
    %c0_16 = arith.constant 0 : index
    %c0_17 = arith.constant 0 : index
    %13 = vector.load %arg2[%c0_15, %c0_16, %c0_17] : memref<3x192x64xbf16, #tpu.memory_space<vmem>>, vector<1x192x64xbf16>
    %14 = vector.shape_cast %13 : vector<1x192x64xbf16> to vector<192x64xbf16>
    %cst_18 = arith.constant dense<0.000000e+00> : vector<256x64xf32>
    %15 = tpu.matmul %11, %14, %cst_18 {dimension_numbers = #tpu.dot_dimension_numbers<[1], [0], [0], [1], [0, 0, 1, 1], [], []>} : vector<256x192xbf16>, vector<192x64xbf16>, vector<256x64xf32> -> vector<256x64xf32>
    %16 = arith.addf %12, %15 : vector<256x64xf32>
    %c0_19 = arith.constant 0 : index
    %c0_20 = arith.constant 0 : index
    %17 = vector.load %arg6[%c0_19, %c0_20] : memref<256x64xf32, #tpu.memory_space<vmem>>, vector<256x64xf32>
    tpu.vector_store %arg6[%c0_19, %c0_20], %16 {strides = array<i32>} : memref<256x64xf32, #tpu.memory_space<vmem>>, vector<256x64xf32>,
    %c1 = arith.constant 1 : index
    %c0_21 = arith.constant 0 : index
    %c0_22 = arith.constant 0 : index
    %18 = vector.load %arg5[%c1, %c0_21, %c0_22] : memref<18x16x192xbf16, #tpu.memory_space<vmem>>, vector<16x16x192xbf16>
    %19 = vector.shape_cast %18 : vector<16x16x192xbf16> to vector<256x192xbf16>
    %c0_23 = arith.constant 0 : index
    %c0_24 = arith.constant 0 : index
    %20 = vector.load %arg6[%c0_23, %c0_24] : memref<256x64xf32, #tpu.memory_space<vmem>>, vector<256x64xf32>
    %c1_25 = arith.constant 1 : index
    %c0_26 = arith.constant 0 : index
    %c0_27 = arith.constant 0 : index
    %21 = vector.load %arg2[%c1_25, %c0_26, %c0_27] : memref<3x192x64xbf16, #tpu.memory_space<vmem>>, vector<1x192x64xbf16>
    %22 = vector.shape_cast %21 : vector<1x192x64xbf16> to vector<192x64xbf16>
    %cst_28 = arith.constant dense<0.000000e+00> : vector<256x64xf32>
    %23 = tpu.matmul %19, %22, %cst_28 {dimension_numbers = #tpu.dot_dimension_numbers<[1], [0], [0], [1], [0, 0, 1, 1], [], []>} : vector<256x192xbf16>, vector<192x64xbf16>, vector<256x64xf32> -> vector<256x64xf32>
    %24 = arith.addf %20, %23 : vector<256x64xf32>
    %c0_29 = arith.constant 0 : index
    %c0_30 = arith.constant 0 : index
    %25 = vector.load %arg6[%c0_29, %c0_30] : memref<256x64xf32, #tpu.memory_space<vmem>>, vector<256x64xf32>
    tpu.vector_store %arg6[%c0_29, %c0_30], %24 {strides = array<i32>} : memref<256x64xf32, #tpu.memory_space<vmem>>, vector<256x64xf32>,
    %c2 = arith.constant 2 : index
    %c0_31 = arith.constant 0 : index
    %c0_32 = arith.constant 0 : index
    %26 = vector.load %arg5[%c2, %c0_31, %c0_32] : memref<18x16x192xbf16, #tpu.memory_space<vmem>>, vector<16x16x192xbf16>
    %27 = vector.shape_cast %26 : vector<16x16x192xbf16> to vector<256x192xbf16>
    %c0_33 = arith.constant 0 : index
    %c0_34 = arith.constant 0 : index
    %28 = vector.load %arg6[%c0_33, %c0_34] : memref<256x64xf32, #tpu.memory_space<vmem>>, vector<256x64xf32>
    %c2_35 = arith.constant 2 : index
    %c0_36 = arith.constant 0 : index
    %c0_37 = arith.constant 0 : index
    %29 = vector.load %arg2[%c2_35, %c0_36, %c0_37] : memref<3x192x64xbf16, #tpu.memory_space<vmem>>, vector<1x192x64xbf16>
    %30 = vector.shape_cast %29 : vector<1x192x64xbf16> to vector<192x64xbf16>
    %cst_38 = arith.constant dense<0.000000e+00> : vector<256x64xf32>
    %31 = tpu.matmul %27, %30, %cst_38 {dimension_numbers = #tpu.dot_dimension_numbers<[1], [0], [0], [1], [0, 0, 1, 1], [], []>} : vector<256x192xbf16>, vector<192x64xbf16>, vector<256x64xf32> -> vector<256x64xf32>
    %32 = arith.addf %28, %31 : vector<256x64xf32>
    %c0_39 = arith.constant 0 : index
    %c0_40 = arith.constant 0 : index
    %33 = vector.load %arg6[%c0_39, %c0_40] : memref<256x64xf32, #tpu.memory_space<vmem>>, vector<256x64xf32>
    tpu.vector_store %arg6[%c0_39, %c0_40], %32 {strides = array<i32>} : memref<256x64xf32, #tpu.memory_space<vmem>>, vector<256x64xf32>,
    %c0_41 = arith.constant 0 : index
    %c0_42 = arith.constant 0 : index
    %34 = vector.load %arg6[%c0_41, %c0_42] : memref<256x64xf32, #tpu.memory_space<vmem>>, vector<256x64xf32>
    %35 = vector.broadcast %0 : vector<1x64xf32> to vector<256x64xf32>
    %36 = arith.addf %34, %35 : vector<256x64xf32>
    %cst_43 = arith.constant 0.000000e+00 : f32
    %37 = vector.broadcast %cst_43 : f32 to vector<256x64xf32>
    %38 = arith.maximumf %36, %37 : vector<256x64xf32>
    %c0_44 = arith.constant 0 : index
    %c0_45 = arith.constant 0 : index
    %39 = vector.load %arg6[%c0_44, %c0_45] : memref<256x64xf32, #tpu.memory_space<vmem>>, vector<256x64xf32>
    tpu.vector_store %arg6[%c0_44, %c0_45], %38 {strides = array<i32>} : memref<256x64xf32, #tpu.memory_space<vmem>>, vector<256x64xf32>,
    %40 = tpu.iota {dimensions = array<i32: 0>} : vector<8x16xi32>
    %41 = tpu.iota {dimensions = array<i32: 1>} : vector<8x16xi32>
    %c2_i32 = arith.constant 2 : i32
    %42 = vector.broadcast %c2_i32 : i32 to vector<8x16xi32>
    %43 = arith.muli %42, %40 : vector<8x16xi32>
    %44 = arith.cmpi eq, %41, %43 : vector<8x16xi32>
    %45 = arith.extui %44 : vector<8x16xi1> to vector<8x16xi32>
    %46 = arith.sitofp %45 : vector<8x16xi32> to vector<8x16xf32>
    %c2_i32_46 = arith.constant 2 : i32
    %47 = vector.broadcast %c2_i32_46 : i32 to vector<8x16xi32>
    %48 = arith.muli %47, %40 : vector<8x16xi32>
    %c1_i32 = arith.constant 1 : i32
    %49 = vector.broadcast %c1_i32 : i32 to vector<8x16xi32>
    %50 = arith.addi %48, %49 : vector<8x16xi32>
    %51 = arith.cmpi eq, %41, %50 : vector<8x16xi32>
    %52 = arith.extui %51 : vector<8x16xi1> to vector<8x16xi32>
    %53 = arith.sitofp %52 : vector<8x16xi32> to vector<8x16xf32>
    %c0_i32 = arith.constant 0 : i32
    %c8_i32 = arith.constant 8 : i32
    %54 = arith.addi %c0_i32, %c8_i32 : i32
    %c1_i32_47 = arith.constant 1 : i32
    scf.for %arg7 = %c0_i32 to %54 step %c1_i32_47  : i32 {
      %c2_i32_49 = arith.constant 2 : i32
      %55 = arith.muli %c2_i32_49, %arg7 : i32
      %c16_i32 = arith.constant 16 : i32
      %56 = arith.muli %55, %c16_i32 : i32
      %57 = tpu.assume_multiple %56, 8 : i32
      %c2_i32_50 = arith.constant 2 : i32
      %58 = arith.muli %c2_i32_50, %arg7 : i32
      %c1_i32_51 = arith.constant 1 : i32
      %59 = arith.addi %58, %c1_i32_51 : i32
      %c16_i32_52 = arith.constant 16 : i32
      %60 = arith.muli %59, %c16_i32_52 : i32
      %61 = tpu.assume_multiple %60, 8 : i32
      %62 = arith.index_cast %57 : i32 to index
      %c0_53 = arith.constant 0 : index
      %63 = vector.load %arg6[%62, %c0_53] : memref<256x64xf32, #tpu.memory_space<vmem>>, vector<16x64xf32>
      %64 = arith.index_cast %61 : i32 to index
      %c0_54 = arith.constant 0 : index
      %65 = vector.load %arg6[%64, %c0_54] : memref<256x64xf32, #tpu.memory_space<vmem>>, vector<16x64xf32>
      %66 = arith.maximumf %63, %65 : vector<16x64xf32>
      %cst_55 = arith.constant dense<0.000000e+00> : vector<8x64xf32>
      %67 = tpu.matmul %46, %66, %cst_55 {dimension_numbers = #tpu.dot_dimension_numbers<[1], [0], [0], [1], [0, 0, 1, 1], [], []>} : vector<8x16xf32>, vector<16x64xf32>, vector<8x64xf32> -> vector<8x64xf32>
      %cst_56 = arith.constant dense<0.000000e+00> : vector<8x64xf32>
      %68 = tpu.matmul %53, %66, %cst_56 {dimension_numbers = #tpu.dot_dimension_numbers<[1], [0], [0], [1], [0, 0, 1, 1], [], []>} : vector<8x16xf32>, vector<16x64xf32>, vector<8x64xf32> -> vector<8x64xf32>
      %69 = arith.maximumf %67, %68 : vector<8x64xf32>
      %70 = arith.truncf %69 : vector<8x64xf32> to vector<8x64xbf16>
      %c0_57 = arith.constant 0 : index
      %71 = arith.index_cast %arg7 : i32 to index
      %c0_58 = arith.constant 0 : index
      %c0_59 = arith.constant 0 : index
      %72 = vector.load %arg4[%c0_57, %71, %c0_58, %c0_59] : memref<1x8x8x64xbf16, #tpu.memory_space<vmem>>, vector<1x1x8x64xbf16>
      %73 = vector.shape_cast %72 : vector<1x1x8x64xbf16> to vector<8x64xbf16>
      %74 = vector.shape_cast %70 : vector<8x64xbf16> to vector<1x1x8x64xbf16>
      tpu.vector_store %arg4[%c0_57, %71, %c0_58, %c0_59], %74 {strides = array<i32>} : memref<1x8x8x64xbf16, #tpu.memory_space<vmem>>, vector<1x1x8x64xbf16>,
    }
    %c8_i32_48 = arith.constant 8 : i32
    return
  }
  func.func @transform_0(%arg0: i32) -> (i32, i32, i32, i32) {
    %c0_i32 = arith.constant 0 : i32
    %c0_i32_0 = arith.constant 0 : i32
    %c0_i32_1 = arith.constant 0 : i32
    %c0_i32_2 = arith.constant 0 : i32
    return %arg0, %c0_i32, %c0_i32_0, %c0_i32_1 : i32, i32, i32, i32
  }
  func.func @transform_1(%arg0: i32) -> (i32, i32, i32) {
    %c0_i32 = arith.constant 0 : i32
    %c0_i32_0 = arith.constant 0 : i32
    %c0_i32_1 = arith.constant 0 : i32
    %c0_i32_2 = arith.constant 0 : i32
    return %c0_i32, %c0_i32_0, %c0_i32_1 : i32, i32, i32
  }
  func.func @transform_2(%arg0: i32) -> (i32, i32) {
    %c0_i32 = arith.constant 0 : i32
    %c0_i32_0 = arith.constant 0 : i32
    %c0_i32_1 = arith.constant 0 : i32
    return %c0_i32, %c0_i32_0 : i32, i32
  }
  func.func @transform_3(%arg0: i32) -> (i32, i32, i32, i32) {
    %c0_i32 = arith.constant 0 : i32
    %c0_i32_0 = arith.constant 0 : i32
    %c0_i32_1 = arith.constant 0 : i32
    %c0_i32_2 = arith.constant 0 : i32
    return %arg0, %c0_i32, %c0_i32_0, %c0_i32_1 : i32, i32, i32, i32
  }
}

module attributes {stable_mosaic.version = 11 : i64} {
  func.func @_conv3x3_kernel(%arg0: i32, %arg1: memref<1x10x10x64xbf16, #tpu.memory_space<vmem>>, %arg2: memref<3x192x64xbf16, #tpu.memory_space<vmem>>, %arg3: memref<1x64xf32, #tpu.memory_space<vmem>>, %arg4: memref<1x8x8x64xbf16, #tpu.memory_space<vmem>>, %arg5: memref<10x8x192xbf16, #tpu.memory_space<vmem>>) attributes {dimension_semantics = [#tpu.dimension_semantics<parallel>], iteration_bounds = array<i64: 2>, scalar_prefetch = 0 : i64, scratch_operands = 1 : i64, tpu.core_type = #tpu.core_type<tc>, window_params = [{transform_indices = @transform_0, window_bounds = array<i64: 1, 10, 10, 64>}, {pipeline_mode = #tpu.pipeline_mode<synchronous>, transform_indices = @transform_1, window_bounds = array<i64: 3, 192, 64>}, {pipeline_mode = #tpu.pipeline_mode<synchronous>, transform_indices = @transform_2, window_bounds = array<i64: 1, 64>}, {transform_indices = @transform_3, window_bounds = array<i64: 1, 8, 8, 64>}]} {
    %c0 = arith.constant 0 : index
    %c0_0 = arith.constant 0 : index
    %0 = vector.load %arg3[%c0, %c0_0] : memref<1x64xf32, #tpu.memory_space<vmem>>, vector<1x64xf32>
    %c0_1 = arith.constant 0 : index
    %c0_2 = arith.constant 0 : index
    %c0_3 = arith.constant 0 : index
    %c0_4 = arith.constant 0 : index
    %1 = vector.load %arg1[%c0_1, %c0_2, %c0_3, %c0_4] : memref<1x10x10x64xbf16, #tpu.memory_space<vmem>>, vector<1x10x10x64xbf16>
    %2 = vector.shape_cast %1 : vector<1x10x10x64xbf16> to vector<10x10x64xbf16>
    %3 = vector.extract_strided_slice %2 {offsets = [0, 0, 0], sizes = [10, 8, 64], strides = [1, 1, 1]} : vector<10x10x64xbf16> to vector<10x8x64xbf16>
    %4 = vector.extract_strided_slice %2 {offsets = [0, 1, 0], sizes = [10, 8, 64], strides = [1, 1, 1]} : vector<10x10x64xbf16> to vector<10x8x64xbf16>
    %5 = vector.extract_strided_slice %2 {offsets = [0, 2, 0], sizes = [10, 8, 64], strides = [1, 1, 1]} : vector<10x10x64xbf16> to vector<10x8x64xbf16>
    %6 = tpu.concatenate %3, %4, %5 in 2 : vector<10x8x64xbf16>, vector<10x8x64xbf16>, vector<10x8x64xbf16> -> vector<10x8x192xbf16>
    %c0_5 = arith.constant 0 : index
    %c0_6 = arith.constant 0 : index
    %c0_7 = arith.constant 0 : index
    %7 = vector.load %arg5[%c0_5, %c0_6, %c0_7] : memref<10x8x192xbf16, #tpu.memory_space<vmem>>, vector<10x8x192xbf16>
    tpu.vector_store %arg5[%c0_5, %c0_6, %c0_7], %6 {strides = array<i32>} : memref<10x8x192xbf16, #tpu.memory_space<vmem>>, vector<10x8x192xbf16>,
    %c0_i32 = arith.constant 0 : i32
    %c8_i32 = arith.constant 8 : i32
    %8 = arith.addi %c0_i32, %c8_i32 : i32
    %c1_i32 = arith.constant 1 : i32
    scf.for %arg6 = %c0_i32 to %8 step %c1_i32  : i32 {
      %cst = arith.constant 0.000000e+00 : f32
      %9 = vector.broadcast %cst : f32 to vector<8x64xf32>
      %c0_i32_9 = arith.constant 0 : i32
      %10 = arith.addi %arg6, %c0_i32_9 : i32
      %11 = arith.index_cast %10 : i32 to index
      %c0_10 = arith.constant 0 : index
      %c0_11 = arith.constant 0 : index
      %12 = vector.load %arg5[%11, %c0_10, %c0_11] : memref<10x8x192xbf16, #tpu.memory_space<vmem>>, vector<1x8x192xbf16>
      %13 = vector.shape_cast %12 : vector<1x8x192xbf16> to vector<8x192xbf16>
      %c0_12 = arith.constant 0 : index
      %c0_13 = arith.constant 0 : index
      %c0_14 = arith.constant 0 : index
      %14 = vector.load %arg2[%c0_12, %c0_13, %c0_14] : memref<3x192x64xbf16, #tpu.memory_space<vmem>>, vector<1x192x64xbf16>
      %15 = vector.shape_cast %14 : vector<1x192x64xbf16> to vector<192x64xbf16>
      %cst_15 = arith.constant dense<0.000000e+00> : vector<8x64xf32>
      %16 = tpu.matmul %13, %15, %cst_15 {dimension_numbers = #tpu.dot_dimension_numbers<[1], [0], [0], [1], [0, 0, 1, 1], [], []>} : vector<8x192xbf16>, vector<192x64xbf16>, vector<8x64xf32> -> vector<8x64xf32>
      %17 = arith.addf %9, %16 : vector<8x64xf32>
      %c1_i32_16 = arith.constant 1 : i32
      %18 = arith.addi %arg6, %c1_i32_16 : i32
      %19 = arith.index_cast %18 : i32 to index
      %c0_17 = arith.constant 0 : index
      %c0_18 = arith.constant 0 : index
      %20 = vector.load %arg5[%19, %c0_17, %c0_18] : memref<10x8x192xbf16, #tpu.memory_space<vmem>>, vector<1x8x192xbf16>
      %21 = vector.shape_cast %20 : vector<1x8x192xbf16> to vector<8x192xbf16>
      %c1 = arith.constant 1 : index
      %c0_19 = arith.constant 0 : index
      %c0_20 = arith.constant 0 : index
      %22 = vector.load %arg2[%c1, %c0_19, %c0_20] : memref<3x192x64xbf16, #tpu.memory_space<vmem>>, vector<1x192x64xbf16>
      %23 = vector.shape_cast %22 : vector<1x192x64xbf16> to vector<192x64xbf16>
      %cst_21 = arith.constant dense<0.000000e+00> : vector<8x64xf32>
      %24 = tpu.matmul %21, %23, %cst_21 {dimension_numbers = #tpu.dot_dimension_numbers<[1], [0], [0], [1], [0, 0, 1, 1], [], []>} : vector<8x192xbf16>, vector<192x64xbf16>, vector<8x64xf32> -> vector<8x64xf32>
      %25 = arith.addf %17, %24 : vector<8x64xf32>
      %c2_i32 = arith.constant 2 : i32
      %26 = arith.addi %arg6, %c2_i32 : i32
      %27 = arith.index_cast %26 : i32 to index
      %c0_22 = arith.constant 0 : index
      %c0_23 = arith.constant 0 : index
      %28 = vector.load %arg5[%27, %c0_22, %c0_23] : memref<10x8x192xbf16, #tpu.memory_space<vmem>>, vector<1x8x192xbf16>
      %29 = vector.shape_cast %28 : vector<1x8x192xbf16> to vector<8x192xbf16>
      %c2 = arith.constant 2 : index
      %c0_24 = arith.constant 0 : index
      %c0_25 = arith.constant 0 : index
      %30 = vector.load %arg2[%c2, %c0_24, %c0_25] : memref<3x192x64xbf16, #tpu.memory_space<vmem>>, vector<1x192x64xbf16>
      %31 = vector.shape_cast %30 : vector<1x192x64xbf16> to vector<192x64xbf16>
      %cst_26 = arith.constant dense<0.000000e+00> : vector<8x64xf32>
      %32 = tpu.matmul %29, %31, %cst_26 {dimension_numbers = #tpu.dot_dimension_numbers<[1], [0], [0], [1], [0, 0, 1, 1], [], []>} : vector<8x192xbf16>, vector<192x64xbf16>, vector<8x64xf32> -> vector<8x64xf32>
      %33 = arith.addf %25, %32 : vector<8x64xf32>
      %34 = vector.broadcast %0 : vector<1x64xf32> to vector<8x64xf32>
      %35 = arith.addf %33, %34 : vector<8x64xf32>
      %cst_27 = arith.constant 0.000000e+00 : f32
      %36 = vector.broadcast %cst_27 : f32 to vector<8x64xf32>
      %37 = arith.maximumf %35, %36 : vector<8x64xf32>
      %38 = arith.truncf %37 : vector<8x64xf32> to vector<8x64xbf16>
      %c0_28 = arith.constant 0 : index
      %39 = arith.index_cast %arg6 : i32 to index
      %c0_29 = arith.constant 0 : index
      %c0_30 = arith.constant 0 : index
      %40 = vector.load %arg4[%c0_28, %39, %c0_29, %c0_30] : memref<1x8x8x64xbf16, #tpu.memory_space<vmem>>, vector<1x1x8x64xbf16>
      %41 = vector.shape_cast %40 : vector<1x1x8x64xbf16> to vector<8x64xbf16>
      %42 = vector.shape_cast %38 : vector<8x64xbf16> to vector<1x1x8x64xbf16>
      tpu.vector_store %arg4[%c0_28, %39, %c0_29, %c0_30], %42 {strides = array<i32>} : memref<1x8x8x64xbf16, #tpu.memory_space<vmem>>, vector<1x1x8x64xbf16>,
    }
    %c8_i32_8 = arith.constant 8 : i32
    return
  }
  func.func @transform_0(%arg0: i32) -> (i32, i32, i32, i32) {
    %c0_i32 = arith.constant 0 : i32
    %c0_i32_0 = arith.constant 0 : i32
    %c0_i32_1 = arith.constant 0 : i32
    %c0_i32_2 = arith.constant 0 : i32
    return %arg0, %c0_i32, %c0_i32_0, %c0_i32_1 : i32, i32, i32, i32
  }
  func.func @transform_1(%arg0: i32) -> (i32, i32, i32) {
    %c0_i32 = arith.constant 0 : i32
    %c0_i32_0 = arith.constant 0 : i32
    %c0_i32_1 = arith.constant 0 : i32
    %c0_i32_2 = arith.constant 0 : i32
    return %c0_i32, %c0_i32_0, %c0_i32_1 : i32, i32, i32
  }
  func.func @transform_2(%arg0: i32) -> (i32, i32) {
    %c0_i32 = arith.constant 0 : i32
    %c0_i32_0 = arith.constant 0 : i32
    %c0_i32_1 = arith.constant 0 : i32
    return %c0_i32, %c0_i32_0 : i32, i32
  }
  func.func @transform_3(%arg0: i32) -> (i32, i32, i32, i32) {
    %c0_i32 = arith.constant 0 : i32
    %c0_i32_0 = arith.constant 0 : i32
    %c0_i32_1 = arith.constant 0 : i32
    %c0_i32_2 = arith.constant 0 : i32
    return %arg0, %c0_i32, %c0_i32_0, %c0_i32_1 : i32, i32, i32, i32
  }
}

module attributes {stable_mosaic.version = 11 : i64} {
  func.func @_conv3x3_kernel(%arg0: i32, %arg1: memref<1x10x10x64xbf16, #tpu.memory_space<vmem>>, %arg2: memref<3x192x64xbf16, #tpu.memory_space<vmem>>, %arg3: memref<1x64xf32, #tpu.memory_space<vmem>>, %arg4: memref<1x4x4x64xbf16, #tpu.memory_space<vmem>>, %arg5: memref<10x8x192xbf16, #tpu.memory_space<vmem>>) attributes {dimension_semantics = [#tpu.dimension_semantics<parallel>], iteration_bounds = array<i64: 2>, scalar_prefetch = 0 : i64, scratch_operands = 1 : i64, tpu.core_type = #tpu.core_type<tc>, window_params = [{transform_indices = @transform_0, window_bounds = array<i64: 1, 10, 10, 64>}, {pipeline_mode = #tpu.pipeline_mode<synchronous>, transform_indices = @transform_1, window_bounds = array<i64: 3, 192, 64>}, {pipeline_mode = #tpu.pipeline_mode<synchronous>, transform_indices = @transform_2, window_bounds = array<i64: 1, 64>}, {transform_indices = @transform_3, window_bounds = array<i64: 1, 4, 4, 64>}]} {
    %c0 = arith.constant 0 : index
    %c0_0 = arith.constant 0 : index
    %0 = vector.load %arg3[%c0, %c0_0] : memref<1x64xf32, #tpu.memory_space<vmem>>, vector<1x64xf32>
    %c0_1 = arith.constant 0 : index
    %c0_2 = arith.constant 0 : index
    %c0_3 = arith.constant 0 : index
    %c0_4 = arith.constant 0 : index
    %1 = vector.load %arg1[%c0_1, %c0_2, %c0_3, %c0_4] : memref<1x10x10x64xbf16, #tpu.memory_space<vmem>>, vector<1x10x10x64xbf16>
    %2 = vector.shape_cast %1 : vector<1x10x10x64xbf16> to vector<10x10x64xbf16>
    %3 = vector.extract_strided_slice %2 {offsets = [0, 0, 0], sizes = [10, 8, 64], strides = [1, 1, 1]} : vector<10x10x64xbf16> to vector<10x8x64xbf16>
    %4 = vector.extract_strided_slice %2 {offsets = [0, 1, 0], sizes = [10, 8, 64], strides = [1, 1, 1]} : vector<10x10x64xbf16> to vector<10x8x64xbf16>
    %5 = vector.extract_strided_slice %2 {offsets = [0, 2, 0], sizes = [10, 8, 64], strides = [1, 1, 1]} : vector<10x10x64xbf16> to vector<10x8x64xbf16>
    %6 = tpu.concatenate %3, %4, %5 in 2 : vector<10x8x64xbf16>, vector<10x8x64xbf16>, vector<10x8x64xbf16> -> vector<10x8x192xbf16>
    %c0_5 = arith.constant 0 : index
    %c0_6 = arith.constant 0 : index
    %c0_7 = arith.constant 0 : index
    %7 = vector.load %arg5[%c0_5, %c0_6, %c0_7] : memref<10x8x192xbf16, #tpu.memory_space<vmem>>, vector<10x8x192xbf16>
    tpu.vector_store %arg5[%c0_5, %c0_6, %c0_7], %6 {strides = array<i32>} : memref<10x8x192xbf16, #tpu.memory_space<vmem>>, vector<10x8x192xbf16>,
    %8 = tpu.iota {dimensions = array<i32: 0>} : vector<4x8xi32>
    %9 = tpu.iota {dimensions = array<i32: 1>} : vector<4x8xi32>
    %c2_i32 = arith.constant 2 : i32
    %10 = vector.broadcast %c2_i32 : i32 to vector<4x8xi32>
    %11 = arith.muli %10, %8 : vector<4x8xi32>
    %12 = arith.cmpi eq, %9, %11 : vector<4x8xi32>
    %13 = arith.extui %12 : vector<4x8xi1> to vector<4x8xi32>
    %14 = arith.sitofp %13 : vector<4x8xi32> to vector<4x8xf32>
    %c2_i32_8 = arith.constant 2 : i32
    %15 = vector.broadcast %c2_i32_8 : i32 to vector<4x8xi32>
    %16 = arith.muli %15, %8 : vector<4x8xi32>
    %c1_i32 = arith.constant 1 : i32
    %17 = vector.broadcast %c1_i32 : i32 to vector<4x8xi32>
    %18 = arith.addi %16, %17 : vector<4x8xi32>
    %19 = arith.cmpi eq, %9, %18 : vector<4x8xi32>
    %20 = arith.extui %19 : vector<4x8xi1> to vector<4x8xi32>
    %21 = arith.sitofp %20 : vector<4x8xi32> to vector<4x8xf32>
    %c0_i32 = arith.constant 0 : i32
    %c4_i32 = arith.constant 4 : i32
    %22 = arith.addi %c0_i32, %c4_i32 : i32
    %c1_i32_9 = arith.constant 1 : i32
    scf.for %arg6 = %c0_i32 to %22 step %c1_i32_9  : i32 {
      %c2_i32_11 = arith.constant 2 : i32
      %23 = arith.muli %c2_i32_11, %arg6 : i32
      %cst = arith.constant 0.000000e+00 : f32
      %24 = vector.broadcast %cst : f32 to vector<8x64xf32>
      %c0_i32_12 = arith.constant 0 : i32
      %25 = arith.addi %23, %c0_i32_12 : i32
      %26 = arith.index_cast %25 : i32 to index
      %c0_13 = arith.constant 0 : index
      %c0_14 = arith.constant 0 : index
      %27 = vector.load %arg5[%26, %c0_13, %c0_14] : memref<10x8x192xbf16, #tpu.memory_space<vmem>>, vector<1x8x192xbf16>
      %28 = vector.shape_cast %27 : vector<1x8x192xbf16> to vector<8x192xbf16>
      %c0_15 = arith.constant 0 : index
      %c0_16 = arith.constant 0 : index
      %c0_17 = arith.constant 0 : index
      %29 = vector.load %arg2[%c0_15, %c0_16, %c0_17] : memref<3x192x64xbf16, #tpu.memory_space<vmem>>, vector<1x192x64xbf16>
      %30 = vector.shape_cast %29 : vector<1x192x64xbf16> to vector<192x64xbf16>
      %cst_18 = arith.constant dense<0.000000e+00> : vector<8x64xf32>
      %31 = tpu.matmul %28, %30, %cst_18 {dimension_numbers = #tpu.dot_dimension_numbers<[1], [0], [0], [1], [0, 0, 1, 1], [], []>} : vector<8x192xbf16>, vector<192x64xbf16>, vector<8x64xf32> -> vector<8x64xf32>
      %32 = arith.addf %24, %31 : vector<8x64xf32>
      %c1_i32_19 = arith.constant 1 : i32
      %33 = arith.addi %23, %c1_i32_19 : i32
      %34 = arith.index_cast %33 : i32 to index
      %c0_20 = arith.constant 0 : index
      %c0_21 = arith.constant 0 : index
      %35 = vector.load %arg5[%34, %c0_20, %c0_21] : memref<10x8x192xbf16, #tpu.memory_space<vmem>>, vector<1x8x192xbf16>
      %36 = vector.shape_cast %35 : vector<1x8x192xbf16> to vector<8x192xbf16>
      %c1 = arith.constant 1 : index
      %c0_22 = arith.constant 0 : index
      %c0_23 = arith.constant 0 : index
      %37 = vector.load %arg2[%c1, %c0_22, %c0_23] : memref<3x192x64xbf16, #tpu.memory_space<vmem>>, vector<1x192x64xbf16>
      %38 = vector.shape_cast %37 : vector<1x192x64xbf16> to vector<192x64xbf16>
      %cst_24 = arith.constant dense<0.000000e+00> : vector<8x64xf32>
      %39 = tpu.matmul %36, %38, %cst_24 {dimension_numbers = #tpu.dot_dimension_numbers<[1], [0], [0], [1], [0, 0, 1, 1], [], []>} : vector<8x192xbf16>, vector<192x64xbf16>, vector<8x64xf32> -> vector<8x64xf32>
      %40 = arith.addf %32, %39 : vector<8x64xf32>
      %c2_i32_25 = arith.constant 2 : i32
      %41 = arith.addi %23, %c2_i32_25 : i32
      %42 = arith.index_cast %41 : i32 to index
      %c0_26 = arith.constant 0 : index
      %c0_27 = arith.constant 0 : index
      %43 = vector.load %arg5[%42, %c0_26, %c0_27] : memref<10x8x192xbf16, #tpu.memory_space<vmem>>, vector<1x8x192xbf16>
      %44 = vector.shape_cast %43 : vector<1x8x192xbf16> to vector<8x192xbf16>
      %c2 = arith.constant 2 : index
      %c0_28 = arith.constant 0 : index
      %c0_29 = arith.constant 0 : index
      %45 = vector.load %arg2[%c2, %c0_28, %c0_29] : memref<3x192x64xbf16, #tpu.memory_space<vmem>>, vector<1x192x64xbf16>
      %46 = vector.shape_cast %45 : vector<1x192x64xbf16> to vector<192x64xbf16>
      %cst_30 = arith.constant dense<0.000000e+00> : vector<8x64xf32>
      %47 = tpu.matmul %44, %46, %cst_30 {dimension_numbers = #tpu.dot_dimension_numbers<[1], [0], [0], [1], [0, 0, 1, 1], [], []>} : vector<8x192xbf16>, vector<192x64xbf16>, vector<8x64xf32> -> vector<8x64xf32>
      %48 = arith.addf %40, %47 : vector<8x64xf32>
      %49 = vector.broadcast %0 : vector<1x64xf32> to vector<8x64xf32>
      %50 = arith.addf %48, %49 : vector<8x64xf32>
      %cst_31 = arith.constant 0.000000e+00 : f32
      %51 = vector.broadcast %cst_31 : f32 to vector<8x64xf32>
      %52 = arith.maximumf %50, %51 : vector<8x64xf32>
      %c2_i32_32 = arith.constant 2 : i32
      %53 = arith.muli %c2_i32_32, %arg6 : i32
      %c1_i32_33 = arith.constant 1 : i32
      %54 = arith.addi %53, %c1_i32_33 : i32
      %cst_34 = arith.constant 0.000000e+00 : f32
      %55 = vector.broadcast %cst_34 : f32 to vector<8x64xf32>
      %c0_i32_35 = arith.constant 0 : i32
      %56 = arith.addi %54, %c0_i32_35 : i32
      %57 = arith.index_cast %56 : i32 to index
      %c0_36 = arith.constant 0 : index
      %c0_37 = arith.constant 0 : index
      %58 = vector.load %arg5[%57, %c0_36, %c0_37] : memref<10x8x192xbf16, #tpu.memory_space<vmem>>, vector<1x8x192xbf16>
      %59 = vector.shape_cast %58 : vector<1x8x192xbf16> to vector<8x192xbf16>
      %c0_38 = arith.constant 0 : index
      %c0_39 = arith.constant 0 : index
      %c0_40 = arith.constant 0 : index
      %60 = vector.load %arg2[%c0_38, %c0_39, %c0_40] : memref<3x192x64xbf16, #tpu.memory_space<vmem>>, vector<1x192x64xbf16>
      %61 = vector.shape_cast %60 : vector<1x192x64xbf16> to vector<192x64xbf16>
      %cst_41 = arith.constant dense<0.000000e+00> : vector<8x64xf32>
      %62 = tpu.matmul %59, %61, %cst_41 {dimension_numbers = #tpu.dot_dimension_numbers<[1], [0], [0], [1], [0, 0, 1, 1], [], []>} : vector<8x192xbf16>, vector<192x64xbf16>, vector<8x64xf32> -> vector<8x64xf32>
      %63 = arith.addf %55, %62 : vector<8x64xf32>
      %c1_i32_42 = arith.constant 1 : i32
      %64 = arith.addi %54, %c1_i32_42 : i32
      %65 = arith.index_cast %64 : i32 to index
      %c0_43 = arith.constant 0 : index
      %c0_44 = arith.constant 0 : index
      %66 = vector.load %arg5[%65, %c0_43, %c0_44] : memref<10x8x192xbf16, #tpu.memory_space<vmem>>, vector<1x8x192xbf16>
      %67 = vector.shape_cast %66 : vector<1x8x192xbf16> to vector<8x192xbf16>
      %c1_45 = arith.constant 1 : index
      %c0_46 = arith.constant 0 : index
      %c0_47 = arith.constant 0 : index
      %68 = vector.load %arg2[%c1_45, %c0_46, %c0_47] : memref<3x192x64xbf16, #tpu.memory_space<vmem>>, vector<1x192x64xbf16>
      %69 = vector.shape_cast %68 : vector<1x192x64xbf16> to vector<192x64xbf16>
      %cst_48 = arith.constant dense<0.000000e+00> : vector<8x64xf32>
      %70 = tpu.matmul %67, %69, %cst_48 {dimension_numbers = #tpu.dot_dimension_numbers<[1], [0], [0], [1], [0, 0, 1, 1], [], []>} : vector<8x192xbf16>, vector<192x64xbf16>, vector<8x64xf32> -> vector<8x64xf32>
      %71 = arith.addf %63, %70 : vector<8x64xf32>
      %c2_i32_49 = arith.constant 2 : i32
      %72 = arith.addi %54, %c2_i32_49 : i32
      %73 = arith.index_cast %72 : i32 to index
      %c0_50 = arith.constant 0 : index
      %c0_51 = arith.constant 0 : index
      %74 = vector.load %arg5[%73, %c0_50, %c0_51] : memref<10x8x192xbf16, #tpu.memory_space<vmem>>, vector<1x8x192xbf16>
      %75 = vector.shape_cast %74 : vector<1x8x192xbf16> to vector<8x192xbf16>
      %c2_52 = arith.constant 2 : index
      %c0_53 = arith.constant 0 : index
      %c0_54 = arith.constant 0 : index
      %76 = vector.load %arg2[%c2_52, %c0_53, %c0_54] : memref<3x192x64xbf16, #tpu.memory_space<vmem>>, vector<1x192x64xbf16>
      %77 = vector.shape_cast %76 : vector<1x192x64xbf16> to vector<192x64xbf16>
      %cst_55 = arith.constant dense<0.000000e+00> : vector<8x64xf32>
      %78 = tpu.matmul %75, %77, %cst_55 {dimension_numbers = #tpu.dot_dimension_numbers<[1], [0], [0], [1], [0, 0, 1, 1], [], []>} : vector<8x192xbf16>, vector<192x64xbf16>, vector<8x64xf32> -> vector<8x64xf32>
      %79 = arith.addf %71, %78 : vector<8x64xf32>
      %80 = vector.broadcast %0 : vector<1x64xf32> to vector<8x64xf32>
      %81 = arith.addf %79, %80 : vector<8x64xf32>
      %cst_56 = arith.constant 0.000000e+00 : f32
      %82 = vector.broadcast %cst_56 : f32 to vector<8x64xf32>
      %83 = arith.maximumf %81, %82 : vector<8x64xf32>
      %84 = arith.maximumf %52, %83 : vector<8x64xf32>
      %cst_57 = arith.constant dense<0.000000e+00> : vector<4x64xf32>
      %85 = tpu.matmul %14, %84, %cst_57 {dimension_numbers = #tpu.dot_dimension_numbers<[1], [0], [0], [1], [0, 0, 1, 1], [], []>} : vector<4x8xf32>, vector<8x64xf32>, vector<4x64xf32> -> vector<4x64xf32>
      %cst_58 = arith.constant dense<0.000000e+00> : vector<4x64xf32>
      %86 = tpu.matmul %21, %84, %cst_58 {dimension_numbers = #tpu.dot_dimension_numbers<[1], [0], [0], [1], [0, 0, 1, 1], [], []>} : vector<4x8xf32>, vector<8x64xf32>, vector<4x64xf32> -> vector<4x64xf32>
      %87 = arith.maximumf %85, %86 : vector<4x64xf32>
      %88 = arith.truncf %87 : vector<4x64xf32> to vector<4x64xbf16>
      %c0_59 = arith.constant 0 : index
      %89 = arith.index_cast %arg6 : i32 to index
      %c0_60 = arith.constant 0 : index
      %c0_61 = arith.constant 0 : index
      %90 = vector.load %arg4[%c0_59, %89, %c0_60, %c0_61] : memref<1x4x4x64xbf16, #tpu.memory_space<vmem>>, vector<1x1x4x64xbf16>
      %91 = vector.shape_cast %90 : vector<1x1x4x64xbf16> to vector<4x64xbf16>
      %92 = vector.shape_cast %88 : vector<4x64xbf16> to vector<1x1x4x64xbf16>
      tpu.vector_store %arg4[%c0_59, %89, %c0_60, %c0_61], %92 {strides = array<i32>} : memref<1x4x4x64xbf16, #tpu.memory_space<vmem>>, vector<1x1x4x64xbf16>,
    }
    %c4_i32_10 = arith.constant 4 : i32
    return
  }
  func.func @transform_0(%arg0: i32) -> (i32, i32, i32, i32) {
    %c0_i32 = arith.constant 0 : i32
    %c0_i32_0 = arith.constant 0 : i32
    %c0_i32_1 = arith.constant 0 : i32
    %c0_i32_2 = arith.constant 0 : i32
    return %arg0, %c0_i32, %c0_i32_0, %c0_i32_1 : i32, i32, i32, i32
  }
  func.func @transform_1(%arg0: i32) -> (i32, i32, i32) {
    %c0_i32 = arith.constant 0 : i32
    %c0_i32_0 = arith.constant 0 : i32
    %c0_i32_1 = arith.constant 0 : i32
    %c0_i32_2 = arith.constant 0 : i32
    return %c0_i32, %c0_i32_0, %c0_i32_1 : i32, i32, i32
  }
  func.func @transform_2(%arg0: i32) -> (i32, i32) {
    %c0_i32 = arith.constant 0 : i32
    %c0_i32_0 = arith.constant 0 : i32
    %c0_i32_1 = arith.constant 0 : i32
    return %c0_i32, %c0_i32_0 : i32, i32
  }
  func.func @transform_3(%arg0: i32) -> (i32, i32, i32, i32) {
    %c0_i32 = arith.constant 0 : i32
    %c0_i32_0 = arith.constant 0 : i32
    %c0_i32_1 = arith.constant 0 : i32
    %c0_i32_2 = arith.constant 0 : i32
    return %arg0, %c0_i32, %c0_i32_0, %c0_i32_1 : i32, i32, i32, i32
  }
}

module attributes {stable_mosaic.version = 11 : i64} {
  func.func @_conv3x3_kernel(%arg0: i32, %arg1: memref<1x6x6x64xbf16, #tpu.memory_space<vmem>>, %arg2: memref<3x192x128xbf16, #tpu.memory_space<vmem>>, %arg3: memref<1x128xf32, #tpu.memory_space<vmem>>, %arg4: memref<1x4x4x128xbf16, #tpu.memory_space<vmem>>, %arg5: memref<6x4x192xbf16, #tpu.memory_space<vmem>>) attributes {dimension_semantics = [#tpu.dimension_semantics<parallel>], iteration_bounds = array<i64: 2>, scalar_prefetch = 0 : i64, scratch_operands = 1 : i64, tpu.core_type = #tpu.core_type<tc>, window_params = [{transform_indices = @transform_0, window_bounds = array<i64: 1, 6, 6, 64>}, {pipeline_mode = #tpu.pipeline_mode<synchronous>, transform_indices = @transform_1, window_bounds = array<i64: 3, 192, 128>}, {pipeline_mode = #tpu.pipeline_mode<synchronous>, transform_indices = @transform_2, window_bounds = array<i64: 1, 128>}, {transform_indices = @transform_3, window_bounds = array<i64: 1, 4, 4, 128>}]} {
    %c0 = arith.constant 0 : index
    %c0_0 = arith.constant 0 : index
    %0 = vector.load %arg3[%c0, %c0_0] : memref<1x128xf32, #tpu.memory_space<vmem>>, vector<1x128xf32>
    %c0_1 = arith.constant 0 : index
    %c0_2 = arith.constant 0 : index
    %c0_3 = arith.constant 0 : index
    %c0_4 = arith.constant 0 : index
    %1 = vector.load %arg1[%c0_1, %c0_2, %c0_3, %c0_4] : memref<1x6x6x64xbf16, #tpu.memory_space<vmem>>, vector<1x6x6x64xbf16>
    %2 = vector.shape_cast %1 : vector<1x6x6x64xbf16> to vector<6x6x64xbf16>
    %3 = vector.extract_strided_slice %2 {offsets = [0, 0, 0], sizes = [6, 4, 64], strides = [1, 1, 1]} : vector<6x6x64xbf16> to vector<6x4x64xbf16>
    %4 = vector.extract_strided_slice %2 {offsets = [0, 1, 0], sizes = [6, 4, 64], strides = [1, 1, 1]} : vector<6x6x64xbf16> to vector<6x4x64xbf16>
    %5 = vector.extract_strided_slice %2 {offsets = [0, 2, 0], sizes = [6, 4, 64], strides = [1, 1, 1]} : vector<6x6x64xbf16> to vector<6x4x64xbf16>
    %6 = tpu.concatenate %3, %4, %5 in 2 : vector<6x4x64xbf16>, vector<6x4x64xbf16>, vector<6x4x64xbf16> -> vector<6x4x192xbf16>
    %c0_5 = arith.constant 0 : index
    %c0_6 = arith.constant 0 : index
    %c0_7 = arith.constant 0 : index
    %7 = vector.load %arg5[%c0_5, %c0_6, %c0_7] : memref<6x4x192xbf16, #tpu.memory_space<vmem>>, vector<6x4x192xbf16>
    tpu.vector_store %arg5[%c0_5, %c0_6, %c0_7], %6 {strides = array<i32>} : memref<6x4x192xbf16, #tpu.memory_space<vmem>>, vector<6x4x192xbf16>,
    %c0_i32 = arith.constant 0 : i32
    %c4_i32 = arith.constant 4 : i32
    %8 = arith.addi %c0_i32, %c4_i32 : i32
    %c1_i32 = arith.constant 1 : i32
    scf.for %arg6 = %c0_i32 to %8 step %c1_i32  : i32 {
      %cst = arith.constant 0.000000e+00 : f32
      %9 = vector.broadcast %cst : f32 to vector<4x128xf32>
      %c0_i32_9 = arith.constant 0 : i32
      %10 = arith.addi %arg6, %c0_i32_9 : i32
      %11 = arith.index_cast %10 : i32 to index
      %c0_10 = arith.constant 0 : index
      %c0_11 = arith.constant 0 : index
      %12 = vector.load %arg5[%11, %c0_10, %c0_11] : memref<6x4x192xbf16, #tpu.memory_space<vmem>>, vector<1x4x192xbf16>
      %13 = vector.shape_cast %12 : vector<1x4x192xbf16> to vector<4x192xbf16>
      %c0_12 = arith.constant 0 : index
      %c0_13 = arith.constant 0 : index
      %c0_14 = arith.constant 0 : index
      %14 = vector.load %arg2[%c0_12, %c0_13, %c0_14] : memref<3x192x128xbf16, #tpu.memory_space<vmem>>, vector<1x192x128xbf16>
      %15 = vector.shape_cast %14 : vector<1x192x128xbf16> to vector<192x128xbf16>
      %cst_15 = arith.constant dense<0.000000e+00> : vector<4x128xf32>
      %16 = tpu.matmul %13, %15, %cst_15 {dimension_numbers = #tpu.dot_dimension_numbers<[1], [0], [0], [1], [0, 0, 1, 1], [], []>} : vector<4x192xbf16>, vector<192x128xbf16>, vector<4x128xf32> -> vector<4x128xf32>
      %17 = arith.addf %9, %16 : vector<4x128xf32>
      %c1_i32_16 = arith.constant 1 : i32
      %18 = arith.addi %arg6, %c1_i32_16 : i32
      %19 = arith.index_cast %18 : i32 to index
      %c0_17 = arith.constant 0 : index
      %c0_18 = arith.constant 0 : index
      %20 = vector.load %arg5[%19, %c0_17, %c0_18] : memref<6x4x192xbf16, #tpu.memory_space<vmem>>, vector<1x4x192xbf16>
      %21 = vector.shape_cast %20 : vector<1x4x192xbf16> to vector<4x192xbf16>
      %c1 = arith.constant 1 : index
      %c0_19 = arith.constant 0 : index
      %c0_20 = arith.constant 0 : index
      %22 = vector.load %arg2[%c1, %c0_19, %c0_20] : memref<3x192x128xbf16, #tpu.memory_space<vmem>>, vector<1x192x128xbf16>
      %23 = vector.shape_cast %22 : vector<1x192x128xbf16> to vector<192x128xbf16>
      %cst_21 = arith.constant dense<0.000000e+00> : vector<4x128xf32>
      %24 = tpu.matmul %21, %23, %cst_21 {dimension_numbers = #tpu.dot_dimension_numbers<[1], [0], [0], [1], [0, 0, 1, 1], [], []>} : vector<4x192xbf16>, vector<192x128xbf16>, vector<4x128xf32> -> vector<4x128xf32>
      %25 = arith.addf %17, %24 : vector<4x128xf32>
      %c2_i32 = arith.constant 2 : i32
      %26 = arith.addi %arg6, %c2_i32 : i32
      %27 = arith.index_cast %26 : i32 to index
      %c0_22 = arith.constant 0 : index
      %c0_23 = arith.constant 0 : index
      %28 = vector.load %arg5[%27, %c0_22, %c0_23] : memref<6x4x192xbf16, #tpu.memory_space<vmem>>, vector<1x4x192xbf16>
      %29 = vector.shape_cast %28 : vector<1x4x192xbf16> to vector<4x192xbf16>
      %c2 = arith.constant 2 : index
      %c0_24 = arith.constant 0 : index
      %c0_25 = arith.constant 0 : index
      %30 = vector.load %arg2[%c2, %c0_24, %c0_25] : memref<3x192x128xbf16, #tpu.memory_space<vmem>>, vector<1x192x128xbf16>
      %31 = vector.shape_cast %30 : vector<1x192x128xbf16> to vector<192x128xbf16>
      %cst_26 = arith.constant dense<0.000000e+00> : vector<4x128xf32>
      %32 = tpu.matmul %29, %31, %cst_26 {dimension_numbers = #tpu.dot_dimension_numbers<[1], [0], [0], [1], [0, 0, 1, 1], [], []>} : vector<4x192xbf16>, vector<192x128xbf16>, vector<4x128xf32> -> vector<4x128xf32>
      %33 = arith.addf %25, %32 : vector<4x128xf32>
      %34 = vector.broadcast %0 : vector<1x128xf32> to vector<4x128xf32>
      %35 = arith.addf %33, %34 : vector<4x128xf32>
      %cst_27 = arith.constant 0.000000e+00 : f32
      %36 = vector.broadcast %cst_27 : f32 to vector<4x128xf32>
      %37 = arith.maximumf %35, %36 : vector<4x128xf32>
      %38 = arith.truncf %37 : vector<4x128xf32> to vector<4x128xbf16>
      %c0_28 = arith.constant 0 : index
      %39 = arith.index_cast %arg6 : i32 to index
      %c0_29 = arith.constant 0 : index
      %c0_30 = arith.constant 0 : index
      %40 = vector.load %arg4[%c0_28, %39, %c0_29, %c0_30] : memref<1x4x4x128xbf16, #tpu.memory_space<vmem>>, vector<1x1x4x128xbf16>
      %41 = vector.shape_cast %40 : vector<1x1x4x128xbf16> to vector<4x128xbf16>
      %42 = vector.shape_cast %38 : vector<4x128xbf16> to vector<1x1x4x128xbf16>
      tpu.vector_store %arg4[%c0_28, %39, %c0_29, %c0_30], %42 {strides = array<i32>} : memref<1x4x4x128xbf16, #tpu.memory_space<vmem>>, vector<1x1x4x128xbf16>,
    }
    %c4_i32_8 = arith.constant 4 : i32
    return
  }
  func.func @transform_0(%arg0: i32) -> (i32, i32, i32, i32) {
    %c0_i32 = arith.constant 0 : i32
    %c0_i32_0 = arith.constant 0 : i32
    %c0_i32_1 = arith.constant 0 : i32
    %c0_i32_2 = arith.constant 0 : i32
    return %arg0, %c0_i32, %c0_i32_0, %c0_i32_1 : i32, i32, i32, i32
  }
  func.func @transform_1(%arg0: i32) -> (i32, i32, i32) {
    %c0_i32 = arith.constant 0 : i32
    %c0_i32_0 = arith.constant 0 : i32
    %c0_i32_1 = arith.constant 0 : i32
    %c0_i32_2 = arith.constant 0 : i32
    return %c0_i32, %c0_i32_0, %c0_i32_1 : i32, i32, i32
  }
  func.func @transform_2(%arg0: i32) -> (i32, i32) {
    %c0_i32 = arith.constant 0 : i32
    %c0_i32_0 = arith.constant 0 : i32
    %c0_i32_1 = arith.constant 0 : i32
    return %c0_i32, %c0_i32_0 : i32, i32
  }
  func.func @transform_3(%arg0: i32) -> (i32, i32, i32, i32) {
    %c0_i32 = arith.constant 0 : i32
    %c0_i32_0 = arith.constant 0 : i32
    %c0_i32_1 = arith.constant 0 : i32
    %c0_i32_2 = arith.constant 0 : i32
    return %arg0, %c0_i32, %c0_i32_0, %c0_i32_1 : i32, i32, i32, i32
  }
}

module attributes {stable_mosaic.version = 11 : i64} {
  func.func @_conv3x3_kernel(%arg0: i32, %arg1: memref<1x6x6x128xbf16, #tpu.memory_space<vmem>>, %arg2: memref<3x384x128xbf16, #tpu.memory_space<vmem>>, %arg3: memref<1x128xf32, #tpu.memory_space<vmem>>, %arg4: memref<1x2x2x128xbf16, #tpu.memory_space<vmem>>, %arg5: memref<6x4x384xbf16, #tpu.memory_space<vmem>>) attributes {dimension_semantics = [#tpu.dimension_semantics<parallel>], iteration_bounds = array<i64: 2>, scalar_prefetch = 0 : i64, scratch_operands = 1 : i64, tpu.core_type = #tpu.core_type<tc>, window_params = [{transform_indices = @transform_0, window_bounds = array<i64: 1, 6, 6, 128>}, {pipeline_mode = #tpu.pipeline_mode<synchronous>, transform_indices = @transform_1, window_bounds = array<i64: 3, 384, 128>}, {pipeline_mode = #tpu.pipeline_mode<synchronous>, transform_indices = @transform_2, window_bounds = array<i64: 1, 128>}, {transform_indices = @transform_3, window_bounds = array<i64: 1, 2, 2, 128>}]} {
    %c0 = arith.constant 0 : index
    %c0_0 = arith.constant 0 : index
    %0 = vector.load %arg3[%c0, %c0_0] : memref<1x128xf32, #tpu.memory_space<vmem>>, vector<1x128xf32>
    %c0_1 = arith.constant 0 : index
    %c0_2 = arith.constant 0 : index
    %c0_3 = arith.constant 0 : index
    %c0_4 = arith.constant 0 : index
    %1 = vector.load %arg1[%c0_1, %c0_2, %c0_3, %c0_4] : memref<1x6x6x128xbf16, #tpu.memory_space<vmem>>, vector<1x6x6x128xbf16>
    %2 = vector.shape_cast %1 : vector<1x6x6x128xbf16> to vector<6x6x128xbf16>
    %3 = vector.extract_strided_slice %2 {offsets = [0, 0, 0], sizes = [6, 4, 128], strides = [1, 1, 1]} : vector<6x6x128xbf16> to vector<6x4x128xbf16>
    %4 = vector.extract_strided_slice %2 {offsets = [0, 1, 0], sizes = [6, 4, 128], strides = [1, 1, 1]} : vector<6x6x128xbf16> to vector<6x4x128xbf16>
    %5 = vector.extract_strided_slice %2 {offsets = [0, 2, 0], sizes = [6, 4, 128], strides = [1, 1, 1]} : vector<6x6x128xbf16> to vector<6x4x128xbf16>
    %6 = tpu.concatenate %3, %4, %5 in 2 : vector<6x4x128xbf16>, vector<6x4x128xbf16>, vector<6x4x128xbf16> -> vector<6x4x384xbf16>
    %c0_5 = arith.constant 0 : index
    %c0_6 = arith.constant 0 : index
    %c0_7 = arith.constant 0 : index
    %7 = vector.load %arg5[%c0_5, %c0_6, %c0_7] : memref<6x4x384xbf16, #tpu.memory_space<vmem>>, vector<6x4x384xbf16>
    tpu.vector_store %arg5[%c0_5, %c0_6, %c0_7], %6 {strides = array<i32>} : memref<6x4x384xbf16, #tpu.memory_space<vmem>>, vector<6x4x384xbf16>,
    %8 = tpu.iota {dimensions = array<i32: 0>} : vector<2x4xi32>
    %9 = tpu.iota {dimensions = array<i32: 1>} : vector<2x4xi32>
    %c2_i32 = arith.constant 2 : i32
    %10 = vector.broadcast %c2_i32 : i32 to vector<2x4xi32>
    %11 = arith.muli %10, %8 : vector<2x4xi32>
    %12 = arith.cmpi eq, %9, %11 : vector<2x4xi32>
    %13 = arith.extui %12 : vector<2x4xi1> to vector<2x4xi32>
    %14 = arith.sitofp %13 : vector<2x4xi32> to vector<2x4xf32>
    %c2_i32_8 = arith.constant 2 : i32
    %15 = vector.broadcast %c2_i32_8 : i32 to vector<2x4xi32>
    %16 = arith.muli %15, %8 : vector<2x4xi32>
    %c1_i32 = arith.constant 1 : i32
    %17 = vector.broadcast %c1_i32 : i32 to vector<2x4xi32>
    %18 = arith.addi %16, %17 : vector<2x4xi32>
    %19 = arith.cmpi eq, %9, %18 : vector<2x4xi32>
    %20 = arith.extui %19 : vector<2x4xi1> to vector<2x4xi32>
    %21 = arith.sitofp %20 : vector<2x4xi32> to vector<2x4xf32>
    %c0_i32 = arith.constant 0 : i32
    %c2_i32_9 = arith.constant 2 : i32
    %22 = arith.addi %c0_i32, %c2_i32_9 : i32
    %c1_i32_10 = arith.constant 1 : i32
    scf.for %arg6 = %c0_i32 to %22 step %c1_i32_10  : i32 {
      %c2_i32_12 = arith.constant 2 : i32
      %23 = arith.muli %c2_i32_12, %arg6 : i32
      %cst = arith.constant 0.000000e+00 : f32
      %24 = vector.broadcast %cst : f32 to vector<4x128xf32>
      %c0_i32_13 = arith.constant 0 : i32
      %25 = arith.addi %23, %c0_i32_13 : i32
      %26 = arith.index_cast %25 : i32 to index
      %c0_14 = arith.constant 0 : index
      %c0_15 = arith.constant 0 : index
      %27 = vector.load %arg5[%26, %c0_14, %c0_15] : memref<6x4x384xbf16, #tpu.memory_space<vmem>>, vector<1x4x384xbf16>
      %28 = vector.shape_cast %27 : vector<1x4x384xbf16> to vector<4x384xbf16>
      %c0_16 = arith.constant 0 : index
      %c0_17 = arith.constant 0 : index
      %c0_18 = arith.constant 0 : index
      %29 = vector.load %arg2[%c0_16, %c0_17, %c0_18] : memref<3x384x128xbf16, #tpu.memory_space<vmem>>, vector<1x384x128xbf16>
      %30 = vector.shape_cast %29 : vector<1x384x128xbf16> to vector<384x128xbf16>
      %cst_19 = arith.constant dense<0.000000e+00> : vector<4x128xf32>
      %31 = tpu.matmul %28, %30, %cst_19 {dimension_numbers = #tpu.dot_dimension_numbers<[1], [0], [0], [1], [0, 0, 1, 1], [], []>} : vector<4x384xbf16>, vector<384x128xbf16>, vector<4x128xf32> -> vector<4x128xf32>
      %32 = arith.addf %24, %31 : vector<4x128xf32>
      %c1_i32_20 = arith.constant 1 : i32
      %33 = arith.addi %23, %c1_i32_20 : i32
      %34 = arith.index_cast %33 : i32 to index
      %c0_21 = arith.constant 0 : index
      %c0_22 = arith.constant 0 : index
      %35 = vector.load %arg5[%34, %c0_21, %c0_22] : memref<6x4x384xbf16, #tpu.memory_space<vmem>>, vector<1x4x384xbf16>
      %36 = vector.shape_cast %35 : vector<1x4x384xbf16> to vector<4x384xbf16>
      %c1 = arith.constant 1 : index
      %c0_23 = arith.constant 0 : index
      %c0_24 = arith.constant 0 : index
      %37 = vector.load %arg2[%c1, %c0_23, %c0_24] : memref<3x384x128xbf16, #tpu.memory_space<vmem>>, vector<1x384x128xbf16>
      %38 = vector.shape_cast %37 : vector<1x384x128xbf16> to vector<384x128xbf16>
      %cst_25 = arith.constant dense<0.000000e+00> : vector<4x128xf32>
      %39 = tpu.matmul %36, %38, %cst_25 {dimension_numbers = #tpu.dot_dimension_numbers<[1], [0], [0], [1], [0, 0, 1, 1], [], []>} : vector<4x384xbf16>, vector<384x128xbf16>, vector<4x128xf32> -> vector<4x128xf32>
      %40 = arith.addf %32, %39 : vector<4x128xf32>
      %c2_i32_26 = arith.constant 2 : i32
      %41 = arith.addi %23, %c2_i32_26 : i32
      %42 = arith.index_cast %41 : i32 to index
      %c0_27 = arith.constant 0 : index
      %c0_28 = arith.constant 0 : index
      %43 = vector.load %arg5[%42, %c0_27, %c0_28] : memref<6x4x384xbf16, #tpu.memory_space<vmem>>, vector<1x4x384xbf16>
      %44 = vector.shape_cast %43 : vector<1x4x384xbf16> to vector<4x384xbf16>
      %c2 = arith.constant 2 : index
      %c0_29 = arith.constant 0 : index
      %c0_30 = arith.constant 0 : index
      %45 = vector.load %arg2[%c2, %c0_29, %c0_30] : memref<3x384x128xbf16, #tpu.memory_space<vmem>>, vector<1x384x128xbf16>
      %46 = vector.shape_cast %45 : vector<1x384x128xbf16> to vector<384x128xbf16>
      %cst_31 = arith.constant dense<0.000000e+00> : vector<4x128xf32>
      %47 = tpu.matmul %44, %46, %cst_31 {dimension_numbers = #tpu.dot_dimension_numbers<[1], [0], [0], [1], [0, 0, 1, 1], [], []>} : vector<4x384xbf16>, vector<384x128xbf16>, vector<4x128xf32> -> vector<4x128xf32>
      %48 = arith.addf %40, %47 : vector<4x128xf32>
      %49 = vector.broadcast %0 : vector<1x128xf32> to vector<4x128xf32>
      %50 = arith.addf %48, %49 : vector<4x128xf32>
      %cst_32 = arith.constant 0.000000e+00 : f32
      %51 = vector.broadcast %cst_32 : f32 to vector<4x128xf32>
      %52 = arith.maximumf %50, %51 : vector<4x128xf32>
      %c2_i32_33 = arith.constant 2 : i32
      %53 = arith.muli %c2_i32_33, %arg6 : i32
      %c1_i32_34 = arith.constant 1 : i32
      %54 = arith.addi %53, %c1_i32_34 : i32
      %cst_35 = arith.constant 0.000000e+00 : f32
      %55 = vector.broadcast %cst_35 : f32 to vector<4x128xf32>
      %c0_i32_36 = arith.constant 0 : i32
      %56 = arith.addi %54, %c0_i32_36 : i32
      %57 = arith.index_cast %56 : i32 to index
      %c0_37 = arith.constant 0 : index
      %c0_38 = arith.constant 0 : index
      %58 = vector.load %arg5[%57, %c0_37, %c0_38] : memref<6x4x384xbf16, #tpu.memory_space<vmem>>, vector<1x4x384xbf16>
      %59 = vector.shape_cast %58 : vector<1x4x384xbf16> to vector<4x384xbf16>
      %c0_39 = arith.constant 0 : index
      %c0_40 = arith.constant 0 : index
      %c0_41 = arith.constant 0 : index
      %60 = vector.load %arg2[%c0_39, %c0_40, %c0_41] : memref<3x384x128xbf16, #tpu.memory_space<vmem>>, vector<1x384x128xbf16>
      %61 = vector.shape_cast %60 : vector<1x384x128xbf16> to vector<384x128xbf16>
      %cst_42 = arith.constant dense<0.000000e+00> : vector<4x128xf32>
      %62 = tpu.matmul %59, %61, %cst_42 {dimension_numbers = #tpu.dot_dimension_numbers<[1], [0], [0], [1], [0, 0, 1, 1], [], []>} : vector<4x384xbf16>, vector<384x128xbf16>, vector<4x128xf32> -> vector<4x128xf32>
      %63 = arith.addf %55, %62 : vector<4x128xf32>
      %c1_i32_43 = arith.constant 1 : i32
      %64 = arith.addi %54, %c1_i32_43 : i32
      %65 = arith.index_cast %64 : i32 to index
      %c0_44 = arith.constant 0 : index
      %c0_45 = arith.constant 0 : index
      %66 = vector.load %arg5[%65, %c0_44, %c0_45] : memref<6x4x384xbf16, #tpu.memory_space<vmem>>, vector<1x4x384xbf16>
      %67 = vector.shape_cast %66 : vector<1x4x384xbf16> to vector<4x384xbf16>
      %c1_46 = arith.constant 1 : index
      %c0_47 = arith.constant 0 : index
      %c0_48 = arith.constant 0 : index
      %68 = vector.load %arg2[%c1_46, %c0_47, %c0_48] : memref<3x384x128xbf16, #tpu.memory_space<vmem>>, vector<1x384x128xbf16>
      %69 = vector.shape_cast %68 : vector<1x384x128xbf16> to vector<384x128xbf16>
      %cst_49 = arith.constant dense<0.000000e+00> : vector<4x128xf32>
      %70 = tpu.matmul %67, %69, %cst_49 {dimension_numbers = #tpu.dot_dimension_numbers<[1], [0], [0], [1], [0, 0, 1, 1], [], []>} : vector<4x384xbf16>, vector<384x128xbf16>, vector<4x128xf32> -> vector<4x128xf32>
      %71 = arith.addf %63, %70 : vector<4x128xf32>
      %c2_i32_50 = arith.constant 2 : i32
      %72 = arith.addi %54, %c2_i32_50 : i32
      %73 = arith.index_cast %72 : i32 to index
      %c0_51 = arith.constant 0 : index
      %c0_52 = arith.constant 0 : index
      %74 = vector.load %arg5[%73, %c0_51, %c0_52] : memref<6x4x384xbf16, #tpu.memory_space<vmem>>, vector<1x4x384xbf16>
      %75 = vector.shape_cast %74 : vector<1x4x384xbf16> to vector<4x384xbf16>
      %c2_53 = arith.constant 2 : index
      %c0_54 = arith.constant 0 : index
      %c0_55 = arith.constant 0 : index
      %76 = vector.load %arg2[%c2_53, %c0_54, %c0_55] : memref<3x384x128xbf16, #tpu.memory_space<vmem>>, vector<1x384x128xbf16>
      %77 = vector.shape_cast %76 : vector<1x384x128xbf16> to vector<384x128xbf16>
      %cst_56 = arith.constant dense<0.000000e+00> : vector<4x128xf32>
      %78 = tpu.matmul %75, %77, %cst_56 {dimension_numbers = #tpu.dot_dimension_numbers<[1], [0], [0], [1], [0, 0, 1, 1], [], []>} : vector<4x384xbf16>, vector<384x128xbf16>, vector<4x128xf32> -> vector<4x128xf32>
      %79 = arith.addf %71, %78 : vector<4x128xf32>
      %80 = vector.broadcast %0 : vector<1x128xf32> to vector<4x128xf32>
      %81 = arith.addf %79, %80 : vector<4x128xf32>
      %cst_57 = arith.constant 0.000000e+00 : f32
      %82 = vector.broadcast %cst_57 : f32 to vector<4x128xf32>
      %83 = arith.maximumf %81, %82 : vector<4x128xf32>
      %84 = arith.maximumf %52, %83 : vector<4x128xf32>
      %cst_58 = arith.constant dense<0.000000e+00> : vector<2x128xf32>
      %85 = tpu.matmul %14, %84, %cst_58 {dimension_numbers = #tpu.dot_dimension_numbers<[1], [0], [0], [1], [0, 0, 1, 1], [], []>} : vector<2x4xf32>, vector<4x128xf32>, vector<2x128xf32> -> vector<2x128xf32>
      %cst_59 = arith.constant dense<0.000000e+00> : vector<2x128xf32>
      %86 = tpu.matmul %21, %84, %cst_59 {dimension_numbers = #tpu.dot_dimension_numbers<[1], [0], [0], [1], [0, 0, 1, 1], [], []>} : vector<2x4xf32>, vector<4x128xf32>, vector<2x128xf32> -> vector<2x128xf32>
      %87 = arith.maximumf %85, %86 : vector<2x128xf32>
      %88 = arith.truncf %87 : vector<2x128xf32> to vector<2x128xbf16>
      %c0_60 = arith.constant 0 : index
      %89 = arith.index_cast %arg6 : i32 to index
      %c0_61 = arith.constant 0 : index
      %c0_62 = arith.constant 0 : index
      %90 = vector.load %arg4[%c0_60, %89, %c0_61, %c0_62] : memref<1x2x2x128xbf16, #tpu.memory_space<vmem>>, vector<1x1x2x128xbf16>
      %91 = vector.shape_cast %90 : vector<1x1x2x128xbf16> to vector<2x128xbf16>
      %92 = vector.shape_cast %88 : vector<2x128xbf16> to vector<1x1x2x128xbf16>
      tpu.vector_store %arg4[%c0_60, %89, %c0_61, %c0_62], %92 {strides = array<i32>} : memref<1x2x2x128xbf16, #tpu.memory_space<vmem>>, vector<1x1x2x128xbf16>,
    }
    %c2_i32_11 = arith.constant 2 : i32
    return
  }
  func.func @transform_0(%arg0: i32) -> (i32, i32, i32, i32) {
    %c0_i32 = arith.constant 0 : i32
    %c0_i32_0 = arith.constant 0 : i32
    %c0_i32_1 = arith.constant 0 : i32
    %c0_i32_2 = arith.constant 0 : i32
    return %arg0, %c0_i32, %c0_i32_0, %c0_i32_1 : i32, i32, i32, i32
  }
  func.func @transform_1(%arg0: i32) -> (i32, i32, i32) {
    %c0_i32 = arith.constant 0 : i32
    %c0_i32_0 = arith.constant 0 : i32
    %c0_i32_1 = arith.constant 0 : i32
    %c0_i32_2 = arith.constant 0 : i32
    return %c0_i32, %c0_i32_0, %c0_i32_1 : i32, i32, i32
  }
  func.func @transform_2(%arg0: i32) -> (i32, i32) {
    %c0_i32 = arith.constant 0 : i32
    %c0_i32_0 = arith.constant 0 : i32
    %c0_i32_1 = arith.constant 0 : i32
    return %c0_i32, %c0_i32_0 : i32, i32
  }
  func.func @transform_3(%arg0: i32) -> (i32, i32, i32, i32) {
    %c0_i32 = arith.constant 0 : i32
    %c0_i32_0 = arith.constant 0 : i32
    %c0_i32_1 = arith.constant 0 : i32
    %c0_i32_2 = arith.constant 0 : i32
    return %arg0, %c0_i32, %c0_i32_0, %c0_i32_1 : i32, i32, i32, i32
  }
}

module attributes {stable_mosaic.version = 11 : i64} {
  func.func @_conv3x3_kernel(%arg0: i32, %arg1: memref<1x4x4x128xbf16, #tpu.memory_space<vmem>>, %arg2: memref<3x384x128xbf16, #tpu.memory_space<vmem>>, %arg3: memref<1x128xf32, #tpu.memory_space<vmem>>, %arg4: memref<1x2x2x128xbf16, #tpu.memory_space<vmem>>, %arg5: memref<4x2x384xbf16, #tpu.memory_space<vmem>>) attributes {dimension_semantics = [#tpu.dimension_semantics<parallel>], iteration_bounds = array<i64: 2>, scalar_prefetch = 0 : i64, scratch_operands = 1 : i64, tpu.core_type = #tpu.core_type<tc>, window_params = [{transform_indices = @transform_0, window_bounds = array<i64: 1, 4, 4, 128>}, {pipeline_mode = #tpu.pipeline_mode<synchronous>, transform_indices = @transform_1, window_bounds = array<i64: 3, 384, 128>}, {pipeline_mode = #tpu.pipeline_mode<synchronous>, transform_indices = @transform_2, window_bounds = array<i64: 1, 128>}, {transform_indices = @transform_3, window_bounds = array<i64: 1, 2, 2, 128>}]} {
    %c0 = arith.constant 0 : index
    %c0_0 = arith.constant 0 : index
    %0 = vector.load %arg3[%c0, %c0_0] : memref<1x128xf32, #tpu.memory_space<vmem>>, vector<1x128xf32>
    %c0_1 = arith.constant 0 : index
    %c0_2 = arith.constant 0 : index
    %c0_3 = arith.constant 0 : index
    %c0_4 = arith.constant 0 : index
    %1 = vector.load %arg1[%c0_1, %c0_2, %c0_3, %c0_4] : memref<1x4x4x128xbf16, #tpu.memory_space<vmem>>, vector<1x4x4x128xbf16>
    %2 = vector.shape_cast %1 : vector<1x4x4x128xbf16> to vector<4x4x128xbf16>
    %3 = vector.extract_strided_slice %2 {offsets = [0, 0, 0], sizes = [4, 2, 128], strides = [1, 1, 1]} : vector<4x4x128xbf16> to vector<4x2x128xbf16>
    %4 = vector.extract_strided_slice %2 {offsets = [0, 1, 0], sizes = [4, 2, 128], strides = [1, 1, 1]} : vector<4x4x128xbf16> to vector<4x2x128xbf16>
    %5 = vector.extract_strided_slice %2 {offsets = [0, 2, 0], sizes = [4, 2, 128], strides = [1, 1, 1]} : vector<4x4x128xbf16> to vector<4x2x128xbf16>
    %6 = tpu.concatenate %3, %4, %5 in 2 : vector<4x2x128xbf16>, vector<4x2x128xbf16>, vector<4x2x128xbf16> -> vector<4x2x384xbf16>
    %c0_5 = arith.constant 0 : index
    %c0_6 = arith.constant 0 : index
    %c0_7 = arith.constant 0 : index
    %7 = vector.load %arg5[%c0_5, %c0_6, %c0_7] : memref<4x2x384xbf16, #tpu.memory_space<vmem>>, vector<4x2x384xbf16>
    tpu.vector_store %arg5[%c0_5, %c0_6, %c0_7], %6 {strides = array<i32>} : memref<4x2x384xbf16, #tpu.memory_space<vmem>>, vector<4x2x384xbf16>,
    %c0_i32 = arith.constant 0 : i32
    %c2_i32 = arith.constant 2 : i32
    %8 = arith.addi %c0_i32, %c2_i32 : i32
    %c1_i32 = arith.constant 1 : i32
    scf.for %arg6 = %c0_i32 to %8 step %c1_i32  : i32 {
      %cst = arith.constant 0.000000e+00 : f32
      %9 = vector.broadcast %cst : f32 to vector<2x128xf32>
      %c0_i32_9 = arith.constant 0 : i32
      %10 = arith.addi %arg6, %c0_i32_9 : i32
      %11 = arith.index_cast %10 : i32 to index
      %c0_10 = arith.constant 0 : index
      %c0_11 = arith.constant 0 : index
      %12 = vector.load %arg5[%11, %c0_10, %c0_11] : memref<4x2x384xbf16, #tpu.memory_space<vmem>>, vector<1x2x384xbf16>
      %13 = vector.shape_cast %12 : vector<1x2x384xbf16> to vector<2x384xbf16>
      %c0_12 = arith.constant 0 : index
      %c0_13 = arith.constant 0 : index
      %c0_14 = arith.constant 0 : index
      %14 = vector.load %arg2[%c0_12, %c0_13, %c0_14] : memref<3x384x128xbf16, #tpu.memory_space<vmem>>, vector<1x384x128xbf16>
      %15 = vector.shape_cast %14 : vector<1x384x128xbf16> to vector<384x128xbf16>
      %cst_15 = arith.constant dense<0.000000e+00> : vector<2x128xf32>
      %16 = tpu.matmul %13, %15, %cst_15 {dimension_numbers = #tpu.dot_dimension_numbers<[1], [0], [0], [1], [0, 0, 1, 1], [], []>} : vector<2x384xbf16>, vector<384x128xbf16>, vector<2x128xf32> -> vector<2x128xf32>
      %17 = arith.addf %9, %16 : vector<2x128xf32>
      %c1_i32_16 = arith.constant 1 : i32
      %18 = arith.addi %arg6, %c1_i32_16 : i32
      %19 = arith.index_cast %18 : i32 to index
      %c0_17 = arith.constant 0 : index
      %c0_18 = arith.constant 0 : index
      %20 = vector.load %arg5[%19, %c0_17, %c0_18] : memref<4x2x384xbf16, #tpu.memory_space<vmem>>, vector<1x2x384xbf16>
      %21 = vector.shape_cast %20 : vector<1x2x384xbf16> to vector<2x384xbf16>
      %c1 = arith.constant 1 : index
      %c0_19 = arith.constant 0 : index
      %c0_20 = arith.constant 0 : index
      %22 = vector.load %arg2[%c1, %c0_19, %c0_20] : memref<3x384x128xbf16, #tpu.memory_space<vmem>>, vector<1x384x128xbf16>
      %23 = vector.shape_cast %22 : vector<1x384x128xbf16> to vector<384x128xbf16>
      %cst_21 = arith.constant dense<0.000000e+00> : vector<2x128xf32>
      %24 = tpu.matmul %21, %23, %cst_21 {dimension_numbers = #tpu.dot_dimension_numbers<[1], [0], [0], [1], [0, 0, 1, 1], [], []>} : vector<2x384xbf16>, vector<384x128xbf16>, vector<2x128xf32> -> vector<2x128xf32>
      %25 = arith.addf %17, %24 : vector<2x128xf32>
      %c2_i32_22 = arith.constant 2 : i32
      %26 = arith.addi %arg6, %c2_i32_22 : i32
      %27 = arith.index_cast %26 : i32 to index
      %c0_23 = arith.constant 0 : index
      %c0_24 = arith.constant 0 : index
      %28 = vector.load %arg5[%27, %c0_23, %c0_24] : memref<4x2x384xbf16, #tpu.memory_space<vmem>>, vector<1x2x384xbf16>
      %29 = vector.shape_cast %28 : vector<1x2x384xbf16> to vector<2x384xbf16>
      %c2 = arith.constant 2 : index
      %c0_25 = arith.constant 0 : index
      %c0_26 = arith.constant 0 : index
      %30 = vector.load %arg2[%c2, %c0_25, %c0_26] : memref<3x384x128xbf16, #tpu.memory_space<vmem>>, vector<1x384x128xbf16>
      %31 = vector.shape_cast %30 : vector<1x384x128xbf16> to vector<384x128xbf16>
      %cst_27 = arith.constant dense<0.000000e+00> : vector<2x128xf32>
      %32 = tpu.matmul %29, %31, %cst_27 {dimension_numbers = #tpu.dot_dimension_numbers<[1], [0], [0], [1], [0, 0, 1, 1], [], []>} : vector<2x384xbf16>, vector<384x128xbf16>, vector<2x128xf32> -> vector<2x128xf32>
      %33 = arith.addf %25, %32 : vector<2x128xf32>
      %34 = vector.broadcast %0 : vector<1x128xf32> to vector<2x128xf32>
      %35 = arith.addf %33, %34 : vector<2x128xf32>
      %cst_28 = arith.constant 0.000000e+00 : f32
      %36 = vector.broadcast %cst_28 : f32 to vector<2x128xf32>
      %37 = arith.maximumf %35, %36 : vector<2x128xf32>
      %38 = arith.truncf %37 : vector<2x128xf32> to vector<2x128xbf16>
      %c0_29 = arith.constant 0 : index
      %39 = arith.index_cast %arg6 : i32 to index
      %c0_30 = arith.constant 0 : index
      %c0_31 = arith.constant 0 : index
      %40 = vector.load %arg4[%c0_29, %39, %c0_30, %c0_31] : memref<1x2x2x128xbf16, #tpu.memory_space<vmem>>, vector<1x1x2x128xbf16>
      %41 = vector.shape_cast %40 : vector<1x1x2x128xbf16> to vector<2x128xbf16>
      %42 = vector.shape_cast %38 : vector<2x128xbf16> to vector<1x1x2x128xbf16>
      tpu.vector_store %arg4[%c0_29, %39, %c0_30, %c0_31], %42 {strides = array<i32>} : memref<1x2x2x128xbf16, #tpu.memory_space<vmem>>, vector<1x1x2x128xbf16>,
    }
    %c2_i32_8 = arith.constant 2 : i32
    return
  }
  func.func @transform_0(%arg0: i32) -> (i32, i32, i32, i32) {
    %c0_i32 = arith.constant 0 : i32
    %c0_i32_0 = arith.constant 0 : i32
    %c0_i32_1 = arith.constant 0 : i32
    %c0_i32_2 = arith.constant 0 : i32
    return %arg0, %c0_i32, %c0_i32_0, %c0_i32_1 : i32, i32, i32, i32
  }
  func.func @transform_1(%arg0: i32) -> (i32, i32, i32) {
    %c0_i32 = arith.constant 0 : i32
    %c0_i32_0 = arith.constant 0 : i32
    %c0_i32_1 = arith.constant 0 : i32
    %c0_i32_2 = arith.constant 0 : i32
    return %c0_i32, %c0_i32_0, %c0_i32_1 : i32, i32, i32
  }
  func.func @transform_2(%arg0: i32) -> (i32, i32) {
    %c0_i32 = arith.constant 0 : i32
    %c0_i32_0 = arith.constant 0 : i32
    %c0_i32_1 = arith.constant 0 : i32
    return %c0_i32, %c0_i32_0 : i32, i32
  }
  func.func @transform_3(%arg0: i32) -> (i32, i32, i32, i32) {
    %c0_i32 = arith.constant 0 : i32
    %c0_i32_0 = arith.constant 0 : i32
    %c0_i32_1 = arith.constant 0 : i32
    %c0_i32_2 = arith.constant 0 : i32
    return %arg0, %c0_i32, %c0_i32_0, %c0_i32_1 : i32, i32, i32, i32
  }
}

module attributes {stable_mosaic.version = 11 : i64} {
  func.func @_matmul_bias_kernel(%arg0: i32, %arg1: i32, %arg2: i32, %arg3: memref<2x512xbf16, #tpu.memory_space<vmem>>, %arg4: memref<512x8xbf16, #tpu.memory_space<vmem>>, %arg5: memref<1x8xf32, #tpu.memory_space<vmem>>, %arg6: memref<2x8xf32, #tpu.memory_space<vmem>>, %arg7: memref<2x8xf32, #tpu.memory_space<vmem>>) attributes {dimension_semantics = [#tpu.dimension_semantics<parallel>, #tpu.dimension_semantics<parallel>, #tpu.dimension_semantics<arbitrary>], iteration_bounds = array<i64: 1, 1, 2>, scalar_prefetch = 0 : i64, scratch_operands = 1 : i64, tpu.core_type = #tpu.core_type<tc>, window_params = [{transform_indices = @transform_0, window_bounds = array<i64: 2, 512>}, {transform_indices = @transform_1, window_bounds = array<i64: 512, 8>}, {transform_indices = @transform_2, window_bounds = array<i64: 1, 8>}, {transform_indices = @transform_3, window_bounds = array<i64: 2, 8>}]} {
    %c0_i32 = arith.constant 0 : i32
    %0 = arith.cmpi eq, %arg2, %c0_i32 : i32
    %1 = arith.extui %0 : i1 to i32
    %c0_i32_0 = arith.constant 0 : i32
    %2 = arith.cmpi ne, %1, %c0_i32_0 : i32
    scf.if %2 {
      %cst_9 = arith.constant 0.000000e+00 : f32
      %12 = vector.broadcast %cst_9 : f32 to vector<2x8xf32>
      %c0_10 = arith.constant 0 : index
      %c0_11 = arith.constant 0 : index
      %13 = vector.load %arg7[%c0_10, %c0_11] : memref<2x8xf32, #tpu.memory_space<vmem>>, vector<2x8xf32>
      tpu.vector_store %arg7[%c0_10, %c0_11], %12 {strides = array<i32>} : memref<2x8xf32, #tpu.memory_space<vmem>>, vector<2x8xf32>,
    } else {
    }
    %c0 = arith.constant 0 : index
    %c0_1 = arith.constant 0 : index
    %3 = vector.load %arg7[%c0, %c0_1] : memref<2x8xf32, #tpu.memory_space<vmem>>, vector<2x8xf32>
    %c0_2 = arith.constant 0 : index
    %c0_3 = arith.constant 0 : index
    %4 = vector.load %arg3[%c0_2, %c0_3] : memref<2x512xbf16, #tpu.memory_space<vmem>>, vector<2x512xbf16>
    %c0_4 = arith.constant 0 : index
    %c0_5 = arith.constant 0 : index
    %5 = vector.load %arg4[%c0_4, %c0_5] : memref<512x8xbf16, #tpu.memory_space<vmem>>, vector<512x8xbf16>
    %cst = arith.constant dense<0.000000e+00> : vector<2x8xf32>
    %6 = tpu.matmul %4, %5, %cst {dimension_numbers = #tpu.dot_dimension_numbers<[1], [0], [0], [1], [0, 0, 1, 1], [], []>} : vector<2x512xbf16>, vector<512x8xbf16>, vector<2x8xf32> -> vector<2x8xf32>
    %7 = arith.addf %3, %6 : vector<2x8xf32>
    %c0_6 = arith.constant 0 : index
    %c0_7 = arith.constant 0 : index
    %8 = vector.load %arg7[%c0_6, %c0_7] : memref<2x8xf32, #tpu.memory_space<vmem>>, vector<2x8xf32>
    tpu.vector_store %arg7[%c0_6, %c0_7], %7 {strides = array<i32>} : memref<2x8xf32, #tpu.memory_space<vmem>>, vector<2x8xf32>,
    %c1_i32 = arith.constant 1 : i32
    %9 = arith.cmpi eq, %arg2, %c1_i32 : i32
    %10 = arith.extui %9 : i1 to i32
    %c0_i32_8 = arith.constant 0 : i32
    %11 = arith.cmpi ne, %10, %c0_i32_8 : i32
    scf.if %11 {
      %c0_9 = arith.constant 0 : index
      %c0_10 = arith.constant 0 : index
      %12 = vector.load %arg7[%c0_9, %c0_10] : memref<2x8xf32, #tpu.memory_space<vmem>>, vector<2x8xf32>
      %c0_11 = arith.constant 0 : index
      %c0_12 = arith.constant 0 : index
      %13 = vector.load %arg5[%c0_11, %c0_12] : memref<1x8xf32, #tpu.memory_space<vmem>>, vector<1x8xf32>
      %14 = vector.broadcast %13 : vector<1x8xf32> to vector<2x8xf32>
      %15 = arith.addf %12, %14 : vector<2x8xf32>
      %c0_13 = arith.constant 0 : index
      %c0_14 = arith.constant 0 : index
      %16 = vector.load %arg6[%c0_13, %c0_14] : memref<2x8xf32, #tpu.memory_space<vmem>>, vector<2x8xf32>
      tpu.vector_store %arg6[%c0_13, %c0_14], %15 {strides = array<i32>} : memref<2x8xf32, #tpu.memory_space<vmem>>, vector<2x8xf32>,
    } else {
    }
    return
  }
  func.func @transform_0(%arg0: i32, %arg1: i32, %arg2: i32) -> (i32, i32) {
    %c0_i32 = arith.constant 0 : i32
    return %arg0, %arg2 : i32, i32
  }
  func.func @transform_1(%arg0: i32, %arg1: i32, %arg2: i32) -> (i32, i32) {
    %c0_i32 = arith.constant 0 : i32
    return %arg2, %arg1 : i32, i32
  }
  func.func @transform_2(%arg0: i32, %arg1: i32, %arg2: i32) -> (i32, i32) {
    %c0_i32 = arith.constant 0 : i32
    %c0_i32_0 = arith.constant 0 : i32
    return %c0_i32, %arg1 : i32, i32
  }
  func.func @transform_3(%arg0: i32, %arg1: i32, %arg2: i32) -> (i32, i32) {
    %c0_i32 = arith.constant 0 : i32
    return %arg0, %arg1 : i32, i32
  }
}

module attributes {stable_mosaic.version = 11 : i64} {
  func.func @_matmul_bias_kernel(%arg0: i32, %arg1: i32, %arg2: i32, %arg3: memref<2x512xbf16, #tpu.memory_space<vmem>>, %arg4: memref<512x512xbf16, #tpu.memory_space<vmem>>, %arg5: memref<1x512xf32, #tpu.memory_space<vmem>>, %arg6: memref<2x512xbf16, #tpu.memory_space<vmem>>, %arg7: memref<2x512xf32, #tpu.memory_space<vmem>>) attributes {dimension_semantics = [#tpu.dimension_semantics<parallel>, #tpu.dimension_semantics<parallel>, #tpu.dimension_semantics<arbitrary>], iteration_bounds = array<i64: 1, 2, 1>, scalar_prefetch = 0 : i64, scratch_operands = 1 : i64, tpu.core_type = #tpu.core_type<tc>, window_params = [{transform_indices = @transform_0, window_bounds = array<i64: 2, 512>}, {transform_indices = @transform_1, window_bounds = array<i64: 512, 512>}, {transform_indices = @transform_2, window_bounds = array<i64: 1, 512>}, {transform_indices = @transform_3, window_bounds = array<i64: 2, 512>}]} {
    %c0_i32 = arith.constant 0 : i32
    %0 = arith.cmpi eq, %arg2, %c0_i32 : i32
    %1 = arith.extui %0 : i1 to i32
    %c0_i32_0 = arith.constant 0 : i32
    %2 = arith.cmpi ne, %1, %c0_i32_0 : i32
    scf.if %2 {
      %cst_10 = arith.constant 0.000000e+00 : f32
      %12 = vector.broadcast %cst_10 : f32 to vector<2x512xf32>
      %c0_11 = arith.constant 0 : index
      %c0_12 = arith.constant 0 : index
      %13 = vector.load %arg7[%c0_11, %c0_12] : memref<2x512xf32, #tpu.memory_space<vmem>>, vector<2x512xf32>
      tpu.vector_store %arg7[%c0_11, %c0_12], %12 {strides = array<i32>} : memref<2x512xf32, #tpu.memory_space<vmem>>, vector<2x512xf32>,
    } else {
    }
    %c0 = arith.constant 0 : index
    %c0_1 = arith.constant 0 : index
    %3 = vector.load %arg7[%c0, %c0_1] : memref<2x512xf32, #tpu.memory_space<vmem>>, vector<2x512xf32>
    %c0_2 = arith.constant 0 : index
    %c0_3 = arith.constant 0 : index
    %4 = vector.load %arg3[%c0_2, %c0_3] : memref<2x512xbf16, #tpu.memory_space<vmem>>, vector<2x512xbf16>
    %c0_4 = arith.constant 0 : index
    %c0_5 = arith.constant 0 : index
    %5 = vector.load %arg4[%c0_4, %c0_5] : memref<512x512xbf16, #tpu.memory_space<vmem>>, vector<512x512xbf16>
    %cst = arith.constant dense<0.000000e+00> : vector<2x512xf32>
    %6 = tpu.matmul %4, %5, %cst {dimension_numbers = #tpu.dot_dimension_numbers<[1], [0], [0], [1], [0, 0, 1, 1], [], []>} : vector<2x512xbf16>, vector<512x512xbf16>, vector<2x512xf32> -> vector<2x512xf32>
    %7 = arith.addf %3, %6 : vector<2x512xf32>
    %c0_6 = arith.constant 0 : index
    %c0_7 = arith.constant 0 : index
    %8 = vector.load %arg7[%c0_6, %c0_7] : memref<2x512xf32, #tpu.memory_space<vmem>>, vector<2x512xf32>
    tpu.vector_store %arg7[%c0_6, %c0_7], %7 {strides = array<i32>} : memref<2x512xf32, #tpu.memory_space<vmem>>, vector<2x512xf32>,
    %c0_i32_8 = arith.constant 0 : i32
    %9 = arith.cmpi eq, %arg2, %c0_i32_8 : i32
    %10 = arith.extui %9 : i1 to i32
    %c0_i32_9 = arith.constant 0 : i32
    %11 = arith.cmpi ne, %10, %c0_i32_9 : i32
    scf.if %11 {
      %c0_10 = arith.constant 0 : index
      %c0_11 = arith.constant 0 : index
      %12 = vector.load %arg7[%c0_10, %c0_11] : memref<2x512xf32, #tpu.memory_space<vmem>>, vector<2x512xf32>
      %c0_12 = arith.constant 0 : index
      %c0_13 = arith.constant 0 : index
      %13 = vector.load %arg5[%c0_12, %c0_13] : memref<1x512xf32, #tpu.memory_space<vmem>>, vector<1x512xf32>
      %14 = vector.broadcast %13 : vector<1x512xf32> to vector<2x512xf32>
      %15 = arith.addf %12, %14 : vector<2x512xf32>
      %cst_14 = arith.constant 0.000000e+00 : f32
      %16 = vector.broadcast %cst_14 : f32 to vector<2x512xf32>
      %17 = arith.maximumf %15, %16 : vector<2x512xf32>
      %18 = arith.truncf %17 : vector<2x512xf32> to vector<2x512xbf16>
      %c0_15 = arith.constant 0 : index
      %c0_16 = arith.constant 0 : index
      %19 = vector.load %arg6[%c0_15, %c0_16] : memref<2x512xbf16, #tpu.memory_space<vmem>>, vector<2x512xbf16>
      tpu.vector_store %arg6[%c0_15, %c0_16], %18 {strides = array<i32>} : memref<2x512xbf16, #tpu.memory_space<vmem>>, vector<2x512xbf16>,
    } else {
    }
    return
  }
  func.func @transform_0(%arg0: i32, %arg1: i32, %arg2: i32) -> (i32, i32) {
    %c0_i32 = arith.constant 0 : i32
    return %arg0, %arg2 : i32, i32
  }
  func.func @transform_1(%arg0: i32, %arg1: i32, %arg2: i32) -> (i32, i32) {
    %c0_i32 = arith.constant 0 : i32
    return %arg2, %arg1 : i32, i32
  }
  func.func @transform_2(%arg0: i32, %arg1: i32, %arg2: i32) -> (i32, i32) {
    %c0_i32 = arith.constant 0 : i32
    %c0_i32_0 = arith.constant 0 : i32
    return %c0_i32, %arg1 : i32, i32
  }
  func.func @transform_3(%arg0: i32, %arg1: i32, %arg2: i32) -> (i32, i32) {
    %c0_i32 = arith.constant 0 : i32
    return %arg0, %arg1 : i32, i32
  }
}

</mosaic_0001>

<bundles_post_ra>
// kernel: homography_forward.13
= control target key start
LH: loop header
LB: loop body
LE: loop exit
PB: predicated region body
PF: predicated region fallthrough
CT: control target
= control target key end

     0   :  { %s1566_s12 = smov 0   ;;  %s2099_s0 = inlined_call_operand.vmem [shape: bf16[2,10,10,64], index: 0, kind: input, shape index: {}]   ;;  %s2100_s1 = inlined_call_operand.vmem [shape: bf16[3,192,64], index: 1, kind: input, shape index: {}]   ;;  %s2101_s2 = inlined_call_operand.vmem [shape: f32[1,64], index: 2, kind: input, shape index: {}]   ;;  %s2102_s3 = inlined_call_operand.vmem [shape: bf16[2,4,4,64], index: 3, kind: output, shape index: {}]  }
   0x1 LB: > { %s1283_s13 = sadd.s32 4294967295, %s1535_s12   ;;  %p1287_p0 = scmp.ge.s32.totalorder %s1535_s12, 1  ;;  %s1535_s12 = sphi %s1566_s12, %s13_s12  }
   0x2   : > { %p137_p1 = scmp.lt.s32.totalorder %s1535_s12, 3 }
   0x4   : > { %p138_p2 = pnand %p1287_p0, %p137_p1 }
   0x5   : > { %p161_p3 = scmp.lt.s32.totalorder (!%p138_p2), %s1283_s13, 1  ;;  %s1541_s22 = smov (!%p138_p2), 64  }
   0x6   : > { %141 = sbr.rel (%p138_p2) target bundleno = 707 (0x2c3), region = 32  ;;  %s1747_s25 = smov (!%p138_p2), 0  }
   0xb   : > { %s2106_s13 = smov (!%p161_p3, %s1283_s13), 1  ;;  %v1679_v62 = vld [vmem:[%s2101_s2] ss:$0 sm:$0xff]  ;;  %vm343_vm2 = vcmask 523264   ;;  %vm424_vm3 = vcmask 1043456   ;;  %vm425_vm4 = vcmask 523268  }
   0xc   : > { %s1449_s14 = smul.u32 80, %s2106_s13  ;;  %s1429_s15 = sshll.u32 %s2106_s13, 3  ;;  %vm1695_vm5 = vmor %vm425_vm4, %vm424_vm3 }
   0xd   : > { %s1577_s18 = scalar_lea.vmem %s2102_s3, %s1429_s15 }
   0xe   : > { %s1582_s21 = scalar_lea.vmem %s2099_s0, %s1449_s14 }
   0xf   : > { %v1585_v0 = vld [vmem:[%s1582_s21 + $0x10] sm:$0xf]  ;;  %v178_v1 = vld [vmem:[%s1582_s21 + $0x14] sm:$0x1]  ;;  %v1589_v2 = vld [vmem:[%s1582_s21] sm:$0xf] }
  0x10   : > { %v1592_v3 = vcombine.low %v1585_v0, %v178_v1  ;;  %v174_v4 = vld [vmem:[%s1582_s21 + $0x4] sm:$0x1]  ;;  %v1596_v5 = vld [vmem:[%s1582_s21 + $0x18] sm:$0xf]  ;;  %v180_v6 = vld [vmem:[%s1582_s21 + $0x1c] sm:$0x1] }
  0x11   : > { %v1600_v7 = vcombine.low %v1589_v2, %v174_v4  ;;  %v1603_v8 = vcombine.low %v1596_v5, %v180_v6  ;;  %v1606_v9 = vld [vmem:[%s1582_s21 + $0x8] sm:$0xf]  ;;  %v176_v10 = vld [vmem:[%s1582_s21 + $0xc] sm:$0x1]  ;;  %v1619_v16 = vld [vmem:[%s1582_s21 + $0x20] sm:$0xf]  ;;  %v437_v6 = vlaneseq }
  0x12   : > { %v1610_v11 = vld [vmem:[%s1582_s21 + $0x28] sm:$0xf]  ;;  %v258_v12 = vshrl.u32 %v1592_v3, 16  ;;  %v260_v13 = vshll.u32 %v1592_v3, 16  ;;  %v1615_v14 = vcombine.low %v1606_v9, %v176_v10  ;;  %v184_v15 = vld [vmem:[%s1582_s21 + $0x2c] sm:$0x1] }
  0x13   : > { %v244_v17 = vshrl.u32 %v1600_v7, 16  ;;  %v246_v18 = vshll.u32 %v1600_v7, 16  ;;  %v265_v19 = vshrl.u32 %v1603_v8, 16  ;;  %v267_v20 = vshll.u32 %v1603_v8, 16  ;;  %v182_v21 = vld [vmem:[%s1582_s21 + $0x24] sm:$0x1] }
  0x14   : > { %v262_v22 = vrot.slane %v260_v13, 1  ;;  %v251_v23 = vshrl.u32 %v1615_v14, 16  ;;  %v253_v24 = vshll.u32 %v1615_v14, 16  ;;  %v1629_v25 = vcombine.low %v1610_v11, %v184_v15  ;;  %v1632_v26 = vld [vmem:[%s1582_s21 + $0x38] sm:$0xf] }
  0x15   : > { %v248_v27 = vrot.slane %v246_v18, 1  ;;  %v269_v28 = vrot.slane %v267_v20, 1  ;;  %v1635_v29 = vcombine.low %v1619_v16, %v182_v21  ;;  %v188_v30 = vld [vmem:[%s1582_s21 + $0x3c] sm:$0x1]  ;;  %v1639_v31 = vld [vmem:[%s1582_s21 + $0x30] sm:$0xf] }
  0x16   : > { %v263_v32 = vor.u32 %v262_v22, %v258_v12  ;;  %v255_v33 = vrot.slane %v253_v24, 1  ;;  %v281_v34 = vshll.u32 %v1629_v25, 16  ;;  %v186_v35 = vld [vmem:[%s1582_s21 + $0x34] sm:$0x1]  ;;  %v279_v38 = vshrl.u32 %v1629_v25, 16 }
  0x17   : > { %v249_v36 = vor.u32 %v248_v27, %v244_v17  ;;  %v270_v37 = vor.u32 %v269_v28, %v265_v19  ;;  %v274_v39 = vshll.u32 %v1635_v29, 16  ;;  %v1646_v40 = vld [vmem:[%s1582_s21 + $0x48] sm:$0xf]  ;;  %v192_v41 = vld [vmem:[%s1582_s21 + $0x4c] sm:$0x1]  ;;  %v272_v43 = vshrl.u32 %v1635_v29, 16 }
  0x18   : > { %317 = vrot.lane.b32.xlu1 %v263_v32, %s1541_s22  ;;  %v283_v42 = vrot.slane %v281_v34, 1  ;;  %v1652_v44 = vcombine.low %v1632_v26, %v188_v30  ;;  %v1655_v45 = vcombine.low %v1639_v31, %v186_v35  ;;  %v1658_v46 = vld [vmem:[%s1582_s21 + $0x40] sm:$0xf]  ;;  %v190_v47 = vld [vmem:[%s1582_s21 + $0x44] sm:$0x1]  ;;  %v256_v48 = vor.u32 %v255_v33, %v251_v23 }
  0x19   : > { %313 = vrot.lane.b32.xlu0 %v249_v36, %s1541_s22  ;;  %v276_v49 = vrot.slane %v274_v39, 1  ;;  %v1663_v50 = vcombine.low %v1646_v40, %v192_v41  ;;  %v1666_v51 = vcombine.low %v1658_v46, %v190_v47  ;;  %v438_v15 = vshrl.u32 %v437_v6, 7 }
  0x1a   : > { %v295_v52 = vshll.u32 %v1652_v44, 16  ;;  %v288_v53 = vshll.u32 %v1655_v45, 16  ;;  %v284_v54 = vor.u32 %v283_v42, %v279_v38  ;;  %v293_v55 = vshrl.u32 %v1652_v44, 16 }
  0x1b   : > { %v309_v57 = vshll.u32 %v1663_v50, 16  ;;  %v277_v58 = vor.u32 %v276_v49, %v272_v43  ;;  %v286_v59 = vshrl.u32 %v1655_v45, 16  ;;  %v302_v61 = vshll.u32 %v1666_v51, 16 }
  0x1c   : > { %319 = vrot.lane.b32.xlu1 %v270_v37, %s1541_s22  ;;  %v297_v56 = vrot.slane %v295_v52, 1  ;;  %v290_v60 = vrot.slane %v288_v53, 1  ;;  %v307_v1 = vshrl.u32 %v1663_v50, 16  ;;  %v300_v12 = vshrl.u32 %v1666_v51, 16 }
  0x1d   : > { %315 = vrot.lane.b32.xlu0 %v256_v48, %s1541_s22  ;;  %v311_v4 = vrot.slane %v309_v57, 1  ;;  %v304_v13 = vrot.slane %v302_v61, 1  ;;  %v440_v17 = vand.u32 127, %v437_v6  ;;  %v441_v19 = vmul.u32 2, %v438_v15 }
  0x1e   : > { %v298_v63 = vor.u32 %v297_v56, %v293_v55  ;;  %v291_v10 = vor.u32 %v290_v60, %v286_v59  ;;  %v1542_v22 = vmov 0.0   ;;  %v335_v27 = vrot.slane %v1592_v3, 1 }
  0x1f   : > { %v312_v18 = vor.u32 %v311_v4, %v307_v1  ;;  %v305_v20 = vor.u32 %v304_v13, %v300_v12  ;;  %vm442_vm0 = vcmp.eq.s32.totalorder %v440_v17, %v441_v19  ;;  %v445_v21 = vadd.s32 1, %v441_v19 }
  0x20   : > { %323 = vrot.lane.b32.xlu1 %v284_v54, %s1541_s22  ;;  %v1687_v23 = vsel %vm442_vm0, 1.0, %v1542_v22  ;;  %v333_v28 = vrot.slane %v1600_v7, 1  ;;  %v336_v3 = vrot.slane %v1603_v8, 1  ;;  %v334_v38 = vrot.slane %v1615_v14, 1 }
  0x21   : > { %321 = vrot.lane.b32.xlu0 %v277_v58, %s1541_s22  ;;  %vm446_vm1 = vcmp.eq.s32.totalorder %v440_v17, %v445_v21  ;;  %v338_v8 = vrot.slane %v1629_v25, 1  ;;  %v337_v14 = vrot.slane %v1635_v29, 1  ;;  %v340_v25 = vrot.slane %v1652_v44, 1 }
  0x22   : > { %v1691_v24 = vsel %vm446_vm1, 1.0, %v1542_v22  ;;  %v339_v29 = vrot.slane %v1655_v45, 1  ;;  %v342_v44 = vrot.slane %v1663_v50, 1  ;;  %v341_v45 = vrot.slane %v1666_v51, 1 }
  0x24   : > { %327 = vrot.lane.b32.xlu1 %v298_v63, %s1541_s22 }
  0x25   : > { %325 = vrot.lane.b32.xlu0 %v291_v10, %s1541_s22 }
  0x28   : > { %331 = vrot.lane.b32.xlu1 %v312_v18, %s1541_s22 }
  0x29   : > { %329 = vrot.lane.b32.xlu0 %v305_v20, %s1541_s22 }
  0x8a   : > { %v318_v30 = vpop.permute.xlu1 %317 }
  0x8b   : > { %v352_v33 = vsel %vm343_vm2, %v1585_v0, %v318_v30  ;;  %v314_v34 = vpop.permute.xlu0 %313 }
  0x8c   : > { %v1303_v35 = vcombine.low %v352_v33, %v335_v27  ;;  %v346_v36 = vsel %vm343_vm2, %v1589_v2, %v314_v34 }
  0x8d   : > { %v1301_v37 = vcombine.low %v346_v36, %v333_v28 }
  0x8e   : > { %429 = vst.msk [vmem:[#allocation2 + $0x10] sm:$0xff] %vm1695_vm5, %v1303_v35  ;;  %v320_v7 = vpop.permute.xlu1 %319 }
  0x8f   : > { %427 = vst.msk [vmem:[#allocation2] sm:$0xff] %vm1695_vm5, %v1301_v37  ;;  %v355_v0 = vsel %vm343_vm2, %v1596_v5, %v320_v7  ;;  %v316_v39 = vpop.permute.xlu0 %315 }
  0x90   : > { %v1304_v41 = vcombine.low %v355_v0, %v336_v3  ;;  %v349_v2 = vsel %vm343_vm2, %v1606_v9, %v316_v39 }
  0x91   : > { %v1302_v42 = vcombine.low %v349_v2, %v334_v38 }
  0x92   : > { %430 = vst.msk [vmem:[#allocation2 + $0x18] sm:$0xff] %vm1695_vm5, %v1304_v41  ;;  %v324_v43 = vpop.permute.xlu1 %323 }
  0x93   : > { %428 = vst.msk [vmem:[#allocation2 + $0x8] sm:$0xff] %vm1695_vm5, %v1302_v42  ;;  %v361_v5 = vsel %vm343_vm2, %v1610_v11, %v324_v43  ;;  %v322_v47 = vpop.permute.xlu0 %321 }
  0x94   : > { %v1306_v48 = vcombine.low %v361_v5, %v338_v8  ;;  %v358_v9 = vsel %vm343_vm2, %v1619_v16, %v322_v47 }
  0x95   : > { %v1305_v49 = vcombine.low %v358_v9, %v337_v14 }
  0x96   : > { %432 = vst.msk [vmem:[#allocation2 + $0x28] sm:$0xff] %vm1695_vm5, %v1306_v48  ;;  %v328_v52 = vpop.permute.xlu1 %327 }
  0x97   : > { %431 = vst.msk [vmem:[#allocation2 + $0x20] sm:$0xff] %vm1695_vm5, %v1305_v49  ;;  %v367_v11 = vsel %vm343_vm2, %v1632_v26, %v328_v52  ;;  %v326_v53 = vpop.permute.xlu0 %325 }
  0x98   : > { %v1308_v54 = vcombine.low %v367_v11, %v340_v25  ;;  %v364_v16 = vsel %vm343_vm2, %v1639_v31, %v326_v53 }
  0x99   : > { %v1307_v55 = vcombine.low %v364_v16, %v339_v29 }
  0x9a   : > { %434 = vst.msk [vmem:[#allocation2 + $0x38] sm:$0xff] %vm1695_vm5, %v1308_v54  ;;  %v332_v56 = vpop.permute.xlu1 %331 }
  0x9b   : > { %433 = vst.msk [vmem:[#allocation2 + $0x30] sm:$0xff] %vm1695_vm5, %v1307_v55  ;;  %v373_v26 = vsel %vm343_vm2, %v1646_v40, %v332_v56  ;;  %v330_v57 = vpop.permute.xlu0 %329 }
  0x9c   : > { %v1310_v58 = vcombine.low %v373_v26, %v342_v44  ;;  %v370_v31 = vsel %vm343_vm2, %v1658_v46, %v330_v57 }
  0x9d   : > { %v1309_v59 = vcombine.low %v370_v31, %v341_v45 }
  0x9e   : > { %436 = vst.msk [vmem:[#allocation2 + $0x48] sm:$0xff] %vm1695_vm5, %v1310_v58 }
  0x9f   : > { %435 = vst.msk [vmem:[#allocation2 + $0x40] sm:$0xff] %vm1695_vm5, %v1309_v59 }
  0xa0 LB: >> { %v1755_v40 = vld [vmem:[%s2100_s1 + $0x98] sm:$0xff]   ;;  %v1543_v46 = vmov 0   ;;  %v1768_v51 = vld [vmem:[%s2100_s1 + $0x90] sm:$0xff]   ;;  %v1782_v61 = vld [vmem:[%s2100_s1 + $0x88] sm:$0xff]   ;;  %s1431_s23 = sshll.u32 %s1539_s25, 4  ;;  %v1544_v53 = vmov 0.0   ;;  %s1539_s25 = sphi %s1747_s25, %s454_s25  }
  0xa1   : >> { %595 = vmatprep.subr.bf16.mxu0 %v1543_v46  ;;  %716 = vmatprep.subr.bf16.mxu1 %v1543_v46  ;;  %v1762_v50 = vld [vmem:[%s2100_s1 + $0x38] sm:$0xff]   ;;  %v1775_v60 = vld [vmem:[%s2100_s1 + $0x30] sm:$0xff]   ;;  %v1789_v63 = vld [vmem:[%s2100_s1 + $0x28] sm:$0xff]   ;;  %s1849_s4 = scalar_lea.vmem [#allocation2], %s1431_s23  ;;  %vm1545_vm6 = vmmov 0   ;;  %vm1054_vm7 = vcmask 64512  }
  0xa2   : >> { %596 = vmatpush1.bf16.msra.mxu0 %v1755_v40  ;;  %717 = vmatpush1.bf16.msra.mxu1 %v1762_v50  ;;  %v1796_v1 = vld [vmem:[%s2100_s1 + $0x80] sm:$0xff]   ;;  %v1810_v6 = vld [vmem:[%s2100_s1 + $0x78] sm:$0xff]   ;;  %v1824_v12 = vld [vmem:[%s2100_s1 + $0x70] sm:$0xff]   ;;  %vm1205_vm8 = vcmask 517120  }
  0xa3   : >> { %597 = vmatprep.subr.bf16.mxu0 %v1543_v46  ;;  %718 = vmatprep.subr.bf16.mxu1 %v1543_v46  ;;  %v1803_v4 = vld [vmem:[%s2100_s1 + $0x20] sm:$0xff]   ;;  %v1817_v10 = vld [vmem:[%s2100_s1 + $0x18] sm:$0xff]   ;;  %v1832_v13 = vld [vmem:[%s2100_s1 + $0x10] sm:$0xff]  }
  0xa4   : >> { %v1839_v15 = vld [vmem:[%s2100_s1 + $0x68] sm:$0xff]   ;;  %v1859_v22 = vld [vmem:[%s2100_s1 + $0x60] sm:$0xff]   ;;  %v1876_v28 = vld [vmem:[%s2100_s1 + $0xb8] sm:$0xff]  }
  0xa5   : >> { %v1846_v17 = vld [vmem:[%s2100_s1 + $0x8] sm:$0xff]   ;;  %v1866_v27 = vld [vmem:[%s2100_s1] sm:$0xff]   ;;  %v1883_v30 = vld [vmem:[%s2100_s1 + $0x58] sm:$0xff]  }
  0xa6   : >> { %598 = vmatpush1.bf16.msra.mxu0 %v1768_v51  ;;  %719 = vmatpush1.bf16.msra.mxu1 %v1775_v60  ;;  %v1318_v18 = vld [vmem:[%s1849_s4 + $0x8] sm:$0xff]  ;;  %v459_v19 = vld [vmem:[%s1849_s4] sm:$0xff]  ;;  %v1890_v32 = vld [vmem:[%s2100_s1 + $0xb0] sm:$0xff]  }
  0xa7   : >> { %599 = vmatprep.subr.bf16.mxu0 %v1543_v46  ;;  %720 = vmatprep.subr.bf16.mxu1 %v1543_v46  ;;  %v1853_v20 = vcombine.high %v1318_v18, %v1318_v18  ;;  %v1359_v21 = vcombine.high %v459_v19, %v459_v19  ;;  %v1897_v33 = vld [vmem:[%s2100_s1 + $0x50] sm:$0xff]   ;;  %v1904_v34 = vld [vmem:[%s2100_s1 + $0xa8] sm:$0xff]   ;;  %v1918_v36 = vld [vmem:[%s2100_s1 + $0xa0] sm:$0xff]   ;;  %v1928_v37 = vcombine.low %v1318_v18, %v1318_v18 }
  0xa8   : >> { %v1911_v35 = vld [vmem:[%s2100_s1 + $0x48] sm:$0xff]   ;;  %v1925_v3 = vld [vmem:[%s2100_s1 + $0x40] sm:$0xff]   ;;  %v1931_v38 = vld [vmem:[%s1849_s4 + $0x10] sm:$0xff]  ;;  %v1358_v7 = vcombine.low %v459_v19, %v459_v19 }
  0xa9   : >> { %1357 = vmatprep.mubr.msk.bf16.mxu0 %vm343_vm2, %v1853_v20  ;;  %1372 = vmatprep.mubr.msk.bf16.mxu1 %vm343_vm2, %v1359_v21  ;;  %v1937_v0 = vld [vmem:[%s2100_s1 + $0xf8] sm:$0xff]   ;;  %v1401_v39 = vcombine.high %v1931_v38, %v1931_v38  ;;  %v1949_v41 = vld [vmem:[%s2100_s1 + $0xf0] sm:$0xff]   ;;  %v1960_v2 = vld [vmem:[%s2100_s1 + $0xe8] sm:$0xff]   ;;  %v1400_v49 = vcombine.low %v1931_v38, %v1931_v38 }
  0xaa   : >> { %600 = vmatpush1.bf16.msra.mxu0 %v1782_v61  ;;  %721 = vmatpush1.bf16.msra.mxu1 %v1789_v63  ;;  %v1969_v8 = vld [vmem:[%s2100_s1 + $0xe0] sm:$0xff]   ;;  %v1978_v42 = vld [vmem:[%s2100_s1 + $0xd8] sm:$0xff]   ;;  %v1987_v14 = vld [vmem:[%s2100_s1 + $0xd0] sm:$0xff]  }
  0xab   : >> { %601 = vmatprep.subr.bf16.mxu0 %v1543_v46  ;;  %722 = vmatprep.subr.bf16.mxu1 %v1543_v46  ;;  %v1996_v43 = vld [vmem:[%s2100_s1 + $0xc8] sm:$0xff]   ;;  %v2005_v5 = vld [vmem:[%s2100_s1 + $0xc0] sm:$0xff]   ;;  %v1517_v47 = vld [vmem:[%s2100_s1 + $0x118] sm:$0xff]  }
  0xac   : >> { %v1518_v48 = vld [vmem:[%s2100_s1 + $0x110] sm:$0xff]   ;;  %v1519_v9 = vld [vmem:[%s2100_s1 + $0x108] sm:$0xff]   ;;  %v1520_v25 = vld [vmem:[%s2100_s1 + $0x100] sm:$0xff]  }
  0xad   : >> { %v1420_v29 = vld [vmem:[%s1849_s4 + $0x18] sm:$0xff]  ;;  %s1426_s4 = sshll.u32 %s1539_s25, 1  ;;  %s454_s25 = sadd.s32 1, %s1539_s25  }
  0xae   : >> { %602 = vmatpush1.bf16.msra.mxu0 %v1796_v1  ;;  %723 = vmatpush1.bf16.msra.mxu1 %v1803_v4  ;;  %v1422_v52 = vcombine.high %v1420_v29, %v1420_v29  ;;  %v1421_v11 = vcombine.low %v1420_v29, %v1420_v29  ;;  %s1204_s29 = scalar_lea.vmem %s1577_s18, %s1426_s4  ;;  %p451_p4 = scmp.ge.s32.totalorder %s454_s25, 4  }
  0xaf   : >> { %603 = vmatprep.subr.bf16.mxu0 %v1543_v46  ;;  %724 = vmatprep.subr.bf16.mxu1 %v1543_v46 }
  0xb2   : >> { %604 = vmatpush1.bf16.msra.mxu0 %v1810_v6  ;;  %725 = vmatpush1.bf16.msra.mxu1 %v1817_v10 }
  0xb3   : >> { %605 = vmatprep.subr.bf16.mxu0 %v1543_v46  ;;  %726 = vmatprep.subr.bf16.mxu1 %v1543_v46 }
  0xb6   : >> { %606 = vmatpush1.bf16.msra.mxu0 %v1824_v12  ;;  %727 = vmatpush1.bf16.msra.mxu1 %v1832_v13 }
  0xb7   : >> { %607 = vmatprep.subr.bf16.mxu0 %v1543_v46  ;;  %728 = vmatprep.subr.bf16.mxu1 %v1543_v46 }
  0xba   : >> { %608 = vmatpush1.bf16.msra.mxu0 %v1839_v15  ;;  %729 = vmatpush1.bf16.msra.mxu1 %v1846_v17 }
  0xbb   : >> { %609 = vmatprep.subr.bf16.mxu0 %v1543_v46  ;;  %730 = vmatprep.subr.bf16.mxu1 %v1543_v46 }
  0xbe   : >> { %610 = vmatpush1.bf16.msra.mxu0 %v1859_v22  ;;  %731 = vmatpush1.bf16.msra.mxu1 %v1866_v27 }
  0xbf   : >> { %619 = vmatprep.subr.bf16.mxu0 %v1543_v46  ;;  %740 = vmatprep.subr.bf16.mxu1 %v1543_v46 }
  0xc2   : >> { %620 = vmatpush2.bf16.msra.mxu0 %v1876_v28  ;;  %741 = vmatpush2.bf16.msra.mxu1 %v1883_v30 }
  0xc3   : >> { %621 = vmatprep.subr.bf16.mxu0 %v1543_v46  ;;  %742 = vmatprep.subr.bf16.mxu1 %v1543_v46 }
  0xc6   : >> { %622 = vmatpush2.bf16.msra.mxu0 %v1890_v32  ;;  %743 = vmatpush2.bf16.msra.mxu1 %v1897_v33 }
  0xc7   : >> { %623 = vmatprep.subr.bf16.mxu0 %v1543_v46  ;;  %744 = vmatprep.subr.bf16.mxu1 %v1543_v46 }
  0xca   : >> { %624 = vmatpush2.bf16.msra.mxu0 %v1904_v34  ;;  %745 = vmatpush2.bf16.msra.mxu1 %v1911_v35 }
  0xcb   : >> { %625 = vmatprep.subr.bf16.mxu0 %v1543_v46  ;;  %746 = vmatprep.subr.bf16.mxu1 %v1543_v46 }
  0xce   : >> { %626 = vmatpush2.bf16.msra.mxu0 %v1918_v36  ;;  %747 = vmatpush2.bf16.msra.mxu1 %v1925_v3 }
  0xcf   : >> { %867 = vmatprep.subr.bf16.mxu0 %v1543_v46  ;;  %916 = vmatprep.subr.bf16.mxu1 %v1543_v46 }
  0xd1   : >> { %628 = vmatmul.mubr.bf16.vlgmr.msra.gmra.mxu0 %v1928_v37  ;;  %749 = vmatmul.mubr.bf16.vlgmr.msra.gmra.mxu1 %v1358_v7 }
  0xd2   : >> { %868 = vmatpush1.bf16.msra.mxu0 %v1937_v0  ;;  %917 = vmatpush1.bf16.msra.mxu1 %v1755_v40 }
  0xd3   : >> { %869 = vmatprep.subr.bf16.mxu0 %v1543_v46  ;;  %918 = vmatprep.subr.bf16.mxu1 %v1543_v46 }
  0xd4   : >> { %1414 = vmatprep.mubr.msk.bf16.mxu0 %vm343_vm2, %v1401_v39  ;;  %1416 = vmatprep.mubr.msk.bf16.mxu1 %vm343_vm2, %v1401_v39 }
  0xd6   : >> { %870 = vmatpush1.bf16.msra.mxu0 %v1949_v41  ;;  %919 = vmatpush1.bf16.msra.mxu1 %v1768_v51 }
  0xd7   : >> { %871 = vmatprep.subr.bf16.mxu0 %v1543_v46  ;;  %920 = vmatprep.subr.bf16.mxu1 %v1543_v46 }
  0xda   : >> { %872 = vmatpush1.bf16.msra.mxu0 %v1960_v2  ;;  %921 = vmatpush1.bf16.msra.mxu1 %v1782_v61 }
  0xdb   : >> { %873 = vmatprep.subr.bf16.mxu0 %v1543_v46  ;;  %922 = vmatprep.subr.bf16.mxu1 %v1543_v46 }
  0xde   : >> { %874 = vmatpush1.bf16.msra.mxu0 %v1969_v8  ;;  %923 = vmatpush1.bf16.msra.mxu1 %v1796_v1 }
  0xdf   : >> { %875 = vmatprep.subr.bf16.mxu0 %v1543_v46  ;;  %924 = vmatprep.subr.bf16.mxu1 %v1543_v46 }
  0xe2   : >> { %876 = vmatpush1.bf16.msra.mxu0 %v1978_v42  ;;  %925 = vmatpush1.bf16.msra.mxu1 %v1810_v6 }
  0xe3   : >> { %877 = vmatprep.subr.bf16.mxu0 %v1543_v46  ;;  %926 = vmatprep.subr.bf16.mxu1 %v1543_v46 }
  0xe6   : >> { %878 = vmatpush1.bf16.msra.mxu0 %v1987_v14  ;;  %927 = vmatpush1.bf16.msra.mxu1 %v1824_v12 }
  0xe7   : >> { %879 = vmatprep.subr.bf16.mxu0 %v1543_v46  ;;  %928 = vmatprep.subr.bf16.mxu1 %v1543_v46 }
  0xea   : >> { %880 = vmatpush1.bf16.msra.mxu0 %v1996_v43  ;;  %929 = vmatpush1.bf16.msra.mxu1 %v1839_v15 }
  0xeb   : >> { %881 = vmatprep.subr.bf16.mxu0 %v1543_v46  ;;  %930 = vmatprep.subr.bf16.mxu1 %v1543_v46 }
  0xee   : >> { %882 = vmatpush1.bf16.msra.mxu0 %v2005_v5  ;;  %931 = vmatpush1.bf16.msra.mxu1 %v1859_v22 }
  0xef   : >> { %891 = vmatprep.subr.bf16.mxu0 %v1543_v46  ;;  %940 = vmatprep.subr.bf16.mxu1 %v1543_v46 }
  0xf2   : >> { %892 = vmatpush2.bf16.msra.mxu0 %v1517_v47  ;;  %941 = vmatpush2.bf16.msra.mxu1 %v1876_v28 }
  0xf3   : >> { %893 = vmatprep.subr.bf16.mxu0 %v1543_v46  ;;  %942 = vmatprep.subr.bf16.mxu1 %v1543_v46 }
  0xf6   : >> { %894 = vmatpush2.bf16.msra.mxu0 %v1518_v48  ;;  %943 = vmatpush2.bf16.msra.mxu1 %v1890_v32 }
  0xf7   : >> { %895 = vmatprep.subr.bf16.mxu0 %v1543_v46  ;;  %944 = vmatprep.subr.bf16.mxu1 %v1543_v46 }
  0xfa   : >> { %896 = vmatpush2.bf16.msra.mxu0 %v1519_v9  ;;  %945 = vmatpush2.bf16.msra.mxu1 %v1904_v34 }
  0xfb   : >> { %897 = vmatprep.subr.bf16.mxu0 %v1543_v46  ;;  %946 = vmatprep.subr.bf16.mxu1 %v1543_v46 }
  0xfe   : >> { %898 = vmatpush2.bf16.msra.mxu0 %v1520_v25  ;;  %947 = vmatpush2.bf16.msra.mxu1 %v1918_v36 }
  0xff   : >> { %956 = vmatprep.subr.bf16.mxu0 %v1543_v46  ;;  %1010 = vmatprep.subr.bf16.mxu1 %v1543_v46 }
 0x101   : >> { %900 = vmatmul.mubr.bf16.vlgmr.msra.gmra.mxu0 %v1400_v49  ;;  %949 = vmatmul.mubr.bf16.vlgmr.msra.gmra.mxu1 %v1400_v49 }
 0x102   : >> { %957 = vmatpush1.bf16.msra.mxu0 %v1762_v50  ;;  %1011 = vmatpush1.bf16.msra.mxu1 %v1937_v0 }
 0x103   : >> { %958 = vmatprep.subr.bf16.mxu0 %v1543_v46  ;;  %1012 = vmatprep.subr.bf16.mxu1 %v1543_v46 }
 0x104   : >> { %1417 = vmatprep.mubr.msk.bf16.mxu0 %vm343_vm2, %v1853_v20  ;;  %1423 = vmatprep.mubr.msk.bf16.mxu1 %vm343_vm2, %v1422_v52 }
 0x106   : >> { %959 = vmatpush1.bf16.msra.mxu0 %v1775_v60  ;;  %1013 = vmatpush1.bf16.msra.mxu1 %v1949_v41 }
 0x107   : >> { %960 = vmatprep.subr.bf16.mxu0 %v1543_v46  ;;  %1014 = vmatprep.subr.bf16.mxu1 %v1543_v46 }
 0x10a   : >> { %961 = vmatpush1.bf16.msra.mxu0 %v1789_v63  ;;  %1015 = vmatpush1.bf16.msra.mxu1 %v1960_v2 }
 0x10b   : >> { %962 = vmatprep.subr.bf16.mxu0 %v1543_v46  ;;  %1016 = vmatprep.subr.bf16.mxu1 %v1543_v46 }
 0x10e   : >> { %963 = vmatpush1.bf16.msra.mxu0 %v1803_v4  ;;  %1017 = vmatpush1.bf16.msra.mxu1 %v1969_v8 }
 0x10f   : >> { %964 = vmatprep.subr.bf16.mxu0 %v1543_v46  ;;  %1018 = vmatprep.subr.bf16.mxu1 %v1543_v46 }
 0x112   : >> { %965 = vmatpush1.bf16.msra.mxu0 %v1817_v10  ;;  %1019 = vmatpush1.bf16.msra.mxu1 %v1978_v42 }
 0x113   : >> { %966 = vmatprep.subr.bf16.mxu0 %v1543_v46  ;;  %1020 = vmatprep.subr.bf16.mxu1 %v1543_v46 }
 0x116   : >> { %967 = vmatpush1.bf16.msra.mxu0 %v1832_v13  ;;  %1021 = vmatpush1.bf16.msra.mxu1 %v1987_v14 }
 0x117   : >> { %968 = vmatprep.subr.bf16.mxu0 %v1543_v46  ;;  %1022 = vmatprep.subr.bf16.mxu1 %v1543_v46 }
 0x11a   : >> { %969 = vmatpush1.bf16.msra.mxu0 %v1846_v17  ;;  %1023 = vmatpush1.bf16.msra.mxu1 %v1996_v43 }
 0x11b   : >> { %970 = vmatprep.subr.bf16.mxu0 %v1543_v46  ;;  %1024 = vmatprep.subr.bf16.mxu1 %v1543_v46 }
 0x11e   : >> { %971 = vmatpush1.bf16.msra.mxu0 %v1866_v27  ;;  %1025 = vmatpush1.bf16.msra.mxu1 %v2005_v5 }
 0x11f   : >> { %980 = vmatprep.subr.bf16.mxu0 %v1543_v46  ;;  %1034 = vmatprep.subr.bf16.mxu1 %v1543_v46 }
 0x122   : >> { %981 = vmatpush2.bf16.msra.mxu0 %v1883_v30  ;;  %1035 = vmatpush2.bf16.msra.mxu1 %v1517_v47 }
 0x123   : >> { %982 = vmatprep.subr.bf16.mxu0 %v1543_v46  ;;  %1036 = vmatprep.subr.bf16.mxu1 %v1543_v46 }
 0x126   : >> { %983 = vmatpush2.bf16.msra.mxu0 %v1897_v33  ;;  %1037 = vmatpush2.bf16.msra.mxu1 %v1518_v48 }
 0x127   : >> { %984 = vmatprep.subr.bf16.mxu0 %v1543_v46  ;;  %1038 = vmatprep.subr.bf16.mxu1 %v1543_v46 }
 0x12a   : >> { %985 = vmatpush2.bf16.msra.mxu0 %v1911_v35  ;;  %1039 = vmatpush2.bf16.msra.mxu1 %v1519_v9 }
 0x12b   : >> { %986 = vmatprep.subr.bf16.mxu0 %v1543_v46  ;;  %1040 = vmatprep.subr.bf16.mxu1 %v1543_v46 }
 0x12e   : >> { %987 = vmatpush2.bf16.msra.mxu0 %v1925_v3  ;;  %1041 = vmatpush2.bf16.msra.mxu1 %v1520_v25 }
 0x12f   : >> { %1439 = vmatprep.subr.mxu0 %v1544_v53  ;;  %1444 = vmatprep.subr.mxu1 %v1544_v53 }
 0x131   : >> { %989 = vmatmul.mubr.bf16.vlgmr.msra.gmra.mxu0 %v1928_v37  ;;  %1043 = vmatmul.mubr.bf16.vlgmr.msra.gmra.mxu1 %v1421_v11 }
 0x132   : >> { %1441 = vmatprep.mubr.msk.f32.mxu0 %vm1545_vm6, %v1544_v53  ;;  %1446 = vmatprep.mubr.msk.f32.mxu1 %vm1545_vm6, %v1544_v53 }
 0x191   : >> { %v629_v54 = vpop.f32.mrf.mxu0  ;;  %v750_v16 = vpop.f32.mrf.mxu1 }
 0x192   : >> { %v751_v44 = vadd.f32 %v750_v16, %v629_v54 }
 0x193   : >> { %v631_v55 = vpop.f32.mrf.mxu0  ;;  %v752_v45 = vpop.f32.mrf.mxu1 }
 0x195   : >> { %v632_v56 = vpop.f32.mrf.mxu0  ;;  %v753_v26 = vpop.f32.mrf.mxu1 }
 0x197   : >> { %v633_v57 = vpop.f32.mrf.mxu0  ;;  %v754_v58 = vpop.f32.mrf.mxu1 }
 0x1c1   : >> { %v901_v31 = vpop.f32.mrf.mxu0  ;;  %v950_v59 = vpop.f32.mrf.mxu1 }
 0x1c2   : >> { %v907_v63 = vadd.f32 %v901_v31, %v751_v44 }
 0x1c3   : >> { %v903_v40 = vpop.f32.mrf.mxu0  ;;  %v952_v46 = vpop.f32.mrf.mxu1 }
 0x1c4   : >> { %v914_v12 = vadd.f32 %v1679_v62, %v907_v63 }
 0x1c5   : >> { %v904_v50 = vpop.f32.mrf.mxu0  ;;  %v953_v51 = vpop.f32.mrf.mxu1 }
 0x1c6   : >> { %v915_v21 = vmax.f32 %v914_v12, 0.0 }
 0x1c7   : >> { %v905_v60 = vpop.f32.mrf.mxu0  ;;  %v954_v61 = vpop.f32.mrf.mxu1 }
 0x1f1   : >> { %v990_v1 = vpop.f32.mrf.mxu0  ;;  %v1044_v6 = vpop.f32.mrf.mxu1 }
 0x1f2   : >> { %v991_v4 = vadd.f32 %v990_v1, %v950_v59 }
 0x1f3   : >> { %v992_v10 = vpop.f32.mrf.mxu0  ;;  %v1046_v15 = vpop.f32.mrf.mxu1 }
 0x1f4   : >> { %v1050_v13 = vadd.f32 %v1044_v6, %v991_v4 }
 0x1f5   : >> { %v993_v17 = vpop.f32.mrf.mxu0  ;;  %v1047_v19 = vpop.f32.mrf.mxu1 }
 0x1f6   : >> { %v1051_v18 = vadd.f32 %v1679_v62, %v1050_v13 }
 0x1f7   : >> { %v994_v20 = vpop.f32.mrf.mxu0  ;;  %v1048_v27 = vpop.f32.mrf.mxu1 }
 0x1f8   : >> { %v1052_v22 = vmax.f32 %v1051_v18, 0.0 }
 0x1fa   : >> { %v1053_v28 = vmax.f32 %v915_v21, %v1052_v22 }
 0x1fc   : >> { %1440 = vmatpush3.msra.mxu0 %v1053_v28  ;;  %1445 = vmatpush3.msra.mxu1 %v1053_v28 }
 0x1fd   : >> { %1442 = vmatmul.mubr.msk.f32.vlgmr.msra.gmra.mxu0 %vm1054_vm7, %v1687_v23  ;;  %1447 = vmatmul.mubr.msk.f32.vlgmr.msra.gmra.mxu1 %vm1054_vm7, %v1691_v24 }
 0x2bd   : >> { %v1124_v30 = vpop.f32.mrf.mxu0  ;;  %v1197_v32 = vpop.f32.mrf.mxu1 }
 0x2be   : >> { %v1201_v33 = vmax.f32 %v1124_v30, %v1197_v32  ;;  %453 = sbr.rel (!%p451_p4) target bundleno = 160 (0xa0), region = 76 }
 0x2bf   : >> { %v1443_v34 = vpop.f32.mrf.mxu0  ;;  %v1448_v35 = vpop.f32.mrf.mxu1 }
 0x2c0   : >> { %v1202_v36 = vpack.c.bf16 %v1201_v33, %v1201_v33 }
 0x2c2   : >> { %1206 = vst.msk [vmem:[%s1204_s29] sm:$0x3] %vm1205_vm8, %v1202_v36 }
 0x2c3 PF: > { %s13_s12 = sadd.s32 1, %s1535_s12  }
 0x2c4   : > { %p10_p5 = scmp.ge.s32.totalorder %s13_s12, 4  }
 0x2c6   :  { %12 = sbr.rel (!%p10_p5) target bundleno = 1 (0x1), region = 87 }

// kernel: homography_forward.12
= control target key start
LH: loop header
LB: loop body
LE: loop exit
PB: predicated region body
PF: predicated region fallthrough
CT: control target
= control target key end

     0   :  { %s1220_s12 = smov 0   ;;  %s1564_s0 = inlined_call_operand.vmem [shape: bf16[2,10,10,64], index: 0, kind: input, shape index: {}]   ;;  %s1565_s1 = inlined_call_operand.vmem [shape: bf16[3,192,64], index: 1, kind: input, shape index: {}]   ;;  %s1566_s2 = inlined_call_operand.vmem [shape: f32[1,64], index: 2, kind: input, shape index: {}]   ;;  %s1567_s3 = inlined_call_operand.vmem [shape: bf16[2,8,8,64], index: 3, kind: output, shape index: {}]  }
   0x1 LB: > { %s978_s13 = sadd.s32 4294967295, %s1192_s12   ;;  %p982_p0 = scmp.ge.s32.totalorder %s1192_s12, 1  ;;  %s1192_s12 = sphi %s1220_s12, %s13_s12  }
   0x2   : > { %p137_p1 = scmp.lt.s32.totalorder %s1192_s12, 3 }
   0x4   : > { %p138_p2 = pnand %p982_p0, %p137_p1 }
   0x5   : > { %p161_p3 = scmp.lt.s32.totalorder (!%p138_p2), %s978_s13, 1  ;;  %s1198_s22 = smov (!%p138_p2), 64  }
   0x6   : > { %141 = sbr.rel (%p138_p2) target bundleno = 459 (0x1cb), region = 32  ;;  %s1397_s25 = smov (!%p138_p2), 0  }
   0xb   : > { %s1571_s13 = smov (!%p161_p3, %s978_s13), 1  ;;  %v1333_v62 = vld [vmem:[%s1566_s2] ss:$0 sm:$0xff]  ;;  %vm343_vm0 = vcmask 523264   ;;  %vm424_vm1 = vcmask 1043456   ;;  %vm425_vm2 = vcmask 523268  }
   0xc   : > { %s1111_s14 = smul.u32 80, %s1571_s13  ;;  %s1109_s15 = sshll.u32 %s1571_s13, 5  ;;  %vm1345_vm3 = vmor %vm425_vm2, %vm424_vm1 }
   0xd   : > { %s1231_s18 = scalar_lea.vmem %s1567_s3, %s1109_s15 }
   0xe   : > { %s1236_s21 = scalar_lea.vmem %s1564_s0, %s1111_s14 }
   0xf   : > { %v1239_v0 = vld [vmem:[%s1236_s21 + $0x10] sm:$0xf]  ;;  %v178_v1 = vld [vmem:[%s1236_s21 + $0x14] sm:$0x1]  ;;  %v1243_v2 = vld [vmem:[%s1236_s21] sm:$0xf] }
  0x10   : > { %v1246_v3 = vcombine.low %v1239_v0, %v178_v1  ;;  %v174_v4 = vld [vmem:[%s1236_s21 + $0x4] sm:$0x1]  ;;  %v1250_v5 = vld [vmem:[%s1236_s21 + $0x18] sm:$0xf]  ;;  %v180_v6 = vld [vmem:[%s1236_s21 + $0x1c] sm:$0x1] }
  0x11   : > { %v1254_v7 = vcombine.low %v1243_v2, %v174_v4  ;;  %v1257_v8 = vcombine.low %v1250_v5, %v180_v6  ;;  %v1260_v9 = vld [vmem:[%s1236_s21 + $0x8] sm:$0xf]  ;;  %v176_v10 = vld [vmem:[%s1236_s21 + $0xc] sm:$0x1]  ;;  %v1273_v16 = vld [vmem:[%s1236_s21 + $0x20] sm:$0xf] }
  0x12   : > { %v1264_v11 = vld [vmem:[%s1236_s21 + $0x28] sm:$0xf]  ;;  %v258_v12 = vshrl.u32 %v1246_v3, 16  ;;  %v260_v13 = vshll.u32 %v1246_v3, 16  ;;  %v1269_v14 = vcombine.low %v1260_v9, %v176_v10  ;;  %v184_v15 = vld [vmem:[%s1236_s21 + $0x2c] sm:$0x1] }
  0x13   : > { %v244_v17 = vshrl.u32 %v1254_v7, 16  ;;  %v246_v18 = vshll.u32 %v1254_v7, 16  ;;  %v265_v19 = vshrl.u32 %v1257_v8, 16  ;;  %v267_v20 = vshll.u32 %v1257_v8, 16  ;;  %v182_v21 = vld [vmem:[%s1236_s21 + $0x24] sm:$0x1] }
  0x14   : > { %v262_v22 = vrot.slane %v260_v13, 1  ;;  %v251_v23 = vshrl.u32 %v1269_v14, 16  ;;  %v253_v24 = vshll.u32 %v1269_v14, 16  ;;  %v1283_v25 = vcombine.low %v1264_v11, %v184_v15  ;;  %v1286_v26 = vld [vmem:[%s1236_s21 + $0x38] sm:$0xf] }
  0x15   : > { %v248_v27 = vrot.slane %v246_v18, 1  ;;  %v269_v28 = vrot.slane %v267_v20, 1  ;;  %v1289_v29 = vcombine.low %v1273_v16, %v182_v21  ;;  %v188_v30 = vld [vmem:[%s1236_s21 + $0x3c] sm:$0x1]  ;;  %v1293_v31 = vld [vmem:[%s1236_s21 + $0x30] sm:$0xf] }
  0x16   : > { %v263_v32 = vor.u32 %v262_v22, %v258_v12  ;;  %v255_v33 = vrot.slane %v253_v24, 1  ;;  %v281_v34 = vshll.u32 %v1283_v25, 16  ;;  %v186_v35 = vld [vmem:[%s1236_s21 + $0x34] sm:$0x1]  ;;  %v279_v38 = vshrl.u32 %v1283_v25, 16 }
  0x17   : > { %v249_v36 = vor.u32 %v248_v27, %v244_v17  ;;  %v270_v37 = vor.u32 %v269_v28, %v265_v19  ;;  %v274_v39 = vshll.u32 %v1289_v29, 16  ;;  %v1300_v40 = vld [vmem:[%s1236_s21 + $0x48] sm:$0xf]  ;;  %v192_v41 = vld [vmem:[%s1236_s21 + $0x4c] sm:$0x1]  ;;  %v272_v43 = vshrl.u32 %v1289_v29, 16 }
  0x18   : > { %317 = vrot.lane.b32.xlu1 %v263_v32, %s1198_s22  ;;  %v283_v42 = vrot.slane %v281_v34, 1  ;;  %v1306_v44 = vcombine.low %v1286_v26, %v188_v30  ;;  %v1309_v45 = vcombine.low %v1293_v31, %v186_v35  ;;  %v1312_v46 = vld [vmem:[%s1236_s21 + $0x40] sm:$0xf]  ;;  %v190_v47 = vld [vmem:[%s1236_s21 + $0x44] sm:$0x1]  ;;  %v256_v48 = vor.u32 %v255_v33, %v251_v23 }
  0x19   : > { %313 = vrot.lane.b32.xlu0 %v249_v36, %s1198_s22  ;;  %v276_v49 = vrot.slane %v274_v39, 1  ;;  %v1317_v50 = vcombine.low %v1300_v40, %v192_v41  ;;  %v1320_v51 = vcombine.low %v1312_v46, %v190_v47  ;;  %v335_v17 = vrot.slane %v1246_v3, 1 }
  0x1a   : > { %v295_v52 = vshll.u32 %v1306_v44, 16  ;;  %v288_v53 = vshll.u32 %v1309_v45, 16  ;;  %v284_v54 = vor.u32 %v283_v42, %v279_v38  ;;  %v293_v55 = vshrl.u32 %v1306_v44, 16 }
  0x1b   : > { %v309_v57 = vshll.u32 %v1317_v50, 16  ;;  %v277_v58 = vor.u32 %v276_v49, %v272_v43  ;;  %v286_v59 = vshrl.u32 %v1309_v45, 16  ;;  %v302_v61 = vshll.u32 %v1320_v51, 16 }
  0x1c   : > { %319 = vrot.lane.b32.xlu1 %v270_v37, %s1198_s22  ;;  %v297_v56 = vrot.slane %v295_v52, 1  ;;  %v290_v60 = vrot.slane %v288_v53, 1  ;;  %v307_v1 = vshrl.u32 %v1317_v50, 16  ;;  %v300_v10 = vshrl.u32 %v1320_v51, 16 }
  0x1d   : > { %315 = vrot.lane.b32.xlu0 %v256_v48, %s1198_s22  ;;  %v311_v4 = vrot.slane %v309_v57, 1  ;;  %v304_v12 = vrot.slane %v302_v61, 1  ;;  %v333_v18 = vrot.slane %v1254_v7, 1  ;;  %v336_v3 = vrot.slane %v1257_v8, 1 }
  0x1e   : > { %v298_v63 = vor.u32 %v297_v56, %v293_v55  ;;  %v291_v6 = vor.u32 %v290_v60, %v286_v59  ;;  %v334_v28 = vrot.slane %v1269_v14, 1  ;;  %v338_v8 = vrot.slane %v1283_v25, 1 }
  0x1f   : > { %v312_v13 = vor.u32 %v311_v4, %v307_v1  ;;  %v305_v15 = vor.u32 %v304_v12, %v300_v10  ;;  %v337_v14 = vrot.slane %v1289_v29, 1  ;;  %v340_v25 = vrot.slane %v1306_v44, 1 }
  0x20   : > { %323 = vrot.lane.b32.xlu1 %v284_v54, %s1198_s22  ;;  %v339_v29 = vrot.slane %v1309_v45, 1  ;;  %v342_v42 = vrot.slane %v1317_v50, 1  ;;  %v341_v44 = vrot.slane %v1320_v51, 1 }
  0x21   : > { %321 = vrot.lane.b32.xlu0 %v277_v58, %s1198_s22 }
  0x24   : > { %327 = vrot.lane.b32.xlu1 %v298_v63, %s1198_s22 }
  0x25   : > { %325 = vrot.lane.b32.xlu0 %v291_v6, %s1198_s22 }
  0x28   : > { %331 = vrot.lane.b32.xlu1 %v312_v13, %s1198_s22 }
  0x29   : > { %329 = vrot.lane.b32.xlu0 %v305_v15, %s1198_s22 }
  0x8a   : > { %v318_v19 = vpop.permute.xlu1 %317 }
  0x8b   : > { %v352_v21 = vsel %vm343_vm0, %v1239_v0, %v318_v19  ;;  %v314_v22 = vpop.permute.xlu0 %313 }
  0x8c   : > { %v998_v23 = vcombine.low %v352_v21, %v335_v17  ;;  %v346_v24 = vsel %vm343_vm0, %v1243_v2, %v314_v22 }
  0x8d   : > { %v996_v27 = vcombine.low %v346_v24, %v333_v18 }
  0x8e   : > { %429 = vst.msk [vmem:[#allocation2 + $0x10] sm:$0xff] %vm1345_vm3, %v998_v23  ;;  %v320_v7 = vpop.permute.xlu1 %319 }
  0x8f   : > { %427 = vst.msk [vmem:[#allocation2] sm:$0xff] %vm1345_vm3, %v996_v27  ;;  %v355_v0 = vsel %vm343_vm0, %v1250_v5, %v320_v7  ;;  %v316_v30 = vpop.permute.xlu0 %315 }
  0x90   : > { %v999_v32 = vcombine.low %v355_v0, %v336_v3  ;;  %v349_v2 = vsel %vm343_vm0, %v1260_v9, %v316_v30 }
  0x91   : > { %v997_v33 = vcombine.low %v349_v2, %v334_v28 }
  0x92   : > { %430 = vst.msk [vmem:[#allocation2 + $0x18] sm:$0xff] %vm1345_vm3, %v999_v32  ;;  %v324_v34 = vpop.permute.xlu1 %323 }
  0x93   : > { %428 = vst.msk [vmem:[#allocation2 + $0x8] sm:$0xff] %vm1345_vm3, %v997_v33  ;;  %v361_v5 = vsel %vm343_vm0, %v1264_v11, %v324_v34  ;;  %v322_v35 = vpop.permute.xlu0 %321 }
  0x94   : > { %v1001_v36 = vcombine.low %v361_v5, %v338_v8  ;;  %v358_v9 = vsel %vm343_vm0, %v1273_v16, %v322_v35 }
  0x95   : > { %v1000_v37 = vcombine.low %v358_v9, %v337_v14 }
  0x96   : > { %432 = vst.msk [vmem:[#allocation2 + $0x28] sm:$0xff] %vm1345_vm3, %v1001_v36  ;;  %v328_v38 = vpop.permute.xlu1 %327 }
  0x97   : > { %431 = vst.msk [vmem:[#allocation2 + $0x20] sm:$0xff] %vm1345_vm3, %v1000_v37  ;;  %v367_v11 = vsel %vm343_vm0, %v1286_v26, %v328_v38  ;;  %v326_v39 = vpop.permute.xlu0 %325 }
  0x98   : > { %v1003_v41 = vcombine.low %v367_v11, %v340_v25  ;;  %v364_v16 = vsel %vm343_vm0, %v1293_v31, %v326_v39 }
  0x99   : > { %v1002_v43 = vcombine.low %v364_v16, %v339_v29 }
  0x9a   : > { %434 = vst.msk [vmem:[#allocation2 + $0x38] sm:$0xff] %vm1345_vm3, %v1003_v41  ;;  %v332_v45 = vpop.permute.xlu1 %331 }
  0x9b   : > { %433 = vst.msk [vmem:[#allocation2 + $0x30] sm:$0xff] %vm1345_vm3, %v1002_v43  ;;  %v373_v26 = vsel %vm343_vm0, %v1300_v40, %v332_v45  ;;  %v330_v47 = vpop.permute.xlu0 %329 }
  0x9c   : > { %v1005_v48 = vcombine.low %v373_v26, %v342_v42  ;;  %v370_v31 = vsel %vm343_vm0, %v1312_v46, %v330_v47 }
  0x9d   : > { %v1004_v49 = vcombine.low %v370_v31, %v341_v44 }
  0x9e   : > { %436 = vst.msk [vmem:[#allocation2 + $0x48] sm:$0xff] %vm1345_vm3, %v1005_v48 }
  0x9f   : > { %435 = vst.msk [vmem:[#allocation2 + $0x40] sm:$0xff] %vm1345_vm3, %v1004_v49 }
  0xa0 LB: >> { %v1140_v40 = vld [vmem:[%s1565_s1 + $0x98] sm:$0xff]   ;;  %v1199_v50 = vmov 0   ;;  %v1142_v51 = vld [vmem:[%s1565_s1 + $0x90] sm:$0xff]   ;;  %v1144_v53 = vld [vmem:[%s1565_s1 + $0x88] sm:$0xff]   ;;  %s1110_s23 = sshll.u32 %s1196_s25, 3  ;;  %s1106_s28 = sshll.u32 %s1196_s25, 2  ;;  %s1196_s25 = sphi %s1397_s25, %s442_s25  }
  0xa1   : >> { %582 = vmatprep.subr.bf16.mxu0 %v1199_v50  ;;  %703 = vmatprep.subr.bf16.mxu1 %v1199_v50  ;;  %v1141_v46 = vld [vmem:[%s1565_s1 + $0x38] sm:$0xff]   ;;  %v1143_v52 = vld [vmem:[%s1565_s1 + $0x30] sm:$0xff]   ;;  %v1145_v54 = vld [vmem:[%s1565_s1 + $0x28] sm:$0xff]   ;;  %s1459_s4 = scalar_lea.vmem [#allocation2], %s1110_s23  ;;  %s905_s29 = scalar_lea.vmem %s1231_s18, %s1106_s28  ;;  %vm906_vm4 = vcmask 519168  }
  0xa2   : >> { %583 = vmatpush1.bf16.msra.mxu0 %v1140_v40  ;;  %704 = vmatpush1.bf16.msra.mxu1 %v1141_v46  ;;  %v1146_v55 = vld [vmem:[%s1565_s1 + $0x80] sm:$0xff]   ;;  %v1148_v57 = vld [vmem:[%s1565_s1 + $0x78] sm:$0xff]   ;;  %v1150_v59 = vld [vmem:[%s1565_s1 + $0x70] sm:$0xff]   ;;  %s442_s25 = sadd.s32 1, %s1196_s25  }
  0xa3   : >> { %584 = vmatprep.subr.bf16.mxu0 %v1199_v50  ;;  %705 = vmatprep.subr.bf16.mxu1 %v1199_v50  ;;  %v1147_v56 = vld [vmem:[%s1565_s1 + $0x20] sm:$0xff]   ;;  %v1149_v58 = vld [vmem:[%s1565_s1 + $0x18] sm:$0xff]   ;;  %v1151_v60 = vld [vmem:[%s1565_s1 + $0x10] sm:$0xff]   ;;  %p439_p4 = scmp.ge.s32.totalorder %s442_s25, 8  }
  0xa4   : >> { %v1152_v61 = vld [vmem:[%s1565_s1 + $0x68] sm:$0xff]   ;;  %v1154_v12 = vld [vmem:[%s1565_s1 + $0x60] sm:$0xff]   ;;  %v1156_v15 = vld [vmem:[%s1565_s1 + $0xb8] sm:$0xff]  }
  0xa5   : >> { %v1153_v63 = vld [vmem:[%s1565_s1 + $0x8] sm:$0xff]   ;;  %v1155_v13 = vld [vmem:[%s1565_s1] sm:$0xff]   ;;  %v1157_v17 = vld [vmem:[%s1565_s1 + $0x58] sm:$0xff]  }
  0xa6   : >> { %585 = vmatpush1.bf16.msra.mxu0 %v1142_v51  ;;  %706 = vmatpush1.bf16.msra.mxu1 %v1143_v52  ;;  %v1009_v1 = vld [vmem:[%s1459_s4 + $0x8] sm:$0xff]  ;;  %v446_v4 = vld [vmem:[%s1459_s4] sm:$0xff]  ;;  %v1158_v18 = vld [vmem:[%s1565_s1 + $0xb0] sm:$0xff]  }
  0xa7   : >> { %586 = vmatprep.subr.bf16.mxu0 %v1199_v50  ;;  %707 = vmatprep.subr.bf16.mxu1 %v1199_v50  ;;  %v1035_v6 = vcombine.high %v1009_v1, %v1009_v1  ;;  %v1050_v10 = vcombine.high %v446_v4, %v446_v4  ;;  %v1159_v19 = vld [vmem:[%s1565_s1 + $0x50] sm:$0xff]   ;;  %v1160_v20 = vld [vmem:[%s1565_s1 + $0xa8] sm:$0xff]   ;;  %v1162_v22 = vld [vmem:[%s1565_s1 + $0xa0] sm:$0xff]   ;;  %v1034_v3 = vcombine.low %v1009_v1, %v1009_v1 }
  0xa8   : >> { %v1161_v21 = vld [vmem:[%s1565_s1 + $0x48] sm:$0xff]   ;;  %v1163_v23 = vld [vmem:[%s1565_s1 + $0x40] sm:$0xff]   ;;  %v1065_v24 = vld [vmem:[%s1459_s4 + $0x10] sm:$0xff]  ;;  %v1049_v27 = vcombine.low %v446_v4, %v446_v4 }
  0xa9   : >> { %1048 = vmatprep.mubr.msk.bf16.mxu0 %vm343_vm0, %v1035_v6  ;;  %1063 = vmatprep.mubr.msk.bf16.mxu1 %vm343_vm0, %v1050_v10  ;;  %v1168_v28 = vld [vmem:[%s1565_s1 + $0xf8] sm:$0xff]   ;;  %v1091_v7 = vcombine.high %v1065_v24, %v1065_v24  ;;  %v1169_v0 = vld [vmem:[%s1565_s1 + $0xf0] sm:$0xff]   ;;  %v1170_v30 = vld [vmem:[%s1565_s1 + $0xe8] sm:$0xff]   ;;  %v1090_v9 = vcombine.low %v1065_v24, %v1065_v24 }
  0xaa   : >> { %587 = vmatpush1.bf16.msra.mxu0 %v1144_v53  ;;  %708 = vmatpush1.bf16.msra.mxu1 %v1145_v54  ;;  %v1171_v32 = vld [vmem:[%s1565_s1 + $0xe0] sm:$0xff]   ;;  %v1172_v2 = vld [vmem:[%s1565_s1 + $0xd8] sm:$0xff]   ;;  %v1173_v8 = vld [vmem:[%s1565_s1 + $0xd0] sm:$0xff]  }
  0xab   : >> { %588 = vmatprep.subr.bf16.mxu0 %v1199_v50  ;;  %709 = vmatprep.subr.bf16.mxu1 %v1199_v50  ;;  %v1174_v33 = vld [vmem:[%s1565_s1 + $0xc8] sm:$0xff]   ;;  %v1175_v14 = vld [vmem:[%s1565_s1 + $0xc0] sm:$0xff]   ;;  %v1176_v34 = vld [vmem:[%s1565_s1 + $0x118] sm:$0xff]  }
  0xac   : >> { %v1177_v5 = vld [vmem:[%s1565_s1 + $0x110] sm:$0xff]   ;;  %v1178_v35 = vld [vmem:[%s1565_s1 + $0x108] sm:$0xff]   ;;  %v1179_v36 = vld [vmem:[%s1565_s1 + $0x100] sm:$0xff]  }
  0xae   : >> { %589 = vmatpush1.bf16.msra.mxu0 %v1146_v55  ;;  %710 = vmatpush1.bf16.msra.mxu1 %v1147_v56 }
  0xaf   : >> { %590 = vmatprep.subr.bf16.mxu0 %v1199_v50  ;;  %711 = vmatprep.subr.bf16.mxu1 %v1199_v50 }
  0xb2   : >> { %591 = vmatpush1.bf16.msra.mxu0 %v1148_v57  ;;  %712 = vmatpush1.bf16.msra.mxu1 %v1149_v58 }
  0xb3   : >> { %592 = vmatprep.subr.bf16.mxu0 %v1199_v50  ;;  %713 = vmatprep.subr.bf16.mxu1 %v1199_v50 }
  0xb6   : >> { %593 = vmatpush1.bf16.msra.mxu0 %v1150_v59  ;;  %714 = vmatpush1.bf16.msra.mxu1 %v1151_v60 }
  0xb7   : >> { %594 = vmatprep.subr.bf16.mxu0 %v1199_v50  ;;  %715 = vmatprep.subr.bf16.mxu1 %v1199_v50 }
  0xba   : >> { %595 = vmatpush1.bf16.msra.mxu0 %v1152_v61  ;;  %716 = vmatpush1.bf16.msra.mxu1 %v1153_v63 }
  0xbb   : >> { %596 = vmatprep.subr.bf16.mxu0 %v1199_v50  ;;  %717 = vmatprep.subr.bf16.mxu1 %v1199_v50 }
  0xbe   : >> { %597 = vmatpush1.bf16.msra.mxu0 %v1154_v12  ;;  %718 = vmatpush1.bf16.msra.mxu1 %v1155_v13 }
  0xbf   : >> { %606 = vmatprep.subr.bf16.mxu0 %v1199_v50  ;;  %727 = vmatprep.subr.bf16.mxu1 %v1199_v50 }
  0xc2   : >> { %607 = vmatpush2.bf16.msra.mxu0 %v1156_v15  ;;  %728 = vmatpush2.bf16.msra.mxu1 %v1157_v17 }
  0xc3   : >> { %608 = vmatprep.subr.bf16.mxu0 %v1199_v50  ;;  %729 = vmatprep.subr.bf16.mxu1 %v1199_v50 }
  0xc6   : >> { %609 = vmatpush2.bf16.msra.mxu0 %v1158_v18  ;;  %730 = vmatpush2.bf16.msra.mxu1 %v1159_v19 }
  0xc7   : >> { %610 = vmatprep.subr.bf16.mxu0 %v1199_v50  ;;  %731 = vmatprep.subr.bf16.mxu1 %v1199_v50 }
  0xca   : >> { %611 = vmatpush2.bf16.msra.mxu0 %v1160_v20  ;;  %732 = vmatpush2.bf16.msra.mxu1 %v1161_v21 }
  0xcb   : >> { %612 = vmatprep.subr.bf16.mxu0 %v1199_v50  ;;  %733 = vmatprep.subr.bf16.mxu1 %v1199_v50 }
  0xce   : >> { %613 = vmatpush2.bf16.msra.mxu0 %v1162_v22  ;;  %734 = vmatpush2.bf16.msra.mxu1 %v1163_v23 }
  0xcf   : >> { %854 = vmatprep.subr.bf16.mxu0 %v1199_v50 }
  0xd1   : >> { %615 = vmatmul.mubr.bf16.vlgmr.msra.gmra.mxu0 %v1034_v3  ;;  %736 = vmatmul.mubr.bf16.vlgmr.msra.gmra.mxu1 %v1049_v27 }
  0xd2   : >> { %855 = vmatpush1.bf16.msra.mxu0 %v1168_v28  ;;  %1104 = vmatprep.mubr.msk.bf16.mxu0 %vm343_vm0, %v1091_v7 }
  0xd3   : >> { %856 = vmatprep.subr.bf16.mxu0 %v1199_v50 }
  0xd6   : >> { %857 = vmatpush1.bf16.msra.mxu0 %v1169_v0 }
  0xd7   : >> { %858 = vmatprep.subr.bf16.mxu0 %v1199_v50 }
  0xda   : >> { %859 = vmatpush1.bf16.msra.mxu0 %v1170_v30 }
  0xdb   : >> { %860 = vmatprep.subr.bf16.mxu0 %v1199_v50 }
  0xde   : >> { %861 = vmatpush1.bf16.msra.mxu0 %v1171_v32 }
  0xdf   : >> { %862 = vmatprep.subr.bf16.mxu0 %v1199_v50 }
  0xe2   : >> { %863 = vmatpush1.bf16.msra.mxu0 %v1172_v2 }
  0xe3   : >> { %864 = vmatprep.subr.bf16.mxu0 %v1199_v50 }
  0xe6   : >> { %865 = vmatpush1.bf16.msra.mxu0 %v1173_v8 }
  0xe7   : >> { %866 = vmatprep.subr.bf16.mxu0 %v1199_v50 }
  0xea   : >> { %867 = vmatpush1.bf16.msra.mxu0 %v1174_v33 }
  0xeb   : >> { %868 = vmatprep.subr.bf16.mxu0 %v1199_v50 }
  0xee   : >> { %869 = vmatpush1.bf16.msra.mxu0 %v1175_v14 }
  0xef   : >> { %878 = vmatprep.subr.bf16.mxu0 %v1199_v50 }
  0xf2   : >> { %879 = vmatpush2.bf16.msra.mxu0 %v1176_v34 }
  0xf3   : >> { %880 = vmatprep.subr.bf16.mxu0 %v1199_v50 }
  0xf6   : >> { %881 = vmatpush2.bf16.msra.mxu0 %v1177_v5 }
  0xf7   : >> { %882 = vmatprep.subr.bf16.mxu0 %v1199_v50 }
  0xfa   : >> { %883 = vmatpush2.bf16.msra.mxu0 %v1178_v35 }
  0xfb   : >> { %884 = vmatprep.subr.bf16.mxu0 %v1199_v50 }
  0xfe   : >> { %885 = vmatpush2.bf16.msra.mxu0 %v1179_v36 }
 0x101   : >> { %887 = vmatmul.mubr.bf16.vlgmr.msra.gmra.mxu0 %v1090_v9 }
 0x191   : >> { %v616_v25 = vpop.f32.mrf.mxu0  ;;  %v737_v37 = vpop.f32.mrf.mxu1 }
 0x192   : >> { %v738_v42 = vadd.f32 %v737_v37, %v616_v25 }
 0x193   : >> { %v618_v29 = vpop.f32.mrf.mxu0  ;;  %v739_v38 = vpop.f32.mrf.mxu1 }
 0x195   : >> { %v619_v11 = vpop.f32.mrf.mxu0  ;;  %v740_v39 = vpop.f32.mrf.mxu1 }
 0x197   : >> { %v620_v41 = vpop.f32.mrf.mxu0  ;;  %v741_v16 = vpop.f32.mrf.mxu1 }
 0x1c1   : >> { %v888_v43 = vpop.f32.mrf.mxu0 }
 0x1c2   : >> { %v894_v44 = vadd.f32 %v888_v43, %v738_v42 }
 0x1c3   : >> { %v890_v45 = vpop.f32.mrf.mxu0 }
 0x1c4   : >> { %v901_v26 = vadd.f32 %v1333_v62, %v894_v44 }
 0x1c5   : >> { %v891_v47 = vpop.f32.mrf.mxu0 }
 0x1c6   : >> { %v902_v48 = vmax.f32 %v901_v26, 0.0  ;;  %441 = sbr.rel (!%p439_p4) target bundleno = 160 (0xa0), region = 75 }
 0x1c7   : >> { %v892_v31 = vpop.f32.mrf.mxu0 }
 0x1c8   : >> { %v903_v49 = vpack.c.bf16 %v902_v48, %v902_v48 }
 0x1ca   : >> { %907 = vst.msk [vmem:[%s905_s29] sm:$0xf] %vm906_vm4, %v903_v49 }
 0x1cb PF: > { %s13_s12 = sadd.s32 1, %s1192_s12  }
 0x1cc   : > { %p10_p5 = scmp.ge.s32.totalorder %s13_s12, 4  }
 0x1ce   :  { %12 = sbr.rel (!%p10_p5) target bundleno = 1 (0x1), region = 86 }

// kernel: homography_forward.10
= control target key start
LH: loop header
LB: loop body
LE: loop exit
PB: predicated region body
PF: predicated region fallthrough
CT: control target
= control target key end

     0   :  { %s3104_s12 = smov 0   ;;  %s3755_s0 = inlined_call_operand.vmem [shape: bf16[2,18,18,2], index: 0, kind: input, shape index: {}]   ;;  %s3756_s1 = inlined_call_operand.vmem [shape: bf16[3,6,64], index: 1, kind: input, shape index: {}]   ;;  %s3757_s2 = inlined_call_operand.vmem [shape: f32[1,64], index: 2, kind: input, shape index: {}]   ;;  %s3758_s3 = inlined_call_operand.vmem [shape: bf16[2,16,16,64], index: 3, kind: output, shape index: {}]  }
   0x1 LB: > { %s2572_s13 = sadd.s32 4294967295, %s3079_s12   ;;  %p2576_p0 = scmp.ge.s32.totalorder %s3079_s12, 1  ;;  %s3079_s12 = sphi %s3104_s12, %s13_s12  }
   0x2   : > { %p137_p1 = scmp.lt.s32.totalorder %s3079_s12, 3 }
   0x4   : > { %p138_p2 = pnand %p2576_p0, %p137_p1 }
   0x5   : > { %p161_p3 = scmp.lt.s32.totalorder (!%p138_p2), %s2572_s13, 1  ;;  %s3081_s18 = smov (!%p138_p2), 4  }
   0x6   : > { %141 = sbr.rel (%p138_p2) target bundleno = 487 (0x1e7), region = 32  ;;  %s3082_s19 = smov (!%p138_p2), 2  }
   0xb   : > { %s3760_s13 = smov (!%p161_p3, %s2572_s13), 1  ;;  %vm624_vm0 = vcmask 1046528   ;;  %vm371_vm1 = vsmask.f32 7424  ;;  %vm1179_vm2 = vcmask 1042432   ;;  %vm715_vm3 = vcmask 15360  }
   0xc   : > { %s2977_s14 = smul.u32 216, %s3760_s13  ;;  %vm752_vm4 = vcmask 31744   ;;  %vm915_vm5 = vcmask 44032   ;;  %vm952_vm6 = vcmask 523264   ;;  %vm1130_vm7 = vcmask 48128   ;;  %s2785_s28 = sshll.u32 %s3760_s13, 7 }
   0xd   : > { %s3610_s4 = scalar_lea.vmem %s3758_s3, %s2785_s28  ;;  %vm2484_vm8 = vcmask 519168  }
   0xe   : > { %s3118_s17 = scalar_lea.vmem %s3755_s0, %s2977_s14 }
   0xf   : > { %v3121_v0 = vld [vmem:[%s3118_s17 + $0x78] sm:$0xff]   ;;  %v3124_v1 = vld [vmem:[%s3118_s17 + $0x80] ss:$0 sps:$4 sm:$0x11]   ;;  %v3133_v6 = vld [vmem:[%s3118_s17 + $0x84] sm:$0xff]  }
  0x10   : > { %v3127_v2 = vld [vmem:[%s3118_s17 + $0x60] sm:$0xff]   ;;  %v655_v3 = vrot.slane %v3121_v0, 1  ;;  %v656_v4 = vrot.slane %v3124_v1, 1  ;;  %v2992_v5 = vld [vmem:[%s3118_s17 + $0x68] ss:$0 sps:$4 sm:$0x11]  }
  0x11   : > { %v649_v7 = vrot.slane %v3127_v2, 1  ;;  %v3137_v8 = vld [vmem:[%s3118_s17 + $0x6c] sm:$0xff]   ;;  %v650_v10 = vrot.slane %v2992_v5, 1  ;;  %v658_v12 = vrot.slane %v3133_v6, 1  ;;  %v505_v17 = vshrl.u32 %v3133_v6, 16  ;;  %v3153_v25 = vld [vmem:[%s3118_s17] sm:$0xff]  }
  0x12   : > { %v657_v9 = vsel %vm624_vm0, %v655_v3, %v656_v4  ;;  %v2994_v11 = vld [vmem:[%s3118_s17 + $0x8c] ss:$0 sps:$4 sm:$0x11]   ;;  %v652_v13 = vrot.slane %v3137_v8, 1  ;;  %v507_v18 = vshll.u32 %v3133_v6, 16  ;;  %v469_v20 = vshrl.u32 %v3127_v2, 16 }
  0x13   : > { %699 = vrot.lane.b32.xlu0 %v657_v9, %s3081_s18  ;;  %v651_v14 = vsel %vm624_vm0, %v649_v7, %v650_v10  ;;  %v659_v15 = vrot.slane %v2994_v11, 1  ;;  %v2996_v16 = vld [vmem:[%s3118_s17 + $0x74] ss:$0 sps:$4 sm:$0x11]   ;;  %v512_v19 = vshll.u32 %v2994_v11, 16  ;;  %v471_v23 = vshll.u32 %v3127_v2, 16 }
  0x14   : > { %695 = vrot.lane.b32.xlu1 %v651_v14, %s3081_s18  ;;  %v653_v22 = vrot.slane %v2996_v16, 1  ;;  %v476_v24 = vshll.u32 %v2992_v5, 16  ;;  %v509_v26 = vrot.slane %v507_v18, 1  ;;  %v481_v28 = vshrl.u32 %v3137_v8, 16  ;;  %v3164_v39 = vld [vmem:[%s3118_s17 + $0xc] sm:$0xff]   ;;  %v3184_v4 = vld [vmem:[%s3118_s17 + $0x9c] sm:$0xff]  }
  0x15   : > { %v660_v21 = vsel %vm624_vm0, %v658_v12, %v659_v15  ;;  %v514_v27 = vrot.slane %v512_v19, 1  ;;  %v483_v29 = vshll.u32 %v3137_v8, 16  ;;  %v473_v31 = vrot.slane %v471_v23, 1  ;;  %v2998_v34 = vld [vmem:[%s3118_s17 + $0x8] ss:$0 sps:$4 sm:$0x11]  }
  0x16   : > { %v654_v30 = vsel %vm624_vm0, %v652_v13, %v653_v22  ;;  %v478_v32 = vrot.slane %v476_v24, 1  ;;  %v488_v33 = vshll.u32 %v2996_v16, 16  ;;  %v510_v35 = vor.u32 %v509_v26, %v505_v17  ;;  %v3170_v48 = vld [vmem:[%s3118_s17 + $0x90] sm:$0xff]   ;;  %v3002_v3 = vld [vmem:[%s3118_s17 + $0x98] ss:$0 sps:$4 sm:$0x11]  }
  0x17   : > { %701 = vrot.lane.b32.xlu0 %v660_v21, %s3081_s18  ;;  %v485_v36 = vrot.slane %v483_v29, 1  ;;  %v373_v37 = vshrl.u32 %v3153_v25, 16  ;;  %v375_v38 = vshll.u32 %v3153_v25, 16  ;;  %v474_v40 = vor.u32 %v473_v31, %v469_v20  ;;  %v3000_v52 = vld [vmem:[%s3118_s17 + $0x14] ss:$0 sps:$4 sm:$0x11]  }
  0x18   : > { %697 = vrot.lane.b32.xlu1 %v654_v30, %s3081_s18  ;;  %v490_v41 = vrot.slane %v488_v33, 1  ;;  %v380_v42 = vshll.u32 %v2998_v34, 16  ;;  %v493_v43 = vshrl.u32 %v3121_v0, 16  ;;  %v515_v44 = vsel %vm371_vm1, %v510_v35, %v514_v27  ;;  %v3189_v10 = vld [vmem:[%s3118_s17 + $0x18] sm:$0xff]   ;;  %v3205_v26 = vld [vmem:[%s3118_s17 + $0x24] sm:$0xff]  }
  0x19   : > { %v486_v45 = vor.u32 %v485_v36, %v481_v28  ;;  %v377_v46 = vrot.slane %v375_v38, 1  ;;  %v495_v47 = vshll.u32 %v3121_v0, 16  ;;  %v479_v49 = vsel %vm371_vm1, %v474_v40, %v478_v32  ;;  %v3196_v16 = vld [vmem:[%s3118_s17 + $0xa4] ss:$0 sps:$4 sm:$0x11]   ;;  %v3216_v40 = vld [vmem:[%s3118_s17 + $0xa8] sm:$0xff]  }
  0x1a   : > { %v382_v50 = vrot.slane %v380_v42, 1  ;;  %v500_v51 = vshll.u32 %v3124_v1, 16  ;;  %v385_v53 = vshrl.u32 %v3164_v39, 16  ;;  %v387_v56 = vshll.u32 %v3164_v39, 16 }
  0x1b   : > { %604 = vrot.lane.b32.xlu0 %v479_v49, %s3082_s19  ;;  %v378_v54 = vor.u32 %v377_v46, %v373_v37  ;;  %v497_v55 = vrot.slane %v495_v47, 1  ;;  %v491_v57 = vsel %vm371_vm1, %v486_v45, %v490_v41  ;;  %v392_v59 = vshll.u32 %v3000_v52, 16  ;;  %v3006_v30 = vld [vmem:[%s3118_s17 + $0x20] ss:$0 sps:$4 sm:$0x11]  }
  0x1c   : > { %610 = vrot.lane.b32.xlu1 %v515_v44, %s3082_s19  ;;  %v502_v58 = vrot.slane %v500_v51, 1  ;;  %v625_v60 = vrot.slane %v3153_v25, 1  ;;  %v389_v63 = vrot.slane %v387_v56, 1  ;;  %v626_v1 = vrot.slane %v2998_v34, 1 }
  0x1d   : > { %v383_v61 = vsel %vm371_vm1, %v378_v54, %v382_v50  ;;  %v498_v62 = vor.u32 %v497_v55, %v493_v43  ;;  %v394_v5 = vrot.slane %v392_v59, 1  ;;  %v628_v7 = vrot.slane %v3164_v39, 1  ;;  %v3008_v37 = vld [vmem:[%s3118_s17 + $0x2c] ss:$0 sps:$4 sm:$0x11]  }
  0x1e   : > { %v517_v9 = vshrl.u32 %v3170_v48, 16  ;;  %v390_v11 = vor.u32 %v389_v63, %v385_v53  ;;  %v519_v12 = vshll.u32 %v3170_v48, 16  ;;  %v524_v13 = vshll.u32 %v3002_v3, 16  ;;  %v3224_v50 = vld [vmem:[%s3118_s17 + $0xb0] ss:$0 sps:$4 sm:$0x11]  }
  0x1f   : > { %606 = vrot.lane.b32.xlu0 %v491_v57, %s3082_s19  ;;  %v503_v14 = vsel %vm371_vm1, %v498_v62, %v502_v58  ;;  %v629_v15 = vrot.slane %v3000_v52, 1  ;;  %v529_v17 = vshrl.u32 %v3184_v4, 16  ;;  %v531_v18 = vshll.u32 %v3184_v4, 16  ;;  %v3229_v53 = vld [vmem:[%s3118_s17 + $0xb4] sm:$0xff]  }
  0x20   : > { %588 = vrot.lane.b32.xlu1 %v383_v61, %s3082_s19  ;;  %v395_v19 = vsel %vm371_vm1, %v390_v11, %v394_v5  ;;  %v521_v20 = vrot.slane %v519_v12, 1  ;;  %v627_v21 = vsel %vm624_vm0, %v625_v60, %v626_v1  ;;  %v536_v23 = vshll.u32 %v3196_v16, 16  ;;  %v3237_v58 = vld [vmem:[%s3118_s17 + $0xbc] ss:$0 sps:$4 sm:$0x11]   ;;  %v3242_v63 = vld [vmem:[%s3118_s17 + $0x30] sm:$0xff]  }
  0x21   : > { %v533_v22 = vrot.slane %v531_v18, 1  ;;  %v399_v24 = vshll.u32 %v3189_v10, 16  ;;  %v526_v28 = vrot.slane %v524_v13, 1  ;;  %v661_v29 = vrot.slane %v3170_v48, 1  ;;  %v3249_v12 = vld [vmem:[%s3118_s17 + $0x3c] sm:$0xff]  }
  0x22   : > { %v522_v27 = vor.u32 %v521_v20, %v517_v9  ;;  %v397_v31 = vshrl.u32 %v3189_v10, 16  ;;  %v630_v32 = vsel %vm624_vm0, %v628_v7, %v629_v15  ;;  %v538_v34 = vrot.slane %v536_v23, 1 }
  0x23   : > { %608 = vrot.lane.b32.xlu0 %v503_v14, %s3082_s19  ;;  %v534_v33 = vor.u32 %v533_v22, %v529_v17  ;;  %v401_v35 = vrot.slane %v399_v24, 1  ;;  %v404_v36 = vshll.u32 %v3006_v30, 16  ;;  %v411_v38 = vshll.u32 %v3205_v26, 16  ;;  %v3255_v14 = vld [vmem:[%s3118_s17 + $0x38] ss:$0 sps:$4 sm:$0x11]  }
  0x24   : > { %590 = vrot.lane.b32.xlu1 %v395_v19, %s3082_s19  ;;  %v527_v41 = vsel %vm371_vm1, %v522_v27, %v526_v28  ;;  %v662_v43 = vrot.slane %v3002_v3, 1  ;;  %v409_v44 = vshrl.u32 %v3205_v26, 16  ;;  %v416_v49 = vshll.u32 %v3008_v37, 16  ;;  %v3261_v19 = vld [vmem:[%s3118_s17 + $0x44] ss:$0 sps:$4 sm:$0x11]  }
  0x25   : > { %v539_v42 = vsel %vm371_vm1, %v534_v33, %v538_v34  ;;  %v402_v45 = vor.u32 %v401_v35, %v397_v31  ;;  %v406_v46 = vrot.slane %v404_v36, 1  ;;  %v413_v47 = vrot.slane %v411_v38, 1 }
  0x26   : > { %v664_v51 = vrot.slane %v3184_v4, 1  ;;  %v543_v52 = vshll.u32 %v3216_v40, 16  ;;  %v663_v54 = vsel %vm624_vm0, %v661_v29, %v662_v43  ;;  %v665_v55 = vrot.slane %v3196_v16, 1  ;;  %v3281_v43 = vld [vmem:[%s3118_s17 + $0x48] sm:$0xff]  }
  0x27   : > { %679 = vrot.lane.b32.xlu0 %v627_v21, %s3081_s18  ;;  %v631_v56 = vrot.slane %v3189_v10, 1  ;;  %v632_v57 = vrot.slane %v3006_v30, 1  ;;  %v407_v59 = vsel %vm371_vm1, %v402_v45, %v406_v46  ;;  %v414_v60 = vor.u32 %v413_v47, %v409_v44 }
  0x28   : > { %681 = vrot.lane.b32.xlu1 %v630_v32, %s3081_s18  ;;  %v418_v61 = vrot.slane %v416_v49, 1  ;;  %v634_v62 = vrot.slane %v3205_v26, 1  ;;  %v635_v1 = vrot.slane %v3008_v37, 1  ;;  %v555_v3 = vshll.u32 %v3229_v53, 16  ;;  %v3286_v49 = vld [vmem:[%s3118_s17 + $0x54] sm:$0xff]  }
  0x29   : > { %v541_v5 = vshrl.u32 %v3216_v40, 16  ;;  %v545_v7 = vrot.slane %v543_v52, 1  ;;  %v548_v9 = vshll.u32 %v3224_v50, 16  ;;  %v553_v11 = vshrl.u32 %v3229_v53, 16 }
  0x2a   : > { %v560_v13 = vshll.u32 %v3237_v58, 16  ;;  %v666_v15 = vsel %vm624_vm0, %v664_v51, %v665_v55  ;;  %v419_v16 = vsel %vm371_vm1, %v414_v60, %v418_v61  ;;  %v557_v17 = vrot.slane %v555_v3, 1  ;;  %v3292_v52 = vld [vmem:[%s3118_s17 + $0x50] ss:$0 sps:$4 sm:$0x11]  }
  0x2b   : > { %612 = vrot.lane.b32.xlu0 %v527_v41, %s3082_s19  ;;  %v423_v18 = vshll.u32 %v3242_v63, 16  ;;  %v633_v20 = vsel %vm624_vm0, %v631_v56, %v632_v57  ;;  %v435_v21 = vshll.u32 %v3249_v12, 16  ;;  %v636_v22 = vsel %vm624_vm0, %v634_v62, %v635_v1  ;;  %v3298_v56 = vld [vmem:[%s3118_s17 + $0x5c] ss:$0 sps:$4 sm:$0x11]  }
  0x2c   : > { %614 = vrot.lane.b32.xlu1 %v539_v42, %s3082_s19  ;;  %v546_v23 = vor.u32 %v545_v7, %v541_v5  ;;  %v550_v24 = vrot.slane %v548_v9, 1  ;;  %v421_v27 = vshrl.u32 %v3242_v63, 16  ;;  %v558_v28 = vor.u32 %v557_v17, %v553_v11  ;;  %v3301_v57 = vld [vmem:[%s3118_s17 + $0xc8] ss:$0 sps:$4 sm:$0x11]  }
  0x2d   : > { %v562_v29 = vrot.slane %v560_v13, 1  ;;  %v425_v30 = vrot.slane %v423_v18, 1  ;;  %v428_v31 = vshll.u32 %v3255_v14, 16  ;;  %v440_v32 = vshll.u32 %v3261_v19, 16  ;;  %v1049_v17 = vld [vmem:[%s3756_s1] sm:$0x7] }
  0x2e   : > { %v667_v33 = vrot.slane %v3216_v40, 1  ;;  %v668_v34 = vrot.slane %v3224_v50, 1  ;;  %v433_v35 = vshrl.u32 %v3249_v12, 16  ;;  %v437_v36 = vrot.slane %v435_v21, 1  ;;  %v3289_v50 = vld [vmem:[%s3118_s17 + $0xc0] sm:$0xff]   ;;  %2974 = vmatprep.subr.msk.bf16.mxu1 %vm1179_vm2, %v1049_v17  ;;  %2973 = vmatprep.subr.msk.bf16.mxu0 %vm1179_vm2, %v1049_v17 }
  0x2f   : > { %703 = vrot.lane.b32.xlu0 %v663_v54, %s3081_s18  ;;  %v551_v37 = vsel %vm371_vm1, %v546_v23, %v550_v24  ;;  %v670_v38 = vrot.slane %v3229_v53, 1  ;;  %v671_v41 = vrot.slane %v3237_v58, 1  ;;  %v637_v42 = vrot.slane %v3242_v63, 1  ;;  %v3295_v54 = vld [vmem:[%s3118_s17 + $0xcc] sm:$0xff]   ;;  %v2684_v18 = vld [vmem:[%s3756_s1 + $0x4] sm:$0x7] }
  0x30   : > { %592 = vrot.lane.b32.xlu1 %v407_v59, %s3082_s19  ;;  %v563_v44 = vsel %vm371_vm1, %v558_v28, %v562_v29  ;;  %v426_v45 = vor.u32 %v425_v30, %v421_v27  ;;  %v430_v46 = vrot.slane %v428_v31, 1  ;;  %v638_v47 = vrot.slane %v3255_v14, 1  ;;  %v3024_v9 = vld [vmem:[%s3118_s17 + $0xd4] ss:$0 sps:$4 sm:$0x11]  }
  0x31   : > { %v442_v51 = vrot.slane %v440_v32, 1  ;;  %v438_v55 = vor.u32 %v437_v36, %v433_v35  ;;  %v669_v58 = vsel %vm624_vm0, %v667_v33, %v668_v34  ;;  %v447_v59 = vshll.u32 %v3281_v43, 16  ;;  %v2717_v23 = vld [vmem:[%s3756_s1 + $0x8] sm:$0x7] }
  0x32   : > { %v673_v60 = vrot.slane %v3289_v50, 1  ;;  %v431_v61 = vsel %vm371_vm1, %v426_v45, %v430_v46  ;;  %v640_v62 = vrot.slane %v3249_v12, 1  ;;  %v459_v1 = vshll.u32 %v3286_v49, 16 }
  0x33   : > { %705 = vrot.lane.b32.xlu0 %v666_v15, %s3081_s18  ;;  %v674_v3 = vrot.slane %v3301_v57, 1  ;;  %v672_v5 = vsel %vm624_vm0, %v670_v38, %v671_v41  ;;  %v641_v7 = vrot.slane %v3261_v19, 1  ;;  %v676_v11 = vrot.slane %v3295_v54, 1 }
  0x34   : > { %594 = vrot.lane.b32.xlu1 %v419_v16, %s3082_s19  ;;  %v443_v13 = vsel %vm371_vm1, %v438_v55, %v442_v51  ;;  %v445_v14 = vshrl.u32 %v3281_v43, 16  ;;  %v452_v15 = vshll.u32 %v3292_v52, 16  ;;  %v449_v19 = vrot.slane %v447_v59, 1 }
  0x35   : > { %v675_v16 = vsel %vm624_vm0, %v673_v60, %v674_v3  ;;  %v677_v21 = vrot.slane %v3024_v9, 1  ;;  %v461_v24 = vrot.slane %v459_v1, 1  ;;  %v464_v27 = vshll.u32 %v3298_v56, 16 }
  0x36   : > { %v3337_v28 = vsel %vm1179_vm2, %v2684_v18, 0  ;;  %v3340_v29 = vsel %vm1179_vm2, %v2717_v23, 0  ;;  %v639_v31 = vsel %vm624_vm0, %v637_v42, %v638_v47  ;;  %v450_v32 = vor.u32 %v449_v19, %v445_v14 }
  0x37   : > { %683 = vrot.lane.b32.xlu0 %v633_v20, %s3081_s18  ;;  %v457_v20 = vshrl.u32 %v3286_v49, 16  ;;  %v678_v30 = vsel %vm624_vm0, %v676_v11, %v677_v21  ;;  %v454_v33 = vrot.slane %v452_v15, 1  ;;  %v642_v34 = vsel %vm624_vm0, %v640_v62, %v641_v7 }
  0x38   : > { %685 = vrot.lane.b32.xlu1 %v636_v22, %s3081_s18  ;;  %v1181_v22 = vsel %vm1179_vm2, %v1049_v17, 0  ;;  %v466_v36 = vrot.slane %v464_v27, 1  ;;  %v643_v38 = vrot.slane %v3281_v43, 1  ;;  %v644_v41 = vrot.slane %v3292_v52, 1 }
  0x39   : > { %2972 = vmatpush3.bf16.msra.mxu1 %v1181_v22  ;;  %2870 = vmatpush3.bf16.msra.mxu0 %v1181_v22  ;;  %v462_v35 = vor.u32 %v461_v24, %v457_v20  ;;  %v646_v42 = vrot.slane %v3286_v49, 1  ;;  %v647_v45 = vrot.slane %v3298_v56, 1  ;;  %v565_v46 = vshrl.u32 %v3289_v50, 16 }
  0x3a   : > { %2975 = vmatprep.subr.msk.bf16.mxu1 %vm1179_vm2, %v2684_v18  ;;  %2976 = vmatprep.subr.msk.bf16.mxu0 %vm1179_vm2, %v2717_v23  ;;  %v572_v55 = vshll.u32 %v3301_v57, 16  ;;  %v645_v52 = vsel %vm624_vm0, %v643_v38, %v644_v41  ;;  %v577_v60 = vshrl.u32 %v3295_v54, 16  ;;  %v584_v1 = vshll.u32 %v3024_v9, 16 }
  0x3b   : > { %616 = vrot.lane.b32.xlu0 %v551_v37, %s3082_s19  ;;  %v567_v37 = vshll.u32 %v3289_v50, 16  ;;  %v467_v47 = vsel %vm371_vm1, %v462_v35, %v466_v36  ;;  %v648_v59 = vsel %vm624_vm0, %v646_v42, %v647_v45  ;;  %v3083_v27 = vmov 0.0  }
  0x3c   : > { %618 = vrot.lane.b32.xlu1 %v563_v44, %s3082_s19  ;;  %v455_v44 = vsel %vm371_vm1, %v450_v32, %v454_v33  ;;  %971 = vst.msk [vmem:[#allocation3 + $0x90] sm:$0xff] %vm952_vm6, %v3083_v27  ;;  %953 = vst.msk [vmem:[#allocation3] sm:$0xff] %vm952_vm6, %v3083_v27 }
  0x3d   : > { %v569_v51 = vrot.slane %v567_v37, 1  ;;  %954 = vst.msk [vmem:[#allocation3 + $0x8] sm:$0xff] %vm952_vm6, %v3083_v27  ;;  %955 = vst.msk [vmem:[#allocation3 + $0x10] sm:$0xff] %vm952_vm6, %v3083_v27 }
  0x3e   : > { %956 = vst.msk [vmem:[#allocation3 + $0x18] sm:$0xff] %vm952_vm6, %v3083_v27  ;;  %957 = vst.msk [vmem:[#allocation3 + $0x20] sm:$0xff] %vm952_vm6, %v3083_v27 }
  0x3f   : > { %707 = vrot.lane.b32.xlu0 %v669_v58, %s3081_s18  ;;  %v579_v58 = vshll.u32 %v3295_v54, 16  ;;  %v570_v56 = vor.u32 %v569_v51, %v565_v46  ;;  %958 = vst.msk [vmem:[#allocation3 + $0x28] sm:$0xff] %vm952_vm6, %v3083_v27  ;;  %959 = vst.msk [vmem:[#allocation3 + $0x30] sm:$0xff] %vm952_vm6, %v3083_v27 }
  0x40   : > { %596 = vrot.lane.b32.xlu1 %v431_v61, %s3082_s19  ;;  %v574_v61 = vrot.slane %v572_v55, 1  ;;  %960 = vst.msk [vmem:[#allocation3 + $0x38] sm:$0xff] %vm952_vm6, %v3083_v27  ;;  %961 = vst.msk [vmem:[#allocation3 + $0x40] sm:$0xff] %vm952_vm6, %v3083_v27 }
  0x41   : > { %v581_v62 = vrot.slane %v579_v58, 1  ;;  %962 = vst.msk [vmem:[#allocation3 + $0x48] sm:$0xff] %vm952_vm6, %v3083_v27  ;;  %963 = vst.msk [vmem:[#allocation3 + $0x50] sm:$0xff] %vm952_vm6, %v3083_v27 }
  0x42   : > { %v575_v57 = vsel %vm371_vm1, %v570_v56, %v574_v61  ;;  %964 = vst.msk [vmem:[#allocation3 + $0x58] sm:$0xff] %vm952_vm6, %v3083_v27  ;;  %965 = vst.msk [vmem:[#allocation3 + $0x60] sm:$0xff] %vm952_vm6, %v3083_v27 }
  0x43   : > { %709 = vrot.lane.b32.xlu0 %v672_v5, %s3081_s18  ;;  %v582_v3 = vor.u32 %v581_v62, %v577_v60  ;;  %v586_v5 = vrot.slane %v584_v1, 1  ;;  %966 = vst.msk [vmem:[#allocation3 + $0x68] sm:$0xff] %vm952_vm6, %v3083_v27  ;;  %967 = vst.msk [vmem:[#allocation3 + $0x70] sm:$0xff] %vm952_vm6, %v3083_v27 }
  0x44   : > { %598 = vrot.lane.b32.xlu1 %v443_v13, %s3082_s19  ;;  %968 = vst.msk [vmem:[#allocation3 + $0x78] sm:$0xff] %vm952_vm6, %v3083_v27  ;;  %969 = vst.msk [vmem:[#allocation3 + $0x80] sm:$0xff] %vm952_vm6, %v3083_v27 }
  0x45   : > { %v587_v7 = vsel %vm371_vm1, %v582_v3, %v586_v5  ;;  %970 = vst.msk [vmem:[#allocation3 + $0x88] sm:$0xff] %vm952_vm6, %v3083_v27  ;;  %972 = vst.msk [vmem:[#allocation3 + $0x98] sm:$0xff] %vm952_vm6, %v3083_v27 }
  0x46   : > { %973 = vst.msk [vmem:[#allocation3 + $0xa0] sm:$0xff] %vm952_vm6, %v3083_v27  ;;  %974 = vst.msk [vmem:[#allocation3 + $0xa8] sm:$0xff] %vm952_vm6, %v3083_v27 }
  0x47   : > { %687 = vrot.lane.b32.xlu0 %v639_v31, %s3081_s18  ;;  %975 = vst.msk [vmem:[#allocation3 + $0xb0] sm:$0xff] %vm952_vm6, %v3083_v27  ;;  %976 = vst.msk [vmem:[#allocation3 + $0xb8] sm:$0xff] %vm952_vm6, %v3083_v27 }
  0x48   : > { %689 = vrot.lane.b32.xlu1 %v642_v34, %s3081_s18  ;;  %977 = vst.msk [vmem:[#allocation3 + $0xc0] sm:$0xff] %vm952_vm6, %v3083_v27  ;;  %978 = vst.msk [vmem:[#allocation3 + $0xc8] sm:$0xff] %vm952_vm6, %v3083_v27 }
  0x49   : > { %979 = vst.msk [vmem:[#allocation3 + $0xd0] sm:$0xff] %vm952_vm6, %v3083_v27  ;;  %980 = vst.msk [vmem:[#allocation3 + $0xd8] sm:$0xff] %vm952_vm6, %v3083_v27 }
  0x4a   : > { %981 = vst.msk [vmem:[#allocation3 + $0xe0] sm:$0xff] %vm952_vm6, %v3083_v27  ;;  %982 = vst.msk [vmem:[#allocation3 + $0xe8] sm:$0xff] %vm952_vm6, %v3083_v27 }
  0x4b   : > { %600 = vrot.lane.b32.xlu0 %v455_v44, %s3082_s19  ;;  %983 = vst.msk [vmem:[#allocation3 + $0xf0] sm:$0xff] %vm952_vm6, %v3083_v27  ;;  %984 = vst.msk [vmem:[#allocation3 + $0xf8] sm:$0xff] %vm952_vm6, %v3083_v27 }
  0x4c   : > { %602 = vrot.lane.b32.xlu1 %v467_v47, %s3082_s19 }
  0x4f   : > { %691 = vrot.lane.b32.xlu0 %v645_v52, %s3081_s18 }
  0x50   : > { %693 = vrot.lane.b32.xlu1 %v648_v59, %s3081_s18 }
  0x53   : > { %620 = vrot.lane.b32.xlu0 %v575_v57, %s3082_s19 }
  0x54   : > { %711 = vrot.lane.b32.xlu1 %v675_v16, %s3081_s18 }
  0x57   : > { %622 = vrot.lane.b32.xlu0 %v587_v7, %s3082_s19 }
  0x58   : > { %713 = vrot.lane.b32.xlu1 %v678_v30, %s3081_s18 }
  0x85   : > { %v3374_v11 = vpop.permute.xlu0 %699 }
  0x86   : > { %v696_v9 = vpop.permute.xlu1 %695 }
  0x89   : > { %v702_v13 = vpop.permute.xlu0 %701 }
  0x8a   : > { %v698_v14 = vpop.permute.xlu1 %697 }
  0x8d   : > { %v605_v17 = vpop.permute.xlu0 %604 }
  0x8e   : > { %v611_v15 = vpop.permute.xlu1 %610  ;;  %v733_v16 = vsel %vm715_vm3, %v3127_v2, %v605_v17 }
  0x8f   : > { %v739_v18 = vsel %vm715_vm3, %v3133_v6, %v611_v15  ;;  %v770_v20 = vsel %vm752_vm4, %v733_v16, %v696_v9 }
  0x90   : > { %v776_v19 = vsel %vm752_vm4, %v739_v18, %v702_v13  ;;  %v2632_v23 = vcombine.low %v770_v20, %v770_v20  ;;  %v2633_v24 = vcombine.high %v770_v20, %v770_v20 }
  0x91   : > { %v2638_v21 = vcombine.low %v776_v19, %v776_v19  ;;  %v2639_v22 = vcombine.high %v776_v19, %v776_v19  ;;  %v607_v2 = vpop.permute.xlu0 %606 }
  0x92   : > { %v589_v6 = vpop.permute.xlu1 %588  ;;  %932 = vst.msk [vmem:[#allocation2 + $0x40] sm:$0xf] %vm915_vm5, %v2632_v23  ;;  %933 = vst.msk [vmem:[#allocation2 + $0x44] sm:$0xf] %vm915_vm5, %v2633_v24  ;;  %v735_v30 = vsel %vm715_vm3, %v3137_v8, %v607_v2 }
  0x93   : > { %938 = vst.msk [vmem:[#allocation2 + $0x58] sm:$0xf] %vm915_vm5, %v2638_v21  ;;  %939 = vst.msk [vmem:[#allocation2 + $0x5c] sm:$0xf] %vm915_vm5, %v2639_v22  ;;  %v772_v31 = vsel %vm752_vm4, %v735_v30, %v698_v14  ;;  %v717_v8 = vsel %vm715_vm3, %v3153_v25, %v589_v6 }
  0x94   : > { %v2634_v32 = vcombine.low %v772_v31, %v772_v31  ;;  %v2635_v33 = vcombine.high %v772_v31, %v772_v31 }
  0x95   : > { %v609_v34 = vpop.permute.xlu0 %608 }
  0x96   : > { %v591_v35 = vpop.permute.xlu1 %590  ;;  %934 = vst.msk [vmem:[#allocation2 + $0x48] sm:$0xf] %vm915_vm5, %v2634_v32  ;;  %935 = vst.msk [vmem:[#allocation2 + $0x4c] sm:$0xf] %vm915_vm5, %v2635_v33  ;;  %v737_v36 = vsel %vm715_vm3, %v3121_v0, %v609_v34 }
  0x97   : > { %v774_v37 = vsel %vm752_vm4, %v737_v36, %v3374_v11  ;;  %v719_v44 = vsel %vm715_vm3, %v3164_v39, %v591_v35 }
  0x98   : > { %v2636_v38 = vcombine.low %v774_v37, %v774_v37  ;;  %v2637_v41 = vcombine.high %v774_v37, %v774_v37 }
  0x99   : > { %v680_v42 = vpop.permute.xlu0 %679  ;;  %v3025_v46 = vld [vmem:[#allocation2 + $0x40] sm:$0xff]  }
  0x9a   : > { %v682_v45 = vpop.permute.xlu1 %681  ;;  %936 = vst.msk [vmem:[#allocation2 + $0x50] sm:$0xf] %vm915_vm5, %v2636_v38  ;;  %937 = vst.msk [vmem:[#allocation2 + $0x54] sm:$0xf] %vm915_vm5, %v2637_v41  ;;  %v754_v0 = vsel %vm752_vm4, %v717_v8, %v680_v42  ;;  %2887 = vmatprep.mubr.msk.bf16.mxu1 %vm1130_vm7, %v3025_v46  ;;  %v3030_v5 = vld [vmem:[#allocation2 + $0x58] sm:$0xff]  }
  0x9b   : > { %v756_v47 = vsel %vm752_vm4, %v719_v44, %v682_v45  ;;  %v2616_v51 = vcombine.low %v754_v0, %v754_v0  ;;  %v2617_v55 = vcombine.high %v754_v0, %v754_v0 }
  0x9c   : > { %v2618_v58 = vcombine.low %v756_v47, %v756_v47  ;;  %v2619_v52 = vcombine.high %v756_v47, %v756_v47 }
  0x9d   : > { %916 = vst.msk [vmem:[#allocation2] sm:$0xf] %vm915_vm5, %v2616_v51  ;;  %917 = vst.msk [vmem:[#allocation2 + $0x4] sm:$0xf] %vm915_vm5, %v2617_v55  ;;  %v613_v25 = vpop.permute.xlu0 %612  ;;  %v3026_v59 = vld [vmem:[#allocation2 + $0x48] sm:$0xff]  }
  0x9e   : > { %918 = vst.msk [vmem:[#allocation2 + $0x8] sm:$0xf] %vm915_vm5, %v2618_v58  ;;  %919 = vst.msk [vmem:[#allocation2 + $0xc] sm:$0xf] %vm915_vm5, %v2619_v52  ;;  %v615_v39 = vpop.permute.xlu1 %614  ;;  %2888 = vmatmul.mubr.msk.bf16.vlgmr.msra.gmra.mxu1 %vm1130_vm7, %v3026_v59  ;;  %v741_v60 = vsel %vm715_vm3, %v3170_v48, %v613_v25 }
  0x9f   : > { %2904 = vmatpush3.bf16.msra.mxu1 %v3337_v28  ;;  %v743_v11 = vsel %vm715_vm3, %v3184_v4, %v615_v39 }
  0xa1   : > { %v704_v56 = vpop.permute.xlu0 %703  ;;  %v3027_v62 = vld [vmem:[#allocation2 + $0x50] sm:$0xff]  }
  0xa2   : > { %v593_v61 = vpop.permute.xlu1 %592  ;;  %v778_v1 = vsel %vm752_vm4, %v741_v60, %v704_v56  ;;  %2891 = vmatprep.mubr.msk.bf16.mxu1 %vm1130_vm7, %v3027_v62 }
  0xa3   : > { %v2640_v57 = vcombine.low %v778_v1, %v778_v1  ;;  %v2641_v3 = vcombine.high %v778_v1, %v778_v1  ;;  %v721_v4 = vsel %vm715_vm3, %v3189_v10, %v593_v61 }
  0xa4   : > { %v3028_v7 = vld [vmem:[#allocation2] sm:$0xff]  }
  0xa5   : > { %940 = vst.msk [vmem:[#allocation2 + $0x60] sm:$0xf] %vm915_vm5, %v2640_v57  ;;  %941 = vst.msk [vmem:[#allocation2 + $0x64] sm:$0xf] %vm915_vm5, %v2641_v3  ;;  %v706_v28 = vpop.permute.xlu0 %705  ;;  %v3029_v9 = vld [vmem:[#allocation2 + $0x8] sm:$0xff]   ;;  %2871 = vmatprep.mubr.msk.bf16.mxu0 %vm1130_vm7, %v3028_v7 }
  0xa6   : > { %v595_v48 = vpop.permute.xlu1 %594  ;;  %v780_v13 = vsel %vm752_vm4, %v743_v11, %v706_v28  ;;  %2872 = vmatmul.mubr.msk.bf16.vlgmr.msra.gmra.mxu0 %vm1130_vm7, %v3029_v9  ;;  %2892 = vmatmul.mubr.msk.bf16.gmra.mxu1 %vm1130_vm7, %v3030_v5  ;;  %v3037_v61 = vld [vmem:[#allocation2 + $0x8] sm:$0xff]  }
  0xa7   : > { %v2642_v14 = vcombine.low %v780_v13, %v780_v13  ;;  %v2643_v15 = vcombine.high %v780_v13, %v780_v13  ;;  %2938 = vmatpush3.bf16.msra.mxu0 %v3340_v29  ;;  %v723_v17 = vsel %vm715_vm3, %v3205_v26, %v595_v48 }
  0xa9   : > { %942 = vst.msk [vmem:[#allocation2 + $0x68] sm:$0xf] %vm915_vm5, %v2642_v14  ;;  %943 = vst.msk [vmem:[#allocation2 + $0x6c] sm:$0xf] %vm915_vm5, %v2643_v15  ;;  %v684_v18 = vpop.permute.xlu0 %683 }
  0xaa   : > { %v686_v16 = vpop.permute.xlu1 %685  ;;  %v758_v19 = vsel %vm752_vm4, %v721_v4, %v684_v18 }
  0xab   : > { %v760_v20 = vsel %vm752_vm4, %v723_v17, %v686_v16  ;;  %v2620_v21 = vcombine.low %v758_v19, %v758_v19  ;;  %v2621_v22 = vcombine.high %v758_v19, %v758_v19 }
  0xac   : > { %v2622_v23 = vcombine.low %v760_v20, %v760_v20  ;;  %v2623_v29 = vcombine.high %v760_v20, %v760_v20  ;;  %v3031_v24 = vld [vmem:[#allocation2 + $0x60] sm:$0xff]  }
  0xad   : > { %920 = vst.msk [vmem:[#allocation2 + $0x10] sm:$0xf] %vm915_vm5, %v2620_v21  ;;  %921 = vst.msk [vmem:[#allocation2 + $0x14] sm:$0xf] %vm915_vm5, %v2621_v22  ;;  %v617_v10 = vpop.permute.xlu0 %616  ;;  %2895 = vmatprep.mubr.msk.bf16.mxu1 %vm1130_vm7, %v3031_v24 }
  0xae   : > { %922 = vst.msk [vmem:[#allocation2 + $0x18] sm:$0xf] %vm915_vm5, %v2622_v23  ;;  %923 = vst.msk [vmem:[#allocation2 + $0x1c] sm:$0xf] %vm915_vm5, %v2623_v29  ;;  %v619_v26 = vpop.permute.xlu1 %618  ;;  %v745_v2 = vsel %vm715_vm3, %v3216_v40, %v617_v10 }
  0xaf   : > { %v747_v35 = vsel %vm715_vm3, %v3229_v53, %v619_v26 }
  0xb0   : > { %v3032_v27 = vld [vmem:[#allocation2 + $0x68] sm:$0xff]  }
  0xb1   : > { %v708_v6 = vpop.permute.xlu0 %707  ;;  %2896 = vmatmul.mubr.msk.bf16.gmra.mxu1 %vm1130_vm7, %v3032_v27 }
  0xb2   : > { %v597_v30 = vpop.permute.xlu1 %596  ;;  %v782_v31 = vsel %vm752_vm4, %v745_v2, %v708_v6 }
  0xb3   : > { %v2644_v32 = vcombine.low %v782_v31, %v782_v31  ;;  %v2645_v33 = vcombine.high %v782_v31, %v782_v31  ;;  %v725_v44 = vsel %vm715_vm3, %v3242_v63, %v597_v30  ;;  %v3053_v30 = vld [vmem:[#allocation2 + $0x40] sm:$0xff]   ;;  %v3054_v31 = vld [vmem:[#allocation2 + $0x48] sm:$0xff]  }
  0xb4   : > { %v3033_v34 = vld [vmem:[#allocation2 + $0x10] sm:$0xff]  }
  0xb5   : > { %944 = vst.msk [vmem:[#allocation2 + $0x70] sm:$0xf] %vm915_vm5, %v2644_v32  ;;  %945 = vst.msk [vmem:[#allocation2 + $0x74] sm:$0xf] %vm915_vm5, %v2645_v33  ;;  %v710_v36 = vpop.permute.xlu0 %709  ;;  %v3034_v38 = vld [vmem:[#allocation2 + $0x18] sm:$0xff]   ;;  %2875 = vmatprep.mubr.msk.bf16.mxu0 %vm1130_vm7, %v3033_v34  ;;  %v3040_v13 = vld [vmem:[#allocation2 + $0x10] sm:$0xff]  }
  0xb6   : > { %v599_v37 = vpop.permute.xlu1 %598  ;;  %v784_v40 = vsel %vm752_vm4, %v747_v35, %v710_v36  ;;  %2876 = vmatmul.mubr.msk.bf16.gmra.mxu0 %vm1130_vm7, %v3034_v38  ;;  %v3041_v4 = vld [vmem:[#allocation2 + $0x18] sm:$0xff]   ;;  %v3044_v23 = vld [vmem:[#allocation2 + $0x10] sm:$0xff]   ;;  %v3056_v33 = vld [vmem:[#allocation2 + $0x40] sm:$0xff]  }
  0xb7   : > { %v2646_v41 = vcombine.low %v784_v40, %v784_v40  ;;  %v2647_v8 = vcombine.high %v784_v40, %v784_v40  ;;  %v727_v53 = vsel %vm715_vm3, %v3249_v12, %v599_v37  ;;  %v3047_v24 = vld [vmem:[#allocation2 + $0x18] sm:$0xff]   ;;  %v3057_v34 = vld [vmem:[#allocation2 + $0x50] sm:$0xff]   ;;  %v3059_v36 = vld [vmem:[#allocation2 + $0x48] sm:$0xff]  }
  0xb8   : > { %v3058_v35 = vld [vmem:[#allocation2 + $0x58] sm:$0xff]   ;;  %v3060_v37 = vld [vmem:[#allocation2 + $0x50] sm:$0xff]   ;;  %v3061_v38 = vld [vmem:[#allocation2 + $0x60] sm:$0xff]  }
  0xb9   : > { %946 = vst.msk [vmem:[#allocation2 + $0x78] sm:$0xf] %vm915_vm5, %v2646_v41  ;;  %947 = vst.msk [vmem:[#allocation2 + $0x7c] sm:$0xf] %vm915_vm5, %v2647_v8  ;;  %v688_v42 = vpop.permute.xlu0 %687  ;;  %v3062_v40 = vld [vmem:[#allocation2 + $0x68] sm:$0xff]   ;;  %v3063_v41 = vld [vmem:[#allocation2 + $0x58] sm:$0xff]  }
  0xba   : > { %v690_v45 = vpop.permute.xlu1 %689  ;;  %v762_v46 = vsel %vm752_vm4, %v725_v44, %v688_v42  ;;  %v3064_v8 = vld [vmem:[#allocation2 + $0x60] sm:$0xff]   ;;  %v3067_v42 = vld [vmem:[#allocation2 + $0x68] sm:$0xff]  }
  0xbb   : > { %v764_v0 = vsel %vm752_vm4, %v727_v53, %v690_v45  ;;  %v2624_v47 = vcombine.low %v762_v46, %v762_v46  ;;  %v2625_v51 = vcombine.high %v762_v46, %v762_v46 }
  0xbc   : > { %v2626_v55 = vcombine.low %v764_v0, %v764_v0  ;;  %v2627_v58 = vcombine.high %v764_v0, %v764_v0  ;;  %v3035_v52 = vld [vmem:[#allocation2 + $0x70] sm:$0xff]  }
  0xbd   : > { %924 = vst.msk [vmem:[#allocation2 + $0x20] sm:$0xf] %vm915_vm5, %v2624_v47  ;;  %925 = vst.msk [vmem:[#allocation2 + $0x24] sm:$0xf] %vm915_vm5, %v2625_v51  ;;  %v601_v63 = vpop.permute.xlu0 %600  ;;  %2899 = vmatprep.mubr.msk.bf16.mxu1 %vm1130_vm7, %v3035_v52  ;;  %v3065_v44 = vld [vmem:[#allocation2 + $0x70] sm:$0xff]  }
  0xbe   : > { %926 = vst.msk [vmem:[#allocation2 + $0x28] sm:$0xf] %vm915_vm5, %v2626_v55  ;;  %927 = vst.msk [vmem:[#allocation2 + $0x2c] sm:$0xf] %vm915_vm5, %v2627_v58  ;;  %v603_v12 = vpop.permute.xlu1 %602  ;;  %v729_v39 = vsel %vm715_vm3, %v3281_v43, %v601_v63  ;;  %v3068_v45 = vld [vmem:[#allocation2 + $0x70] sm:$0xff]   ;;  %v1035_v55 = vld [vmem:[#allocation3 + $0x90] sm:$0xff] }
  0xbf   : > { %v731_v59 = vsel %vm715_vm3, %v3286_v49, %v603_v12  ;;  %v1033_v52 = vld [vmem:[#allocation3 + $0x80] sm:$0xff] }
  0xc0   : > { %v3036_v25 = vld [vmem:[#allocation2 + $0x78] sm:$0xff]  }
  0xc1   : > { %v692_v60 = vpop.permute.xlu0 %691  ;;  %2900 = vmatmul.mubr.msk.bf16.gmra.mxu1 %vm1130_vm7, %v3036_v25  ;;  %v3066_v53 = vld [vmem:[#allocation2 + $0x78] sm:$0xff]   ;;  %v1036_v25 = vld [vmem:[#allocation3 + $0x98] sm:$0xff] }
  0xc2   : > { %v694_v56 = vpop.permute.xlu1 %693  ;;  %v766_v62 = vsel %vm752_vm4, %v729_v39, %v692_v60  ;;  %2905 = vmatprep.mubr.msk.bf16.mxu1 %vm1130_vm7, %v3037_v61  ;;  %v3070_v0 = vld [vmem:[#allocation2 + $0x78] sm:$0xff]  }
  0xc3   : > { %v768_v1 = vsel %vm752_vm4, %v731_v59, %v694_v56  ;;  %v2628_v57 = vcombine.low %v766_v62, %v766_v62  ;;  %v2629_v3 = vcombine.high %v766_v62, %v766_v62  ;;  %v1034_v60 = vld [vmem:[#allocation3 + $0x88] sm:$0xff]  ;;  %v1019_v62 = vld [vmem:[#allocation3 + $0x10] sm:$0xff] }
  0xc4   : > { %v2630_v5 = vcombine.low %v768_v1, %v768_v1  ;;  %v2631_v7 = vcombine.high %v768_v1, %v768_v1  ;;  %v3038_v11 = vld [vmem:[#allocation2 + $0x20] sm:$0xff]  }
  0xc5   : > { %928 = vst.msk [vmem:[#allocation2 + $0x30] sm:$0xf] %vm915_vm5, %v2628_v57  ;;  %929 = vst.msk [vmem:[#allocation2 + $0x34] sm:$0xf] %vm915_vm5, %v2629_v3  ;;  %v3039_v43 = vld [vmem:[#allocation2 + $0x28] sm:$0xff]   ;;  %v621_v49 = vpop.permute.xlu0 %620  ;;  %2879 = vmatprep.mubr.msk.bf16.mxu0 %vm1130_vm7, %v3038_v11  ;;  %v3048_v10 = vld [vmem:[#allocation2 + $0x20] sm:$0xff]  }
  0xc6   : > { %930 = vst.msk [vmem:[#allocation2 + $0x38] sm:$0xf] %vm915_vm5, %v2630_v5  ;;  %931 = vst.msk [vmem:[#allocation2 + $0x3c] sm:$0xf] %vm915_vm5, %v2631_v7  ;;  %v712_v28 = vpop.permute.xlu1 %711  ;;  %v749_v48 = vsel %vm715_vm3, %v3289_v50, %v621_v49  ;;  %2880 = vmatmul.mubr.msk.bf16.gmra.mxu0 %vm1130_vm7, %v3039_v43  ;;  %v3046_v29 = vld [vmem:[#allocation2 + $0x28] sm:$0xff]   ;;  %v1039_v1 = vld [vmem:[#allocation3 + $0xb0] sm:$0xff] }
  0xc7   : > { %v786_v9 = vsel %vm752_vm4, %v749_v48, %v712_v28  ;;  %v3051_v2 = vld [vmem:[#allocation2 + $0x28] sm:$0xff]   ;;  %v1017_v7 = vld [vmem:[#allocation3] sm:$0xff] }
  0xc8   : > { %v2648_v14 = vcombine.low %v786_v9, %v786_v9  ;;  %v2649_v15 = vcombine.high %v786_v9, %v786_v9  ;;  %v1037_v11 = vld [vmem:[#allocation3 + $0xa0] sm:$0xff]  ;;  %v1020_v9 = vld [vmem:[#allocation3 + $0x18] sm:$0xff] }
  0xc9   : > { %v623_v17 = vpop.permute.xlu0 %622  ;;  %2906 = vmatmul.mubr.msk.bf16.vlgmr.msra.gmra.mxu1 %vm1130_vm7, %v3040_v13  ;;  %v1040_v13 = vld [vmem:[#allocation3 + $0xb8] sm:$0xff] }
  0xca   : > { %v714_v18 = vpop.permute.xlu1 %713  ;;  %948 = vst.msk [vmem:[#allocation2 + $0x80] sm:$0xf] %vm915_vm5, %v2648_v14  ;;  %949 = vst.msk [vmem:[#allocation2 + $0x84] sm:$0xf] %vm915_vm5, %v2649_v15  ;;  %v751_v16 = vsel %vm715_vm3, %v3295_v54, %v623_v17  ;;  %2909 = vmatprep.mubr.msk.bf16.mxu1 %vm1130_vm7, %v3041_v4  ;;  %v3045_v54 = vld [vmem:[#allocation2 + $0x20] sm:$0xff]  }
  0xcb   : > { %v788_v50 = vsel %vm752_vm4, %v751_v16, %v714_v18  ;;  %v1018_v18 = vld [vmem:[#allocation3 + $0x8] sm:$0xff] }
  0xcc   : > { %v3042_v19 = vld [vmem:[#allocation2 + $0x30] sm:$0xff]   ;;  %v2650_v20 = vcombine.low %v788_v50, %v788_v50  ;;  %v2651_v21 = vcombine.high %v788_v50, %v788_v50  ;;  %v1038_v16 = vld [vmem:[#allocation3 + $0xa8] sm:$0xff] }
  0xcd   : > { %v3043_v22 = vld [vmem:[#allocation2 + $0x38] sm:$0xff]   ;;  %2883 = vmatprep.mubr.msk.bf16.mxu0 %vm1130_vm7, %v3042_v19  ;;  %v3049_v26 = vld [vmem:[#allocation2 + $0x30] sm:$0xff]  }
  0xce   : > { %950 = vst.msk [vmem:[#allocation2 + $0x88] sm:$0xf] %vm915_vm5, %v2650_v20  ;;  %951 = vst.msk [vmem:[#allocation2 + $0x8c] sm:$0xf] %vm915_vm5, %v2651_v21  ;;  %2884 = vmatmul.mubr.msk.bf16.gmra.mxu0 %vm1130_vm7, %v3043_v22  ;;  %v3050_v27 = vld [vmem:[#allocation2 + $0x38] sm:$0xff]   ;;  %v3052_v6 = vld [vmem:[#allocation2 + $0x30] sm:$0xff]  }
  0xcf   : > { %2939 = vmatprep.mubr.msk.bf16.mxu0 %vm1130_vm7, %v3044_v23  ;;  %v3055_v32 = vld [vmem:[#allocation2 + $0x38] sm:$0xff]  }
  0xd1   : > { %2910 = vmatmul.mubr.msk.bf16.gmra.mxu1 %vm1130_vm7, %v3045_v54  ;;  %v3069_v46 = vld [vmem:[#allocation2 + $0x80] sm:$0xff]  }
  0xd2   : > { %2913 = vmatprep.mubr.msk.bf16.mxu1 %vm1130_vm7, %v3046_v29  ;;  %v3071_v47 = vld [vmem:[#allocation2 + $0x80] sm:$0xff]  }
  0xd3   : > { %v1043_v54 = vld [vmem:[#allocation3 + $0xd0] sm:$0xff] }
  0xd5   : > { %v3072_v51 = vld [vmem:[#allocation2 + $0x88] sm:$0xff]  }
  0xd6   : > { %2940 = vmatmul.mubr.msk.bf16.vlgmr.msra.gmra.mxu0 %vm1130_vm7, %v3047_v24  ;;  %v1041_v24 = vld [vmem:[#allocation3 + $0xc0] sm:$0xff] }
  0xd7   : > { %2943 = vmatprep.mubr.msk.bf16.mxu0 %vm1130_vm7, %v3048_v10 }
  0xd9   : > { %2914 = vmatmul.mubr.msk.bf16.gmra.mxu1 %vm1130_vm7, %v3049_v26 }
  0xda   : > { %2917 = vmatprep.mubr.msk.bf16.mxu1 %vm1130_vm7, %v3050_v27  ;;  %v1044_v27 = vld [vmem:[#allocation3 + $0xd8] sm:$0xff] }
  0xde   : > { %2944 = vmatmul.mubr.msk.bf16.gmra.mxu0 %vm1130_vm7, %v3051_v2 }
  0xdf   : > { %2947 = vmatprep.mubr.msk.bf16.mxu0 %vm1130_vm7, %v3052_v6  ;;  %v1023_v6 = vld [vmem:[#allocation3 + $0x30] sm:$0xff] }
  0xe1   : > { %2918 = vmatmul.mubr.msk.bf16.gmra.mxu1 %vm1130_vm7, %v3053_v30 }
  0xe2   : > { %2921 = vmatprep.mubr.msk.bf16.mxu1 %vm1130_vm7, %v3054_v31  ;;  %v1042_v31 = vld [vmem:[#allocation3 + $0xc8] sm:$0xff] }
  0xe6   : > { %2948 = vmatmul.mubr.msk.bf16.gmra.mxu0 %vm1130_vm7, %v3055_v32 }
  0xe7   : > { %2951 = vmatprep.mubr.msk.bf16.mxu0 %vm1130_vm7, %v3056_v33 }
  0xe9   : > { %2922 = vmatmul.mubr.msk.bf16.gmra.mxu1 %vm1130_vm7, %v3057_v34  ;;  %v1021_v34 = vld [vmem:[#allocation3 + $0x20] sm:$0xff] }
  0xea   : > { %2925 = vmatprep.mubr.msk.bf16.mxu1 %vm1130_vm7, %v3058_v35 }
  0xee   : > { %2952 = vmatmul.mubr.msk.bf16.gmra.mxu0 %vm1130_vm7, %v3059_v36 }
  0xef   : > { %2955 = vmatprep.mubr.msk.bf16.mxu0 %vm1130_vm7, %v3060_v37 }
  0xf1   : > { %2926 = vmatmul.mubr.msk.bf16.gmra.mxu1 %vm1130_vm7, %v3061_v38 }
  0xf2   : > { %2929 = vmatprep.mubr.msk.bf16.mxu1 %vm1130_vm7, %v3062_v40  ;;  %v1024_v40 = vld [vmem:[#allocation3 + $0x38] sm:$0xff] }
  0xf6   : > { %2956 = vmatmul.mubr.msk.bf16.gmra.mxu0 %vm1130_vm7, %v3063_v41 }
  0xf7   : > { %2959 = vmatprep.mubr.msk.bf16.mxu0 %vm1130_vm7, %v3064_v8 }
  0xf9   : > { %2930 = vmatmul.mubr.msk.bf16.gmra.mxu1 %vm1130_vm7, %v3065_v44  ;;  %v1022_v44 = vld [vmem:[#allocation3 + $0x28] sm:$0xff] }
  0xfa   : > { %2933 = vmatprep.mubr.msk.bf16.mxu1 %vm1130_vm7, %v3066_v53 }
  0xfe   : > { %2960 = vmatmul.mubr.msk.bf16.gmra.mxu0 %vm1130_vm7, %v3067_v42 }
  0xff   : > { %2963 = vmatprep.mubr.msk.bf16.mxu0 %vm1130_vm7, %v3068_v45 }
 0x101   : > { %2934 = vmatmul.mubr.msk.bf16.gmra.mxu1 %vm1130_vm7, %v3069_v46  ;;  %v1047_v46 = vld [vmem:[#allocation3 + $0xf0] sm:$0xff] }
 0x106   : > { %2964 = vmatmul.mubr.msk.bf16.gmra.mxu0 %vm1130_vm7, %v3070_v0 }
 0x107   : > { %2967 = vmatprep.mubr.msk.bf16.mxu0 %vm1130_vm7, %v3071_v47  ;;  %v1045_v47 = vld [vmem:[#allocation3 + $0xe0] sm:$0xff] }
 0x10e   : > { %2968 = vmatmul.mubr.msk.bf16.gmra.mxu0 %vm1130_vm7, %v3072_v51 }
 0x15e   : > { %v2889_v58 = vpop.f32.mrf.mxu1 }
 0x15f   : > { %v1362_v63 = vadd.f32 %v2889_v58, %v1035_v55  ;;  %v1048_v58 = vld [vmem:[#allocation3 + $0xf8] sm:$0xff] }
 0x160   : > { %v1281_v12 = vpop.f32.mrf.mxu1 }
 0x161   : > { %1394 = vst.msk [vmem:[#allocation3 + $0x90] sm:$0xff] %vm952_vm6, %v1362_v63  ;;  %v1360_v39 = vadd.f32 %v1281_v12, %v1033_v52  ;;  %v1027_v63 = vld [vmem:[#allocation3 + $0x50] sm:$0xff] }
 0x162   : > { %v2890_v59 = vpop.f32.mrf.mxu1 }
 0x163   : > { %1392 = vst.msk [vmem:[#allocation3 + $0x80] sm:$0xff] %vm952_vm6, %v1360_v39  ;;  %v1363_v56 = vadd.f32 %v2890_v59, %v1036_v25  ;;  %v1046_v25 = vld [vmem:[#allocation3 + $0xe8] sm:$0xff] }
 0x164   : > { %v1284_v61 = vpop.f32.mrf.mxu1 }
 0x165   : > { %1395 = vst.msk [vmem:[#allocation3 + $0x98] sm:$0xff] %vm952_vm6, %v1363_v56  ;;  %v1361_v57 = vadd.f32 %v1284_v61, %v1034_v60  ;;  %v1025_v60 = vld [vmem:[#allocation3 + $0x40] sm:$0xff] }
 0x166   : > { %v2873_v3 = vpop.f32.mrf.mxu0  ;;  %v2893_v5 = vpop.f32.mrf.mxu1 }
 0x167   : > { %1393 = vst.msk [vmem:[#allocation3 + $0x88] sm:$0xff] %vm952_vm6, %v1361_v57  ;;  %v1346_v43 = vadd.f32 %v2873_v3, %v1019_v62  ;;  %v1366_v49 = vadd.f32 %v2893_v5, %v1039_v1  ;;  %v1028_v57 = vld [vmem:[#allocation3 + $0x58] sm:$0xff] }
 0x168   : > { %v1217_v28 = vpop.f32.mrf.mxu0  ;;  %v1297_v48 = vpop.f32.mrf.mxu1 }
 0x169   : > { %1378 = vst.msk [vmem:[#allocation3 + $0x10] sm:$0xff] %vm952_vm6, %v1346_v43  ;;  %1398 = vst.msk [vmem:[#allocation3 + $0xb0] sm:$0xff] %vm952_vm6, %v1366_v49  ;;  %v1344_v14 = vadd.f32 %v1217_v28, %v1017_v7  ;;  %v1364_v15 = vadd.f32 %v1297_v48, %v1037_v11  ;;  %v1026_v49 = vld [vmem:[#allocation3 + $0x48] sm:$0xff] }
 0x16a   : > { %v2874_v4 = vpop.f32.mrf.mxu0  ;;  %v2894_v17 = vpop.f32.mrf.mxu1 }
 0x16b   : > { %1376 = vst.msk [vmem:[#allocation3] sm:$0xff] %vm952_vm6, %v1344_v14  ;;  %1396 = vst.msk [vmem:[#allocation3 + $0xa0] sm:$0xff] %vm952_vm6, %v1364_v15  ;;  %v1347_v50 = vadd.f32 %v2874_v4, %v1020_v9  ;;  %v1367_v19 = vadd.f32 %v2894_v17, %v1040_v13  ;;  %v1031_v15 = vld [vmem:[#allocation3 + $0x70] sm:$0xff] }
 0x16c   : > { %v1220_v20 = vpop.f32.mrf.mxu0  ;;  %v1300_v21 = vpop.f32.mrf.mxu1 }
 0x16d   : > { %1379 = vst.msk [vmem:[#allocation3 + $0x18] sm:$0xff] %vm952_vm6, %v1347_v50  ;;  %1399 = vst.msk [vmem:[#allocation3 + $0xb8] sm:$0xff] %vm952_vm6, %v1367_v19  ;;  %v1345_v22 = vadd.f32 %v1220_v20, %v1018_v18  ;;  %v1365_v23 = vadd.f32 %v1300_v21, %v1038_v16  ;;  %v1029_v19 = vld [vmem:[#allocation3 + $0x60] sm:$0xff] }
 0x16f   : > { %1377 = vst.msk [vmem:[#allocation3 + $0x8] sm:$0xff] %vm952_vm6, %v1345_v22  ;;  %1397 = vst.msk [vmem:[#allocation3 + $0xa8] sm:$0xff] %vm952_vm6, %v1365_v23 }
 0x170   : > { %v1443_v5 = vld [vmem:[#allocation3 + $0x10] sm:$0xff] }
 0x171   : > { %v2897_v29 = vpop.f32.mrf.mxu1 }
 0x172   : > { %v1370_v10 = vadd.f32 %v2897_v29, %v1043_v54  ;;  %v1441_v48 = vld [vmem:[#allocation3] sm:$0xff]  ;;  %v1032_v29 = vld [vmem:[#allocation3 + $0x78] sm:$0xff] }
 0x173   : > { %v1313_v26 = vpop.f32.mrf.mxu1 }
 0x174   : > { %1402 = vst.msk [vmem:[#allocation3 + $0xd0] sm:$0xff] %vm952_vm6, %v1370_v10  ;;  %v1368_v2 = vadd.f32 %v1313_v26, %v1041_v24  ;;  %v1444_v17 = vld [vmem:[#allocation3 + $0x18] sm:$0xff] }
 0x175   : > { %v2898_v30 = vpop.f32.mrf.mxu1 }
 0x176   : > { %1400 = vst.msk [vmem:[#allocation3 + $0xc0] sm:$0xff] %vm952_vm6, %v1368_v2  ;;  %v1371_v32 = vadd.f32 %v2898_v30, %v1044_v27  ;;  %v2877_v33 = vpop.f32.mrf.mxu0  ;;  %v1442_v21 = vld [vmem:[#allocation3 + $0x8] sm:$0xff] }
 0x177   : > { %v1350_v35 = vadd.f32 %v2877_v33, %v1023_v6  ;;  %v1316_v36 = vpop.f32.mrf.mxu1  ;;  %v1030_v6 = vld [vmem:[#allocation3 + $0x68] sm:$0xff] }
 0x178   : > { %1403 = vst.msk [vmem:[#allocation3 + $0xd8] sm:$0xff] %vm952_vm6, %v1371_v32  ;;  %v1369_v37 = vadd.f32 %v1316_v36, %v1042_v31  ;;  %v1233_v38 = vpop.f32.mrf.mxu0 }
 0x179   : > { %1382 = vst.msk [vmem:[#allocation3 + $0x30] sm:$0xff] %vm952_vm6, %v1350_v35  ;;  %v1348_v41 = vadd.f32 %v1233_v38, %v1021_v34 }
 0x17a   : > { %1401 = vst.msk [vmem:[#allocation3 + $0xc8] sm:$0xff] %vm952_vm6, %v1369_v37  ;;  %v2878_v8 = vpop.f32.mrf.mxu0 }
 0x17b   : > { %1380 = vst.msk [vmem:[#allocation3 + $0x20] sm:$0xff] %vm952_vm6, %v1348_v41  ;;  %v1351_v53 = vadd.f32 %v2878_v8, %v1024_v40 }
 0x17c   : > { %v1236_v42 = vpop.f32.mrf.mxu0 }
 0x17d   : > { %1383 = vst.msk [vmem:[#allocation3 + $0x38] sm:$0xff] %vm952_vm6, %v1351_v53  ;;  %v1349_v45 = vadd.f32 %v1236_v42, %v1022_v44 }
 0x17f   : > { %1381 = vst.msk [vmem:[#allocation3 + $0x28] sm:$0xff] %vm952_vm6, %v1349_v45 }
 0x180   : > { %v1447_v10 = vld [vmem:[#allocation3 + $0x30] sm:$0xff] }
 0x181   : > { %v2901_v0 = vpop.f32.mrf.mxu1 }
 0x182   : > { %v1374_v51 = vadd.f32 %v2901_v0, %v1047_v46  ;;  %v1445_v31 = vld [vmem:[#allocation3 + $0x20] sm:$0xff] }
 0x183   : > { %v1329_v55 = vpop.f32.mrf.mxu1 }
 0x184   : > { %1406 = vst.msk [vmem:[#allocation3 + $0xf0] sm:$0xff] %vm952_vm6, %v1374_v51  ;;  %v1372_v52 = vadd.f32 %v1329_v55, %v1045_v47  ;;  %v1448_v36 = vld [vmem:[#allocation3 + $0x38] sm:$0xff] }
 0x185   : > { %v2902_v12 = vpop.f32.mrf.mxu1 }
 0x186   : > { %1404 = vst.msk [vmem:[#allocation3 + $0xe0] sm:$0xff] %vm952_vm6, %v1372_v52  ;;  %v1375_v39 = vadd.f32 %v2902_v12, %v1048_v58  ;;  %v2881_v59 = vpop.f32.mrf.mxu0  ;;  %v1446_v44 = vld [vmem:[#allocation3 + $0x28] sm:$0xff] }
 0x187   : > { %v1354_v56 = vadd.f32 %v2881_v59, %v1027_v63  ;;  %v1332_v61 = vpop.f32.mrf.mxu1 }
 0x188   : > { %1407 = vst.msk [vmem:[#allocation3 + $0xf8] sm:$0xff] %vm952_vm6, %v1375_v39  ;;  %v1373_v62 = vadd.f32 %v1332_v61, %v1046_v25  ;;  %v1249_v1 = vpop.f32.mrf.mxu0 }
 0x189   : > { %1386 = vst.msk [vmem:[#allocation3 + $0x50] sm:$0xff] %vm952_vm6, %v1354_v56  ;;  %v1352_v3 = vadd.f32 %v1249_v1, %v1025_v60  ;;  %v2907_v7 = vpop.f32.mrf.mxu1  ;;  %v3596_v1 = vld [vmem:[%s3757_s2] ss:$0 sm:$0xff] }
 0x18a   : > { %1405 = vst.msk [vmem:[#allocation3 + $0xe8] sm:$0xff] %vm952_vm6, %v1373_v62  ;;  %v1769_v11 = vadd.f32 %v2907_v7, %v1443_v5  ;;  %v2882_v43 = vpop.f32.mrf.mxu0 }
 0x18b   : > { %1384 = vst.msk [vmem:[#allocation3 + $0x40] sm:$0xff] %vm952_vm6, %v1352_v3  ;;  %v1355_v28 = vadd.f32 %v2882_v43, %v1028_v57  ;;  %v1640_v9 = vpop.f32.mrf.mxu1 }
 0x18c   : > { %1801 = vst.msk [vmem:[#allocation3 + $0x10] sm:$0xff] %vm952_vm6, %v1769_v11  ;;  %v1767_v13 = vadd.f32 %v1640_v9, %v1441_v48  ;;  %v1252_v14 = vpop.f32.mrf.mxu0 }
 0x18d   : > { %1387 = vst.msk [vmem:[#allocation3 + $0x58] sm:$0xff] %vm952_vm6, %v1355_v28  ;;  %v1353_v4 = vadd.f32 %v1252_v14, %v1026_v49  ;;  %v2908_v18 = vpop.f32.mrf.mxu1 }
 0x18e   : > { %1799 = vst.msk [vmem:[#allocation3] sm:$0xff] %vm952_vm6, %v1767_v13  ;;  %v1770_v16 = vadd.f32 %v2908_v18, %v1444_v17  ;;  %v2885_v50 = vpop.f32.mrf.mxu0 }
 0x18f   : > { %1385 = vst.msk [vmem:[#allocation3 + $0x48] sm:$0xff] %vm952_vm6, %v1353_v4  ;;  %v1358_v20 = vadd.f32 %v2885_v50, %v1031_v15  ;;  %v1643_v22 = vpop.f32.mrf.mxu1 }
 0x190   : > { %1802 = vst.msk [vmem:[#allocation3 + $0x18] sm:$0xff] %vm952_vm6, %v1770_v16  ;;  %v1768_v23 = vadd.f32 %v1643_v22, %v1442_v21  ;;  %v1265_v54 = vpop.f32.mrf.mxu0  ;;  %v1451_v47 = vld [vmem:[#allocation3 + $0x50] sm:$0xff] }
 0x191   : > { %1390 = vst.msk [vmem:[#allocation3 + $0x70] sm:$0xff] %vm952_vm6, %v1358_v20  ;;  %v1356_v24 = vadd.f32 %v1265_v54, %v1029_v19  ;;  %v2911_v26 = vpop.f32.mrf.mxu1 }
 0x192   : > { %1800 = vst.msk [vmem:[#allocation3 + $0x8] sm:$0xff] %vm952_vm6, %v1768_v23  ;;  %v1773_v27 = vadd.f32 %v2911_v26, %v1447_v10  ;;  %v2886_v2 = vpop.f32.mrf.mxu0  ;;  %v1449_v12 = vld [vmem:[#allocation3 + $0x40] sm:$0xff] }
 0x193   : > { %1388 = vst.msk [vmem:[#allocation3 + $0x60] sm:$0xff] %vm952_vm6, %v1356_v24  ;;  %v1359_v30 = vadd.f32 %v2886_v2, %v1032_v29  ;;  %v1656_v32 = vpop.f32.mrf.mxu1  ;;  %v1866_v40 = vld [vmem:[#allocation3 + $0x10] sm:$0xff] }
 0x194   : > { %1805 = vst.msk [vmem:[#allocation3 + $0x30] sm:$0xff] %vm952_vm6, %v1773_v27  ;;  %v1771_v33 = vadd.f32 %v1656_v32, %v1445_v31  ;;  %v1268_v34 = vpop.f32.mrf.mxu0  ;;  %v1452_v61 = vld [vmem:[#allocation3 + $0x58] sm:$0xff] }
 0x195   : > { %1391 = vst.msk [vmem:[#allocation3 + $0x78] sm:$0xff] %vm952_vm6, %v1359_v30  ;;  %v1357_v35 = vadd.f32 %v1268_v34, %v1030_v6  ;;  %v2912_v37 = vpop.f32.mrf.mxu1  ;;  %v1864_v45 = vld [vmem:[#allocation3] sm:$0xff] }
 0x196   : > { %1803 = vst.msk [vmem:[#allocation3 + $0x20] sm:$0xff] %vm952_vm6, %v1771_v33  ;;  %v1774_v38 = vadd.f32 %v2912_v37, %v1448_v36  ;;  %v2941_v41 = vpop.f32.mrf.mxu0  ;;  %v1450_v11 = vld [vmem:[#allocation3 + $0x48] sm:$0xff] }
 0x197   : > { %1389 = vst.msk [vmem:[#allocation3 + $0x68] sm:$0xff] %vm952_vm6, %v1357_v35  ;;  %v2192_v8 = vadd.f32 %v2941_v41, %v1866_v40  ;;  %v1659_v53 = vpop.f32.mrf.mxu1  ;;  %v1867_v58 = vld [vmem:[#allocation3 + $0x18] sm:$0xff] }
 0x198   : > { %1806 = vst.msk [vmem:[#allocation3 + $0x38] sm:$0xff] %vm952_vm6, %v1774_v38  ;;  %v1772_v42 = vadd.f32 %v1659_v53, %v1446_v44  ;;  %v2063_v46 = vpop.f32.mrf.mxu0  ;;  %v1455_v15 = vld [vmem:[#allocation3 + $0x70] sm:$0xff] }
 0x199   : > { %2224 = vst.msk [vmem:[#allocation3 + $0x10] sm:$0xff] %vm952_vm6, %v2192_v8  ;;  %v2190_v0 = vadd.f32 %v2063_v46, %v1864_v45  ;;  %v2915_v51 = vpop.f32.mrf.mxu1  ;;  %v1865_v59 = vld [vmem:[#allocation3 + $0x8] sm:$0xff] }
 0x19a   : > { %1804 = vst.msk [vmem:[#allocation3 + $0x28] sm:$0xff] %vm952_vm6, %v1772_v42  ;;  %v1777_v55 = vadd.f32 %v2915_v51, %v1451_v47  ;;  %v2942_v52 = vpop.f32.mrf.mxu0  ;;  %v1453_v22 = vld [vmem:[#allocation3 + $0x60] sm:$0xff] }
 0x19b   : > { %2222 = vst.msk [vmem:[#allocation3] sm:$0xff] %vm952_vm6, %v2190_v0  ;;  %v2193_v63 = vadd.f32 %v2942_v52, %v1867_v58  ;;  %v1672_v25 = vpop.f32.mrf.mxu1  ;;  %v1870_v3 = vld [vmem:[#allocation3 + $0x30] sm:$0xff] }
 0x19c   : > { %1809 = vst.msk [vmem:[#allocation3 + $0x50] sm:$0xff] %vm952_vm6, %v1777_v55  ;;  %v1775_v39 = vadd.f32 %v1672_v25, %v1449_v12  ;;  %v2066_v60 = vpop.f32.mrf.mxu0  ;;  %v1456_v30 = vld [vmem:[#allocation3 + $0x78] sm:$0xff]  ;;  %v1459_v55 = vld [vmem:[#allocation3 + $0x90] sm:$0xff] }
 0x19d   : > { %2225 = vst.msk [vmem:[#allocation3 + $0x18] sm:$0xff] %vm952_vm6, %v2193_v63  ;;  %v2191_v56 = vadd.f32 %v2066_v60, %v1865_v59  ;;  %v2916_v62 = vpop.f32.mrf.mxu1  ;;  %v1868_v48 = vld [vmem:[#allocation3 + $0x20] sm:$0xff] }
 0x19e   : > { %1807 = vst.msk [vmem:[#allocation3 + $0x40] sm:$0xff] %vm952_vm6, %v1775_v39  ;;  %v1778_v57 = vadd.f32 %v2916_v62, %v1452_v61  ;;  %v2945_v5 = vpop.f32.mrf.mxu0  ;;  %v1454_v41 = vld [vmem:[#allocation3 + $0x68] sm:$0xff]  ;;  %v1457_v61 = vld [vmem:[#allocation3 + $0x80] sm:$0xff] }
 0x19f   : > { %2223 = vst.msk [vmem:[#allocation3 + $0x8] sm:$0xff] %vm952_vm6, %v2191_v56  ;;  %v2196_v7 = vadd.f32 %v2945_v5, %v1870_v3  ;;  %v1675_v43 = vpop.f32.mrf.mxu1  ;;  %v1871_v16 = vld [vmem:[#allocation3 + $0x38] sm:$0xff] }
 0x1a0   : > { %v2256_v49 = vld [vmem:[#allocation3 + $0x10] sm:$0xff]  ;;  %1810 = vst.msk [vmem:[#allocation3 + $0x58] sm:$0xff] %vm952_vm6, %v1778_v57  ;;  %v1776_v28 = vadd.f32 %v1675_v43, %v1450_v11  ;;  %v2079_v9 = vpop.f32.mrf.mxu0 }
 0x1a1   : > { %v2294_v13 = vadd.f32 %v3596_v1, %v2256_v49  ;;  %2228 = vst.msk [vmem:[#allocation3 + $0x30] sm:$0xff] %vm952_vm6, %v2196_v7  ;;  %v2194_v14 = vadd.f32 %v2079_v9, %v1868_v48  ;;  %v2919_v4 = vpop.f32.mrf.mxu1  ;;  %v1869_v24 = vld [vmem:[#allocation3 + $0x28] sm:$0xff]  ;;  %v1460_v48 = vld [vmem:[#allocation3 + $0x98] sm:$0xff] }
 0x1a2   : > { %v2254_v17 = vld [vmem:[#allocation3] sm:$0xff]  ;;  %1808 = vst.msk [vmem:[#allocation3 + $0x48] sm:$0xff] %vm952_vm6, %v1776_v28  ;;  %v1781_v18 = vadd.f32 %v2919_v4, %v1455_v15  ;;  %v2946_v50 = vpop.f32.mrf.mxu0 }
 0x1a3   : > { %v2326_v19 = vmax.f32 %v2294_v13, 0.0  ;;  %v2292_v20 = vadd.f32 %v3596_v1, %v2254_v17  ;;  %2226 = vst.msk [vmem:[#allocation3 + $0x20] sm:$0xff] %vm952_vm6, %v2194_v14  ;;  %v2197_v21 = vadd.f32 %v2946_v50, %v1871_v16  ;;  %v1688_v23 = vpop.f32.mrf.mxu1  ;;  %v1874_v34 = vld [vmem:[#allocation3 + $0x50] sm:$0xff] }
 0x1a4   : > { %v2257_v54 = vld [vmem:[#allocation3 + $0x18] sm:$0xff]  ;;  %1813 = vst.msk [vmem:[#allocation3 + $0x70] sm:$0xff] %vm952_vm6, %v1781_v18  ;;  %v1779_v29 = vadd.f32 %v1688_v23, %v1453_v22  ;;  %v2082_v10 = vpop.f32.mrf.mxu0 }
 0x1a5   : > { %v2788_v26 = vpack.c.bf16 %v2326_v19, %v2326_v19  ;;  %v2324_v27 = vmax.f32 %v2292_v20, 0.0  ;;  %v2295_v2 = vadd.f32 %v3596_v1, %v2257_v54  ;;  %2229 = vst.msk [vmem:[#allocation3 + $0x38] sm:$0xff] %vm952_vm6, %v2197_v21  ;;  %v2195_v6 = vadd.f32 %v2082_v10, %v1869_v24  ;;  %v2920_v31 = vpop.f32.mrf.mxu1  ;;  %v1872_v42 = vld [vmem:[#allocation3 + $0x40] sm:$0xff]  ;;  %v1458_v19 = vld [vmem:[#allocation3 + $0x88] sm:$0xff] }
 0x1a6   : > { %v2255_v32 = vld [vmem:[#allocation3 + $0x8] sm:$0xff]  ;;  %1811 = vst.msk [vmem:[#allocation3 + $0x60] sm:$0xff] %vm952_vm6, %v1779_v29  ;;  %v1782_v33 = vadd.f32 %v2920_v31, %v1456_v30  ;;  %v2949_v35 = vpop.f32.mrf.mxu0 }
 0x1a7   : > { %2487 = vst.msk [vmem:[%s3610_s4 + $0x8] sm:$0xf] %vm2484_vm8, %v2788_v26  ;;  %v2786_v36 = vpack.c.bf16 %v2324_v27, %v2324_v27  ;;  %v2327_v37 = vmax.f32 %v2295_v2, 0.0  ;;  %v2293_v38 = vadd.f32 %v3596_v1, %v2255_v32  ;;  %v2200_v40 = vadd.f32 %v2949_v35, %v1874_v34  ;;  %v1691_v8 = vpop.f32.mrf.mxu1  ;;  %v1875_v12 = vld [vmem:[#allocation3 + $0x58] sm:$0xff]  ;;  %v1463_v27 = vld [vmem:[#allocation3 + $0xb0] sm:$0xff] }
 0x1a8   : > { %2227 = vst.msk [vmem:[#allocation3 + $0x28] sm:$0xff] %vm952_vm6, %v2195_v6  ;;  %v2260_v44 = vld [vmem:[#allocation3 + $0x30] sm:$0xff]  ;;  %1814 = vst.msk [vmem:[#allocation3 + $0x78] sm:$0xff] %vm952_vm6, %v1782_v33  ;;  %v1780_v53 = vadd.f32 %v1691_v8, %v1454_v41  ;;  %v2095_v45 = vpop.f32.mrf.mxu0 }
 0x1a9   : > { %2485 = vst.msk [vmem:[%s3610_s4] sm:$0xf] %vm2484_vm8, %v2786_v36  ;;  %v2789_v46 = vpack.c.bf16 %v2327_v37, %v2327_v37  ;;  %v2325_v0 = vmax.f32 %v2293_v38, 0.0  ;;  %v2298_v47 = vadd.f32 %v3596_v1, %v2260_v44  ;;  %v2198_v51 = vadd.f32 %v2095_v45, %v1872_v42  ;;  %v2923_v58 = vpop.f32.mrf.mxu1  ;;  %v1873_v5 = vld [vmem:[#allocation3 + $0x48] sm:$0xff]  ;;  %v1461_v37 = vld [vmem:[#allocation3 + $0xa0] sm:$0xff] }
 0x1aa   : > { %2232 = vst.msk [vmem:[#allocation3 + $0x50] sm:$0xff] %vm952_vm6, %v2200_v40  ;;  %v2258_v52 = vld [vmem:[#allocation3 + $0x20] sm:$0xff]  ;;  %1812 = vst.msk [vmem:[#allocation3 + $0x68] sm:$0xff] %vm952_vm6, %v1780_v53  ;;  %v1785_v63 = vadd.f32 %v2923_v58, %v1459_v55  ;;  %v2950_v25 = vpop.f32.mrf.mxu0 }
 0x1ab   : > { %2488 = vst.msk [vmem:[%s3610_s4 + $0xc] sm:$0xf] %vm2484_vm8, %v2789_v46  ;;  %v2787_v39 = vpack.c.bf16 %v2325_v0, %v2325_v0  ;;  %v2330_v59 = vmax.f32 %v2298_v47, 0.0  ;;  %v2296_v60 = vadd.f32 %v3596_v1, %v2258_v52  ;;  %v2201_v56 = vadd.f32 %v2950_v25, %v1875_v12  ;;  %v1704_v62 = vpop.f32.mrf.mxu1  ;;  %v1878_v15 = vld [vmem:[#allocation3 + $0x70] sm:$0xff]  ;;  %v1464_v0 = vld [vmem:[#allocation3 + $0xb8] sm:$0xff] }
 0x1ac   : > { %2230 = vst.msk [vmem:[#allocation3 + $0x40] sm:$0xff] %vm952_vm6, %v2198_v51  ;;  %v2261_v57 = vld [vmem:[#allocation3 + $0x38] sm:$0xff]  ;;  %1817 = vst.msk [vmem:[#allocation3 + $0x90] sm:$0xff] %vm952_vm6, %v1785_v63  ;;  %v1783_v3 = vadd.f32 %v1704_v62, %v1457_v61  ;;  %v2098_v7 = vpop.f32.mrf.mxu0 }
 0x1ad   : > { %2486 = vst.msk [vmem:[%s3610_s4 + $0x4] sm:$0xf] %vm2484_vm8, %v2787_v39  ;;  %v2792_v11 = vpack.c.bf16 %v2330_v59, %v2330_v59  ;;  %v2328_v43 = vmax.f32 %v2296_v60, 0.0  ;;  %v2299_v49 = vadd.f32 %v3596_v1, %v2261_v57  ;;  %v2199_v28 = vadd.f32 %v2098_v7, %v1873_v5  ;;  %v2924_v9 = vpop.f32.mrf.mxu1  ;;  %v1876_v23 = vld [vmem:[#allocation3 + $0x60] sm:$0xff]  ;;  %v1462_v59 = vld [vmem:[#allocation3 + $0xa8] sm:$0xff] }
 0x1ae   : > { %2233 = vst.msk [vmem:[#allocation3 + $0x58] sm:$0xff] %vm952_vm6, %v2201_v56  ;;  %1815 = vst.msk [vmem:[#allocation3 + $0x80] sm:$0xff] %vm952_vm6, %v1783_v3  ;;  %v1786_v14 = vadd.f32 %v2924_v9, %v1460_v48  ;;  %v2953_v4 = vpop.f32.mrf.mxu0 }
 0x1af   : > { %v2259_v13 = vld [vmem:[#allocation3 + $0x28] sm:$0xff]  ;;  %2491 = vst.msk [vmem:[%s3610_s4 + $0x18] sm:$0xf] %vm2484_vm8, %v2792_v11  ;;  %v2790_v17 = vpack.c.bf16 %v2328_v43, %v2328_v43  ;;  %v2331_v18 = vmax.f32 %v2299_v49, 0.0  ;;  %v2204_v50 = vadd.f32 %v2953_v4, %v1878_v15  ;;  %v1707_v20 = vpop.f32.mrf.mxu1  ;;  %v1879_v31 = vld [vmem:[#allocation3 + $0x78] sm:$0xff]  ;;  %v1467_v43 = vld [vmem:[#allocation3 + $0xd0] sm:$0xff] }
 0x1b0   : > { %v2297_v16 = vadd.f32 %v3596_v1, %v2259_v13  ;;  %2231 = vst.msk [vmem:[#allocation3 + $0x48] sm:$0xff] %vm952_vm6, %v2199_v28  ;;  %1818 = vst.msk [vmem:[#allocation3 + $0x98] sm:$0xff] %vm952_vm6, %v1786_v14  ;;  %v1784_v22 = vadd.f32 %v1707_v20, %v1458_v19  ;;  %v2111_v54 = vpop.f32.mrf.mxu0 }
 0x1b1   : > { %v2264_v21 = vld [vmem:[#allocation3 + $0x50] sm:$0xff]  ;;  %2489 = vst.msk [vmem:[%s3610_s4 + $0x10] sm:$0xf] %vm2484_vm8, %v2790_v17  ;;  %v2793_v29 = vpack.c.bf16 %v2331_v18, %v2331_v18  ;;  %v2202_v26 = vadd.f32 %v2111_v54, %v1876_v23  ;;  %v2927_v2 = vpop.f32.mrf.mxu1  ;;  %v1877_v8 = vld [vmem:[#allocation3 + $0x68] sm:$0xff]  ;;  %v1465_v18 = vld [vmem:[#allocation3 + $0xc0] sm:$0xff] }
 0x1b2   : > { %v2329_v24 = vmax.f32 %v2297_v16, 0.0  ;;  %v2302_v10 = vadd.f32 %v3596_v1, %v2264_v21  ;;  %2236 = vst.msk [vmem:[#allocation3 + $0x70] sm:$0xff] %vm952_vm6, %v2204_v50  ;;  %1816 = vst.msk [vmem:[#allocation3 + $0x88] sm:$0xff] %vm952_vm6, %v1784_v22  ;;  %v1789_v30 = vadd.f32 %v2927_v2, %v1463_v27  ;;  %v2954_v32 = vpop.f32.mrf.mxu0 }
 0x1b3   : > { %v2262_v6 = vld [vmem:[#allocation3 + $0x40] sm:$0xff]  ;;  %2492 = vst.msk [vmem:[%s3610_s4 + $0x1c] sm:$0xf] %vm2484_vm8, %v2793_v29  ;;  %v2205_v36 = vadd.f32 %v2954_v32, %v1879_v31  ;;  %v1720_v38 = vpop.f32.mrf.mxu1  ;;  %v1882_v58 = vld [vmem:[#allocation3 + $0x90] sm:$0xff] }
 0x1b4   : > { %v2791_v33 = vpack.c.bf16 %v2329_v24, %v2329_v24  ;;  %v2334_v34 = vmax.f32 %v2302_v10, 0.0  ;;  %v2300_v35 = vadd.f32 %v3596_v1, %v2262_v6  ;;  %2234 = vst.msk [vmem:[#allocation3 + $0x60] sm:$0xff] %vm952_vm6, %v2202_v26  ;;  %1821 = vst.msk [vmem:[#allocation3 + $0xb0] sm:$0xff] %vm952_vm6, %v1789_v30  ;;  %v1787_v41 = vadd.f32 %v1720_v38, %v1461_v37  ;;  %v2114_v44 = vpop.f32.mrf.mxu0  ;;  %v1468_v24 = vld [vmem:[#allocation3 + $0xd8] sm:$0xff] }
 0x1b5   : > { %v2265_v40 = vld [vmem:[#allocation3 + $0x58] sm:$0xff]  ;;  %2237 = vst.msk [vmem:[#allocation3 + $0x78] sm:$0xff] %vm952_vm6, %v2205_v36  ;;  %v2203_v46 = vadd.f32 %v2114_v44, %v1877_v8  ;;  %v2928_v47 = vpop.f32.mrf.mxu1  ;;  %v1880_v62 = vld [vmem:[#allocation3 + $0x80] sm:$0xff] }
 0x1b6   : > { %2490 = vst.msk [vmem:[%s3610_s4 + $0x14] sm:$0xf] %vm2484_vm8, %v2791_v33  ;;  %v2796_v53 = vpack.c.bf16 %v2334_v34, %v2334_v34  ;;  %v2332_v42 = vmax.f32 %v2300_v35, 0.0  ;;  %v2303_v45 = vadd.f32 %v3596_v1, %v2265_v40  ;;  %v1790_v55 = vadd.f32 %v2928_v47, %v1464_v0  ;;  %v2957_v52 = vpop.f32.mrf.mxu0  ;;  %v1466_v34 = vld [vmem:[#allocation3 + $0xc8] sm:$0xff] }
 0x1b7   : > { %v2263_v51 = vld [vmem:[#allocation3 + $0x48] sm:$0xff]  ;;  %1819 = vst.msk [vmem:[#allocation3 + $0xa0] sm:$0xff] %vm952_vm6, %v1787_v41  ;;  %2235 = vst.msk [vmem:[#allocation3 + $0x68] sm:$0xff] %vm952_vm6, %v2203_v46  ;;  %v2208_v39 = vadd.f32 %v2957_v52, %v1882_v58  ;;  %v1723_v60 = vpop.f32.mrf.mxu1  ;;  %v1883_v9 = vld [vmem:[#allocation3 + $0x98] sm:$0xff] }
 0x1b8   : > { %2495 = vst.msk [vmem:[%s3610_s4 + $0x28] sm:$0xf] %vm2484_vm8, %v2796_v53  ;;  %v2794_v63 = vpack.c.bf16 %v2332_v42, %v2332_v42  ;;  %v2335_v12 = vmax.f32 %v2303_v45, 0.0  ;;  %v2301_v25 = vadd.f32 %v3596_v1, %v2263_v51  ;;  %v1788_v61 = vadd.f32 %v1723_v60, %v1462_v59  ;;  %v2127_v57 = vpop.f32.mrf.mxu0  ;;  %v1471_v42 = vld [vmem:[#allocation3 + $0xf0] sm:$0xff] }
 0x1b9   : > { %v2268_v56 = vld [vmem:[#allocation3 + $0x70] sm:$0xff]  ;;  %1822 = vst.msk [vmem:[#allocation3 + $0xb8] sm:$0xff] %vm952_vm6, %v1790_v55  ;;  %2240 = vst.msk [vmem:[#allocation3 + $0x90] sm:$0xff] %vm952_vm6, %v2208_v39  ;;  %v2206_v11 = vadd.f32 %v2127_v57, %v1880_v62  ;;  %v2931_v49 = vpop.f32.mrf.mxu1  ;;  %v1881_v20 = vld [vmem:[#allocation3 + $0x88] sm:$0xff] }
 0x1ba   : > { %2493 = vst.msk [vmem:[%s3610_s4 + $0x20] sm:$0xf] %vm2484_vm8, %v2794_v63  ;;  %v2797_v3 = vpack.c.bf16 %v2335_v12, %v2335_v12  ;;  %v2333_v5 = vmax.f32 %v2301_v25, 0.0  ;;  %v2306_v7 = vadd.f32 %v3596_v1, %v2268_v56  ;;  %v1793_v48 = vadd.f32 %v2931_v49, %v1467_v43  ;;  %v2958_v13 = vpop.f32.mrf.mxu0  ;;  %v1469_v12 = vld [vmem:[#allocation3 + $0xe0] sm:$0xff] }
 0x1bb   : > { %v2266_v28 = vld [vmem:[#allocation3 + $0x60] sm:$0xff]  ;;  %1820 = vst.msk [vmem:[#allocation3 + $0xa8] sm:$0xff] %vm952_vm6, %v1788_v61  ;;  %2238 = vst.msk [vmem:[#allocation3 + $0x80] sm:$0xff] %vm952_vm6, %v2206_v11  ;;  %v2209_v17 = vadd.f32 %v2958_v13, %v1883_v9  ;;  %v1736_v16 = vpop.f32.mrf.mxu1  ;;  %v1886_v2 = vld [vmem:[#allocation3 + $0xb0] sm:$0xff] }
 0x1bc   : > { %2496 = vst.msk [vmem:[%s3610_s4 + $0x2c] sm:$0xf] %vm2484_vm8, %v2797_v3  ;;  %v2795_v14 = vpack.c.bf16 %v2333_v5, %v2333_v5  ;;  %v2338_v15 = vmax.f32 %v2306_v7, 0.0  ;;  %v2304_v4 = vadd.f32 %v3596_v1, %v2266_v28  ;;  %v2269_v50 = vld [vmem:[#allocation3 + $0x78] sm:$0xff]  ;;  %v1791_v19 = vadd.f32 %v1736_v16, %v1465_v18  ;;  %v2130_v21 = vpop.f32.mrf.mxu0 }
 0x1bd   : > { %1825 = vst.msk [vmem:[#allocation3 + $0xd0] sm:$0xff] %vm952_vm6, %v1793_v48  ;;  %v2307_v54 = vadd.f32 %v3596_v1, %v2269_v50  ;;  %2241 = vst.msk [vmem:[#allocation3 + $0x98] sm:$0xff] %vm952_vm6, %v2209_v17  ;;  %v2207_v29 = vadd.f32 %v2130_v21, %v1881_v20  ;;  %v2932_v10 = vpop.f32.mrf.mxu1  ;;  %v1472_v5 = vld [vmem:[#allocation3 + $0xf8] sm:$0xff] }
 0x1be   : > { %2494 = vst.msk [vmem:[%s3610_s4 + $0x24] sm:$0xf] %vm2484_vm8, %v2795_v14  ;;  %v2800_v22 = vpack.c.bf16 %v2338_v15, %v2338_v15  ;;  %v2336_v23 = vmax.f32 %v2304_v4, 0.0  ;;  %v2267_v26 = vld [vmem:[#allocation3 + $0x68] sm:$0xff]  ;;  %v1794_v27 = vadd.f32 %v2932_v10, %v1468_v24  ;;  %v2961_v6 = vpop.f32.mrf.mxu0  ;;  %v1884_v38 = vld [vmem:[#allocation3 + $0xa0] sm:$0xff] }
 0x1bf   : > { %1823 = vst.msk [vmem:[#allocation3 + $0xc0] sm:$0xff] %vm952_vm6, %v1791_v19  ;;  %v2339_v31 = vmax.f32 %v2307_v54, 0.0  ;;  %v2305_v32 = vadd.f32 %v3596_v1, %v2267_v26  ;;  %2239 = vst.msk [vmem:[#allocation3 + $0x88] sm:$0xff] %vm952_vm6, %v2207_v29  ;;  %v2212_v33 = vadd.f32 %v2961_v6, %v1886_v2  ;;  %v1739_v35 = vpop.f32.mrf.mxu1  ;;  %v1470_v15 = vld [vmem:[#allocation3 + $0xe8] sm:$0xff] }
 0x1c0   : > { %2499 = vst.msk [vmem:[%s3610_s4 + $0x38] sm:$0xf] %vm2484_vm8, %v2800_v22  ;;  %v2798_v30 = vpack.c.bf16 %v2336_v23, %v2336_v23  ;;  %v2272_v36 = vld [vmem:[#allocation3 + $0x90] sm:$0xff]  ;;  %v1792_v37 = vadd.f32 %v1739_v35, %v1466_v34  ;;  %v2143_v40 = vpop.f32.mrf.mxu0  ;;  %v1887_v47 = vld [vmem:[#allocation3 + $0xb8] sm:$0xff] }
 0x1c1   : > { %1826 = vst.msk [vmem:[#allocation3 + $0xd8] sm:$0xff] %vm952_vm6, %v1794_v27  ;;  %v2801_v41 = vpack.c.bf16 %v2339_v31, %v2339_v31  ;;  %v2337_v8 = vmax.f32 %v2305_v32, 0.0  ;;  %v2310_v44 = vadd.f32 %v3596_v1, %v2272_v36  ;;  %2244 = vst.msk [vmem:[#allocation3 + $0xb0] sm:$0xff] %vm952_vm6, %v2212_v33  ;;  %v2210_v53 = vadd.f32 %v2143_v40, %v1884_v38  ;;  %v2935_v45 = vpop.f32.mrf.mxu1 }
 0x1c2   : > { %2497 = vst.msk [vmem:[%s3610_s4 + $0x30] sm:$0xf] %vm2484_vm8, %v2798_v30  ;;  %v2270_v46 = vld [vmem:[#allocation3 + $0x80] sm:$0xff]  ;;  %v1797_v0 = vadd.f32 %v2935_v45, %v1471_v42  ;;  %v2962_v51 = vpop.f32.mrf.mxu0  ;;  %v1885_v60 = vld [vmem:[#allocation3 + $0xa8] sm:$0xff] }
 0x1c3   : > { %1824 = vst.msk [vmem:[#allocation3 + $0xc8] sm:$0xff] %vm952_vm6, %v1792_v37  ;;  %v2799_v55 = vpack.c.bf16 %v2337_v8, %v2337_v8  ;;  %v2342_v58 = vmax.f32 %v2310_v44, 0.0  ;;  %v2308_v52 = vadd.f32 %v3596_v1, %v2270_v46  ;;  %2242 = vst.msk [vmem:[#allocation3 + $0xa0] sm:$0xff] %vm952_vm6, %v2210_v53  ;;  %v2213_v63 = vadd.f32 %v2962_v51, %v1887_v47  ;;  %v1752_v25 = vpop.f32.mrf.mxu1 }
 0x1c4   : > { %2500 = vst.msk [vmem:[%s3610_s4 + $0x3c] sm:$0xf] %vm2484_vm8, %v2801_v41  ;;  %v2273_v39 = vld [vmem:[#allocation3 + $0x98] sm:$0xff]  ;;  %v1795_v59 = vadd.f32 %v1752_v25, %v1469_v12  ;;  %v2146_v56 = vpop.f32.mrf.mxu0  ;;  %v1890_v49 = vld [vmem:[#allocation3 + $0xd0] sm:$0xff] }
 0x1c5   : > { %1829 = vst.msk [vmem:[#allocation3 + $0xf0] sm:$0xff] %vm952_vm6, %v1797_v0  ;;  %v2804_v61 = vpack.c.bf16 %v2342_v58, %v2342_v58  ;;  %v2340_v62 = vmax.f32 %v2308_v52, 0.0  ;;  %v2311_v57 = vadd.f32 %v3596_v1, %v2273_v39  ;;  %2245 = vst.msk [vmem:[#allocation3 + $0xb8] sm:$0xff] %vm952_vm6, %v2213_v63  ;;  %v2211_v3 = vadd.f32 %v2146_v56, %v1885_v60  ;;  %v2936_v7 = vpop.f32.mrf.mxu1 }
 0x1c6   : > { %2498 = vst.msk [vmem:[%s3610_s4 + $0x34] sm:$0xf] %vm2484_vm8, %v2799_v55  ;;  %v2271_v11 = vld [vmem:[#allocation3 + $0x88] sm:$0xff]  ;;  %v1798_v43 = vadd.f32 %v2936_v7, %v1472_v5  ;;  %v2965_v28 = vpop.f32.mrf.mxu0  ;;  %v1888_v16 = vld [vmem:[#allocation3 + $0xc0] sm:$0xff] }
 0x1c7   : > { %1827 = vst.msk [vmem:[#allocation3 + $0xe0] sm:$0xff] %vm952_vm6, %v1795_v59  ;;  %v2802_v48 = vpack.c.bf16 %v2340_v62, %v2340_v62  ;;  %v2343_v9 = vmax.f32 %v2311_v57, 0.0  ;;  %v2309_v13 = vadd.f32 %v3596_v1, %v2271_v11  ;;  %2243 = vst.msk [vmem:[#allocation3 + $0xa8] sm:$0xff] %vm952_vm6, %v2211_v3  ;;  %v2216_v14 = vadd.f32 %v2965_v28, %v1890_v49  ;;  %v1755_v4 = vpop.f32.mrf.mxu1 }
 0x1c8   : > { %2503 = vst.msk [vmem:[%s3610_s4 + $0x48] sm:$0xf] %vm2484_vm8, %v2804_v61  ;;  %v2276_v17 = vld [vmem:[#allocation3 + $0xb0] sm:$0xff]  ;;  %v1796_v18 = vadd.f32 %v1755_v4, %v1470_v15  ;;  %v2159_v50 = vpop.f32.mrf.mxu0  ;;  %v1891_v54 = vld [vmem:[#allocation3 + $0xd8] sm:$0xff] }
 0x1c9   : > { %1830 = vst.msk [vmem:[#allocation3 + $0xf8] sm:$0xff] %vm952_vm6, %v1798_v43  ;;  %v2805_v19 = vpack.c.bf16 %v2343_v9, %v2343_v9  ;;  %v2341_v20 = vmax.f32 %v2309_v13, 0.0  ;;  %v2314_v21 = vadd.f32 %v3596_v1, %v2276_v17  ;;  %2248 = vst.msk [vmem:[#allocation3 + $0xd0] sm:$0xff] %vm952_vm6, %v2216_v14  ;;  %v2214_v22 = vadd.f32 %v2159_v50, %v1888_v16 }
 0x1ca   : > { %2501 = vst.msk [vmem:[%s3610_s4 + $0x40] sm:$0xf] %vm2484_vm8, %v2802_v48  ;;  %v2274_v23 = vld [vmem:[#allocation3 + $0xa0] sm:$0xff]  ;;  %v2966_v29 = vpop.f32.mrf.mxu0  ;;  %v1889_v6 = vld [vmem:[#allocation3 + $0xc8] sm:$0xff] }
 0x1cb   : > { %1828 = vst.msk [vmem:[#allocation3 + $0xe8] sm:$0xff] %vm952_vm6, %v1796_v18  ;;  %v2803_v24 = vpack.c.bf16 %v2341_v20, %v2341_v20  ;;  %v2346_v10 = vmax.f32 %v2314_v21, 0.0  ;;  %v2312_v26 = vadd.f32 %v3596_v1, %v2274_v23  ;;  %2246 = vst.msk [vmem:[#allocation3 + $0xc0] sm:$0xff] %vm952_vm6, %v2214_v22  ;;  %v2217_v27 = vadd.f32 %v2966_v29, %v1891_v54 }
 0x1cc   : > { %2504 = vst.msk [vmem:[%s3610_s4 + $0x4c] sm:$0xf] %vm2484_vm8, %v2805_v19  ;;  %v2277_v2 = vld [vmem:[#allocation3 + $0xb8] sm:$0xff]  ;;  %v2162_v30 = vpop.f32.mrf.mxu0  ;;  %v1894_v36 = vld [vmem:[#allocation3 + $0xf0] sm:$0xff] }
 0x1cd   : > { %2502 = vst.msk [vmem:[%s3610_s4 + $0x44] sm:$0xf] %vm2484_vm8, %v2803_v24  ;;  %v2808_v31 = vpack.c.bf16 %v2346_v10, %v2346_v10  ;;  %v2344_v32 = vmax.f32 %v2312_v26, 0.0  ;;  %v2315_v33 = vadd.f32 %v3596_v1, %v2277_v2  ;;  %v2215_v34 = vadd.f32 %v2162_v30, %v1889_v6 }
 0x1ce   : > { %2249 = vst.msk [vmem:[#allocation3 + $0xd8] sm:$0xff] %vm952_vm6, %v2217_v27  ;;  %v2275_v35 = vld [vmem:[#allocation3 + $0xa8] sm:$0xff]  ;;  %v2969_v37 = vpop.f32.mrf.mxu0  ;;  %v1892_v53 = vld [vmem:[#allocation3 + $0xe0] sm:$0xff] }
 0x1cf   : > { %2507 = vst.msk [vmem:[%s3610_s4 + $0x58] sm:$0xf] %vm2484_vm8, %v2808_v31  ;;  %v2806_v38 = vpack.c.bf16 %v2344_v32, %v2344_v32  ;;  %v2347_v40 = vmax.f32 %v2315_v33, 0.0  ;;  %v2313_v41 = vadd.f32 %v3596_v1, %v2275_v35  ;;  %v2220_v8 = vadd.f32 %v2969_v37, %v1894_v36 }
 0x1d0   : > { %2247 = vst.msk [vmem:[#allocation3 + $0xc8] sm:$0xff] %vm952_vm6, %v2215_v34  ;;  %v2280_v44 = vld [vmem:[#allocation3 + $0xd0] sm:$0xff]  ;;  %v2175_v42 = vpop.f32.mrf.mxu0  ;;  %v1895_v55 = vld [vmem:[#allocation3 + $0xf8] sm:$0xff] }
 0x1d1   : > { %2505 = vst.msk [vmem:[%s3610_s4 + $0x50] sm:$0xf] %vm2484_vm8, %v2806_v38  ;;  %v2809_v45 = vpack.c.bf16 %v2347_v40, %v2347_v40  ;;  %v2345_v46 = vmax.f32 %v2313_v41, 0.0  ;;  %v2318_v0 = vadd.f32 %v3596_v1, %v2280_v44  ;;  %v2218_v47 = vadd.f32 %v2175_v42, %v1892_v53 }
 0x1d2   : > { %2252 = vst.msk [vmem:[#allocation3 + $0xf0] sm:$0xff] %vm952_vm6, %v2220_v8  ;;  %v2278_v51 = vld [vmem:[#allocation3 + $0xc0] sm:$0xff]  ;;  %v2970_v58 = vpop.f32.mrf.mxu0  ;;  %v1893_v59 = vld [vmem:[#allocation3 + $0xe8] sm:$0xff] }
 0x1d3   : > { %2508 = vst.msk [vmem:[%s3610_s4 + $0x5c] sm:$0xf] %vm2484_vm8, %v2809_v45  ;;  %v2807_v52 = vpack.c.bf16 %v2345_v46, %v2345_v46  ;;  %v2350_v63 = vmax.f32 %v2318_v0, 0.0  ;;  %v2316_v12 = vadd.f32 %v3596_v1, %v2278_v51  ;;  %v2221_v25 = vadd.f32 %v2970_v58, %v1895_v55 }
 0x1d4   : > { %2250 = vst.msk [vmem:[#allocation3 + $0xe0] sm:$0xff] %vm952_vm6, %v2218_v47  ;;  %v2178_v60 = vpop.f32.mrf.mxu0 }
 0x1d5   : > { %v2281_v39 = vld [vmem:[#allocation3 + $0xd8] sm:$0xff]  ;;  %2506 = vst.msk [vmem:[%s3610_s4 + $0x54] sm:$0xf] %vm2484_vm8, %v2807_v52  ;;  %v2812_v56 = vpack.c.bf16 %v2350_v63, %v2350_v63  ;;  %v2348_v61 = vmax.f32 %v2316_v12, 0.0  ;;  %v2219_v57 = vadd.f32 %v2178_v60, %v1893_v59 }
 0x1d6   : > { %v2319_v62 = vadd.f32 %v3596_v1, %v2281_v39  ;;  %2253 = vst.msk [vmem:[#allocation3 + $0xf8] sm:$0xff] %vm952_vm6, %v2221_v25 }
 0x1d7   : > { %v2279_v3 = vld [vmem:[#allocation3 + $0xc8] sm:$0xff]  ;;  %2511 = vst.msk [vmem:[%s3610_s4 + $0x68] sm:$0xf] %vm2484_vm8, %v2812_v56  ;;  %v2810_v5 = vpack.c.bf16 %v2348_v61, %v2348_v61 }
 0x1d8   : > { %v2351_v7 = vmax.f32 %v2319_v62, 0.0  ;;  %v2317_v11 = vadd.f32 %v3596_v1, %v2279_v3  ;;  %2251 = vst.msk [vmem:[#allocation3 + $0xe8] sm:$0xff] %vm952_vm6, %v2219_v57 }
 0x1d9   : > { %v2284_v43 = vld [vmem:[#allocation3 + $0xf0] sm:$0xff]  ;;  %2509 = vst.msk [vmem:[%s3610_s4 + $0x60] sm:$0xf] %vm2484_vm8, %v2810_v5 }
 0x1da   : > { %v2813_v49 = vpack.c.bf16 %v2351_v7, %v2351_v7  ;;  %v2349_v28 = vmax.f32 %v2317_v11, 0.0  ;;  %v2322_v48 = vadd.f32 %v3596_v1, %v2284_v43 }
 0x1db   : > { %v2282_v9 = vld [vmem:[#allocation3 + $0xe0] sm:$0xff] }
 0x1dc   : > { %2512 = vst.msk [vmem:[%s3610_s4 + $0x6c] sm:$0xf] %vm2484_vm8, %v2813_v49  ;;  %v2811_v13 = vpack.c.bf16 %v2349_v28, %v2349_v28  ;;  %v2354_v14 = vmax.f32 %v2322_v48, 0.0  ;;  %v2320_v15 = vadd.f32 %v3596_v1, %v2282_v9 }
 0x1dd   : > { %v2285_v4 = vld [vmem:[#allocation3 + $0xf8] sm:$0xff] }
 0x1de   : > { %2510 = vst.msk [vmem:[%s3610_s4 + $0x64] sm:$0xf] %vm2484_vm8, %v2811_v13  ;;  %v2816_v17 = vpack.c.bf16 %v2354_v14, %v2354_v14  ;;  %v2352_v18 = vmax.f32 %v2320_v15, 0.0  ;;  %v2323_v16 = vadd.f32 %v3596_v1, %v2285_v4 }
 0x1df   : > { %v2283_v50 = vld [vmem:[#allocation3 + $0xe8] sm:$0xff] }
 0x1e0   : > { %2515 = vst.msk [vmem:[%s3610_s4 + $0x78] sm:$0xf] %vm2484_vm8, %v2816_v17  ;;  %v2814_v19 = vpack.c.bf16 %v2352_v18, %v2352_v18  ;;  %v2355_v20 = vmax.f32 %v2323_v16, 0.0  ;;  %v2321_v21 = vadd.f32 %v3596_v1, %v2283_v50 }
 0x1e2   : > { %2513 = vst.msk [vmem:[%s3610_s4 + $0x70] sm:$0xf] %vm2484_vm8, %v2814_v19  ;;  %v2817_v22 = vpack.c.bf16 %v2355_v20, %v2355_v20  ;;  %v2353_v23 = vmax.f32 %v2321_v21, 0.0 }
 0x1e4   : > { %2516 = vst.msk [vmem:[%s3610_s4 + $0x7c] sm:$0xf] %vm2484_vm8, %v2817_v22  ;;  %v2815_v54 = vpack.c.bf16 %v2353_v23, %v2353_v23 }
 0x1e6   : > { %2514 = vst.msk [vmem:[%s3610_s4 + $0x74] sm:$0xf] %vm2484_vm8, %v2815_v54 }
 0x1e7 PF: > { %s13_s12 = sadd.s32 1, %s3079_s12  }
 0x1e8   : > { %p10_p4 = scmp.ge.s32.totalorder %s13_s12, 4  }
 0x1ea   :  { %12 = sbr.rel (!%p10_p4) target bundleno = 1 (0x1), region = 66 }

// kernel: homography_forward.11
= control target key start
LH: loop header
LB: loop body
LE: loop exit
PB: predicated region body
PF: predicated region fallthrough
CT: control target
= control target key end

     0   :  { %s3625_s12 = smov 0   ;;  %s4610_s0 = inlined_call_operand.vmem [shape: bf16[2,18,18,64], index: 0, kind: input, shape index: {}]   ;;  %s4611_s1 = inlined_call_operand.vmem [shape: bf16[3,192,64], index: 1, kind: input, shape index: {}]   ;;  %s4612_s2 = inlined_call_operand.vmem [shape: f32[1,64], index: 2, kind: input, shape index: {}]   ;;  %s4613_s3 = inlined_call_operand.vmem [shape: bf16[2,8,8,64], index: 3, kind: output, shape index: {}]  }
   0x1 LB: > { %s3069_s13 = sadd.s32 4294967295, %s3594_s12   ;;  %p3073_p0 = scmp.ge.s32.totalorder %s3594_s12, 1  ;;  %s3594_s12 = sphi %s3625_s12, %s13_s12  }
   0x2   : > { %p137_p1 = scmp.lt.s32.totalorder %s3594_s12, 3 }
   0x4   : > { %p138_p2 = pnand %p3073_p0, %p137_p1 }
   0x5   : > { %p161_p3 = scmp.lt.s32.totalorder (!%p138_p2), %s3069_s13, 1  ;;  %s3601_s7 = smov (!%p138_p2), 64  }
   0x6   : > { %141 = sbr.rel (%p138_p2) target bundleno = 766 (0x2fe), region = 32  ;;  %s4594_s21 = smov (!%p138_p2), 0  }
   0xb   : > { %v3490_v0 = vld [vmem:[%s4611_s1 + $0x38] sm:$0xff]   ;;  %v3600_v1 = vmov 0   ;;  %s4617_s13 = smov (!%p161_p3, %s3069_s13), 1  ;;  %v3491_v2 = vld [vmem:[%s4611_s1 + $0x30] sm:$0xff]   ;;  %vm371_vm0 = vsmask.f32 7424 }
   0xc   : > { %3412 = vmatprep.subr.bf16.mxu1 %v3600_v1  ;;  %1301 = vmatprep.subr.bf16.mxu0 %v3600_v1  ;;  %s3436_s18 = smul.u32 216, %s4617_s13  ;;  %s3390_s19 = sshll.u32 %s4617_s13, 5  ;;  %v3492_v3 = vld [vmem:[%s4611_s1 + $0x28] sm:$0xff]   ;;  %v3493_v6 = vld [vmem:[%s4611_s1 + $0x20] sm:$0xff]   ;;  %v3494_v18 = vld [vmem:[%s4611_s1 + $0x18] sm:$0xff]   ;;  %vm624_vm1 = vcmask 1046528  }
   0xd   : > { %3424 = vmatpush1.bf16.msra.mxu1 %v3490_v0  ;;  %1302 = vmatpush1.bf16.msra.mxu0 %v3490_v0  ;;  %s3646_s22 = scalar_lea.vmem %s4613_s3, %s3390_s19  ;;  %v3495_v34 = vld [vmem:[%s4611_s1 + $0x10] sm:$0xff]   ;;  %vm679_vm2 = vcmask 523264   ;;  %vm878_vm3 = vcmask 1043456   ;;  %vm879_vm4 = vcmask 523268  }
   0xe   : > { %3413 = vmatprep.subr.bf16.mxu1 %v3600_v1  ;;  %1303 = vmatprep.subr.bf16.mxu0 %v3600_v1  ;;  %s3651_s25 = scalar_lea.vmem %s4610_s0, %s3436_s18  ;;  %vm3911_vm5 = vmor %vm879_vm4, %vm878_vm3 }
   0xf   : > { %v3659_v4 = vld [vmem:[%s3651_s25 + $0x60] sm:$0xff]   ;;  %v3662_v5 = vld [vmem:[%s3651_s25 + $0x68] ss:$0 sps:$4 sm:$0x11]   ;;  %v3682_v17 = vld [vmem:[%s3651_s25 + $0x6c] sm:$0xff]  }
  0x10   : > { %v3668_v7 = vld [vmem:[%s3651_s25] sm:$0xff]   ;;  %v469_v8 = vshrl.u32 %v3659_v4, 16  ;;  %v471_v9 = vshll.u32 %v3659_v4, 16  ;;  %v476_v10 = vshll.u32 %v3662_v5, 16  ;;  %v481_v23 = vshrl.u32 %v3682_v17, 16  ;;  %v3693_v25 = vld [vmem:[%s3651_s25 + $0xc] sm:$0xff]  }
  0x11   : > { %3425 = vmatpush1.bf16.msra.mxu1 %v3491_v2  ;;  %1304 = vmatpush1.bf16.msra.mxu0 %v3491_v2  ;;  %v3674_v11 = vld [vmem:[%s3651_s25 + $0x8] ss:$0 sps:$4 sm:$0x11]   ;;  %v373_v12 = vshrl.u32 %v3668_v7, 16  ;;  %v375_v13 = vshll.u32 %v3668_v7, 16  ;;  %v483_v24 = vshll.u32 %v3682_v17, 16 }
  0x12   : > { %3414 = vmatprep.subr.bf16.mxu1 %v3600_v1  ;;  %1305 = vmatprep.subr.bf16.mxu0 %v3600_v1  ;;  %v473_v14 = vrot.slane %v471_v9, 1  ;;  %v478_v15 = vrot.slane %v476_v10, 1  ;;  %v380_v16 = vshll.u32 %v3674_v11, 16  ;;  %v3688_v20 = vld [vmem:[%s3651_s25 + $0x74] ss:$0 sps:$4 sm:$0x11]  }
  0x13   : > { %v377_v19 = vrot.slane %v375_v13, 1  ;;  %v488_v27 = vshll.u32 %v3688_v20, 16  ;;  %v3697_v28 = vld [vmem:[%s3651_s25 + $0x14] ss:$0 sps:$4 sm:$0x11]   ;;  %v485_v30 = vrot.slane %v483_v24, 1 }
  0x14   : > { %v474_v21 = vor.u32 %v473_v14, %v469_v8  ;;  %v382_v22 = vrot.slane %v380_v16, 1  ;;  %v385_v31 = vshrl.u32 %v3693_v25, 16  ;;  %v387_v32 = vshll.u32 %v3693_v25, 16  ;;  %v3705_v33 = vld [vmem:[%s3651_s25 + $0x18] sm:$0xff]   ;;  %v3733_v52 = vld [vmem:[%s3651_s25 + $0x24] sm:$0xff]  }
  0x15   : > { %3426 = vmatpush1.bf16.msra.mxu1 %v3492_v3  ;;  %1306 = vmatpush1.bf16.msra.mxu0 %v3492_v3  ;;  %v378_v26 = vor.u32 %v377_v19, %v373_v12  ;;  %v490_v36 = vrot.slane %v488_v27, 1  ;;  %v392_v37 = vshll.u32 %v3697_v28, 16  ;;  %v486_v38 = vor.u32 %v485_v30, %v481_v23  ;;  %v3715_v40 = vld [vmem:[%s3651_s25 + $0x20] ss:$0 sps:$4 sm:$0x11]   ;;  %v3720_v44 = vld [vmem:[%s3651_s25 + $0x78] sm:$0xff]  }
  0x16   : > { %3415 = vmatprep.subr.bf16.mxu1 %v3600_v1  ;;  %1307 = vmatprep.subr.bf16.mxu0 %v3600_v1  ;;  %v479_v29 = vsel %vm371_vm0, %v474_v21, %v478_v15  ;;  %v389_v39 = vrot.slane %v387_v32, 1  ;;  %v397_v41 = vshrl.u32 %v3705_v33, 16  ;;  %v399_v42 = vshll.u32 %v3705_v33, 16  ;;  %v3728_v49 = vld [vmem:[%s3651_s25 + $0x80] ss:$0 sps:$4 sm:$0x11]  }
  0x17   : > { %604 = vrot.lane.b32.xlu0 %v479_v29, %s3601_s7  ;;  %v383_v35 = vsel %vm371_vm0, %v378_v26, %v382_v22  ;;  %v394_v43 = vrot.slane %v392_v37, 1  ;;  %v491_v45 = vsel %vm371_vm0, %v486_v38, %v490_v36  ;;  %v404_v48 = vshll.u32 %v3715_v40, 16  ;;  %v3737_v56 = vld [vmem:[%s3651_s25 + $0x84] sm:$0xff]   ;;  %v3741_v59 = vld [vmem:[%s3651_s25 + $0x2c] ss:$0 sps:$4 sm:$0x11]  }
  0x18   : > { %588 = vrot.lane.b32.xlu1 %v383_v35, %s3601_s7  ;;  %v390_v46 = vor.u32 %v389_v39, %v385_v31  ;;  %v401_v47 = vrot.slane %v399_v42, 1  ;;  %v493_v50 = vshrl.u32 %v3720_v44, 16  ;;  %v495_v51 = vshll.u32 %v3720_v44, 16  ;;  %v3756_v10 = vld [vmem:[%s3651_s25 + $0x8c] ss:$0 sps:$4 sm:$0x11]  }
  0x19   : > { %3427 = vmatpush1.bf16.msra.mxu1 %v3493_v6  ;;  %1308 = vmatpush1.bf16.msra.mxu0 %v3493_v6  ;;  %v406_v55 = vrot.slane %v404_v48, 1  ;;  %v500_v58 = vshll.u32 %v3728_v49, 16  ;;  %v409_v60 = vshrl.u32 %v3733_v52, 16  ;;  %v411_v61 = vshll.u32 %v3733_v52, 16  ;;  %v3752_v6 = vld [vmem:[%s3651_s25 + $0x30] sm:$0xff]   ;;  %v3776_v31 = vld [vmem:[%s3651_s25 + $0x3c] sm:$0xff]  }
  0x1a   : > { %3416 = vmatprep.subr.bf16.mxu1 %v3600_v1  ;;  %1309 = vmatprep.subr.bf16.mxu0 %v3600_v1  ;;  %v395_v53 = vsel %vm371_vm0, %v390_v46, %v394_v43  ;;  %v402_v54 = vor.u32 %v401_v47, %v397_v41  ;;  %v497_v57 = vrot.slane %v495_v51, 1  ;;  %v505_v62 = vshrl.u32 %v3737_v56, 16  ;;  %v3770_v29 = vld [vmem:[%s3651_s25 + $0x90] sm:$0xff]   ;;  %v3773_v30 = vld [vmem:[%s3651_s25 + $0x98] ss:$0 sps:$4 sm:$0x11]  }
  0x1b   : > { %606 = vrot.lane.b32.xlu0 %v491_v45, %s3601_s7  ;;  %v502_v0 = vrot.slane %v500_v58, 1  ;;  %v416_v2 = vshll.u32 %v3741_v59, 16  ;;  %v507_v3 = vshll.u32 %v3737_v56, 16  ;;  %v413_v9 = vrot.slane %v411_v61, 1  ;;  %v3791_v45 = vld [vmem:[%s3651_s25 + $0x9c] sm:$0xff]  }
  0x1c   : > { %v498_v63 = vor.u32 %v497_v57, %v493_v50  ;;  %v407_v8 = vsel %vm371_vm0, %v402_v54, %v406_v55  ;;  %v512_v16 = vshll.u32 %v3756_v10, 16  ;;  %v421_v19 = vshrl.u32 %v3752_v6, 16  ;;  %v3785_v39 = vld [vmem:[%s3651_s25 + $0x44] ss:$0 sps:$4 sm:$0x11]   ;;  %v3800_v55 = vld [vmem:[%s3651_s25 + $0x48] sm:$0xff]  }
  0x1d   : > { %3428 = vmatpush1.bf16.msra.mxu1 %v3494_v18  ;;  %1310 = vmatpush1.bf16.msra.mxu0 %v3494_v18  ;;  %v418_v13 = vrot.slane %v416_v2, 1  ;;  %v509_v14 = vrot.slane %v507_v3, 1  ;;  %v414_v15 = vor.u32 %v413_v9, %v409_v60  ;;  %v3762_v18 = vld [vmem:[%s3651_s25 + $0x38] ss:$0 sps:$4 sm:$0x11]   ;;  %v423_v21 = vshll.u32 %v3752_v6, 16 }
  0x1e   : > { %3417 = vmatprep.subr.bf16.mxu1 %v3600_v1  ;;  %1311 = vmatprep.subr.bf16.mxu0 %v3600_v1  ;;  %v503_v12 = vsel %vm371_vm0, %v498_v63, %v502_v0  ;;  %v514_v24 = vrot.slane %v512_v16, 1  ;;  %v428_v27 = vshll.u32 %v3762_v18, 16  ;;  %v517_v36 = vshrl.u32 %v3770_v29, 16  ;;  %v3795_v50 = vld [vmem:[%s3651_s25 + $0xa4] ss:$0 sps:$4 sm:$0x11]  }
  0x1f   : > { %590 = vrot.lane.b32.xlu0 %v395_v53, %s3601_s7  ;;  %608 = vrot.lane.b32.xlu1 %v503_v12, %s3601_s7  ;;  %v510_v22 = vor.u32 %v509_v14, %v505_v62  ;;  %v419_v23 = vsel %vm371_vm0, %v414_v15, %v418_v13  ;;  %v425_v26 = vrot.slane %v423_v21, 1  ;;  %v519_v37 = vshll.u32 %v3770_v29, 16  ;;  %v3805_v63 = vld [vmem:[%s3651_s25 + $0x50] ss:$0 sps:$4 sm:$0x11]   ;;  %v3811_v9 = vld [vmem:[%s3651_s25 + $0xa8] sm:$0xff]  }
  0x20   : > { %v430_v35 = vrot.slane %v428_v27, 1  ;;  %v524_v38 = vshll.u32 %v3773_v30, 16  ;;  %v433_v41 = vshrl.u32 %v3776_v31, 16  ;;  %v435_v43 = vshll.u32 %v3776_v31, 16  ;;  %v3827_v27 = vld [vmem:[%s3651_s25 + $0x54] sm:$0xff]  }
  0x21   : > { %3429 = vmatpush1.bf16.msra.mxu1 %v3495_v34  ;;  %1312 = vmatpush1.bf16.msra.mxu0 %v3495_v34  ;;  %v515_v32 = vsel %vm371_vm0, %v510_v22, %v514_v24  ;;  %v426_v34 = vor.u32 %v425_v26, %v421_v19  ;;  %v521_v46 = vrot.slane %v519_v37, 1  ;;  %v440_v48 = vshll.u32 %v3785_v39, 16  ;;  %v3818_v16 = vld [vmem:[%s3651_s25 + $0xb0] ss:$0 sps:$4 sm:$0x11]   ;;  %v3823_v22 = vld [vmem:[%s3651_s25 + $0xb4] sm:$0xff]  }
  0x22   : > { %3418 = vmatprep.subr.bf16.mxu1 %v3600_v1  ;;  %1313 = vmatprep.subr.bf16.mxu0 %v3600_v1  ;;  %v526_v47 = vrot.slane %v524_v38, 1  ;;  %v437_v51 = vrot.slane %v435_v43, 1  ;;  %v529_v53 = vshrl.u32 %v3791_v45, 16  ;;  %v531_v54 = vshll.u32 %v3791_v45, 16 }
  0x23   : > { %592 = vrot.lane.b32.xlu0 %v407_v8, %s3601_s7  ;;  %610 = vrot.lane.b32.xlu1 %v515_v32, %s3601_s7  ;;  %v431_v42 = vsel %vm371_vm0, %v426_v34, %v430_v35  ;;  %v522_v57 = vor.u32 %v521_v46, %v517_v36  ;;  %v442_v58 = vrot.slane %v440_v48, 1  ;;  %v536_v60 = vshll.u32 %v3795_v50, 16  ;;  %v3831_v35 = vld [vmem:[%s3651_s25 + $0xbc] ss:$0 sps:$4 sm:$0x11]   ;;  %v3496_v48 = vld [vmem:[%s4611_s1 + $0x8] sm:$0xff]  }
  0x24   : > { %v438_v61 = vor.u32 %v437_v51, %v433_v41  ;;  %v533_v62 = vrot.slane %v531_v54, 1  ;;  %v445_v0 = vshrl.u32 %v3800_v55, 16  ;;  %v447_v2 = vshll.u32 %v3800_v55, 16 }
  0x25   : > { %v527_v3 = vsel %vm371_vm0, %v522_v57, %v526_v47  ;;  %v538_v8 = vrot.slane %v536_v60, 1  ;;  %v452_v15 = vshll.u32 %v3805_v63, 16  ;;  %v541_v19 = vshrl.u32 %v3811_v9, 16  ;;  %3430 = vmatpush1.bf16.msra.mxu1 %v3496_v48  ;;  %1314 = vmatpush1.bf16.msra.mxu0 %v3496_v48 }
  0x26   : > { %v443_v12 = vsel %vm371_vm0, %v438_v61, %v442_v58  ;;  %v534_v13 = vor.u32 %v533_v62, %v529_v53  ;;  %v449_v14 = vrot.slane %v447_v2, 1  ;;  %v543_v21 = vshll.u32 %v3811_v9, 16  ;;  %v3845_v53 = vld [vmem:[%s3651_s25 + $0x5c] ss:$0 sps:$4 sm:$0x11]   ;;  %3419 = vmatprep.subr.bf16.mxu1 %v3600_v1  ;;  %v3497_v62 = vld [vmem:[%s4611_s1] sm:$0xff]   ;;  %1315 = vmatprep.subr.bf16.mxu0 %v3600_v1 }
  0x27   : > { %594 = vrot.lane.b32.xlu0 %v419_v23, %s3601_s7  ;;  %612 = vrot.lane.b32.xlu1 %v527_v3, %s3601_s7  ;;  %v454_v26 = vrot.slane %v452_v15, 1  ;;  %v548_v34 = vshll.u32 %v3818_v16, 16  ;;  %v553_v36 = vshrl.u32 %v3823_v22, 16  ;;  %v555_v38 = vshll.u32 %v3823_v22, 16  ;;  %v3501_v15 = vld [vmem:[%s4611_s1 + $0x40] sm:$0xff]  }
  0x28   : > { %v539_v23 = vsel %vm371_vm0, %v534_v13, %v538_v8  ;;  %v450_v24 = vor.u32 %v449_v14, %v445_v0  ;;  %v545_v32 = vrot.slane %v543_v21, 1  ;;  %v457_v41 = vshrl.u32 %v3827_v27, 16  ;;  %v3498_v8 = vld [vmem:[%s4611_s1 + $0x58] sm:$0xff]   ;;  %v3499_v13 = vld [vmem:[%s4611_s1 + $0x50] sm:$0xff]   ;;  %v3500_v14 = vld [vmem:[%s4611_s1 + $0x48] sm:$0xff]  }
  0x29   : > { %v550_v43 = vrot.slane %v548_v34, 1  ;;  %v560_v46 = vshll.u32 %v3831_v35, 16  ;;  %v459_v47 = vshll.u32 %v3827_v27, 16  ;;  %v557_v51 = vrot.slane %v555_v38, 1  ;;  %3431 = vmatpush1.bf16.msra.mxu1 %v3497_v62  ;;  %1316 = vmatpush1.bf16.msra.mxu0 %v3497_v62 }
  0x2a   : > { %v455_v37 = vsel %vm371_vm0, %v450_v24, %v454_v26  ;;  %v464_v61 = vshll.u32 %v3845_v53, 16  ;;  %3420 = vmatprep.subr.bf16.mxu1 %v3600_v1  ;;  %1325 = vmatprep.subr.bf16.mxu0 %v3600_v1  ;;  %v3885_v21 = vld [vmem:[%s3651_s25 + $0xc8] ss:$0 sps:$4 sm:$0x11]  }
  0x2b   : > { %596 = vrot.lane.b32.xlu0 %v431_v42, %s3601_s7  ;;  %614 = vrot.lane.b32.xlu1 %v539_v23, %s3601_s7  ;;  %v546_v42 = vor.u32 %v545_v32, %v541_v19  ;;  %v562_v57 = vrot.slane %v560_v46, 1  ;;  %v461_v58 = vrot.slane %v459_v47, 1  ;;  %v558_v60 = vor.u32 %v557_v51, %v553_v36  ;;  %v3882_v19 = vld [vmem:[%s3651_s25 + $0xc0] sm:$0xff]   ;;  %v3894_v38 = vld [vmem:[%s3651_s25 + $0xd4] ss:$0 sps:$4 sm:$0x11]  }
  0x2c   : > { %v466_v3 = vrot.slane %v464_v61, 1  ;;  %v565_v23 = vshrl.u32 %v3882_v19, 16  ;;  %v567_v24 = vshll.u32 %v3882_v19, 16  ;;  %v572_v26 = vshll.u32 %v3885_v21, 16 }
  0x2d   : > { %v551_v54 = vsel %vm371_vm0, %v546_v42, %v550_v43  ;;  %v462_v0 = vor.u32 %v461_v58, %v457_v41  ;;  %v563_v2 = vsel %vm371_vm0, %v558_v60, %v562_v57  ;;  %3432 = vmatpush2.bf16.msra.mxu1 %v3498_v8  ;;  %1326 = vmatpush2.bf16.msra.mxu0 %v3498_v8  ;;  %v584_v46 = vshll.u32 %v3894_v38, 16 }
  0x2e   : > { %3421 = vmatprep.subr.bf16.mxu1 %v3600_v1  ;;  %1327 = vmatprep.subr.bf16.mxu0 %v3600_v1  ;;  %v569_v32 = vrot.slane %v567_v24, 1  ;;  %v574_v34 = vrot.slane %v572_v26, 1  ;;  %v649_v57 = vrot.slane %v3659_v4, 1  ;;  %v650_v58 = vrot.slane %v3662_v5, 1 }
  0x2f   : > { %598 = vrot.lane.b32.xlu0 %v443_v12, %s3601_s7  ;;  %616 = vrot.lane.b32.xlu1 %v551_v54, %s3601_s7  ;;  %v467_v12 = vsel %vm371_vm0, %v462_v0, %v466_v3  ;;  %v586_v48 = vrot.slane %v584_v46, 1  ;;  %v625_v60 = vrot.slane %v3668_v7, 1  ;;  %v626_v61 = vrot.slane %v3674_v11, 1 }
  0x30   : > { %v570_v36 = vor.u32 %v569_v32, %v565_v23  ;;  %v651_v62 = vsel %vm624_vm1, %v649_v57, %v650_v58  ;;  %v652_v0 = vrot.slane %v3682_v17, 1  ;;  %v628_v23 = vrot.slane %v3693_v25, 1 }
  0x31   : > { %3433 = vmatpush2.bf16.msra.mxu1 %v3499_v13  ;;  %1328 = vmatpush2.bf16.msra.mxu0 %v3499_v13  ;;  %v627_v8 = vsel %vm624_vm1, %v625_v60, %v626_v61  ;;  %v629_v32 = vrot.slane %v3697_v28, 1  ;;  %v655_v28 = vrot.slane %v3720_v44, 1  ;;  %v632_v46 = vrot.slane %v3715_v40, 1 }
  0x32   : > { %3422 = vmatprep.subr.bf16.mxu1 %v3600_v1  ;;  %1329 = vmatprep.subr.bf16.mxu0 %v3600_v1  ;;  %v575_v41 = vsel %vm371_vm0, %v570_v36, %v574_v34  ;;  %v635_v57 = vrot.slane %v3741_v59, 1  ;;  %v658_v61 = vrot.slane %v3737_v56, 1 }
  0x33   : > { %600 = vrot.lane.b32.xlu0 %v455_v37, %s3601_s7  ;;  %618 = vrot.lane.b32.xlu1 %v563_v2, %s3601_s7  ;;  %v3891_v37 = vld [vmem:[%s3651_s25 + $0xcc] sm:$0xff]   ;;  %v653_v2 = vrot.slane %v3688_v20, 1 }
  0x34   : > { %v577_v42 = vshrl.u32 %v3891_v37, 16  ;;  %v579_v43 = vshll.u32 %v3891_v37, 16 }
  0x35   : > { %3434 = vmatpush2.bf16.msra.mxu1 %v3500_v14  ;;  %1330 = vmatpush2.bf16.msra.mxu0 %v3500_v14  ;;  %v654_v26 = vsel %vm624_vm1, %v652_v0, %v653_v2 }
  0x36   : > { %3423 = vmatprep.subr.bf16.mxu1 %v3600_v1  ;;  %1331 = vmatprep.subr.bf16.mxu0 %v3600_v1  ;;  %v581_v47 = vrot.slane %v579_v43, 1  ;;  %v631_v43 = vrot.slane %v3705_v33, 1 }
  0x37   : > { %602 = vrot.lane.b32.xlu1 %v467_v12, %s3601_s7  ;;  %620 = vrot.lane.b32.xlu0 %v575_v41, %s3601_s7  ;;  %v656_v41 = vrot.slane %v3728_v49, 1 }
  0x38   : > { %v582_v51 = vor.u32 %v581_v47, %v577_v42  ;;  %v630_v42 = vsel %vm624_vm1, %v628_v23, %v629_v32  ;;  %v633_v40 = vsel %vm624_vm1, %v631_v43, %v632_v46  ;;  %v3525_v46 = vld [vmem:[%s4611_s1 + $0xf0] sm:$0xff]  }
  0x39   : > { %3435 = vmatpush2.bf16.msra.mxu1 %v3501_v15  ;;  %1332 = vmatpush2.bf16.msra.mxu0 %v3501_v15 }
  0x3a   : > { %1880 = vmatprep.subr.bf16.mxu1 %v3600_v1  ;;  %2459 = vmatprep.subr.bf16.mxu0 %v3600_v1  ;;  %v587_v54 = vsel %vm371_vm0, %v582_v51, %v586_v48  ;;  %v634_v48 = vrot.slane %v3733_v52, 1 }
  0x3b   : > { %622 = vrot.lane.b32.xlu1 %v587_v54, %s3601_s7  ;;  %v657_v54 = vsel %vm624_vm1, %v655_v28, %v656_v41 }
  0x89   : > { %v605_v3 = vpop.permute.xlu0 %604 }
  0x8a   : > { %v697_v5 = vsel %vm679_vm2, %v3659_v4, %v605_v3  ;;  %v589_v11 = vpop.permute.xlu1 %588 }
  0x8b   : > { %v3129_v13 = vcombine.low %v697_v5, %v651_v62  ;;  %v3130_v14 = vcombine.high %v697_v5, %v651_v62  ;;  %v681_v15 = vsel %vm679_vm2, %v3668_v7, %v589_v11  ;;  %v659_v62 = vrot.slane %v3756_v10, 1 }
  0x8c   : > { %v3113_v24 = vcombine.low %v681_v15, %v627_v8  ;;  %v3114_v20 = vcombine.high %v681_v15, %v627_v8  ;;  %v3508_v8 = vld [vmem:[%s4611_s1 + $0x98] sm:$0xff]  }
  0x8d   : > { %897 = vst.msk [vmem:[#allocation2 + $0x80] sm:$0xff] %vm3911_vm5, %v3129_v13  ;;  %898 = vst.msk [vmem:[#allocation2 + $0x88] sm:$0xff] %vm3911_vm5, %v3130_v14  ;;  %v607_v4 = vpop.permute.xlu0 %606  ;;  %v3516_v15 = vld [vmem:[%s4611_s1 + $0xf8] sm:$0xff]   ;;  %v660_v23 = vsel %vm624_vm1, %v658_v61, %v659_v62 }
  0x8e   : > { %881 = vst.msk [vmem:[#allocation2] sm:$0xff] %vm3911_vm5, %v3113_v24  ;;  %882 = vst.msk [vmem:[#allocation2 + $0x8] sm:$0xff] %vm3911_vm5, %v3114_v20  ;;  %v699_v7 = vsel %vm679_vm2, %v3682_v17, %v607_v4  ;;  %v637_v24 = vrot.slane %v3752_v6, 1  ;;  %v638_v20 = vrot.slane %v3762_v18, 1  ;;  %v3509_v4 = vld [vmem:[%s4611_s1 + $0x90] sm:$0xff]  }
  0x8f   : > { %v3131_v34 = vcombine.low %v699_v7, %v654_v26  ;;  %v3132_v36 = vcombine.high %v699_v7, %v654_v26 }
  0x91   : > { %899 = vst.msk [vmem:[#allocation2 + $0x90] sm:$0xff] %vm3911_vm5, %v3131_v34  ;;  %900 = vst.msk [vmem:[#allocation2 + $0x98] sm:$0xff] %vm3911_vm5, %v3132_v36  ;;  %v591_v47 = vpop.permute.xlu0 %590  ;;  %v609_v60 = vpop.permute.xlu1 %608  ;;  %v661_v34 = vrot.slane %v3770_v29, 1  ;;  %v662_v36 = vrot.slane %v3773_v30, 1 }
  0x92   : > { %v683_v17 = vsel %vm679_vm2, %v3693_v25, %v591_v47  ;;  %v701_v59 = vsel %vm679_vm2, %v3720_v44, %v609_v60  ;;  %v636_v44 = vsel %vm624_vm1, %v634_v48, %v635_v57 }
  0x93   : > { %v3115_v51 = vcombine.low %v683_v17, %v630_v42  ;;  %v3116_v49 = vcombine.high %v683_v17, %v630_v42  ;;  %v3133_v5 = vcombine.low %v701_v59, %v657_v54  ;;  %v3134_v11 = vcombine.high %v701_v59, %v657_v54  ;;  %v3517_v54 = vld [vmem:[%s4611_s1 + $0x88] sm:$0xff]  }
  0x94   : > { %v3946_v58 = vld [vmem:[#allocation2 + $0x80] ss:$8 sps:$4 sm:$0xff]   ;;  %v3957_v3 = vld [vmem:[#allocation2 + $0x84] ss:$8 sps:$4 sm:$0xff]   ;;  %v641_v17 = vrot.slane %v3785_v39, 1  ;;  %v664_v39 = vrot.slane %v3791_v45, 1  ;;  %v663_v62 = vsel %vm624_vm1, %v661_v34, %v662_v36 }
  0x95   : > { %883 = vst.msk [vmem:[#allocation2 + $0x10] sm:$0xff] %vm3911_vm5, %v3115_v51  ;;  %884 = vst.msk [vmem:[#allocation2 + $0x18] sm:$0xff] %vm3911_vm5, %v3116_v49  ;;  %v3502_v25 = vld [vmem:[#allocation2] ss:$8 sps:$4 sm:$0xff]   ;;  %v593_v0 = vpop.permute.xlu0 %592  ;;  %v3504_v2 = vld [vmem:[#allocation2 + $0x4] ss:$8 sps:$4 sm:$0xff]   ;;  %3201 = vmatprep.mubr.msk.bf16.mxu1 %vm679_vm2, %v3957_v3  ;;  %v611_v32 = vpop.permute.xlu1 %610 }
  0x96   : > { %v685_v10 = vsel %vm679_vm2, %v3705_v33, %v593_v0  ;;  %3193 = vmatprep.mubr.msk.bf16.mxu0 %vm679_vm2, %v3504_v2  ;;  %901 = vst.msk [vmem:[#allocation2 + $0xa0] sm:$0xff] %vm3911_vm5, %v3133_v5  ;;  %902 = vst.msk [vmem:[#allocation2 + $0xa8] sm:$0xff] %vm3911_vm5, %v3134_v11  ;;  %1398 = vmatmul.mubr.bf16.vlgmr.msra.gmra.mxu1 %v3946_v58  ;;  %v703_v7 = vsel %vm679_vm2, %v3737_v56, %v611_v32  ;;  %v640_v56 = vrot.slane %v3776_v31, 1  ;;  %v3524_v5 = vld [vmem:[%s4611_s1 + $0x80] sm:$0xff]  }
  0x97   : > { %v3117_v13 = vcombine.low %v685_v10, %v633_v40  ;;  %v3118_v14 = vcombine.high %v685_v10, %v633_v40  ;;  %1334 = vmatmul.mubr.bf16.vlgmr.msra.gmra.mxu0 %v3502_v25  ;;  %1881 = vmatpush1.bf16.msra.mxu1 %v3508_v8  ;;  %v3135_v42 = vcombine.low %v703_v7, %v660_v23  ;;  %v665_v49 = vrot.slane %v3795_v50, 1  ;;  %v3526_v8 = vld [vmem:[%s4611_s1 + $0xe8] sm:$0xff]  }
  0x98   : > { %v3974_v33 = vld [vmem:[#allocation2 + $0x94] ss:$8 sps:$4 sm:$0xff]   ;;  %1882 = vmatprep.subr.bf16.mxu1 %v3600_v1  ;;  %v3136_v43 = vcombine.high %v703_v7, %v660_v23  ;;  %2460 = vmatpush1.bf16.msra.mxu0 %v3516_v15  ;;  %v4007_v48 = vld [vmem:[#allocation2 + $0x90] ss:$8 sps:$4 sm:$0xff]   ;;  %v642_v0 = vsel %vm624_vm1, %v640_v56, %v641_v17  ;;  %v643_v59 = vrot.slane %v3800_v55, 1  ;;  %v644_v2 = vrot.slane %v3805_v63, 1 }
  0x99   : > { %885 = vst.msk [vmem:[#allocation2 + $0x20] sm:$0xff] %vm3911_vm5, %v3117_v13  ;;  %886 = vst.msk [vmem:[#allocation2 + $0x28] sm:$0xff] %vm3911_vm5, %v3118_v14  ;;  %v595_v26 = vpop.permute.xlu0 %594  ;;  %3202 = vmatprep.mubr.msk.bf16.mxu1 %vm679_vm2, %v3974_v33  ;;  %2461 = vmatprep.subr.bf16.mxu0 %v3600_v1  ;;  %v613_v25 = vpop.permute.xlu1 %612  ;;  %v666_v63 = vsel %vm624_vm1, %v664_v39, %v665_v49  ;;  %v668_v23 = vrot.slane %v3818_v16, 1  ;;  %v3535_v56 = vld [vmem:[%s4611_s1 + $0x70] sm:$0xff]   ;;  %v646_v49 = vrot.slane %v3827_v27, 1 }
  0x9a   : > { %v687_v18 = vsel %vm679_vm2, %v3733_v52, %v595_v26  ;;  %v639_v52 = vsel %vm624_vm1, %v637_v24, %v638_v20  ;;  %903 = vst.msk [vmem:[#allocation2 + $0xb0] sm:$0xff] %vm3911_vm5, %v3135_v42  ;;  %904 = vst.msk [vmem:[#allocation2 + $0xb8] sm:$0xff] %vm3911_vm5, %v3136_v43  ;;  %v645_v20 = vsel %vm624_vm1, %v643_v59, %v644_v2  ;;  %v3542_v2 = vld [vmem:[%s4611_s1 + $0x68] sm:$0xff]  }
  0x9b   : > { %v3119_v28 = vcombine.low %v687_v18, %v636_v44  ;;  %v3120_v41 = vcombine.high %v687_v18, %v636_v44  ;;  %1883 = vmatpush1.bf16.msra.mxu1 %v3509_v4  ;;  %v667_v44 = vrot.slane %v3811_v9, 1  ;;  %v3527_v4 = vld [vmem:[%s4611_s1 + $0x78] sm:$0xff]  }
  0x9c   : > { %v4000_v47 = vld [vmem:[#allocation2 + $0x14] ss:$8 sps:$4 sm:$0xff]   ;;  %v4005_v30 = vld [vmem:[#allocation2 + $0x10] ss:$8 sps:$4 sm:$0xff]   ;;  %1884 = vmatprep.subr.bf16.mxu1 %v3600_v1  ;;  %2462 = vmatpush1.bf16.msra.mxu0 %v3525_v46  ;;  %v671_v46 = vrot.slane %v3831_v35, 1 }
  0x9d   : > { %887 = vst.msk [vmem:[#allocation2 + $0x30] sm:$0xff] %vm3911_vm5, %v3119_v28  ;;  %888 = vst.msk [vmem:[#allocation2 + $0x38] sm:$0xff] %vm3911_vm5, %v3120_v41  ;;  %v597_v51 = vpop.permute.xlu0 %596  ;;  %3194 = vmatprep.mubr.msk.bf16.mxu0 %vm679_vm2, %v4000_v47  ;;  %v4028_v40 = vld [vmem:[#allocation2 + $0xa4] ss:$8 sps:$4 sm:$0xff]   ;;  %2463 = vmatprep.subr.bf16.mxu0 %v3600_v1  ;;  %v4068_v26 = vld [vmem:[#allocation2 + $0xa0] ss:$8 sps:$4 sm:$0xff]   ;;  %v669_v43 = vsel %vm624_vm1, %v667_v44, %v668_v23 }
  0x9e   : > { %v689_v57 = vsel %vm679_vm2, %v3752_v6, %v597_v51  ;;  %1406 = vmatmul.mubr.bf16.gmra.mxu1 %v4007_v48  ;;  %v705_v6 = vsel %vm679_vm2, %v3770_v29, %v613_v25  ;;  %v670_v28 = vrot.slane %v3823_v22, 1  ;;  %v3553_v44 = vld [vmem:[%s4611_s1 + $0xb8] sm:$0xff]   ;;  %v3554_v23 = vld [vmem:[%s4611_s1 + $0xc0] sm:$0xff]  }
  0x9f   : > { %v3121_v60 = vcombine.low %v689_v57, %v639_v52  ;;  %v3122_v61 = vcombine.high %v689_v57, %v639_v52  ;;  %1342 = vmatmul.mubr.bf16.gmra.mxu0 %v4005_v30  ;;  %1885 = vmatpush1.bf16.msra.mxu1 %v3517_v54  ;;  %v3137_v11 = vcombine.low %v705_v6, %v663_v62  ;;  %v3543_v54 = vld [vmem:[%s4611_s1 + $0xd8] sm:$0xff]  }
  0xa0   : > { %v4031_v50 = vld [vmem:[#allocation2 + $0x24] ss:$8 sps:$4 sm:$0xff]   ;;  %v3138_v13 = vcombine.high %v705_v6, %v663_v62  ;;  %3203 = vmatprep.mubr.msk.bf16.mxu1 %vm679_vm2, %v4028_v40  ;;  %1886 = vmatprep.subr.bf16.mxu1 %v3600_v1  ;;  %v4060_v24 = vld [vmem:[#allocation2 + $0x20] ss:$8 sps:$4 sm:$0xff]   ;;  %v672_v39 = vsel %vm624_vm1, %v670_v28, %v671_v46  ;;  %v673_v46 = vrot.slane %v3882_v19, 1 }
  0xa1   : > { %889 = vst.msk [vmem:[#allocation2 + $0x40] sm:$0xff] %vm3911_vm5, %v3121_v60  ;;  %890 = vst.msk [vmem:[#allocation2 + $0x48] sm:$0xff] %vm3911_vm5, %v3122_v61  ;;  %v599_v10 = vpop.permute.xlu0 %598  ;;  %3195 = vmatprep.mubr.msk.bf16.mxu0 %vm679_vm2, %v4031_v50  ;;  %2464 = vmatpush1.bf16.msra.mxu0 %v3526_v8  ;;  %v4125_v61 = vld [vmem:[#allocation2 + $0xb0] ss:$8 sps:$4 sm:$0xff]   ;;  %v3576_v28 = vld [vmem:[%s4611_s1 + $0xa0] sm:$0xff]  }
  0xa2   : > { %v691_v29 = vsel %vm679_vm2, %v3776_v31, %v599_v10  ;;  %905 = vst.msk [vmem:[#allocation2 + $0xc0] sm:$0xff] %vm3911_vm5, %v3137_v11  ;;  %906 = vst.msk [vmem:[#allocation2 + $0xc8] sm:$0xff] %vm3911_vm5, %v3138_v13  ;;  %v615_v31 = vpop.permute.xlu1 %614  ;;  %2465 = vmatprep.subr.bf16.mxu0 %v3600_v1  ;;  %v3545_v11 = vld [vmem:[%s4611_s1 + $0x60] sm:$0xff]  }
  0xa3   : > { %v3123_v14 = vcombine.low %v691_v29, %v642_v0  ;;  %v3124_v15 = vcombine.high %v691_v29, %v642_v0  ;;  %v707_v16 = vsel %vm679_vm2, %v3791_v45, %v615_v31  ;;  %1887 = vmatpush1.bf16.msra.mxu1 %v3524_v5  ;;  %v4086_v45 = vld [vmem:[#allocation2 + $0xb4] ss:$8 sps:$4 sm:$0xff]  }
  0xa4   : > { %v4079_v18 = vld [vmem:[#allocation2 + $0x34] ss:$8 sps:$4 sm:$0xff]   ;;  %v3139_v7 = vcombine.low %v707_v16, %v666_v63  ;;  %v3140_v34 = vcombine.high %v707_v16, %v666_v63  ;;  %1888 = vmatprep.subr.bf16.mxu1 %v3600_v1  ;;  %v4123_v60 = vld [vmem:[#allocation2 + $0x30] ss:$8 sps:$4 sm:$0xff]  }
  0xa5   : > { %891 = vst.msk [vmem:[#allocation2 + $0x50] sm:$0xff] %vm3911_vm5, %v3123_v14  ;;  %892 = vst.msk [vmem:[#allocation2 + $0x58] sm:$0xff] %vm3911_vm5, %v3124_v15  ;;  %v601_v32 = vpop.permute.xlu0 %600  ;;  %v3559_v31 = vld [vmem:[%s4611_s1 + $0xb0] sm:$0xff]  }
  0xa6   : > { %v693_v36 = vsel %vm679_vm2, %v3800_v55, %v601_v32  ;;  %907 = vst.msk [vmem:[#allocation2 + $0xd0] sm:$0xff] %vm3911_vm5, %v3139_v7  ;;  %908 = vst.msk [vmem:[#allocation2 + $0xd8] sm:$0xff] %vm3911_vm5, %v3140_v34  ;;  %v3534_v55 = vld [vmem:[%s4611_s1 + $0xe0] sm:$0xff]   ;;  %v617_v52 = vpop.permute.xlu1 %616  ;;  %1414 = vmatmul.mubr.bf16.gmra.mxu1 %v4068_v26  ;;  %v3566_v34 = vld [vmem:[%s4611_s1 + $0xa8] sm:$0xff]  }
  0xa7   : > { %v3125_v41 = vcombine.low %v693_v36, %v645_v20  ;;  %v3126_v42 = vcombine.high %v693_v36, %v645_v20  ;;  %1350 = vmatmul.mubr.bf16.gmra.mxu0 %v4060_v24  ;;  %v709_v35 = vsel %vm679_vm2, %v3811_v9, %v617_v52  ;;  %1889 = vmatpush1.bf16.msra.mxu1 %v3527_v4  ;;  %v647_v9 = vrot.slane %v3845_v53, 1  ;;  %v3564_v20 = vld [vmem:[%s4611_s1 + $0x118] sm:$0xff]   ;;  %v3565_v36 = vld [vmem:[%s4611_s1 + $0x110] sm:$0xff]  }
  0xa8   : > { %3196 = vmatprep.mubr.msk.bf16.mxu0 %vm679_vm2, %v4079_v18  ;;  %v3141_v17 = vcombine.low %v709_v35, %v669_v43  ;;  %v3142_v51 = vcombine.high %v709_v35, %v669_v43  ;;  %3204 = vmatprep.mubr.msk.bf16.mxu1 %vm679_vm2, %v4086_v45  ;;  %v4130_v62 = vld [vmem:[#allocation2 + $0x44] ss:$8 sps:$4 sm:$0xff]   ;;  %v4166_v13 = vld [vmem:[#allocation2 + $0x40] ss:$8 sps:$4 sm:$0xff]  }
  0xa9   : > { %893 = vst.msk [vmem:[#allocation2 + $0x60] sm:$0xff] %vm3911_vm5, %v3125_v41  ;;  %894 = vst.msk [vmem:[#allocation2 + $0x68] sm:$0xff] %vm3911_vm5, %v3126_v42  ;;  %1890 = vmatprep.subr.bf16.mxu1 %v3600_v1  ;;  %2466 = vmatpush1.bf16.msra.mxu0 %v3534_v55  ;;  %v4132_v25 = vld [vmem:[#allocation2 + $0xc4] ss:$8 sps:$4 sm:$0xff]   ;;  %v648_v6 = vsel %vm624_vm1, %v646_v49, %v647_v9  ;;  %v4168_v29 = vld [vmem:[#allocation2 + $0xc0] ss:$8 sps:$4 sm:$0xff]  }
  0xaa   : > { %909 = vst.msk [vmem:[#allocation2 + $0xe0] sm:$0xff] %vm3911_vm5, %v3141_v17  ;;  %910 = vst.msk [vmem:[#allocation2 + $0xe8] sm:$0xff] %vm3911_vm5, %v3142_v51  ;;  %v619_v57 = vpop.permute.xlu1 %618  ;;  %2467 = vmatprep.subr.bf16.mxu0 %v3600_v1  ;;  %v3573_v41 = vld [vmem:[%s4611_s1 + $0x108] sm:$0xff]   ;;  %v674_v55 = vrot.slane %v3885_v21, 1  ;;  %v621_v21 = vpop.permute.xlu0 %620  ;;  %v677_v49 = vrot.slane %v3894_v38, 1 }
  0xab   : > { %v711_v53 = vsel %vm679_vm2, %v3823_v22, %v619_v57  ;;  %1891 = vmatpush1.bf16.msra.mxu1 %v3535_v56  ;;  %v3544_v22 = vld [vmem:[%s4611_s1 + $0xd0] sm:$0xff]   ;;  %v3577_v56 = vld [vmem:[%s4611_s1 + $0x100] sm:$0xff]   ;;  %v713_v51 = vsel %vm679_vm2, %v3882_v19, %v621_v21 }
  0xac   : > { %v3143_v0 = vcombine.low %v711_v53, %v672_v39  ;;  %v3144_v59 = vcombine.high %v711_v53, %v672_v39  ;;  %1892 = vmatprep.subr.bf16.mxu1 %v3600_v1  ;;  %v4171_v14 = vld [vmem:[#allocation2 + $0x54] ss:$8 sps:$4 sm:$0xff]   ;;  %v4196_v16 = vld [vmem:[#allocation2 + $0x50] ss:$8 sps:$4 sm:$0xff]   ;;  %v675_v17 = vsel %vm624_vm1, %v673_v46, %v674_v55  ;;  %v676_v39 = vrot.slane %v3891_v37, 1 }
  0xad   : > { %2468 = vmatpush1.bf16.msra.mxu0 %v3543_v54  ;;  %v4173_v15 = vld [vmem:[#allocation2 + $0xd4] ss:$8 sps:$4 sm:$0xff]   ;;  %v4198_v32 = vld [vmem:[#allocation2 + $0xd0] ss:$8 sps:$4 sm:$0xff]   ;;  %v3145_v9 = vcombine.low %v713_v51, %v675_v17  ;;  %v3146_v54 = vcombine.high %v713_v51, %v675_v17 }
  0xae   : > { %911 = vst.msk [vmem:[#allocation2 + $0xf0] sm:$0xff] %vm3911_vm5, %v3143_v0  ;;  %912 = vst.msk [vmem:[#allocation2 + $0xf8] sm:$0xff] %vm3911_vm5, %v3144_v59  ;;  %v603_v8 = vpop.permute.xlu1 %602  ;;  %1422 = vmatmul.mubr.bf16.gmra.mxu1 %v4125_v61  ;;  %2469 = vmatprep.subr.bf16.mxu0 %v3600_v1 }
  0xaf   : > { %1358 = vmatmul.mubr.bf16.gmra.mxu0 %v4123_v60  ;;  %v695_v10 = vsel %vm679_vm2, %v3827_v27, %v603_v8  ;;  %3205 = vmatprep.mubr.msk.bf16.mxu1 %vm679_vm2, %v4132_v25  ;;  %v3552_v27 = vld [vmem:[%s4611_s1 + $0xc8] sm:$0xff]   ;;  %913 = vst.msk [vmem:[#allocation2 + $0x100] sm:$0xff] %vm3911_vm5, %v3145_v9  ;;  %914 = vst.msk [vmem:[#allocation2 + $0x108] sm:$0xff] %vm3911_vm5, %v3146_v54 }
  0xb0   : > { %3197 = vmatprep.mubr.msk.bf16.mxu0 %vm679_vm2, %v4130_v62  ;;  %v3127_v63 = vcombine.low %v695_v10, %v648_v6  ;;  %v3128_v5 = vcombine.high %v695_v10, %v648_v6  ;;  %1893 = vmatpush1.bf16.msra.mxu1 %v3542_v2  ;;  %v4201_v4 = vld [vmem:[#allocation2 + $0x64] ss:$8 sps:$4 sm:$0xff]   ;;  %v4226_v42 = vld [vmem:[#allocation2 + $0x60] ss:$8 sps:$4 sm:$0xff]   ;;  %v3602_v2 = vmov 0.0  }
  0xb1   : > { %1894 = vmatprep.subr.bf16.mxu1 %v3600_v1  ;;  %2470 = vmatpush1.bf16.msra.mxu0 %v3544_v22  ;;  %v4203_v7 = vld [vmem:[#allocation2 + $0xe4] ss:$8 sps:$4 sm:$0xff]   ;;  %v4228_v43 = vld [vmem:[#allocation2 + $0xe0] ss:$8 sps:$4 sm:$0xff]   ;;  %917 = vst.msk [vmem:[#allocation3] sm:$0xff] %vm679_vm2, %v3602_v2  ;;  %918 = vst.msk [vmem:[#allocation3 + $0x8] sm:$0xff] %vm679_vm2, %v3602_v2 }
  0xb2   : > { %895 = vst.msk [vmem:[#allocation2 + $0x70] sm:$0xff] %vm3911_vm5, %v3127_v63  ;;  %896 = vst.msk [vmem:[#allocation2 + $0x78] sm:$0xff] %vm3911_vm5, %v3128_v5  ;;  %2471 = vmatprep.subr.bf16.mxu0 %v3600_v1  ;;  %v623_v19 = vpop.permute.xlu1 %622 }
  0xb3   : > { %v715_v38 = vsel %vm679_vm2, %v3891_v37, %v623_v19  ;;  %919 = vst.msk [vmem:[#allocation3 + $0x10] sm:$0xff] %vm679_vm2, %v3602_v2  ;;  %920 = vst.msk [vmem:[#allocation3 + $0x18] sm:$0xff] %vm679_vm2, %v3602_v2 }
  0xb4   : > { %1895 = vmatpush1.bf16.msra.mxu1 %v3545_v11  ;;  %921 = vst.msk [vmem:[#allocation3 + $0x20] sm:$0xff] %vm679_vm2, %v3602_v2  ;;  %922 = vst.msk [vmem:[#allocation3 + $0x28] sm:$0xff] %vm679_vm2, %v3602_v2 }
  0xb5   : > { %2472 = vmatpush1.bf16.msra.mxu0 %v3552_v27  ;;  %1904 = vmatprep.subr.bf16.mxu1 %v3600_v1  ;;  %v4235_v35 = vld [vmem:[#allocation2 + $0xf4] ss:$8 sps:$4 sm:$0xff]   ;;  %v4254_v53 = vld [vmem:[#allocation2 + $0xf0] ss:$8 sps:$4 sm:$0xff]   ;;  %923 = vst.msk [vmem:[#allocation3 + $0x30] sm:$0xff] %vm679_vm2, %v3602_v2  ;;  %924 = vst.msk [vmem:[#allocation3 + $0x38] sm:$0xff] %vm679_vm2, %v3602_v2 }
  0xb6   : > { %1430 = vmatmul.mubr.bf16.gmra.mxu1 %v4168_v29  ;;  %2473 = vmatprep.subr.bf16.mxu0 %v3600_v1  ;;  %925 = vst.msk [vmem:[#allocation3 + $0x40] sm:$0xff] %vm679_vm2, %v3602_v2  ;;  %926 = vst.msk [vmem:[#allocation3 + $0x48] sm:$0xff] %vm679_vm2, %v3602_v2  ;;  %v3578_v37 = vld [vmem:[#allocation2 + $0x104] ss:$8 sps:$4 sm:$0xff]   ;;  %v3580_v12 = vld [vmem:[#allocation2 + $0x100] ss:$8 sps:$4 sm:$0xff]  }
  0xb7   : > { %1366 = vmatmul.mubr.bf16.gmra.mxu0 %v4166_v13  ;;  %3206 = vmatprep.mubr.msk.bf16.mxu1 %vm679_vm2, %v4173_v15  ;;  %927 = vst.msk [vmem:[#allocation3 + $0x50] sm:$0xff] %vm679_vm2, %v3602_v2  ;;  %928 = vst.msk [vmem:[#allocation3 + $0x58] sm:$0xff] %vm679_vm2, %v3602_v2 }
  0xb8   : > { %3198 = vmatprep.mubr.msk.bf16.mxu0 %vm679_vm2, %v4171_v14  ;;  %1905 = vmatpush2.bf16.msra.mxu1 %v3553_v44  ;;  %929 = vst.msk [vmem:[#allocation3 + $0x60] sm:$0xff] %vm679_vm2, %v3602_v2  ;;  %930 = vst.msk [vmem:[#allocation3 + $0x68] sm:$0xff] %vm679_vm2, %v3602_v2 }
  0xb9   : > { %2474 = vmatpush1.bf16.msra.mxu0 %v3554_v23  ;;  %1906 = vmatprep.subr.bf16.mxu1 %v3600_v1  ;;  %v4233_v52 = vld [vmem:[#allocation2 + $0x74] ss:$8 sps:$4 sm:$0xff]   ;;  %v4252_v57 = vld [vmem:[#allocation2 + $0x70] ss:$8 sps:$4 sm:$0xff]   ;;  %931 = vst.msk [vmem:[#allocation3 + $0x70] sm:$0xff] %vm679_vm2, %v3602_v2  ;;  %932 = vst.msk [vmem:[#allocation3 + $0x78] sm:$0xff] %vm679_vm2, %v3602_v2 }
  0xba   : > { %2483 = vmatprep.subr.bf16.mxu0 %v3600_v1  ;;  %933 = vst.msk [vmem:[#allocation3 + $0x80] sm:$0xff] %vm679_vm2, %v3602_v2  ;;  %934 = vst.msk [vmem:[#allocation3 + $0x88] sm:$0xff] %vm679_vm2, %v3602_v2  ;;  %v983_v8 = vld [vmem:[#allocation3 + $0x10] sm:$0xff] }
  0xbb   : > { %935 = vst.msk [vmem:[#allocation3 + $0x90] sm:$0xff] %vm679_vm2, %v3602_v2  ;;  %936 = vst.msk [vmem:[#allocation3 + $0x98] sm:$0xff] %vm679_vm2, %v3602_v2  ;;  %v986_v46 = vld [vmem:[#allocation3 + $0x28] sm:$0xff] }
  0xbc   : > { %1907 = vmatpush2.bf16.msra.mxu1 %v3559_v31  ;;  %937 = vst.msk [vmem:[#allocation3 + $0xa0] sm:$0xff] %vm679_vm2, %v3602_v2  ;;  %938 = vst.msk [vmem:[#allocation3 + $0xa8] sm:$0xff] %vm679_vm2, %v3602_v2 }
  0xbd   : > { %2484 = vmatpush2.bf16.msra.mxu0 %v3564_v20  ;;  %1908 = vmatprep.subr.bf16.mxu1 %v3600_v1  ;;  %939 = vst.msk [vmem:[#allocation3 + $0xb0] sm:$0xff] %vm679_vm2, %v3602_v2  ;;  %940 = vst.msk [vmem:[#allocation3 + $0xb8] sm:$0xff] %vm679_vm2, %v3602_v2 }
  0xbe   : > { %1438 = vmatmul.mubr.bf16.gmra.mxu1 %v4198_v32  ;;  %2485 = vmatprep.subr.bf16.mxu0 %v3600_v1  ;;  %941 = vst.msk [vmem:[#allocation3 + $0xc0] sm:$0xff] %vm679_vm2, %v3602_v2  ;;  %942 = vst.msk [vmem:[#allocation3 + $0xc8] sm:$0xff] %vm679_vm2, %v3602_v2 }
  0xbf   : > { %1374 = vmatmul.mubr.bf16.gmra.mxu0 %v4196_v16  ;;  %3207 = vmatprep.mubr.msk.bf16.mxu1 %vm679_vm2, %v4203_v7  ;;  %943 = vst.msk [vmem:[#allocation3 + $0xd0] sm:$0xff] %vm679_vm2, %v3602_v2  ;;  %944 = vst.msk [vmem:[#allocation3 + $0xd8] sm:$0xff] %vm679_vm2, %v3602_v2 }
  0xc0   : > { %3199 = vmatprep.mubr.msk.bf16.mxu0 %vm679_vm2, %v4201_v4  ;;  %1909 = vmatpush2.bf16.msra.mxu1 %v3566_v34  ;;  %945 = vst.msk [vmem:[#allocation3 + $0xe0] sm:$0xff] %vm679_vm2, %v3602_v2  ;;  %946 = vst.msk [vmem:[#allocation3 + $0xe8] sm:$0xff] %vm679_vm2, %v3602_v2 }
  0xc1   : > { %2486 = vmatpush2.bf16.msra.mxu0 %v3565_v36  ;;  %1910 = vmatprep.subr.bf16.mxu1 %v3600_v1  ;;  %947 = vst.msk [vmem:[#allocation3 + $0xf0] sm:$0xff] %vm679_vm2, %v3602_v2  ;;  %948 = vst.msk [vmem:[#allocation3 + $0xf8] sm:$0xff] %vm679_vm2, %v3602_v2 }
  0xc2   : > { %2487 = vmatprep.subr.bf16.mxu0 %v3600_v1  ;;  %v999_v10 = vld [vmem:[#allocation3 + $0x90] sm:$0xff] }
  0xc3   : > { %v1002_v55 = vld [vmem:[#allocation3 + $0xa8] sm:$0xff] }
  0xc4   : > { %1911 = vmatpush2.bf16.msra.mxu1 %v3576_v28 }
  0xc5   : > { %2488 = vmatpush2.bf16.msra.mxu0 %v3573_v41 }
  0xc6   : > { %1446 = vmatmul.mubr.bf16.gmra.mxu1 %v4228_v43  ;;  %2489 = vmatprep.subr.bf16.mxu0 %v3600_v1  ;;  %v678_v1 = vsel %vm624_vm1, %v676_v39, %v677_v49  ;;  %v987_v39 = vld [vmem:[#allocation3 + $0x30] sm:$0xff] }
  0xc7   : > { %1382 = vmatmul.mubr.bf16.gmra.mxu0 %v4226_v42  ;;  %3208 = vmatprep.mubr.msk.bf16.mxu1 %vm679_vm2, %v4235_v35  ;;  %v3147_v0 = vcombine.low %v715_v38, %v678_v1  ;;  %v3148_v59 = vcombine.high %v715_v38, %v678_v1  ;;  %v1003_v49 = vld [vmem:[#allocation3 + $0xb0] sm:$0xff]  ;;  %v988_v38 = vld [vmem:[#allocation3 + $0x38] sm:$0xff] }
  0xc8   : > { %3200 = vmatprep.mubr.msk.bf16.mxu0 %vm679_vm2, %v4233_v52 }
  0xc9   : > { %2490 = vmatpush2.bf16.msra.mxu0 %v3577_v56  ;;  %915 = vst.msk [vmem:[#allocation2 + $0x110] sm:$0xff] %vm3911_vm5, %v3147_v0  ;;  %916 = vst.msk [vmem:[#allocation2 + $0x118] sm:$0xff] %vm3911_vm5, %v3148_v59  ;;  %v1004_v0 = vld [vmem:[#allocation3 + $0xb8] sm:$0xff] }
  0xce   : > { %1454 = vmatmul.mubr.bf16.gmra.mxu1 %v4254_v53 }
  0xcf   : > { %1390 = vmatmul.mubr.bf16.gmra.mxu0 %v4252_v57  ;;  %3277 = vmatprep.mubr.msk.bf16.mxu1 %vm679_vm2, %v4000_v47  ;;  %v997_v47 = vld [vmem:[#allocation3 + $0x80] sm:$0xff] }
  0xd0   : > { %3361 = vmatprep.mubr.msk.bf16.mxu0 %vm679_vm2, %v4031_v50 }
  0xd6   : > { %1913 = vmatmul.mubr.bf16.vlgmr.msra.gmra.mxu1 %v4005_v30 }
  0xd7   : > { %2492 = vmatmul.mubr.bf16.vlgmr.msra.gmra.mxu0 %v4060_v24  ;;  %3278 = vmatprep.mubr.msk.bf16.mxu1 %vm679_vm2, %v4031_v50 }
  0xd8   : > { %3362 = vmatprep.mubr.msk.bf16.mxu0 %vm679_vm2, %v4079_v18 }
  0xde   : > { %1921 = vmatmul.mubr.bf16.gmra.mxu1 %v4060_v24 }
  0xdf   : > { %2500 = vmatmul.mubr.bf16.gmra.mxu0 %v4123_v60  ;;  %3279 = vmatprep.mubr.msk.bf16.mxu1 %vm679_vm2, %v4079_v18  ;;  %v982_v18 = vld [vmem:[#allocation3 + $0x8] sm:$0xff] }
  0xe0   : > { %3363 = vmatprep.mubr.msk.bf16.mxu0 %vm679_vm2, %v4130_v62 }
  0xe6   : > { %1929 = vmatmul.mubr.bf16.gmra.mxu1 %v4123_v60 }
  0xe7   : > { %2508 = vmatmul.mubr.bf16.gmra.mxu0 %v4166_v13  ;;  %3280 = vmatprep.mubr.msk.bf16.mxu1 %vm679_vm2, %v4130_v62 }
  0xe8   : > { %3364 = vmatprep.mubr.msk.bf16.mxu0 %vm679_vm2, %v4171_v14 }
  0xee   : > { %1937 = vmatmul.mubr.bf16.gmra.mxu1 %v4166_v13 }
  0xef   : > { %2516 = vmatmul.mubr.bf16.gmra.mxu0 %v4196_v16  ;;  %3281 = vmatprep.mubr.msk.bf16.mxu1 %vm679_vm2, %v4171_v14  ;;  %v984_v14 = vld [vmem:[#allocation3 + $0x18] sm:$0xff] }
  0xf0   : > { %3365 = vmatprep.mubr.msk.bf16.mxu0 %vm679_vm2, %v4201_v4 }
  0xf6   : > { %1945 = vmatmul.mubr.bf16.gmra.mxu1 %v4196_v16 }
  0xf7   : > { %2524 = vmatmul.mubr.bf16.gmra.mxu0 %v4226_v42  ;;  %3282 = vmatprep.mubr.msk.bf16.mxu1 %vm679_vm2, %v4201_v4  ;;  %v985_v4 = vld [vmem:[#allocation3 + $0x20] sm:$0xff] }
  0xf8   : > { %3366 = vmatprep.mubr.msk.bf16.mxu0 %vm679_vm2, %v4233_v52 }
  0xfe   : > { %1953 = vmatmul.mubr.bf16.gmra.mxu1 %v4226_v42 }
  0xff   : > { %2532 = vmatmul.mubr.bf16.gmra.mxu0 %v4252_v57  ;;  %3283 = vmatprep.mubr.msk.bf16.mxu1 %vm679_vm2, %v4233_v52 }
 0x100   : > { %3367 = vmatprep.mubr.msk.bf16.mxu0 %vm679_vm2, %v3957_v3 }
 0x106   : > { %1961 = vmatmul.mubr.bf16.gmra.mxu1 %v4252_v57 }
 0x107   : > { %2540 = vmatmul.mubr.bf16.gmra.mxu0 %v3946_v58  ;;  %3284 = vmatprep.mubr.msk.bf16.mxu1 %vm679_vm2, %v3957_v3  ;;  %v3583_v3 = vld [vmem:[#allocation2 + $0x110] ss:$8 sps:$4 sm:$0xff]  }
 0x108   : > { %3368 = vmatprep.mubr.msk.bf16.mxu0 %vm679_vm2, %v3974_v33 }
 0x10e   : > { %1969 = vmatmul.mubr.bf16.gmra.mxu1 %v3946_v58  ;;  %v3581_v58 = vld [vmem:[#allocation2 + $0x114] ss:$8 sps:$4 sm:$0xff]  }
 0x10f   : > { %2548 = vmatmul.mubr.bf16.gmra.mxu0 %v4007_v48  ;;  %3285 = vmatprep.mubr.msk.bf16.mxu1 %vm679_vm2, %v3974_v33  ;;  %v981_v33 = vld [vmem:[#allocation3] sm:$0xff] }
 0x110   : > { %3369 = vmatprep.mubr.msk.bf16.mxu0 %vm679_vm2, %v4028_v40 }
 0x116   : > { %1977 = vmatmul.mubr.bf16.gmra.mxu1 %v4007_v48 }
 0x117   : > { %2556 = vmatmul.mubr.bf16.gmra.mxu0 %v4068_v26  ;;  %3286 = vmatprep.mubr.msk.bf16.mxu1 %vm679_vm2, %v4028_v40 }
 0x118   : > { %3370 = vmatprep.mubr.msk.bf16.mxu0 %vm679_vm2, %v4086_v45 }
 0x11e   : > { %1985 = vmatmul.mubr.bf16.gmra.mxu1 %v4068_v26 }
 0x11f   : > { %2564 = vmatmul.mubr.bf16.gmra.mxu0 %v4125_v61  ;;  %3287 = vmatprep.mubr.msk.bf16.mxu1 %vm679_vm2, %v4086_v45  ;;  %v998_v45 = vld [vmem:[#allocation3 + $0x88] sm:$0xff] }
 0x120   : > { %3371 = vmatprep.mubr.msk.bf16.mxu0 %vm679_vm2, %v4132_v25 }
 0x126   : > { %1993 = vmatmul.mubr.bf16.gmra.mxu1 %v4125_v61 }
 0x127   : > { %2572 = vmatmul.mubr.bf16.gmra.mxu0 %v4168_v29  ;;  %3288 = vmatprep.mubr.msk.bf16.mxu1 %vm679_vm2, %v4132_v25 }
 0x128   : > { %3372 = vmatprep.mubr.msk.bf16.mxu0 %vm679_vm2, %v4173_v15 }
 0x12e   : > { %2001 = vmatmul.mubr.bf16.gmra.mxu1 %v4168_v29 }
 0x12f   : > { %2580 = vmatmul.mubr.bf16.gmra.mxu0 %v4198_v32  ;;  %3289 = vmatprep.mubr.msk.bf16.mxu1 %vm679_vm2, %v4173_v15  ;;  %v1000_v15 = vld [vmem:[#allocation3 + $0x98] sm:$0xff] }
 0x130   : > { %3373 = vmatprep.mubr.msk.bf16.mxu0 %vm679_vm2, %v4203_v7 }
 0x136   : > { %2009 = vmatmul.mubr.bf16.gmra.mxu1 %v4198_v32 }
 0x137   : > { %2588 = vmatmul.mubr.bf16.gmra.mxu0 %v4228_v43  ;;  %3290 = vmatprep.mubr.msk.bf16.mxu1 %vm679_vm2, %v4203_v7  ;;  %v1001_v7 = vld [vmem:[#allocation3 + $0xa0] sm:$0xff] }
 0x138   : > { %3374 = vmatprep.mubr.msk.bf16.mxu0 %vm679_vm2, %v4235_v35 }
 0x13e   : > { %2017 = vmatmul.mubr.bf16.gmra.mxu1 %v4228_v43 }
 0x13f   : > { %2596 = vmatmul.mubr.bf16.gmra.mxu0 %v4254_v53  ;;  %3291 = vmatprep.mubr.msk.bf16.mxu1 %vm679_vm2, %v4235_v35 }
 0x140   : > { %3375 = vmatprep.mubr.msk.bf16.mxu0 %vm679_vm2, %v3578_v37 }
 0x146   : > { %2025 = vmatmul.mubr.bf16.gmra.mxu1 %v4254_v53 }
 0x147   : > { %2604 = vmatmul.mubr.bf16.gmra.mxu0 %v3580_v12  ;;  %3292 = vmatprep.mubr.msk.bf16.mxu1 %vm679_vm2, %v3578_v37 }
 0x148   : > { %3376 = vmatprep.mubr.msk.bf16.mxu0 %vm679_vm2, %v3581_v58 }
 0x14e   : > { %2033 = vmatmul.mubr.bf16.gmra.mxu1 %v3580_v12 }
 0x14f   : > { %2612 = vmatmul.mubr.bf16.gmra.mxu0 %v3583_v3 }
 0x156   : > { %v1399_v48 = vpop.f32.mrf.mxu1 }
 0x157   : > { %v1335_v30 = vpop.f32.mrf.mxu0  ;;  %v1478_v50 = vadd.f32 %v1399_v48, %v997_v47  ;;  %v989_v47 = vld [vmem:[#allocation3 + $0x40] sm:$0xff] }
 0x158   : > { %v1462_v40 = vadd.f32 %v1335_v30, %v981_v33  ;;  %v1401_v26 = vpop.f32.mrf.mxu1  ;;  %v1005_v30 = vld [vmem:[#allocation3 + $0xc0] sm:$0xff] }
 0x159   : > { %v1337_v24 = vpop.f32.mrf.mxu0  ;;  %1510 = vst.msk [vmem:[#allocation3 + $0x80] sm:$0xff] %vm679_vm2, %v1478_v50 }
 0x15a   : > { %1494 = vst.msk [vmem:[#allocation3] sm:$0xff] %vm679_vm2, %v1462_v40  ;;  %v1402_v61 = vpop.f32.mrf.mxu1 }
 0x15b   : > { %v1338_v60 = vpop.f32.mrf.mxu0  ;;  %v1479_v25 = vadd.f32 %v1402_v61, %v998_v45  ;;  %v990_v45 = vld [vmem:[#allocation3 + $0x48] sm:$0xff] }
 0x15c   : > { %v1463_v62 = vadd.f32 %v1338_v60, %v982_v18  ;;  %v1404_v22 = vpop.f32.mrf.mxu1  ;;  %v1006_v60 = vld [vmem:[#allocation3 + $0xc8] sm:$0xff] }
 0x15d   : > { %v1340_v6 = vpop.f32.mrf.mxu0  ;;  %1511 = vst.msk [vmem:[#allocation3 + $0x88] sm:$0xff] %vm679_vm2, %v1479_v25 }
 0x15e   : > { %1495 = vst.msk [vmem:[#allocation3 + $0x8] sm:$0xff] %vm679_vm2, %v1463_v62  ;;  %v1407_v5 = vpop.f32.mrf.mxu1 }
 0x15f   : > { %v1343_v63 = vpop.f32.mrf.mxu0  ;;  %v1480_v27 = vadd.f32 %v1407_v5, %v999_v10  ;;  %v991_v10 = vld [vmem:[#allocation3 + $0x50] sm:$0xff] }
 0x160   : > { %v1464_v11 = vadd.f32 %v1343_v63, %v983_v8  ;;  %v1409_v29 = vpop.f32.mrf.mxu1  ;;  %v1007_v63 = vld [vmem:[#allocation3 + $0xd0] sm:$0xff] }
 0x161   : > { %v1345_v13 = vpop.f32.mrf.mxu0  ;;  %1512 = vst.msk [vmem:[#allocation3 + $0x90] sm:$0xff] %vm679_vm2, %v1480_v27 }
 0x162   : > { %1496 = vst.msk [vmem:[#allocation3 + $0x10] sm:$0xff] %vm679_vm2, %v1464_v11  ;;  %v1410_v23 = vpop.f32.mrf.mxu1 }
 0x163   : > { %v1346_v44 = vpop.f32.mrf.mxu0  ;;  %v1481_v20 = vadd.f32 %v1410_v23, %v1000_v15  ;;  %v992_v15 = vld [vmem:[#allocation3 + $0x58] sm:$0xff] }
 0x164   : > { %v1465_v31 = vadd.f32 %v1346_v44, %v984_v14  ;;  %v1412_v32 = vpop.f32.mrf.mxu1  ;;  %v1008_v44 = vld [vmem:[#allocation3 + $0xd8] sm:$0xff] }
 0x165   : > { %v1348_v16 = vpop.f32.mrf.mxu0  ;;  %1513 = vst.msk [vmem:[#allocation3 + $0x98] sm:$0xff] %vm679_vm2, %v1481_v20 }
 0x166   : > { %1497 = vst.msk [vmem:[#allocation3 + $0x18] sm:$0xff] %vm679_vm2, %v1465_v31  ;;  %v1415_v36 = vpop.f32.mrf.mxu1 }
 0x167   : > { %v1351_v34 = vpop.f32.mrf.mxu0  ;;  %v1482_v41 = vadd.f32 %v1415_v36, %v1001_v7  ;;  %v993_v7 = vld [vmem:[#allocation3 + $0x60] sm:$0xff] }
 0x168   : > { %v1466_v28 = vadd.f32 %v1351_v34, %v985_v4  ;;  %v1417_v43 = vpop.f32.mrf.mxu1  ;;  %v1009_v34 = vld [vmem:[#allocation3 + $0xe0] sm:$0xff] }
 0x169   : > { %v1353_v42 = vpop.f32.mrf.mxu0  ;;  %1514 = vst.msk [vmem:[#allocation3 + $0xa0] sm:$0xff] %vm679_vm2, %v1482_v41 }
 0x16a   : > { %1498 = vst.msk [vmem:[#allocation3 + $0x20] sm:$0xff] %vm679_vm2, %v1466_v28  ;;  %v1418_v35 = vpop.f32.mrf.mxu1 }
 0x16b   : > { %v1354_v52 = vpop.f32.mrf.mxu0  ;;  %v1483_v17 = vadd.f32 %v1418_v35, %v1002_v55  ;;  %v994_v55 = vld [vmem:[#allocation3 + $0x68] sm:$0xff] }
 0x16c   : > { %v1467_v56 = vadd.f32 %v1354_v52, %v986_v46  ;;  %v1420_v51 = vpop.f32.mrf.mxu1  ;;  %v1010_v52 = vld [vmem:[#allocation3 + $0xe8] sm:$0xff] }
 0x16d   : > { %v1356_v21 = vpop.f32.mrf.mxu0  ;;  %1515 = vst.msk [vmem:[#allocation3 + $0xa8] sm:$0xff] %vm679_vm2, %v1483_v17 }
 0x16e   : > { %1499 = vst.msk [vmem:[#allocation3 + $0x28] sm:$0xff] %vm679_vm2, %v1467_v56  ;;  %v1423_v54 = vpop.f32.mrf.mxu1 }
 0x16f   : > { %v1359_v9 = vpop.f32.mrf.mxu0  ;;  %v1484_v53 = vadd.f32 %v1423_v54, %v1003_v49  ;;  %v995_v49 = vld [vmem:[#allocation3 + $0x70] sm:$0xff] }
 0x170   : > { %v1468_v57 = vadd.f32 %v1359_v9, %v987_v39  ;;  %v1425_v19 = vpop.f32.mrf.mxu1  ;;  %v1011_v9 = vld [vmem:[#allocation3 + $0xf0] sm:$0xff] }
 0x171   : > { %v1361_v1 = vpop.f32.mrf.mxu0  ;;  %1516 = vst.msk [vmem:[#allocation3 + $0xb0] sm:$0xff] %vm679_vm2, %v1484_v53 }
 0x172   : > { %1500 = vst.msk [vmem:[#allocation3 + $0x30] sm:$0xff] %vm679_vm2, %v1468_v57  ;;  %v1426_v37 = vpop.f32.mrf.mxu1 }
 0x173   : > { %v1362_v59 = vpop.f32.mrf.mxu0  ;;  %v1485_v58 = vadd.f32 %v1426_v37, %v1004_v0  ;;  %v996_v0 = vld [vmem:[#allocation3 + $0x78] sm:$0xff] }
 0x174   : > { %v1469_v12 = vadd.f32 %v1362_v59, %v988_v38  ;;  %v1428_v33 = vpop.f32.mrf.mxu1  ;;  %v1012_v59 = vld [vmem:[#allocation3 + $0xf8] sm:$0xff] }
 0x175   : > { %v1364_v3 = vpop.f32.mrf.mxu0  ;;  %1517 = vst.msk [vmem:[#allocation3 + $0xb8] sm:$0xff] %vm679_vm2, %v1485_v58 }
 0x176   : > { %1501 = vst.msk [vmem:[#allocation3 + $0x38] sm:$0xff] %vm679_vm2, %v1469_v12  ;;  %v1431_v40 = vpop.f32.mrf.mxu1 }
 0x177   : > { %v1367_v48 = vpop.f32.mrf.mxu0  ;;  %v1486_v24 = vadd.f32 %v1431_v40, %v1005_v30  ;;  %v1559_v30 = vld [vmem:[#allocation3] sm:$0xff] }
 0x178   : > { %v1470_v50 = vadd.f32 %v1367_v48, %v989_v47  ;;  %v1433_v18 = vpop.f32.mrf.mxu1 }
 0x179   : > { %v1369_v26 = vpop.f32.mrf.mxu0  ;;  %1518 = vst.msk [vmem:[#allocation3 + $0xc0] sm:$0xff] %vm679_vm2, %v1486_v24  ;;  %v1560_v18 = vld [vmem:[#allocation3 + $0x8] sm:$0xff] }
 0x17a   : > { %1502 = vst.msk [vmem:[#allocation3 + $0x40] sm:$0xff] %vm679_vm2, %v1470_v50  ;;  %v1434_v62 = vpop.f32.mrf.mxu1 }
 0x17b   : > { %v1370_v61 = vpop.f32.mrf.mxu0  ;;  %v1487_v6 = vadd.f32 %v1434_v62, %v1006_v60 }
 0x17c   : > { %v1471_v25 = vadd.f32 %v1370_v61, %v990_v45  ;;  %v1436_v8 = vpop.f32.mrf.mxu1 }
 0x17d   : > { %v1372_v22 = vpop.f32.mrf.mxu0  ;;  %1519 = vst.msk [vmem:[#allocation3 + $0xc8] sm:$0xff] %vm679_vm2, %v1487_v6  ;;  %v1561_v6 = vld [vmem:[#allocation3 + $0x10] sm:$0xff] }
 0x17e   : > { %1503 = vst.msk [vmem:[#allocation3 + $0x48] sm:$0xff] %vm679_vm2, %v1471_v25  ;;  %v1439_v11 = vpop.f32.mrf.mxu1 }
 0x17f   : > { %v1375_v5 = vpop.f32.mrf.mxu0  ;;  %v1488_v13 = vadd.f32 %v1439_v11, %v1007_v63 }
 0x180   : > { %v1472_v27 = vadd.f32 %v1375_v5, %v991_v10  ;;  %v1441_v14 = vpop.f32.mrf.mxu1 }
 0x181   : > { %v1377_v29 = vpop.f32.mrf.mxu0  ;;  %1520 = vst.msk [vmem:[#allocation3 + $0xd0] sm:$0xff] %vm679_vm2, %v1488_v13  ;;  %v1562_v13 = vld [vmem:[#allocation3 + $0x18] sm:$0xff] }
 0x182   : > { %1504 = vst.msk [vmem:[#allocation3 + $0x50] sm:$0xff] %vm679_vm2, %v1472_v27  ;;  %v1442_v31 = vpop.f32.mrf.mxu1 }
 0x183   : > { %v1378_v23 = vpop.f32.mrf.mxu0  ;;  %v1489_v16 = vadd.f32 %v1442_v31, %v1008_v44 }
 0x184   : > { %v1473_v20 = vadd.f32 %v1378_v23, %v992_v15  ;;  %v1444_v4 = vpop.f32.mrf.mxu1  ;;  %v2818_v15 = vlaneseq }
 0x185   : > { %v1380_v32 = vpop.f32.mrf.mxu0  ;;  %1521 = vst.msk [vmem:[#allocation3 + $0xd8] sm:$0xff] %vm679_vm2, %v1489_v16  ;;  %v1563_v4 = vld [vmem:[#allocation3 + $0x20] sm:$0xff] }
 0x186   : > { %1505 = vst.msk [vmem:[#allocation3 + $0x58] sm:$0xff] %vm679_vm2, %v1473_v20  ;;  %v1447_v28 = vpop.f32.mrf.mxu1  ;;  %v2819_v16 = vshrl.u32 %v2818_v15, 7 }
 0x187   : > { %v1383_v36 = vpop.f32.mrf.mxu0  ;;  %v1490_v42 = vadd.f32 %v1447_v28, %v1009_v34 }
 0x188   : > { %v1474_v41 = vadd.f32 %v1383_v36, %v993_v7  ;;  %v1449_v46 = vpop.f32.mrf.mxu1  ;;  %v2822_v36 = vmul.u32 2, %v2819_v16 }
 0x189   : > { %v1385_v43 = vpop.f32.mrf.mxu0  ;;  %1522 = vst.msk [vmem:[#allocation3 + $0xe0] sm:$0xff] %vm679_vm2, %v1490_v42 }
 0x18a   : > { %1506 = vst.msk [vmem:[#allocation3 + $0x60] sm:$0xff] %vm679_vm2, %v1474_v41  ;;  %v1450_v56 = vpop.f32.mrf.mxu1  ;;  %v4464_v41 = vld [vmem:[%s4612_s2] ss:$0 sm:$0xff] }
 0x18b   : > { %v1386_v35 = vpop.f32.mrf.mxu0  ;;  %v1491_v21 = vadd.f32 %v1450_v56, %v1010_v52  ;;  %v2826_v52 = vadd.s32 1, %v2822_v36 }
 0x18c   : > { %v1475_v17 = vadd.f32 %v1386_v35, %v994_v55  ;;  %v1452_v39 = vpop.f32.mrf.mxu1  ;;  %v2821_v55 = vand.u32 127, %v2818_v15 }
 0x18d   : > { %v1388_v51 = vpop.f32.mrf.mxu0  ;;  %1523 = vst.msk [vmem:[#allocation3 + $0xe8] sm:$0xff] %vm679_vm2, %v1491_v21 }
 0x18e   : > { %1507 = vst.msk [vmem:[#allocation3 + $0x68] sm:$0xff] %vm679_vm2, %v1475_v17  ;;  %v1455_v57 = vpop.f32.mrf.mxu1  ;;  %v1564_v17 = vld [vmem:[#allocation3 + $0x28] sm:$0xff]  ;;  %vm2823_vm6 = vcmp.eq.s32.totalorder %v2821_v55, %v2822_v36  ;;  %vm2827_vm7 = vcmp.eq.s32.totalorder %v2821_v55, %v2826_v52 }
 0x18f   : > { %v1391_v54 = vpop.f32.mrf.mxu0  ;;  %v1492_v1 = vadd.f32 %v1455_v57, %v1011_v9  ;;  %v4470_v9 = vsel %vm2823_vm6, 1.0, %v3602_v2 }
 0x190   : > { %v1476_v53 = vadd.f32 %v1391_v54, %v995_v49  ;;  %v1457_v38 = vpop.f32.mrf.mxu1  ;;  %v4473_v54 = vsel %vm2827_vm7, 1.0, %v3602_v2 }
 0x191   : > { %v1393_v19 = vpop.f32.mrf.mxu0  ;;  %1524 = vst.msk [vmem:[#allocation3 + $0xf0] sm:$0xff] %vm679_vm2, %v1492_v1 }
 0x192   : > { %1508 = vst.msk [vmem:[#allocation3 + $0x70] sm:$0xff] %vm679_vm2, %v1476_v53  ;;  %v1458_v12 = vpop.f32.mrf.mxu1 }
 0x193   : > { %v1394_v37 = vpop.f32.mrf.mxu0  ;;  %v1493_v3 = vadd.f32 %v1458_v12, %v1012_v59  ;;  %v1565_v59 = vld [vmem:[#allocation3 + $0x30] sm:$0xff] }
 0x194   : > { %v1477_v58 = vadd.f32 %v1394_v37, %v996_v0  ;;  %v1460_v47 = vpop.f32.mrf.mxu1 }
 0x195   : > { %v1396_v33 = vpop.f32.mrf.mxu0  ;;  %1525 = vst.msk [vmem:[#allocation3 + $0xf8] sm:$0xff] %vm679_vm2, %v1493_v3 }
 0x196   : > { %1509 = vst.msk [vmem:[#allocation3 + $0x78] sm:$0xff] %vm679_vm2, %v1477_v58  ;;  %v1914_v48 = vpop.f32.mrf.mxu1 }
 0x197   : > { %v2493_v40 = vpop.f32.mrf.mxu0  ;;  %v2041_v50 = vadd.f32 %v1914_v48, %v1559_v30 }
 0x198   : > { %v1916_v24 = vpop.f32.mrf.mxu1 }
 0x199   : > { %v2495_v26 = vpop.f32.mrf.mxu0  ;;  %2073 = vst.msk [vmem:[#allocation3] sm:$0xff] %vm679_vm2, %v2041_v50  ;;  %v1566_v50 = vld [vmem:[#allocation3 + $0x38] sm:$0xff] }
 0x19a   : > { %v1917_v45 = vpop.f32.mrf.mxu1 }
 0x19b   : > { %v2496_v60 = vpop.f32.mrf.mxu0  ;;  %v2042_v61 = vadd.f32 %v1917_v45, %v1560_v18 }
 0x19c   : > { %v1919_v62 = vpop.f32.mrf.mxu1 }
 0x19d   : > { %v2498_v25 = vpop.f32.mrf.mxu0  ;;  %2074 = vst.msk [vmem:[#allocation3 + $0x8] sm:$0xff] %vm679_vm2, %v2042_v61 }
 0x19e   : > { %v1922_v22 = vpop.f32.mrf.mxu1 }
 0x19f   : > { %v2501_v8 = vpop.f32.mrf.mxu0  ;;  %v2043_v10 = vadd.f32 %v1922_v22, %v1561_v6 }
 0x1a0   : > { %v2138_v63 = vld [vmem:[#allocation3] sm:$0xff]  ;;  %v1924_v5 = vpop.f32.mrf.mxu1 }
 0x1a1   : > { %v2503_v11 = vpop.f32.mrf.mxu0  ;;  %v2620_v27 = vadd.f32 %v2493_v40, %v2138_v63  ;;  %2075 = vst.msk [vmem:[#allocation3 + $0x10] sm:$0xff] %vm679_vm2, %v2043_v10 }
 0x1a2   : > { %v1925_v29 = vpop.f32.mrf.mxu1 }
 0x1a3   : > { %v2504_v14 = vpop.f32.mrf.mxu0  ;;  %2652 = vst.msk [vmem:[#allocation3] sm:$0xff] %vm679_vm2, %v2620_v27  ;;  %v2044_v44 = vadd.f32 %v1925_v29, %v1562_v13 }
 0x1a4   : > { %v2139_v23 = vld [vmem:[#allocation3 + $0x8] sm:$0xff]  ;;  %v1927_v31 = vpop.f32.mrf.mxu1 }
 0x1a5   : > { %v2506_v20 = vpop.f32.mrf.mxu0  ;;  %v2621_v32 = vadd.f32 %v2496_v60, %v2139_v23  ;;  %2076 = vst.msk [vmem:[#allocation3 + $0x18] sm:$0xff] %vm679_vm2, %v2044_v44  ;;  %v1568_v23 = vld [vmem:[#allocation3 + $0x48] sm:$0xff] }
 0x1a6   : > { %v1930_v7 = vpop.f32.mrf.mxu1 }
 0x1a7   : > { %v2509_v34 = vpop.f32.mrf.mxu0  ;;  %2653 = vst.msk [vmem:[#allocation3 + $0x8] sm:$0xff] %vm679_vm2, %v2621_v32  ;;  %v2045_v28 = vadd.f32 %v1930_v7, %v1563_v4 }
 0x1a8   : > { %v2140_v42 = vld [vmem:[#allocation3 + $0x10] sm:$0xff]  ;;  %v1932_v43 = vpop.f32.mrf.mxu1 }
 0x1a9   : > { %v2511_v46 = vpop.f32.mrf.mxu0  ;;  %v2622_v35 = vadd.f32 %v2501_v8, %v2140_v42  ;;  %2077 = vst.msk [vmem:[#allocation3 + $0x20] sm:$0xff] %vm679_vm2, %v2045_v28  ;;  %v1567_v8 = vld [vmem:[#allocation3 + $0x40] sm:$0xff]  ;;  %v1569_v43 = vld [vmem:[#allocation3 + $0x50] sm:$0xff] }
 0x1aa   : > { %v2684_v56 = vld [vmem:[#allocation3] sm:$0xff]  ;;  %v1933_v21 = vpop.f32.mrf.mxu1 }
 0x1ab   : > { %v2512_v51 = vpop.f32.mrf.mxu0  ;;  %v2722_v39 = vadd.f32 %v4464_v41, %v2684_v56  ;;  %2654 = vst.msk [vmem:[#allocation3 + $0x10] sm:$0xff] %vm679_vm2, %v2622_v35  ;;  %v2046_v49 = vadd.f32 %v1933_v21, %v1564_v17 }
 0x1ac   : > { %v2141_v57 = vld [vmem:[#allocation3 + $0x18] sm:$0xff]  ;;  %v1935_v53 = vpop.f32.mrf.mxu1 }
 0x1ad   : > { %v2514_v1 = vpop.f32.mrf.mxu0  ;;  %v2754_v19 = vmax.f32 %v2722_v39, 0.0  ;;  %v2623_v38 = vadd.f32 %v2504_v14, %v2141_v57  ;;  %2078 = vst.msk [vmem:[#allocation3 + $0x28] sm:$0xff] %vm679_vm2, %v2046_v49  ;;  %v1570_v57 = vld [vmem:[#allocation3 + $0x58] sm:$0xff] }
 0x1ae   : > { %v2685_v0 = vld [vmem:[#allocation3 + $0x8] sm:$0xff]  ;;  %v1938_v37 = vpop.f32.mrf.mxu1 }
 0x1af   : > { %v2517_v12 = vpop.f32.mrf.mxu0  ;;  %2786 = vst.msk [vmem:[#allocation3] sm:$0xff] %vm679_vm2, %v2754_v19  ;;  %v2723_v58 = vadd.f32 %v4464_v41, %v2685_v0  ;;  %2655 = vst.msk [vmem:[#allocation3 + $0x18] sm:$0xff] %vm679_vm2, %v2623_v38  ;;  %v2047_v3 = vadd.f32 %v1938_v37, %v1565_v59 }
 0x1b0   : > { %v2142_v2 = vld [vmem:[#allocation3 + $0x20] sm:$0xff]  ;;  %v1940_v33 = vpop.f32.mrf.mxu1 }
 0x1b1   : > { %v2519_v47 = vpop.f32.mrf.mxu0  ;;  %v2755_v30 = vmax.f32 %v2723_v58, 0.0  ;;  %v2624_v48 = vadd.f32 %v2509_v34, %v2142_v2  ;;  %2079 = vst.msk [vmem:[#allocation3 + $0x30] sm:$0xff] %vm679_vm2, %v2047_v3  ;;  %v1571_v2 = vld [vmem:[#allocation3 + $0x60] sm:$0xff] }
 0x1b2   : > { %v2686_v40 = vld [vmem:[#allocation3 + $0x10] sm:$0xff]  ;;  %v1941_v24 = vpop.f32.mrf.mxu1 }
 0x1b3   : > { %v2520_v26 = vpop.f32.mrf.mxu0  ;;  %2787 = vst.msk [vmem:[#allocation3 + $0x8] sm:$0xff] %vm679_vm2, %v2755_v30  ;;  %v2724_v18 = vadd.f32 %v4464_v41, %v2686_v40  ;;  %2656 = vst.msk [vmem:[#allocation3 + $0x20] sm:$0xff] %vm679_vm2, %v2624_v48  ;;  %v2048_v45 = vadd.f32 %v1941_v24, %v1566_v50 }
 0x1b4   : > { %v2143_v60 = vld [vmem:[#allocation3 + $0x28] sm:$0xff]  ;;  %v1943_v61 = vpop.f32.mrf.mxu1 }
 0x1b5   : > { %v2522_v62 = vpop.f32.mrf.mxu0  ;;  %v2756_v25 = vmax.f32 %v2724_v18, 0.0  ;;  %v2625_v6 = vadd.f32 %v2512_v51, %v2143_v60  ;;  %2080 = vst.msk [vmem:[#allocation3 + $0x38] sm:$0xff] %vm679_vm2, %v2048_v45  ;;  %v1572_v60 = vld [vmem:[#allocation3 + $0x68] sm:$0xff] }
 0x1b6   : > { %v2687_v22 = vld [vmem:[#allocation3 + $0x18] sm:$0xff]  ;;  %v1946_v10 = vpop.f32.mrf.mxu1 }
 0x1b7   : > { %v2525_v63 = vpop.f32.mrf.mxu0  ;;  %2788 = vst.msk [vmem:[#allocation3 + $0x10] sm:$0xff] %vm679_vm2, %v2756_v25  ;;  %v2725_v5 = vadd.f32 %v4464_v41, %v2687_v22  ;;  %2657 = vst.msk [vmem:[#allocation3 + $0x28] sm:$0xff] %vm679_vm2, %v2625_v6  ;;  %v2049_v11 = vadd.f32 %v1946_v10, %v1567_v8 }
 0x1b8   : > { %v2144_v27 = vld [vmem:[#allocation3 + $0x30] sm:$0xff]  ;;  %v1948_v13 = vpop.f32.mrf.mxu1 }
 0x1b9   : > { %v2527_v29 = vpop.f32.mrf.mxu0  ;;  %v2757_v14 = vmax.f32 %v2725_v5, 0.0  ;;  %v2626_v15 = vadd.f32 %v2517_v12, %v2144_v27  ;;  %2081 = vst.msk [vmem:[#allocation3 + $0x40] sm:$0xff] %vm679_vm2, %v2049_v11  ;;  %v1573_v27 = vld [vmem:[#allocation3 + $0x70] sm:$0xff] }
 0x1ba   : > { %v2688_v44 = vld [vmem:[#allocation3 + $0x20] sm:$0xff]  ;;  %v1949_v31 = vpop.f32.mrf.mxu1 }
 0x1bb   : > { %v2528_v20 = vpop.f32.mrf.mxu0  ;;  %2789 = vst.msk [vmem:[#allocation3 + $0x18] sm:$0xff] %vm679_vm2, %v2757_v14  ;;  %v2726_v16 = vadd.f32 %v4464_v41, %v2688_v44  ;;  %2658 = vst.msk [vmem:[#allocation3 + $0x30] sm:$0xff] %vm679_vm2, %v2626_v15  ;;  %v2050_v32 = vadd.f32 %v1949_v31, %v1568_v23 }
 0x1bc   : > { %v2145_v4 = vld [vmem:[#allocation3 + $0x38] sm:$0xff]  ;;  %v1951_v7 = vpop.f32.mrf.mxu1 }
 0x1bd   : > { %v2530_v34 = vpop.f32.mrf.mxu0  ;;  %v2758_v36 = vmax.f32 %v2726_v16, 0.0  ;;  %v2627_v28 = vadd.f32 %v2520_v26, %v2145_v4  ;;  %2082 = vst.msk [vmem:[#allocation3 + $0x48] sm:$0xff] %vm679_vm2, %v2050_v32  ;;  %v1574_v4 = vld [vmem:[#allocation3 + $0x78] sm:$0xff] }
 0x1be   : > { %v2689_v42 = vld [vmem:[#allocation3 + $0x28] sm:$0xff]  ;;  %v1954_v46 = vpop.f32.mrf.mxu1 }
 0x1bf   : > { %v2533_v55 = vpop.f32.mrf.mxu0  ;;  %2790 = vst.msk [vmem:[#allocation3 + $0x20] sm:$0xff] %vm679_vm2, %v2758_v36  ;;  %v2727_v52 = vadd.f32 %v4464_v41, %v2689_v42  ;;  %2659 = vst.msk [vmem:[#allocation3 + $0x38] sm:$0xff] %vm679_vm2, %v2627_v28  ;;  %v2051_v35 = vadd.f32 %v1954_v46, %v1569_v43 }
 0x1c0   : > { %v2146_v56 = vld [vmem:[#allocation3 + $0x40] sm:$0xff]  ;;  %v1956_v17 = vpop.f32.mrf.mxu1 }
 0x1c1   : > { %v2535_v21 = vpop.f32.mrf.mxu0  ;;  %v2759_v51 = vmax.f32 %v2727_v52, 0.0  ;;  %v2628_v39 = vadd.f32 %v2525_v63, %v2146_v56  ;;  %2083 = vst.msk [vmem:[#allocation3 + $0x50] sm:$0xff] %vm679_vm2, %v2051_v35  ;;  %v1575_v56 = vld [vmem:[#allocation3 + $0x80] sm:$0xff] }
 0x1c2   : > { %v2690_v49 = vld [vmem:[#allocation3 + $0x30] sm:$0xff]  ;;  %v1957_v53 = vpop.f32.mrf.mxu1 }
 0x1c3   : > { %v2536_v1 = vpop.f32.mrf.mxu0  ;;  %2791 = vst.msk [vmem:[#allocation3 + $0x28] sm:$0xff] %vm679_vm2, %v2759_v51  ;;  %v2728_v19 = vadd.f32 %v4464_v41, %v2690_v49  ;;  %2660 = vst.msk [vmem:[#allocation3 + $0x40] sm:$0xff] %vm679_vm2, %v2628_v39  ;;  %v2052_v38 = vadd.f32 %v1957_v53, %v1570_v57 }
 0x1c4   : > { %v2147_v0 = vld [vmem:[#allocation3 + $0x48] sm:$0xff]  ;;  %v1959_v59 = vpop.f32.mrf.mxu1 }
 0x1c5   : > { %v2538_v37 = vpop.f32.mrf.mxu0  ;;  %v2760_v12 = vmax.f32 %v2728_v19, 0.0  ;;  %v2629_v58 = vadd.f32 %v2528_v20, %v2147_v0  ;;  %2084 = vst.msk [vmem:[#allocation3 + $0x58] sm:$0xff] %vm679_vm2, %v2052_v38  ;;  %v1576_v0 = vld [vmem:[#allocation3 + $0x88] sm:$0xff] }
 0x1c6   : > { %v2691_v3 = vld [vmem:[#allocation3 + $0x38] sm:$0xff]  ;;  %v1962_v33 = vpop.f32.mrf.mxu1 }
 0x1c7   : > { %v2541_v47 = vpop.f32.mrf.mxu0  ;;  %2792 = vst.msk [vmem:[#allocation3 + $0x30] sm:$0xff] %vm679_vm2, %v2760_v12  ;;  %v2729_v30 = vadd.f32 %v4464_v41, %v2691_v3  ;;  %2661 = vst.msk [vmem:[#allocation3 + $0x48] sm:$0xff] %vm679_vm2, %v2629_v58  ;;  %v2053_v48 = vadd.f32 %v1962_v33, %v1571_v2 }
 0x1c8   : > { %v2148_v40 = vld [vmem:[#allocation3 + $0x50] sm:$0xff]  ;;  %v1964_v50 = vpop.f32.mrf.mxu1 }
 0x1c9   : > { %v2543_v24 = vpop.f32.mrf.mxu0  ;;  %v2761_v26 = vmax.f32 %v2729_v30, 0.0  ;;  %v2630_v18 = vadd.f32 %v2533_v55, %v2148_v40  ;;  %2085 = vst.msk [vmem:[#allocation3 + $0x60] sm:$0xff] %vm679_vm2, %v2053_v48  ;;  %v1577_v40 = vld [vmem:[#allocation3 + $0x90] sm:$0xff] }
 0x1ca   : > { %v2692_v45 = vld [vmem:[#allocation3 + $0x40] sm:$0xff]  ;;  %v1965_v61 = vpop.f32.mrf.mxu1 }
 0x1cb   : > { %v2544_v62 = vpop.f32.mrf.mxu0  ;;  %2793 = vst.msk [vmem:[#allocation3 + $0x38] sm:$0xff] %vm679_vm2, %v2761_v26  ;;  %v2730_v25 = vadd.f32 %v4464_v41, %v2692_v45  ;;  %2662 = vst.msk [vmem:[#allocation3 + $0x50] sm:$0xff] %vm679_vm2, %v2630_v18  ;;  %v2054_v6 = vadd.f32 %v1965_v61, %v1572_v60 }
 0x1cc   : > { %v2149_v22 = vld [vmem:[#allocation3 + $0x58] sm:$0xff]  ;;  %v1967_v8 = vpop.f32.mrf.mxu1 }
 0x1cd   : > { %v2546_v10 = vpop.f32.mrf.mxu0  ;;  %v2762_v63 = vmax.f32 %v2730_v25, 0.0  ;;  %v2631_v5 = vadd.f32 %v2536_v1, %v2149_v22  ;;  %2086 = vst.msk [vmem:[#allocation3 + $0x68] sm:$0xff] %vm679_vm2, %v2054_v6  ;;  %v1578_v22 = vld [vmem:[#allocation3 + $0x98] sm:$0xff] }
 0x1ce   : > { %v2693_v11 = vld [vmem:[#allocation3 + $0x48] sm:$0xff]  ;;  %v1970_v13 = vpop.f32.mrf.mxu1 }
 0x1cf   : > { %v2549_v29 = vpop.f32.mrf.mxu0  ;;  %2794 = vst.msk [vmem:[#allocation3 + $0x40] sm:$0xff] %vm679_vm2, %v2762_v63  ;;  %v2731_v14 = vadd.f32 %v4464_v41, %v2693_v11  ;;  %2663 = vst.msk [vmem:[#allocation3 + $0x58] sm:$0xff] %vm679_vm2, %v2631_v5  ;;  %v2055_v15 = vadd.f32 %v1970_v13, %v1573_v27 }
 0x1d0   : > { %v2150_v44 = vld [vmem:[#allocation3 + $0x60] sm:$0xff]  ;;  %v1972_v23 = vpop.f32.mrf.mxu1 }
 0x1d1   : > { %v2551_v31 = vpop.f32.mrf.mxu0  ;;  %v2763_v20 = vmax.f32 %v2731_v14, 0.0  ;;  %v2632_v16 = vadd.f32 %v2541_v47, %v2150_v44  ;;  %2087 = vst.msk [vmem:[#allocation3 + $0x70] sm:$0xff] %vm679_vm2, %v2055_v15  ;;  %v1579_v44 = vld [vmem:[#allocation3 + $0xa0] sm:$0xff] }
 0x1d2   : > { %v2694_v32 = vld [vmem:[#allocation3 + $0x50] sm:$0xff]  ;;  %v1973_v7 = vpop.f32.mrf.mxu1 }
 0x1d3   : > { %v2552_v34 = vpop.f32.mrf.mxu0  ;;  %2795 = vst.msk [vmem:[#allocation3 + $0x48] sm:$0xff] %vm679_vm2, %v2763_v20  ;;  %v2732_v36 = vadd.f32 %v4464_v41, %v2694_v32  ;;  %2664 = vst.msk [vmem:[#allocation3 + $0x60] sm:$0xff] %vm679_vm2, %v2632_v16  ;;  %v2056_v28 = vadd.f32 %v1973_v7, %v1574_v4 }
 0x1d4   : > { %v2151_v42 = vld [vmem:[#allocation3 + $0x68] sm:$0xff]  ;;  %v1975_v43 = vpop.f32.mrf.mxu1 }
 0x1d5   : > { %v2554_v46 = vpop.f32.mrf.mxu0  ;;  %v2764_v55 = vmax.f32 %v2732_v36, 0.0  ;;  %v2633_v52 = vadd.f32 %v2544_v62, %v2151_v42  ;;  %2088 = vst.msk [vmem:[#allocation3 + $0x78] sm:$0xff] %vm679_vm2, %v2056_v28  ;;  %v1580_v42 = vld [vmem:[#allocation3 + $0xa8] sm:$0xff] }
 0x1d6   : > { %v2695_v35 = vld [vmem:[#allocation3 + $0x58] sm:$0xff]  ;;  %v1978_v17 = vpop.f32.mrf.mxu1 }
 0x1d7   : > { %v2557_v21 = vpop.f32.mrf.mxu0  ;;  %2796 = vst.msk [vmem:[#allocation3 + $0x50] sm:$0xff] %vm679_vm2, %v2764_v55  ;;  %v2733_v51 = vadd.f32 %v4464_v41, %v2695_v35  ;;  %2665 = vst.msk [vmem:[#allocation3 + $0x68] sm:$0xff] %vm679_vm2, %v2633_v52  ;;  %v2057_v39 = vadd.f32 %v1978_v17, %v1575_v56 }
 0x1d8   : > { %v2152_v49 = vld [vmem:[#allocation3 + $0x70] sm:$0xff]  ;;  %v1980_v57 = vpop.f32.mrf.mxu1 }
 0x1d9   : > { %v2559_v53 = vpop.f32.mrf.mxu0  ;;  %v2765_v1 = vmax.f32 %v2733_v51, 0.0  ;;  %v2634_v19 = vadd.f32 %v2549_v29, %v2152_v49  ;;  %2089 = vst.msk [vmem:[#allocation3 + $0x80] sm:$0xff] %vm679_vm2, %v2057_v39  ;;  %v1581_v49 = vld [vmem:[#allocation3 + $0xb0] sm:$0xff] }
 0x1da   : > { %v2696_v38 = vld [vmem:[#allocation3 + $0x60] sm:$0xff]  ;;  %v1981_v59 = vpop.f32.mrf.mxu1 }
 0x1db   : > { %v2560_v37 = vpop.f32.mrf.mxu0  ;;  %2797 = vst.msk [vmem:[#allocation3 + $0x58] sm:$0xff] %vm679_vm2, %v2765_v1  ;;  %v2734_v12 = vadd.f32 %v4464_v41, %v2696_v38  ;;  %2666 = vst.msk [vmem:[#allocation3 + $0x70] sm:$0xff] %vm679_vm2, %v2634_v19  ;;  %v2058_v58 = vadd.f32 %v1981_v59, %v1576_v0 }
 0x1dc   : > { %v2153_v3 = vld [vmem:[#allocation3 + $0x78] sm:$0xff]  ;;  %v1983_v2 = vpop.f32.mrf.mxu1 }
 0x1dd   : > { %v2562_v33 = vpop.f32.mrf.mxu0  ;;  %v2766_v47 = vmax.f32 %v2734_v12, 0.0  ;;  %v2635_v30 = vadd.f32 %v2552_v34, %v2153_v3  ;;  %2090 = vst.msk [vmem:[#allocation3 + $0x88] sm:$0xff] %vm679_vm2, %v2058_v58  ;;  %v1582_v3 = vld [vmem:[#allocation3 + $0xb8] sm:$0xff] }
 0x1de   : > { %v2697_v48 = vld [vmem:[#allocation3 + $0x68] sm:$0xff]  ;;  %v1986_v50 = vpop.f32.mrf.mxu1 }
 0x1df   : > { %v2565_v24 = vpop.f32.mrf.mxu0  ;;  %2798 = vst.msk [vmem:[#allocation3 + $0x60] sm:$0xff] %vm679_vm2, %v2766_v47  ;;  %v2735_v26 = vadd.f32 %v4464_v41, %v2697_v48  ;;  %2667 = vst.msk [vmem:[#allocation3 + $0x78] sm:$0xff] %vm679_vm2, %v2635_v30  ;;  %v2059_v18 = vadd.f32 %v1986_v50, %v1577_v40 }
 0x1e0   : > { %v2154_v45 = vld [vmem:[#allocation3 + $0x80] sm:$0xff]  ;;  %v1988_v60 = vpop.f32.mrf.mxu1 }
 0x1e1   : > { %v2567_v61 = vpop.f32.mrf.mxu0  ;;  %v2767_v62 = vmax.f32 %v2735_v26, 0.0  ;;  %v2636_v25 = vadd.f32 %v2557_v21, %v2154_v45  ;;  %2091 = vst.msk [vmem:[#allocation3 + $0x90] sm:$0xff] %vm679_vm2, %v2059_v18  ;;  %v1583_v45 = vld [vmem:[#allocation3 + $0xc0] sm:$0xff] }
 0x1e2   : > { %v2698_v6 = vld [vmem:[#allocation3 + $0x70] sm:$0xff]  ;;  %v1989_v8 = vpop.f32.mrf.mxu1 }
 0x1e3   : > { %v2568_v10 = vpop.f32.mrf.mxu0  ;;  %2799 = vst.msk [vmem:[#allocation3 + $0x68] sm:$0xff] %vm679_vm2, %v2767_v62  ;;  %v2736_v63 = vadd.f32 %v4464_v41, %v2698_v6  ;;  %2668 = vst.msk [vmem:[#allocation3 + $0x80] sm:$0xff] %vm679_vm2, %v2636_v25  ;;  %v2060_v5 = vadd.f32 %v1989_v8, %v1578_v22 }
 0x1e4   : > { %v2155_v11 = vld [vmem:[#allocation3 + $0x88] sm:$0xff]  ;;  %v1991_v27 = vpop.f32.mrf.mxu1 }
 0x1e5   : > { %v2570_v13 = vpop.f32.mrf.mxu0  ;;  %v2768_v29 = vmax.f32 %v2736_v63, 0.0  ;;  %v2637_v14 = vadd.f32 %v2560_v37, %v2155_v11  ;;  %2092 = vst.msk [vmem:[#allocation3 + $0x98] sm:$0xff] %vm679_vm2, %v2060_v5  ;;  %v1584_v11 = vld [vmem:[#allocation3 + $0xc8] sm:$0xff] }
 0x1e6   : > { %v2699_v15 = vld [vmem:[#allocation3 + $0x78] sm:$0xff]  ;;  %v1994_v23 = vpop.f32.mrf.mxu1 }
 0x1e7   : > { %v2573_v31 = vpop.f32.mrf.mxu0  ;;  %2800 = vst.msk [vmem:[#allocation3 + $0x70] sm:$0xff] %vm679_vm2, %v2768_v29  ;;  %v2737_v20 = vadd.f32 %v4464_v41, %v2699_v15  ;;  %2669 = vst.msk [vmem:[#allocation3 + $0x88] sm:$0xff] %vm679_vm2, %v2637_v14  ;;  %v2061_v16 = vadd.f32 %v1994_v23, %v1579_v44 }
 0x1e8   : > { %v2156_v32 = vld [vmem:[#allocation3 + $0x90] sm:$0xff]  ;;  %v1996_v4 = vpop.f32.mrf.mxu1 }
 0x1e9   : > { %v2575_v7 = vpop.f32.mrf.mxu0  ;;  %v2769_v34 = vmax.f32 %v2737_v20, 0.0  ;;  %v2638_v36 = vadd.f32 %v2565_v24, %v2156_v32  ;;  %2093 = vst.msk [vmem:[#allocation3 + $0xa0] sm:$0xff] %vm679_vm2, %v2061_v16  ;;  %v1585_v32 = vld [vmem:[#allocation3 + $0xd0] sm:$0xff] }
 0x1ea   : > { %v2700_v28 = vld [vmem:[#allocation3 + $0x80] sm:$0xff]  ;;  %v1997_v43 = vpop.f32.mrf.mxu1 }
 0x1eb   : > { %v2576_v46 = vpop.f32.mrf.mxu0  ;;  %2801 = vst.msk [vmem:[#allocation3 + $0x78] sm:$0xff] %vm679_vm2, %v2769_v34  ;;  %v2738_v55 = vadd.f32 %v4464_v41, %v2700_v28  ;;  %2670 = vst.msk [vmem:[#allocation3 + $0x90] sm:$0xff] %vm679_vm2, %v2638_v36  ;;  %v2062_v52 = vadd.f32 %v1997_v43, %v1580_v42 }
 0x1ec   : > { %v2157_v35 = vld [vmem:[#allocation3 + $0x98] sm:$0xff]  ;;  %v1999_v56 = vpop.f32.mrf.mxu1 }
 0x1ed   : > { %v2578_v17 = vpop.f32.mrf.mxu0  ;;  %v2770_v21 = vmax.f32 %v2738_v55, 0.0  ;;  %v2639_v51 = vadd.f32 %v2568_v10, %v2157_v35  ;;  %2094 = vst.msk [vmem:[#allocation3 + $0xa8] sm:$0xff] %vm679_vm2, %v2062_v52  ;;  %v1586_v35 = vld [vmem:[#allocation3 + $0xd8] sm:$0xff] }
 0x1ee   : > { %v2701_v39 = vld [vmem:[#allocation3 + $0x88] sm:$0xff]  ;;  %v2002_v57 = vpop.f32.mrf.mxu1 }
 0x1ef   : > { %v2581_v53 = vpop.f32.mrf.mxu0  ;;  %2802 = vst.msk [vmem:[#allocation3 + $0x80] sm:$0xff] %vm679_vm2, %v2770_v21  ;;  %v2739_v1 = vadd.f32 %v4464_v41, %v2701_v39  ;;  %2671 = vst.msk [vmem:[#allocation3 + $0x98] sm:$0xff] %vm679_vm2, %v2639_v51  ;;  %v2063_v19 = vadd.f32 %v2002_v57, %v1581_v49 }
 0x1f0   : > { %v2158_v38 = vld [vmem:[#allocation3 + $0xa0] sm:$0xff]  ;;  %v2004_v0 = vpop.f32.mrf.mxu1 }
 0x1f1   : > { %v2583_v59 = vpop.f32.mrf.mxu0  ;;  %v2771_v37 = vmax.f32 %v2739_v1, 0.0  ;;  %v2640_v12 = vadd.f32 %v2573_v31, %v2158_v38  ;;  %2095 = vst.msk [vmem:[#allocation3 + $0xb0] sm:$0xff] %vm679_vm2, %v2063_v19  ;;  %v1587_v38 = vld [vmem:[#allocation3 + $0xe0] sm:$0xff] }
 0x1f2   : > { %v2702_v58 = vld [vmem:[#allocation3 + $0x90] sm:$0xff]  ;;  %v2005_v2 = vpop.f32.mrf.mxu1 }
 0x1f3   : > { %v2584_v33 = vpop.f32.mrf.mxu0  ;;  %2803 = vst.msk [vmem:[#allocation3 + $0x88] sm:$0xff] %vm679_vm2, %v2771_v37  ;;  %v2740_v47 = vadd.f32 %v4464_v41, %v2702_v58  ;;  %2672 = vst.msk [vmem:[#allocation3 + $0xa0] sm:$0xff] %vm679_vm2, %v2640_v12  ;;  %v2064_v30 = vadd.f32 %v2005_v2, %v1582_v3 }
 0x1f4   : > { %v2159_v48 = vld [vmem:[#allocation3 + $0xa8] sm:$0xff]  ;;  %v2007_v40 = vpop.f32.mrf.mxu1 }
 0x1f5   : > { %v2586_v50 = vpop.f32.mrf.mxu0  ;;  %v2772_v24 = vmax.f32 %v2740_v47, 0.0  ;;  %v2641_v26 = vadd.f32 %v2576_v46, %v2159_v48  ;;  %2096 = vst.msk [vmem:[#allocation3 + $0xb8] sm:$0xff] %vm679_vm2, %v2064_v30  ;;  %v1588_v48 = vld [vmem:[#allocation3 + $0xe8] sm:$0xff] }
 0x1f6   : > { %v2703_v18 = vld [vmem:[#allocation3 + $0x98] sm:$0xff]  ;;  %v2010_v60 = vpop.f32.mrf.mxu1 }
 0x1f7   : > { %v2589_v61 = vpop.f32.mrf.mxu0  ;;  %2804 = vst.msk [vmem:[#allocation3 + $0x90] sm:$0xff] %vm679_vm2, %v2772_v24  ;;  %v2741_v62 = vadd.f32 %v4464_v41, %v2703_v18  ;;  %2673 = vst.msk [vmem:[#allocation3 + $0xa8] sm:$0xff] %vm679_vm2, %v2641_v26  ;;  %v2065_v25 = vadd.f32 %v2010_v60, %v1583_v45 }
 0x1f8   : > { %v2160_v6 = vld [vmem:[#allocation3 + $0xb0] sm:$0xff]  ;;  %v2012_v22 = vpop.f32.mrf.mxu1 }
 0x1f9   : > { %v2591_v8 = vpop.f32.mrf.mxu0  ;;  %v2773_v10 = vmax.f32 %v2741_v62, 0.0  ;;  %v2642_v63 = vadd.f32 %v2581_v53, %v2160_v6  ;;  %2097 = vst.msk [vmem:[#allocation3 + $0xc0] sm:$0xff] %vm679_vm2, %v2065_v25  ;;  %v1589_v6 = vld [vmem:[#allocation3 + $0xf0] sm:$0xff] }
 0x1fa   : > { %v2704_v5 = vld [vmem:[#allocation3 + $0xa0] sm:$0xff]  ;;  %v2013_v27 = vpop.f32.mrf.mxu1 }
 0x1fb   : > { %v2592_v13 = vpop.f32.mrf.mxu0  ;;  %2805 = vst.msk [vmem:[#allocation3 + $0x98] sm:$0xff] %vm679_vm2, %v2773_v10  ;;  %v2742_v29 = vadd.f32 %v4464_v41, %v2704_v5  ;;  %2674 = vst.msk [vmem:[#allocation3 + $0xb0] sm:$0xff] %vm679_vm2, %v2642_v63  ;;  %v2066_v14 = vadd.f32 %v2013_v27, %v1584_v11 }
 0x1fc   : > { %v2161_v15 = vld [vmem:[#allocation3 + $0xb8] sm:$0xff]  ;;  %v2015_v44 = vpop.f32.mrf.mxu1 }
 0x1fd   : > { %v2594_v23 = vpop.f32.mrf.mxu0  ;;  %v2774_v31 = vmax.f32 %v2742_v29, 0.0  ;;  %v2643_v20 = vadd.f32 %v2584_v33, %v2161_v15  ;;  %2098 = vst.msk [vmem:[#allocation3 + $0xc8] sm:$0xff] %vm679_vm2, %v2066_v14  ;;  %v1590_v15 = vld [vmem:[#allocation3 + $0xf8] sm:$0xff] }
 0x1fe   : > { %v2705_v16 = vld [vmem:[#allocation3 + $0xa8] sm:$0xff]  ;;  %v2018_v4 = vpop.f32.mrf.mxu1 }
 0x1ff   : > { %v2597_v7 = vpop.f32.mrf.mxu0  ;;  %2806 = vst.msk [vmem:[#allocation3 + $0xa0] sm:$0xff] %vm679_vm2, %v2774_v31  ;;  %v2743_v34 = vadd.f32 %v4464_v41, %v2705_v16  ;;  %2675 = vst.msk [vmem:[#allocation3 + $0xb8] sm:$0xff] %vm679_vm2, %v2643_v20  ;;  %v2067_v36 = vadd.f32 %v2018_v4, %v1585_v32 }
 0x200   : > { %v2162_v28 = vld [vmem:[#allocation3 + $0xc0] sm:$0xff]  ;;  %v2020_v42 = vpop.f32.mrf.mxu1 }
 0x201   : > { %v2599_v43 = vpop.f32.mrf.mxu0  ;;  %v2775_v46 = vmax.f32 %v2743_v34, 0.0  ;;  %v2644_v55 = vadd.f32 %v2589_v61, %v2162_v28  ;;  %2099 = vst.msk [vmem:[#allocation3 + $0xd0] sm:$0xff] %vm679_vm2, %v2067_v36 }
 0x202   : > { %v2706_v52 = vld [vmem:[#allocation3 + $0xb0] sm:$0xff]  ;;  %v2021_v56 = vpop.f32.mrf.mxu1 }
 0x203   : > { %v2600_v17 = vpop.f32.mrf.mxu0  ;;  %2807 = vst.msk [vmem:[#allocation3 + $0xa8] sm:$0xff] %vm679_vm2, %v2775_v46  ;;  %v2744_v21 = vadd.f32 %v4464_v41, %v2706_v52  ;;  %2676 = vst.msk [vmem:[#allocation3 + $0xc0] sm:$0xff] %vm679_vm2, %v2644_v55  ;;  %v2068_v51 = vadd.f32 %v2021_v56, %v1586_v35 }
 0x204   : > { %v2163_v39 = vld [vmem:[#allocation3 + $0xc8] sm:$0xff]  ;;  %v2023_v49 = vpop.f32.mrf.mxu1 }
 0x205   : > { %v2602_v57 = vpop.f32.mrf.mxu0  ;;  %v2776_v53 = vmax.f32 %v2744_v21, 0.0  ;;  %v2645_v1 = vadd.f32 %v2592_v13, %v2163_v39  ;;  %2100 = vst.msk [vmem:[#allocation3 + $0xd8] sm:$0xff] %vm679_vm2, %v2068_v51 }
 0x206   : > { %v2707_v19 = vld [vmem:[#allocation3 + $0xb8] sm:$0xff]  ;;  %v2026_v0 = vpop.f32.mrf.mxu1 }
 0x207   : > { %v2605_v59 = vpop.f32.mrf.mxu0  ;;  %2808 = vst.msk [vmem:[#allocation3 + $0xb0] sm:$0xff] %vm679_vm2, %v2776_v53  ;;  %v2745_v37 = vadd.f32 %v4464_v41, %v2707_v19  ;;  %2677 = vst.msk [vmem:[#allocation3 + $0xc8] sm:$0xff] %vm679_vm2, %v2645_v1  ;;  %v2069_v12 = vadd.f32 %v2026_v0, %v1587_v38 }
 0x208   : > { %v2164_v58 = vld [vmem:[#allocation3 + $0xd0] sm:$0xff]  ;;  %v2028_v3 = vpop.f32.mrf.mxu1 }
 0x209   : > { %v2607_v2 = vpop.f32.mrf.mxu0  ;;  %v2777_v33 = vmax.f32 %v2745_v37, 0.0  ;;  %v2646_v47 = vadd.f32 %v2597_v7, %v2164_v58  ;;  %2101 = vst.msk [vmem:[#allocation3 + $0xe0] sm:$0xff] %vm679_vm2, %v2069_v12 }
 0x20a   : > { %v2708_v30 = vld [vmem:[#allocation3 + $0xc0] sm:$0xff]  ;;  %v2029_v40 = vpop.f32.mrf.mxu1 }
 0x20b   : > { %v2608_v50 = vpop.f32.mrf.mxu0  ;;  %2809 = vst.msk [vmem:[#allocation3 + $0xb8] sm:$0xff] %vm679_vm2, %v2777_v33  ;;  %v2746_v24 = vadd.f32 %v4464_v41, %v2708_v30  ;;  %2678 = vst.msk [vmem:[#allocation3 + $0xd0] sm:$0xff] %vm679_vm2, %v2646_v47  ;;  %v2070_v26 = vadd.f32 %v2029_v40, %v1588_v48 }
 0x20c   : > { %v2165_v18 = vld [vmem:[#allocation3 + $0xd8] sm:$0xff]  ;;  %v2031_v45 = vpop.f32.mrf.mxu1 }
 0x20d   : > { %v2610_v60 = vpop.f32.mrf.mxu0  ;;  %v2778_v61 = vmax.f32 %v2746_v24, 0.0  ;;  %v2647_v62 = vadd.f32 %v2600_v17, %v2165_v18  ;;  %2102 = vst.msk [vmem:[#allocation3 + $0xe8] sm:$0xff] %vm679_vm2, %v2070_v26 }
 0x20e   : > { %v2709_v25 = vld [vmem:[#allocation3 + $0xc8] sm:$0xff]  ;;  %v2034_v22 = vpop.f32.mrf.mxu1 }
 0x20f   : > { %v2613_v8 = vpop.f32.mrf.mxu0  ;;  %2810 = vst.msk [vmem:[#allocation3 + $0xc0] sm:$0xff] %vm679_vm2, %v2778_v61  ;;  %v2747_v10 = vadd.f32 %v4464_v41, %v2709_v25  ;;  %2679 = vst.msk [vmem:[#allocation3 + $0xd8] sm:$0xff] %vm679_vm2, %v2647_v62  ;;  %v2071_v63 = vadd.f32 %v2034_v22, %v1589_v6 }
 0x210   : > { %v2166_v5 = vld [vmem:[#allocation3 + $0xe0] sm:$0xff]  ;;  %v2036_v11 = vpop.f32.mrf.mxu1 }
 0x211   : > { %v2615_v27 = vpop.f32.mrf.mxu0  ;;  %v2779_v13 = vmax.f32 %v2747_v10, 0.0  ;;  %v2648_v29 = vadd.f32 %v2605_v59, %v2166_v5  ;;  %2103 = vst.msk [vmem:[#allocation3 + $0xf0] sm:$0xff] %vm679_vm2, %v2071_v63 }
 0x212   : > { %v2710_v14 = vld [vmem:[#allocation3 + $0xd0] sm:$0xff]  ;;  %v2037_v44 = vpop.f32.mrf.mxu1 }
 0x213   : > { %v2616_v23 = vpop.f32.mrf.mxu0  ;;  %2811 = vst.msk [vmem:[#allocation3 + $0xc8] sm:$0xff] %vm679_vm2, %v2779_v13  ;;  %v2748_v31 = vadd.f32 %v4464_v41, %v2710_v14  ;;  %2680 = vst.msk [vmem:[#allocation3 + $0xe0] sm:$0xff] %vm679_vm2, %v2648_v29  ;;  %v2072_v20 = vadd.f32 %v2037_v44, %v1590_v15 }
 0x214   : > { %v2167_v16 = vld [vmem:[#allocation3 + $0xe8] sm:$0xff]  ;;  %v2039_v32 = vpop.f32.mrf.mxu1 }
 0x215   : > { %v2618_v4 = vpop.f32.mrf.mxu0  ;;  %v2780_v7 = vmax.f32 %v2748_v31, 0.0  ;;  %v2649_v34 = vadd.f32 %v2608_v50, %v2167_v16  ;;  %2104 = vst.msk [vmem:[#allocation3 + $0xf8] sm:$0xff] %vm679_vm2, %v2072_v20 }
 0x216   : > { %v2711_v36 = vld [vmem:[#allocation3 + $0xd8] sm:$0xff] }
 0x217   : > { %2812 = vst.msk [vmem:[#allocation3 + $0xd0] sm:$0xff] %vm679_vm2, %v2780_v7  ;;  %v2749_v28 = vadd.f32 %v4464_v41, %v2711_v36  ;;  %2681 = vst.msk [vmem:[#allocation3 + $0xe8] sm:$0xff] %vm679_vm2, %v2649_v34 }
 0x218   : > { %v2168_v42 = vld [vmem:[#allocation3 + $0xf0] sm:$0xff] }
 0x219   : > { %v2781_v43 = vmax.f32 %v2749_v28, 0.0  ;;  %v2650_v46 = vadd.f32 %v2613_v8, %v2168_v42 }
 0x21a   : > { %v2712_v55 = vld [vmem:[#allocation3 + $0xe0] sm:$0xff] }
 0x21b   : > { %2813 = vst.msk [vmem:[#allocation3 + $0xd8] sm:$0xff] %vm679_vm2, %v2781_v43  ;;  %v2750_v52 = vadd.f32 %v4464_v41, %v2712_v55  ;;  %2682 = vst.msk [vmem:[#allocation3 + $0xf0] sm:$0xff] %vm679_vm2, %v2650_v46 }
 0x21c   : > { %v2169_v35 = vld [vmem:[#allocation3 + $0xf8] sm:$0xff] }
 0x21d   : > { %v2782_v56 = vmax.f32 %v2750_v52, 0.0  ;;  %v2651_v17 = vadd.f32 %v2616_v23, %v2169_v35 }
 0x21e   : > { %v2713_v21 = vld [vmem:[#allocation3 + $0xe8] sm:$0xff] }
 0x21f   : > { %2814 = vst.msk [vmem:[#allocation3 + $0xe0] sm:$0xff] %vm679_vm2, %v2782_v56  ;;  %v2751_v51 = vadd.f32 %v4464_v41, %v2713_v21  ;;  %2683 = vst.msk [vmem:[#allocation3 + $0xf8] sm:$0xff] %vm679_vm2, %v2651_v17 }
 0x221   : > { %v2783_v39 = vmax.f32 %v2751_v51, 0.0 }
 0x222   : > { %v2714_v49 = vld [vmem:[#allocation3 + $0xf0] sm:$0xff] }
 0x223   : > { %2815 = vst.msk [vmem:[#allocation3 + $0xe8] sm:$0xff] %vm679_vm2, %v2783_v39  ;;  %v2752_v57 = vadd.f32 %v4464_v41, %v2714_v49 }
 0x225   : > { %v2784_v53 = vmax.f32 %v2752_v57, 0.0 }
 0x226   : > { %v2715_v1 = vld [vmem:[#allocation3 + $0xf8] sm:$0xff] }
 0x227   : > { %2816 = vst.msk [vmem:[#allocation3 + $0xf0] sm:$0xff] %vm679_vm2, %v2784_v53  ;;  %v2753_v19 = vadd.f32 %v4464_v41, %v2715_v1 }
 0x229   : > { %v2785_v38 = vmax.f32 %v2753_v19, 0.0 }
 0x22b   : > { %2817 = vst.msk [vmem:[#allocation3 + $0xf8] sm:$0xff] %vm679_vm2, %v2785_v38 }
 0x22c LB: >> { %v3603_v0 = vmov 0.0   ;;  %s3380_s23 = sshll.u32 %s3598_s21, 5  ;;  %vm3604_vm8 = vmmov 0   ;;  %vm2848_vm9 = vcmask 130048   ;;  %s3387_s25 = sshll.u32 %s3598_s21, 2  ;;  %vm2999_vm10 = vcmask 519168   ;;  %s3598_s21 = sphi %s4594_s21, %s2835_s21  }
 0x22d   : >> { %3398 = vmatprep.subr.mxu0 %v3603_v0  ;;  %3405 = vmatprep.subr.mxu1 %v3603_v0  ;;  %s2840_s24 = scalar_lea.vmem [#allocation3], %s3380_s23  ;;  %s2998_s26 = scalar_lea.vmem %s3646_s22, %s3387_s25 }
 0x22e   : >> { %3402 = vmatprep.mubr.msk.f32.mxu0 %vm3604_vm8, %v3603_v0  ;;  %3409 = vmatprep.mubr.msk.f32.mxu1 %vm3604_vm8, %v3603_v0  ;;  %s2835_s21 = sadd.s32 1, %s3598_s21  }
 0x22f   : >> { %p2832_p4 = scmp.ge.s32.totalorder %s2835_s21, 8  }
 0x232   : >> { %v2842_v41 = vld [vmem:[%s2840_s24 + $0x8] sm:$0xff]  ;;  %v3384_v59 = vld [vmem:[%s2840_s24 + $0x18] sm:$0xff]  ;;  %v2841_v37 = vld [vmem:[%s2840_s24] sm:$0xff] }
 0x233   : >> { %v2847_v12 = vmax.f32 %v2842_v41, %v3384_v59  ;;  %v3383_v58 = vld [vmem:[%s2840_s24 + $0x10] sm:$0xff] }
 0x234   : >> { %v2846_v3 = vmax.f32 %v2841_v37, %v3383_v58 }
 0x235   : >> { %3399 = vmatpush3.msra.mxu0 %v2847_v12  ;;  %3406 = vmatpush3.msra.mxu1 %v2847_v12 }
 0x236   : >> { %3400 = vmatprep.subr.mxu0 %v3603_v0  ;;  %3407 = vmatprep.subr.mxu1 %v3603_v0 }
 0x237   : >> { %3401 = vmatpush3.msra.mxu0 %v2846_v3  ;;  %3408 = vmatpush3.msra.mxu1 %v2846_v3 }
 0x238   : >> { %3403 = vmatmul.mubr.msk.f32.vlgmr.msra.gmra.mxu0 %vm2848_vm9, %v4470_v9  ;;  %3410 = vmatmul.mubr.msk.f32.vlgmr.msra.gmra.mxu1 %vm2848_vm9, %v4473_v54 }
 0x2f8   : >> { %v2918_v2 = vpop.f32.mrf.mxu0  ;;  %v2991_v33 = vpop.f32.mrf.mxu1 }
 0x2f9   : >> { %v2995_v47 = vmax.f32 %v2918_v2, %v2991_v33  ;;  %2834 = sbr.rel (!%p2832_p4) target bundleno = 556 (0x22c), region = 76 }
 0x2fa   : >> { %v3404_v30 = vpop.f32.mrf.mxu0  ;;  %v3411_v48 = vpop.f32.mrf.mxu1 }
 0x2fb   : >> { %v2996_v40 = vpack.c.bf16 %v2995_v47, %v2995_v47 }
 0x2fd   : >> { %3000 = vst.msk [vmem:[%s2998_s26] sm:$0xf] %vm2999_vm10, %v2996_v40 }
 0x2fe PF: > { %s13_s12 = sadd.s32 1, %s3594_s12  }
 0x2ff   : > { %p10_p5 = scmp.ge.s32.totalorder %s13_s12, 4  }
 0x301   :  { %12 = sbr.rel (!%p10_p5) target bundleno = 1 (0x1), region = 87 }

// kernel: homography_forward.14
= control target key start
LH: loop header
LB: loop body
LE: loop exit
PB: predicated region body
PF: predicated region fallthrough
CT: control target
= control target key end

     0   :  { %s1114_s12 = smov 0   ;;  %s1364_s0 = inlined_call_operand.vmem [shape: bf16[2,6,6,64], index: 0, kind: input, shape index: {}]   ;;  %s1365_s1 = inlined_call_operand.vmem [shape: bf16[3,192,128], index: 1, kind: input, shape index: {}]   ;;  %s1366_s2 = inlined_call_operand.vmem [shape: f32[1,128], index: 2, kind: input, shape index: {}]   ;;  %s1367_s3 = inlined_call_operand.vmem [shape: bf16[2,4,4,128], index: 3, kind: output, shape index: {}]  }
   0x1 LB: > { %s897_s13 = sadd.s32 4294967295, %s1085_s12   ;;  %p901_p0 = scmp.ge.s32.totalorder %s1085_s12, 1  ;;  %s1085_s12 = sphi %s1114_s12, %s13_s12  }
   0x2   : > { %p137_p1 = scmp.lt.s32.totalorder %s1085_s12, 3 }
   0x4   : > { %p138_p2 = pnand %p901_p0, %p137_p1 }
   0x5   : > { %p161_p3 = scmp.lt.s32.totalorder (!%p138_p2), %s897_s13, 1  ;;  %s1091_s22 = smov (!%p138_p2), 64  }
   0x6   : > { %141 = sbr.rel (%p138_p2) target bundleno = 452 (0x1c4), region = 32  ;;  %s1197_s25 = smov (!%p138_p2), 0  }
   0xb   : > { %s1371_s13 = smov (!%p161_p3, %s897_s13), 1  ;;  %v1165_v34 = vld [vmem:[%s1366_s2] ss:$0 sm:$0xff]  ;;  %v1092_v37 = vmov 1983009808   ;;  %v286_v39 = vlaneseq  ;;  %vm257_vm0 = vcmask 523264  }
   0xc   : > { %s1013_s14 = smul.u32 24, %s1371_s13  ;;  %s1011_s15 = sshll.u32 %s1371_s13, 3  ;;  %v284_v38 = vunpack.c.l.s4 %v1092_v37  ;;  %vm336_vm1 = vcmask 1041408   ;;  %vm337_vm2 = vcmask 519170  }
   0xd   : > { %s1125_s18 = scalar_lea.vmem %s1367_s3, %s1011_s15  ;;  %v287_v41 = vshrl.u32 %v286_v39, 7  ;;  %vm1171_vm3 = vmor %vm337_vm2, %vm336_vm1 }
   0xe   : > { %s165_s21 = scalar_lea.vmem %s1364_s0, %s1013_s14  ;;  %v285_v40 = vunpack.c.0.s8 %v284_v38 }
   0xf   : > { %v175_v0 = vld [vmem:[%s165_s21 + $0x8] sm:$0x7]  ;;  %v173_v1 = vld [vmem:[%s165_s21] sm:$0x7]  ;;  %v1130_v2 = vld [vmem:[%s165_s21 + $0xc] sm:$0x7] }
  0x10   : > { %v907_v3 = vcombine.low %v175_v0, %v175_v0  ;;  %v905_v4 = vcombine.low %v173_v1, %v173_v1  ;;  %v1134_v5 = vcombine.low %v1130_v2, %v1130_v2  ;;  %v1136_v6 = vld [vmem:[%s165_s21 + $0x4] sm:$0x7]  ;;  %v1138_v7 = vld [vmem:[%s165_s21 + $0x14] sm:$0x7]  ;;  %v1140_v8 = vld [vmem:[%s165_s21 + $0x10] sm:$0x7]  ;;  %v288_v44 = vsub.s32 %v285_v40, %v287_v41 }
  0x11   : > { %v1144_v9 = vcombine.low %v1136_v6, %v1136_v6  ;;  %v1148_v10 = vcombine.low %v1138_v7, %v1138_v7  ;;  %v1152_v11 = vcombine.low %v1140_v8, %v1140_v8 }
  0x12   : > { %v212_v12 = vshrl.u32 %v907_v3, 16  ;;  %v214_v13 = vshll.u32 %v907_v3, 16  ;;  %v198_v14 = vshrl.u32 %v905_v4, 16  ;;  %v200_v15 = vshll.u32 %v905_v4, 16 }
  0x13   : > { %v219_v16 = vshrl.u32 %v1134_v5, 16  ;;  %v221_v17 = vshll.u32 %v1134_v5, 16  ;;  %v207_v18 = vshll.u32 %v1144_v9, 16  ;;  %v205_v21 = vshrl.u32 %v1144_v9, 16 }
  0x14   : > { %v216_v19 = vrot.slane %v214_v13, 1  ;;  %v202_v20 = vrot.slane %v200_v15, 1  ;;  %v235_v22 = vshll.u32 %v1148_v10, 16  ;;  %v228_v25 = vshll.u32 %v1152_v11, 16 }
  0x15   : > { %v223_v23 = vrot.slane %v221_v17, 1  ;;  %v209_v24 = vrot.slane %v207_v18, 1  ;;  %v233_v28 = vshrl.u32 %v1148_v10, 16  ;;  %v226_v29 = vshrl.u32 %v1152_v11, 16 }
  0x16   : > { %v217_v26 = vor.u32 %v216_v19, %v212_v12  ;;  %v203_v27 = vor.u32 %v202_v20, %v198_v14  ;;  %v237_v32 = vrot.slane %v235_v22, 1  ;;  %v230_v33 = vrot.slane %v228_v25, 1 }
  0x17   : > { %v224_v30 = vor.u32 %v223_v23, %v219_v16  ;;  %v210_v31 = vor.u32 %v209_v24, %v205_v21  ;;  %v253_v42 = vrot.slane %v907_v3, 1  ;;  %v251_v43 = vrot.slane %v905_v4, 1 }
  0x18   : > { %243 = vrot.lane.b32.xlu1 %v217_v26, %s1091_s22  ;;  %239 = vrot.lane.b32.xlu0 %v203_v27, %s1091_s22  ;;  %v238_v35 = vor.u32 %v237_v32, %v233_v28  ;;  %v231_v36 = vor.u32 %v230_v33, %v226_v29  ;;  %v254_v51 = vrot.slane %v1134_v5, 1  ;;  %v252_v52 = vrot.slane %v1144_v9, 1 }
  0x19   : > { %v256_v62 = vrot.slane %v1148_v10, 1  ;;  %v255_v63 = vrot.slane %v1152_v11, 1 }
  0x1c   : > { %245 = vrot.lane.b32.xlu1 %v224_v30, %s1091_s22  ;;  %241 = vrot.lane.b32.xlu0 %v210_v31, %s1091_s22 }
  0x20   : > { %249 = vrot.lane.b32.xlu1 %v238_v35, %s1091_s22  ;;  %247 = vrot.lane.b32.xlu0 %v231_v36, %s1091_s22 }
  0x8a   : > { %v244_v45 = vpop.permute.xlu1 %243  ;;  %v240_v46 = vpop.permute.xlu0 %239 }
  0x8b   : > { %v266_v47 = vsel %vm257_vm0, %v175_v0, %v244_v45  ;;  %v260_v48 = vsel %vm257_vm0, %v173_v1, %v240_v46 }
  0x8c   : > { %v298_v49 = vcombine.low %v266_v47, %v253_v42  ;;  %v282_v50 = vcombine.low %v260_v48, %v251_v43 }
  0x8e   : > { %v305_v54 = vrot.slane %v298_v49, %v288_v44  ;;  %v289_v55 = vrot.slane %v282_v50, %v288_v44  ;;  %v246_v56 = vpop.permute.xlu1 %245  ;;  %v242_v57 = vpop.permute.xlu0 %241 }
  0x8f   : > { %v269_v58 = vsel %vm257_vm0, %v1130_v2, %v246_v56  ;;  %v263_v59 = vsel %vm257_vm0, %v1136_v6, %v242_v57 }
  0x90   : > { %341 = vst.msk [vmem:[#allocation2 + $0x8] sm:$0xf] %vm1171_vm3, %v305_v54  ;;  %339 = vst.msk [vmem:[#allocation2] sm:$0xf] %vm1171_vm3, %v289_v55  ;;  %v306_v60 = vcombine.low %v269_v58, %v254_v51  ;;  %v290_v61 = vcombine.low %v263_v59, %v252_v52 }
  0x92   : > { %v313_v0 = vrot.slane %v306_v60, %v288_v44  ;;  %v297_v1 = vrot.slane %v290_v61, %v288_v44  ;;  %v250_v3 = vpop.permute.xlu1 %249  ;;  %v248_v4 = vpop.permute.xlu0 %247 }
  0x93   : > { %v275_v2 = vsel %vm257_vm0, %v1138_v7, %v250_v3  ;;  %v272_v5 = vsel %vm257_vm0, %v1140_v8, %v248_v4 }
  0x94   : > { %342 = vst.msk [vmem:[#allocation2 + $0xc] sm:$0xf] %vm1171_vm3, %v313_v0  ;;  %340 = vst.msk [vmem:[#allocation2 + $0x4] sm:$0xf] %vm1171_vm3, %v297_v1  ;;  %v322_v6 = vcombine.low %v275_v2, %v256_v62  ;;  %v314_v9 = vcombine.low %v272_v5, %v255_v63 }
  0x96   : > { %v329_v10 = vrot.slane %v322_v6, %v288_v44  ;;  %v321_v11 = vrot.slane %v314_v9, %v288_v44 }
  0x98   : > { %344 = vst.msk [vmem:[#allocation2 + $0x14] sm:$0xf] %vm1171_vm3, %v329_v10  ;;  %343 = vst.msk [vmem:[#allocation2 + $0x10] sm:$0xf] %vm1171_vm3, %v321_v11 }
  0x99 LB: >> { %v1039_v7 = vld [vmem:[%s1365_s1 + $0x98] sm:$0xff]   ;;  %v1093_v8 = vmov 0   ;;  %v1041_v13 = vld [vmem:[%s1365_s1 + $0x90] sm:$0xff]   ;;  %v1043_v15 = vld [vmem:[%s1365_s1 + $0x88] sm:$0xff]   ;;  %s1012_s23 = sshll.u32 %s1089_s25, 2  ;;  %s1008_s28 = sshll.u32 %s1089_s25, 1  ;;  %s1089_s25 = sphi %s1197_s25, %s350_s25  }
  0x9a   : >> { %494 = vmatprep.subr.bf16.mxu0 %v1093_v8  ;;  %619 = vmatprep.subr.bf16.mxu1 %v1093_v8  ;;  %v1040_v12 = vld [vmem:[%s1365_s1 + $0x38] sm:$0xff]   ;;  %v1042_v14 = vld [vmem:[%s1365_s1 + $0x30] sm:$0xff]   ;;  %v1044_v16 = vld [vmem:[%s1365_s1 + $0x28] sm:$0xff]   ;;  %s1259_s4 = scalar_lea.vmem [#allocation2], %s1012_s23  ;;  %s825_s29 = scalar_lea.vmem %s1125_s18, %s1008_s28 }
  0x9b   : >> { %495 = vmatpush1.bf16.msra.mxu0 %v1039_v7  ;;  %620 = vmatpush1.bf16.msra.mxu1 %v1040_v12  ;;  %v1045_v17 = vld [vmem:[%s1365_s1 + $0x80] sm:$0xff]   ;;  %v1047_v19 = vld [vmem:[%s1365_s1 + $0x78] sm:$0xff]   ;;  %v1049_v21 = vld [vmem:[%s1365_s1 + $0x70] sm:$0xff]   ;;  %s350_s25 = sadd.s32 1, %s1089_s25  }
  0x9c   : >> { %496 = vmatprep.subr.bf16.mxu0 %v1093_v8  ;;  %621 = vmatprep.subr.bf16.mxu1 %v1093_v8  ;;  %v1046_v18 = vld [vmem:[%s1365_s1 + $0x20] sm:$0xff]   ;;  %v1048_v20 = vld [vmem:[%s1365_s1 + $0x18] sm:$0xff]   ;;  %v1050_v22 = vld [vmem:[%s1365_s1 + $0x10] sm:$0xff]   ;;  %p347_p4 = scmp.ge.s32.totalorder %s350_s25, 4  }
  0x9d   : >> { %v1051_v23 = vld [vmem:[%s1365_s1 + $0x68] sm:$0xff]   ;;  %v1053_v28 = vld [vmem:[%s1365_s1 + $0x60] sm:$0xff]   ;;  %v1055_v31 = vld [vmem:[%s1365_s1 + $0xb8] sm:$0xff]  }
  0x9e   : >> { %v1052_v24 = vld [vmem:[%s1365_s1 + $0x8] sm:$0xff]   ;;  %v1054_v30 = vld [vmem:[%s1365_s1] sm:$0xff]   ;;  %v1056_v32 = vld [vmem:[%s1365_s1 + $0x58] sm:$0xff]  }
  0x9f   : >> { %497 = vmatpush1.bf16.msra.mxu0 %v1041_v13  ;;  %622 = vmatpush1.bf16.msra.mxu1 %v1042_v14  ;;  %v939_v25 = vld.sshfl [vmem:[%s1259_s4 + $0x4] sm:$0x33 pattern:$0x76325410]  ;;  %v1057_v33 = vld [vmem:[%s1365_s1 + $0xb0] sm:$0xff]   ;;  %v1059_v36 = vld [vmem:[%s1365_s1 + $0xa8] sm:$0xff]  }
  0xa0   : >> { %498 = vmatprep.subr.bf16.mxu0 %v1093_v8  ;;  %623 = vmatprep.subr.bf16.mxu1 %v1093_v8  ;;  %v417_v26 = vcombine.high %v939_v25, %v939_v25  ;;  %v953_v27 = vld.sshfl [vmem:[%s1259_s4] sm:$0x33 pattern:$0x76325410]  ;;  %v1058_v35 = vld [vmem:[%s1365_s1 + $0x50] sm:$0xff]   ;;  %v1060_v37 = vld [vmem:[%s1365_s1 + $0x48] sm:$0xff]  }
  0xa1   : >> { %v542_v29 = vcombine.high %v953_v27, %v953_v27  ;;  %v1061_v38 = vld [vmem:[%s1365_s1 + $0xa0] sm:$0xff]   ;;  %v993_v40 = vld.sshfl [vmem:[%s1259_s4 + $0x8] sm:$0x33 pattern:$0x76325410]  ;;  %v1063_v41 = vld [vmem:[%s1365_s1 + $0xf8] sm:$0xff]  }
  0xa2   : >> { %952 = vmatprep.mubr.msk.bf16.mxu0 %vm257_vm0, %v417_v26  ;;  %v1062_v39 = vld [vmem:[%s1365_s1 + $0x40] sm:$0xff]   ;;  %v697_v42 = vcombine.high %v993_v40, %v993_v40  ;;  %v1064_v43 = vld [vmem:[%s1365_s1 + $0xf0] sm:$0xff]   ;;  %v1065_v44 = vld [vmem:[%s1365_s1 + $0xe8] sm:$0xff]  }
  0xa3   : >> { %499 = vmatpush1.bf16.msra.mxu0 %v1043_v15  ;;  %624 = vmatpush1.bf16.msra.mxu1 %v1044_v16  ;;  %v1066_v45 = vld [vmem:[%s1365_s1 + $0xe0] sm:$0xff]   ;;  %v1067_v46 = vld [vmem:[%s1365_s1 + $0xd8] sm:$0xff]   ;;  %v1068_v47 = vld [vmem:[%s1365_s1 + $0xd0] sm:$0xff]  }
  0xa4   : >> { %500 = vmatprep.subr.bf16.mxu0 %v1093_v8  ;;  %625 = vmatprep.subr.bf16.mxu1 %v1093_v8  ;;  %v1069_v48 = vld [vmem:[%s1365_s1 + $0xc8] sm:$0xff]   ;;  %v1070_v49 = vld [vmem:[%s1365_s1 + $0xc0] sm:$0xff]   ;;  %v1071_v50 = vld [vmem:[%s1365_s1 + $0x118] sm:$0xff]  }
  0xa5   : >> { %966 = vmatprep.mubr.msk.bf16.mxu1 %vm257_vm0, %v542_v29  ;;  %v1072_v51 = vld [vmem:[%s1365_s1 + $0x110] sm:$0xff]   ;;  %v1073_v52 = vld [vmem:[%s1365_s1 + $0x108] sm:$0xff]   ;;  %v1074_v53 = vld [vmem:[%s1365_s1 + $0x100] sm:$0xff]  }
  0xa7   : >> { %501 = vmatpush1.bf16.msra.mxu0 %v1045_v17  ;;  %626 = vmatpush1.bf16.msra.mxu1 %v1046_v18 }
  0xa8   : >> { %502 = vmatprep.subr.bf16.mxu0 %v1093_v8  ;;  %627 = vmatprep.subr.bf16.mxu1 %v1093_v8 }
  0xab   : >> { %503 = vmatpush1.bf16.msra.mxu0 %v1047_v19  ;;  %628 = vmatpush1.bf16.msra.mxu1 %v1048_v20 }
  0xac   : >> { %504 = vmatprep.subr.bf16.mxu0 %v1093_v8  ;;  %629 = vmatprep.subr.bf16.mxu1 %v1093_v8 }
  0xaf   : >> { %505 = vmatpush1.bf16.msra.mxu0 %v1049_v21  ;;  %630 = vmatpush1.bf16.msra.mxu1 %v1050_v22 }
  0xb0   : >> { %506 = vmatprep.subr.bf16.mxu0 %v1093_v8  ;;  %631 = vmatprep.subr.bf16.mxu1 %v1093_v8 }
  0xb3   : >> { %507 = vmatpush1.bf16.msra.mxu0 %v1051_v23  ;;  %632 = vmatpush1.bf16.msra.mxu1 %v1052_v24 }
  0xb4   : >> { %508 = vmatprep.subr.bf16.mxu0 %v1093_v8  ;;  %633 = vmatprep.subr.bf16.mxu1 %v1093_v8 }
  0xb7   : >> { %509 = vmatpush1.bf16.msra.mxu0 %v1053_v28  ;;  %634 = vmatpush1.bf16.msra.mxu1 %v1054_v30 }
  0xb8   : >> { %518 = vmatprep.subr.bf16.mxu0 %v1093_v8  ;;  %643 = vmatprep.subr.bf16.mxu1 %v1093_v8 }
  0xbb   : >> { %519 = vmatpush2.bf16.msra.mxu0 %v1055_v31  ;;  %644 = vmatpush2.bf16.msra.mxu1 %v1056_v32 }
  0xbc   : >> { %520 = vmatprep.subr.bf16.mxu0 %v1093_v8  ;;  %645 = vmatprep.subr.bf16.mxu1 %v1093_v8 }
  0xbf   : >> { %521 = vmatpush2.bf16.msra.mxu0 %v1057_v33  ;;  %646 = vmatpush2.bf16.msra.mxu1 %v1058_v35 }
  0xc0   : >> { %522 = vmatprep.subr.bf16.mxu0 %v1093_v8  ;;  %647 = vmatprep.subr.bf16.mxu1 %v1093_v8 }
  0xc3   : >> { %523 = vmatpush2.bf16.msra.mxu0 %v1059_v36  ;;  %648 = vmatpush2.bf16.msra.mxu1 %v1060_v37 }
  0xc4   : >> { %524 = vmatprep.subr.bf16.mxu0 %v1093_v8  ;;  %649 = vmatprep.subr.bf16.mxu1 %v1093_v8 }
  0xc7   : >> { %525 = vmatpush2.bf16.msra.mxu0 %v1061_v38  ;;  %650 = vmatpush2.bf16.msra.mxu1 %v1062_v39 }
  0xc8   : >> { %774 = vmatprep.subr.bf16.mxu0 %v1093_v8 }
  0xca   : >> { %527 = vmatmul.mubr.bf16.vlgmr.msra.gmra.mxu0 %v939_v25  ;;  %652 = vmatmul.mubr.bf16.vlgmr.msra.gmra.mxu1 %v953_v27 }
  0xcb   : >> { %775 = vmatpush1.bf16.msra.mxu0 %v1063_v41  ;;  %1006 = vmatprep.mubr.msk.bf16.mxu0 %vm257_vm0, %v697_v42 }
  0xcc   : >> { %776 = vmatprep.subr.bf16.mxu0 %v1093_v8 }
  0xcf   : >> { %777 = vmatpush1.bf16.msra.mxu0 %v1064_v43 }
  0xd0   : >> { %778 = vmatprep.subr.bf16.mxu0 %v1093_v8 }
  0xd3   : >> { %779 = vmatpush1.bf16.msra.mxu0 %v1065_v44 }
  0xd4   : >> { %780 = vmatprep.subr.bf16.mxu0 %v1093_v8 }
  0xd7   : >> { %781 = vmatpush1.bf16.msra.mxu0 %v1066_v45 }
  0xd8   : >> { %782 = vmatprep.subr.bf16.mxu0 %v1093_v8 }
  0xdb   : >> { %783 = vmatpush1.bf16.msra.mxu0 %v1067_v46 }
  0xdc   : >> { %784 = vmatprep.subr.bf16.mxu0 %v1093_v8 }
  0xdf   : >> { %785 = vmatpush1.bf16.msra.mxu0 %v1068_v47 }
  0xe0   : >> { %786 = vmatprep.subr.bf16.mxu0 %v1093_v8 }
  0xe3   : >> { %787 = vmatpush1.bf16.msra.mxu0 %v1069_v48 }
  0xe4   : >> { %788 = vmatprep.subr.bf16.mxu0 %v1093_v8 }
  0xe7   : >> { %789 = vmatpush1.bf16.msra.mxu0 %v1070_v49 }
  0xe8   : >> { %798 = vmatprep.subr.bf16.mxu0 %v1093_v8 }
  0xeb   : >> { %799 = vmatpush2.bf16.msra.mxu0 %v1071_v50 }
  0xec   : >> { %800 = vmatprep.subr.bf16.mxu0 %v1093_v8 }
  0xef   : >> { %801 = vmatpush2.bf16.msra.mxu0 %v1072_v51 }
  0xf0   : >> { %802 = vmatprep.subr.bf16.mxu0 %v1093_v8 }
  0xf3   : >> { %803 = vmatpush2.bf16.msra.mxu0 %v1073_v52 }
  0xf4   : >> { %804 = vmatprep.subr.bf16.mxu0 %v1093_v8 }
  0xf7   : >> { %805 = vmatpush2.bf16.msra.mxu0 %v1074_v53 }
  0xfa   : >> { %807 = vmatmul.mubr.bf16.vlgmr.msra.gmra.mxu0 %v993_v40 }
 0x18a   : >> { %v528_v54 = vpop.f32.mrf.mxu0  ;;  %v653_v55 = vpop.f32.mrf.mxu1 }
 0x18b   : >> { %v654_v62 = vadd.f32 %v653_v55, %v528_v54 }
 0x18c   : >> { %v530_v56 = vpop.f32.mrf.mxu0  ;;  %v655_v57 = vpop.f32.mrf.mxu1 }
 0x18e   : >> { %v531_v58 = vpop.f32.mrf.mxu0  ;;  %v656_v59 = vpop.f32.mrf.mxu1 }
 0x190   : >> { %v532_v60 = vpop.f32.mrf.mxu0  ;;  %v657_v61 = vpop.f32.mrf.mxu1 }
 0x1ba   : >> { %v808_v63 = vpop.f32.mrf.mxu0 }
 0x1bb   : >> { %v814_v0 = vadd.f32 %v808_v63, %v654_v62 }
 0x1bc   : >> { %v810_v1 = vpop.f32.mrf.mxu0 }
 0x1bd   : >> { %v821_v3 = vadd.f32 %v1165_v34, %v814_v0 }
 0x1be   : >> { %v811_v4 = vpop.f32.mrf.mxu0 }
 0x1bf   : >> { %v822_v2 = vmax.f32 %v821_v3, 0.0  ;;  %349 = sbr.rel (!%p347_p4) target bundleno = 153 (0x99), region = 75 }
 0x1c0   : >> { %v812_v5 = vpop.f32.mrf.mxu0 }
 0x1c1   : >> { %v823_v6 = vpack.c.bf16 %v822_v2, %v822_v2 }
 0x1c3   : >> { %826 = vst [vmem:[%s825_s29] sm:$0x3] %v823_v6 }
 0x1c4 PF: > { %s13_s12 = sadd.s32 1, %s1085_s12  }
 0x1c5   : > { %p10_p5 = scmp.ge.s32.totalorder %s13_s12, 4  }
 0x1c7   :  { %12 = sbr.rel (!%p10_p5) target bundleno = 1 (0x1), region = 86 }

// kernel: homography_forward.19
= control target key start
LH: loop header
LB: loop body
LE: loop exit
PB: predicated region body
PF: predicated region fallthrough
CT: control target
= control target key end

     0   :  { %8 = vsyncpa [#allocation4], 0  ;;  %s960_s12 = smov 0   ;;  %s962_s13 = smov 0   ;;  %s1062_s0 = inlined_call_operand.vmem [shape: bf16[2,1024], index: 0, kind: input, shape index: {}]   ;;  %s1063_s1 = inlined_call_operand.vmem [shape: bf16[1024,8], index: 1, kind: input, shape index: {}]   ;;  %s1064_s2 = inlined_call_operand.vmem [shape: f32[1,8], index: 2, kind: input, shape index: {}]   ;;  %s1065_s3 = inlined_call_operand.hbm [shape: f32[2,8], index: 3, kind: output, shape index: {}]  }
   0x1   :  { %s964_s14 = smov 0  }
   0x2 LB: > { %s728_s15 = sadd.s32 4294967295, %s935_s14   ;;  %s26_s16 = sadd.s32 1, %s931_s13  ;;  %s935_s14 = sphi %s964_s14, %s14_s14   ;;  %s931_s13 = sphi %s962_s13, %s1068_s13   ;;  %s927_s12 = sphi %s960_s12, %s1067_s12  }
   0x3   : > { %p27_p0 = scmp.ge.s32.totalorder %s26_s16, 2  ;;  %p732_p1 = scmp.ge.s32.totalorder %s935_s14, 1 }
   0x4   : > { %p189_p2 = scmp.lt.s32.totalorder %s935_s14, 3 }
   0x5   : > { %s1070_s16 = smov (%p27_p0, %s26_s16), 0 }
   0x6   : > { %p190_p3 = pnand %p732_p1, %p189_p2 }
   0x7   : > { %s733_s17 = sshll.u32 (!%p190_p3), %s927_s12, 2  ;;  %s734_s18 = sshll.u32 (!%p190_p3), %s927_s12, 6 }
   0x8   : > { %193 = sbr.rel (%p190_p3) target bundleno = 284 (0x11c), region = 32  ;;  %p225_p4 = scmp.lt.s32.totalorder (!%p190_p3), %s733_s17, 7 }
   0x9   : > { %p232_p5 = scmp.lt.s32.totalorder (!%p190_p3), %s734_s18, 127  ;;  %p736_p6 = scmp.ne.s32.totalorder (!%p190_p3), %s927_s12, 0 }
   0xd   : > { %s1072_s17 = smov (!%p225_p4, %s733_s17), 7  ;;  %s1074_s18 = smov (!%p232_p5, %s734_s18), 127 }
   0xe   : > { %s229_s21 = scalar_lea.vmem %s1062_s0, %s1072_s17  ;;  %s735_s22 = sshll.u32 %s1074_s18, 2 }
   0xf   : > { %s992_s25 = scalar_lea.vmem %s1063_s1, %s735_s22  ;;  %247 = sbr.rel (%p736_p6) target bundleno = 22 (0x16), region = 36 }
  0x14   : > { %vm248_vm0 = vcmask 58368   ;;  %v937_v0 = vmov 0.0  }
  0x15   : > { %249 = vst.msk [vmem:[#allocation2] sm:$0x3] %vm248_vm0, %v937_v0 }
  0x16 PF: > { %v853_v1 = vld [vmem:[%s992_s25 + $0x78] sm:$0xff]   ;;  %v857_v5 = vld [vmem:[%s992_s25 + $0x70] sm:$0xff]   ;;  %v861_v9 = vld [vmem:[%s992_s25 + $0x68] sm:$0xff]   ;;  %v328_v31 = vlaneseq  ;;  %v938_v35 = vmov 1966171168   ;;  %vm618_vm1 = vcmask 58368  }
  0x17   : > { %v854_v2 = vld [vmem:[%s992_s25 + $0xf8] sm:$0xff]   ;;  %776 = vmatprep.subr.bf16.mxu0 %v853_v1  ;;  %v858_v6 = vld [vmem:[%s992_s25 + $0xf0] sm:$0xff]   ;;  %v862_v10 = vld [vmem:[%s992_s25 + $0xe8] sm:$0xff]   ;;  %v326_v36 = vunpack.c.l.s4 %v938_v35  ;;  %p770_p7 = scmp.ne.s32.totalorder %s927_s12, 1 }
  0x18   : > { %v855_v3 = vld [vmem:[%s992_s25 + $0x38] sm:$0xff]   ;;  %798 = vmatprep.subr.bf16.mxu1 %v854_v2  ;;  %v859_v7 = vld [vmem:[%s992_s25 + $0x30] sm:$0xff]   ;;  %v863_v11 = vld [vmem:[%s992_s25 + $0x28] sm:$0xff]   ;;  %v329_v37 = vshrl.u32 %v328_v31, 7 }
  0x19   : > { %v856_v4 = vld [vmem:[%s992_s25 + $0xb8] sm:$0xff]   ;;  %777 = vmatpush3.bf16.msra.mxu0 %v855_v3  ;;  %v860_v8 = vld [vmem:[%s992_s25 + $0xb0] sm:$0xff]   ;;  %v864_v12 = vld [vmem:[%s992_s25 + $0xa8] sm:$0xff]   ;;  %v327_v39 = vunpack.c.0.s8 %v326_v36 }
  0x1a   : > { %799 = vmatpush3.bf16.msra.mxu1 %v856_v4  ;;  %778 = vmatprep.subr.bf16.mxu0 %v857_v5  ;;  %v865_v13 = vld [vmem:[%s992_s25 + $0x60] sm:$0xff]   ;;  %v869_v17 = vld [vmem:[%s992_s25 + $0x58] sm:$0xff]   ;;  %v873_v21 = vld [vmem:[%s992_s25 + $0x50] sm:$0xff]  }
  0x1b   : > { %800 = vmatprep.subr.bf16.mxu1 %v858_v6  ;;  %v866_v14 = vld [vmem:[%s992_s25 + $0xe0] sm:$0xff]   ;;  %v870_v18 = vld [vmem:[%s992_s25 + $0xd8] sm:$0xff]   ;;  %v874_v22 = vld [vmem:[%s992_s25 + $0xd0] sm:$0xff]   ;;  %v330_v40 = vsub.s32 %v327_v39, %v329_v37 }
  0x1c   : > { %v867_v15 = vld [vmem:[%s992_s25 + $0x20] sm:$0xff]   ;;  %v871_v19 = vld [vmem:[%s992_s25 + $0x18] sm:$0xff]   ;;  %v875_v23 = vld [vmem:[%s992_s25 + $0x10] sm:$0xff]  }
  0x1d   : > { %779 = vmatpush3.bf16.msra.mxu0 %v859_v7  ;;  %v868_v16 = vld [vmem:[%s992_s25 + $0xa0] sm:$0xff]   ;;  %v872_v20 = vld [vmem:[%s992_s25 + $0x98] sm:$0xff]   ;;  %v876_v24 = vld [vmem:[%s992_s25 + $0x90] sm:$0xff]  }
  0x1e   : > { %801 = vmatpush3.bf16.msra.mxu1 %v860_v8  ;;  %780 = vmatprep.subr.bf16.mxu0 %v861_v9  ;;  %v877_v25 = vld [vmem:[%s992_s25 + $0x48] sm:$0xff]   ;;  %v881_v29 = vld [vmem:[%s992_s25 + $0x40] sm:$0xff]  }
  0x1f   : > { %802 = vmatprep.subr.bf16.mxu1 %v862_v10  ;;  %v878_v26 = vld [vmem:[%s992_s25 + $0xc8] sm:$0xff]   ;;  %v882_v30 = vld [vmem:[%s992_s25 + $0xc0] sm:$0xff]  }
  0x20   : > { %v879_v27 = vld [vmem:[%s992_s25 + $0x8] sm:$0xff]   ;;  %v883_v32 = vld [vmem:[%s992_s25] sm:$0xff]  }
  0x21   : > { %781 = vmatpush3.bf16.msra.mxu0 %v863_v11  ;;  %v880_v28 = vld [vmem:[%s992_s25 + $0x88] sm:$0xff]   ;;  %v884_v33 = vld [vmem:[%s992_s25 + $0x80] sm:$0xff]  }
  0x22   : > { %803 = vmatpush3.bf16.msra.mxu1 %v864_v12  ;;  %782 = vmatprep.subr.bf16.mxu0 %v865_v13  ;;  %v737_v34 = vld.sshfl [vmem:[%s229_s21] sm:$0x33 pattern:$0x75316420] }
  0x23   : > { %804 = vmatprep.subr.bf16.mxu1 %v866_v14  ;;  %v324_v38 = vcombine.high %v737_v34, %v737_v34  ;;  %v331_v42 = vrot.slane %v737_v34, %v330_v40  ;;  %v250_v52 = vld [vmem:[#allocation2] sm:$0x3] }
  0x25   : > { %783 = vmatpush3.bf16.msra.mxu0 %v867_v15  ;;  %v338_v41 = vrot.slane %v324_v38, %v330_v40  ;;  %v339_v44 = vcombine.high %v331_v42, %v331_v42 }
  0x26   : > { %805 = vmatpush3.bf16.msra.mxu1 %v868_v16  ;;  %784 = vmatprep.subr.bf16.mxu0 %v869_v17 }
  0x27   : > { %806 = vmatprep.subr.bf16.mxu1 %v870_v18  ;;  %569 = vmatprep.mubr.bf16.mxu0 %v338_v41  ;;  %v340_v43 = vcombine.high %v338_v41, %v338_v41 }
  0x29   : > { %785 = vmatpush3.bf16.msra.mxu0 %v871_v19  ;;  %609 = vmatprep.mubr.bf16.mxu1 %v340_v43 }
  0x2a   : > { %807 = vmatpush3.bf16.msra.mxu1 %v872_v20  ;;  %786 = vmatprep.subr.bf16.mxu0 %v873_v21 }
  0x2b   : > { %808 = vmatprep.subr.bf16.mxu1 %v874_v22 }
  0x2d   : > { %787 = vmatpush3.bf16.msra.mxu0 %v875_v23 }
  0x2e   : > { %809 = vmatpush3.bf16.msra.mxu1 %v876_v24  ;;  %788 = vmatprep.subr.bf16.mxu0 %v877_v25 }
  0x2f   : > { %810 = vmatprep.subr.bf16.mxu1 %v878_v26 }
  0x31   : > { %789 = vmatpush3.bf16.msra.mxu0 %v879_v27 }
  0x32   : > { %811 = vmatpush3.bf16.msra.mxu1 %v880_v28  ;;  %790 = vmatprep.subr.bf16.mxu0 %v881_v29 }
  0x33   : > { %812 = vmatprep.subr.bf16.mxu1 %v882_v30 }
  0x35   : > { %791 = vmatpush3.bf16.msra.mxu0 %v883_v32 }
  0x36   : > { %813 = vmatpush3.bf16.msra.mxu1 %v884_v33 }
  0x38   : > { %570 = vmatmul.mubr.bf16.vlgmr.msra.gmra.mxu0 %v331_v42 }
  0x39   : > { %610 = vmatmul.mubr.bf16.vlgmr.msra.gmra.mxu1 %v339_v44 }
  0xf8   : > { %v792_v45 = vpop.f32.mrf.mxu0 }
  0xf9   : > { %v814_v46 = vpop.f32.mrf.mxu1 }
  0xfa   : > { %v793_v47 = vpop.f32.mrf.mxu0 }
  0xfb   : > { %v794_v48 = vadd.f32 %v793_v47, %v792_v45  ;;  %v815_v49 = vpop.f32.mrf.mxu1 }
  0xfc   : > { %v795_v50 = vpop.f32.mrf.mxu0  ;;  %v816_v51 = vadd.f32 %v815_v49, %v814_v46 }
  0xfd   : > { %v817_v53 = vpop.f32.mrf.mxu1 }
  0xfe   : > { %v796_v54 = vpop.f32.mrf.mxu0  ;;  %v612_v55 = vadd.f32 %v816_v51, %v794_v48  ;;  %623 = sbr.rel (%p770_p7) target bundleno = 269 (0x10d), region = 40 }
  0xff   : > { %v818_v56 = vpop.f32.mrf.mxu1 }
 0x100   : > { %v617_v57 = vadd.f32 %v612_v55, %v250_v52 }
 0x102   : > { %619 = vst.msk [vmem:[#allocation2] sm:$0x3] %vm618_vm1, %v617_v57 }
 0x103   : > { %v771_v59 = vld [vmem:[%s1064_s2] ss:$0 sm:$0xff] }
 0x109   : > { %v624_v58 = vld [vmem:[#allocation2] sm:$0x3] }
 0x10a   : > { %v632_v60 = vadd.f32 %v771_v59, %v624_v58 }
 0x10c   : > { %633 = vst.msk [vmem:[#allocation3] sm:$0x3] %vm618_vm1, %v632_v60 }
 0x10d PF: > { %p1038_p8 = scmp.eq.s32.totalorder %s728_s15, 1  ;;  %s939_s4 = smov [#allocation3]  }
 0x10e   : > { %s644_s5 = sshll.u32 %s939_s4, 4  ;;  %s645_s5 = int_to_ptr.vmem [resolvable:$true] %s644_s5 }
 0x10f   : > { %s885_s6 = scalar_lea.vmem %s645_s5, 32  ;;  %p892_p12 = scmp.lt.s32.totalorder %s645_s5, %s645_s5 }
 0x110   : > { %p886_p9 = scmp.ne.s32.totalorder %s645_s5, %s885_s6  ;;  %p893_p13 = scmp.lt.s32.totalorder %s885_s6, %s885_s6 }
 0x112   : > { %p887_p10 = pnand %p886_p9, %p1038_p8  ;;  %p894_p0 = por %p893_p13, %p892_p12 }
 0x114   : > { %p888_p11 = pneg %p887_p10 }
 0x116   : > { %p895_p1 = pnand %p894_p0, %p888_p11 }
 0x118   : > { %898 = shalt.err (!%p895_p1)
}
 0x119   : > { %821 = dma.vmem_to_hbm [thread:$0]  (%p1038_p8), %s645_s5, 32, %s1065_s3, [#allocation4]  }
 0x11a   : > { %922 = dma.done.wait (%p1038_p8), [#allocation4], 32  }
 0x11b   : > { %924 = vsyncadd (%p1038_p8), [#allocation4], 4294967264 }
 0x11c PF: > { %s14_s14 = sadd.s32 1, %s935_s14   ;;  %s1067_s12 = smov %s931_s13 }
 0x11d   : > { %p11_p2 = scmp.ge.s32.totalorder %s14_s14, 4   ;;  %s1068_s13 = smov %s1070_s16 }
 0x11f   :  { %13 = sbr.rel (!%p11_p2) target bundleno = 2 (0x2), region = 74 }
 0x124   :  { %657 = vsyncpa [#allocation4], 1 }
 0x125   :  { %659 = vsyncpa [#allocation4 + $0x1], 1 }

// kernel: homography_forward.16
= control target key start
LH: loop header
LB: loop body
LE: loop exit
PB: predicated region body
PF: predicated region fallthrough
CT: control target
= control target key end

     0   :  { %s1808_s12 = smov 0   ;;  %s2111_s0 = inlined_call_operand.vmem [shape: bf16[2,4,4,128], index: 0, kind: input, shape index: {}]   ;;  %s2112_s1 = inlined_call_operand.vmem [shape: bf16[3,384,128], index: 1, kind: input, shape index: {}]   ;;  %s2113_s2 = inlined_call_operand.vmem [shape: f32[1,128], index: 2, kind: input, shape index: {}]   ;;  %s2114_s3 = inlined_call_operand.vmem [shape: bf16[2,2,2,128], index: 3, kind: output, shape index: {}]  }
   0x1 LB: > { %s1334_s13 = sadd.s32 4294967295, %s1778_s12   ;;  %p1338_p0 = scmp.ge.s32.totalorder %s1778_s12, 1  ;;  %s1778_s12 = sphi %s1808_s12, %s13_s12  }
   0x2   : > { %p137_p1 = scmp.lt.s32.totalorder %s1778_s12, 3 }
   0x4   : > { %p138_p2 = pnand %p1338_p0, %p137_p1 }
   0x5   : > { %p160_p3 = scmp.lt.s32.totalorder (!%p138_p2), %s1334_s13, 1  ;;  %s1839_s24 = smov (!%p138_p2), 0  }
   0x6   : > { %141 = sbr.rel (%p138_p2) target bundleno = 342 (0x156), region = 32 }
   0xb   : > { %v1819_v0 = vld [vmem:[%s2113_s2] ss:$0 sm:$0xff]  ;;  %v182_v1 = vlaneseq  ;;  %v1784_v2 = vmov 1983009808   ;;  %s2116_s13 = smov (!%p160_p3, %s1334_s13), 1 }
   0xc   : > { %v180_v3 = vunpack.c.l.s4 %v1784_v2  ;;  %v1785_v5 = vmov 1966171168   ;;  %s1522_s16 = sshll.u32 %s2116_s13, 3  ;;  %s1341_s17 = sshll.u32 %s2116_s13, 1 }
   0xd   : > { %v183_v4 = vshrl.u32 %v182_v1, 7  ;;  %v241_v6 = vunpack.c.l.s4 %v1785_v5  ;;  %s164_s20 = scalar_lea.vmem %s2111_s0, %s1522_s16  ;;  %s1827_s23 = scalar_lea.vmem %s2114_s3, %s1341_s17 }
   0xe   : > { %v181_v7 = vunpack.c.0.s8 %v180_v3  ;;  %v171_v10 = vld [vmem:[%s164_s20] sm:$0x3]  ;;  %v172_v11 = vld [vmem:[%s164_s20 + $0x2] sm:$0x3]  ;;  %v173_v12 = vld [vmem:[%s164_s20 + $0x4] sm:$0x3] }
   0xf   : > { %v242_v9 = vunpack.c.0.s8 %v241_v6  ;;  %v174_v16 = vld [vmem:[%s164_s20 + $0x6] sm:$0x3] }
  0x10   : > { %v184_v8 = vsub.s32 %v181_v7, %v183_v4 }
  0x11   : > { %v1829_v20 = vsub.s32 %v242_v9, %v183_v4 }
  0x12   : > { %v185_v13 = vrot.slane %v171_v10, %v184_v8  ;;  %v192_v14 = vrot.slane %v172_v11, %v184_v8  ;;  %v199_v15 = vrot.slane %v173_v12, %v184_v8  ;;  %v206_v17 = vrot.slane %v174_v16, %v184_v8 }
  0x14   : > { %v208_v18 = vshrl.u32 %v185_v13, 16  ;;  %v210_v19 = vshll.u32 %v185_v13, 16  ;;  %v215_v21 = vshrl.u32 %v192_v14, 16  ;;  %v217_v22 = vshll.u32 %v192_v14, 16 }
  0x15   : > { %v222_v23 = vshrl.u32 %v199_v15, 16  ;;  %v224_v24 = vshll.u32 %v199_v15, 16  ;;  %v235_v26 = vrot.slane %v185_v13, 1  ;;  %v236_v27 = vrot.slane %v192_v14, 1 }
  0x16   : > { %v212_v25 = vrot.slane %v210_v19, 1  ;;  %v237_v28 = vrot.slane %v199_v15, 1  ;;  %v219_v29 = vrot.slane %v217_v22, 1  ;;  %v229_v31 = vshrl.u32 %v206_v17, 16 }
  0x17   : > { %v226_v30 = vrot.slane %v224_v24, 1  ;;  %v231_v32 = vshll.u32 %v206_v17, 16  ;;  %v238_v37 = vrot.slane %v206_v17, 1  ;;  %v253_v39 = vrot.slane %v235_v26, %v1829_v20 }
  0x18   : > { %v213_v33 = vor.u32 %v212_v25, %v208_v18  ;;  %v220_v34 = vor.u32 %v219_v29, %v215_v21  ;;  %v276_v40 = vrot.slane %v236_v27, %v1829_v20  ;;  %v299_v43 = vrot.slane %v237_v28, %v1829_v20 }
  0x19   : > { %v227_v35 = vor.u32 %v226_v30, %v222_v23  ;;  %v233_v36 = vrot.slane %v231_v32, 1  ;;  %v322_v49 = vrot.slane %v238_v37, %v1829_v20 }
  0x1a   : > { %v239_v38 = vcombine.low %v171_v10, %v213_v33  ;;  %v262_v41 = vcombine.low %v172_v11, %v220_v34 }
  0x1b   : > { %v285_v42 = vcombine.low %v173_v12, %v227_v35  ;;  %v234_v44 = vor.u32 %v233_v36, %v229_v31 }
  0x1c   : > { %v246_v45 = vrot.slane %v239_v38, %v1829_v20  ;;  %v269_v46 = vrot.slane %v262_v41, %v1829_v20 }
  0x1d   : > { %v292_v47 = vrot.slane %v285_v42, %v1829_v20  ;;  %v308_v48 = vcombine.low %v174_v16, %v234_v44 }
  0x1e   : > { %v254_v50 = vcombine.low %v246_v45, %v253_v39  ;;  %v277_v51 = vcombine.low %v269_v46, %v276_v40 }
  0x1f   : > { %v300_v52 = vcombine.low %v292_v47, %v299_v43  ;;  %v315_v53 = vrot.slane %v308_v48, %v1829_v20 }
  0x20   : > { %1342 = vst.sshfl [vmem:[#allocation2] sm:$0x15 pattern:$0x73625140] %v254_v50 }
  0x21   : > { %1343 = vst.sshfl [vmem:[#allocation2 + $0x3] sm:$0x15 pattern:$0x73625140] %v277_v51  ;;  %v323_v54 = vcombine.low %v315_v53, %v322_v49 }
  0x22   : > { %1344 = vst.sshfl [vmem:[#allocation2 + $0x6] sm:$0x15 pattern:$0x73625140] %v300_v52 }
  0x23   : > { %1345 = vst.sshfl [vmem:[#allocation2 + $0x9] sm:$0x15 pattern:$0x73625140] %v323_v54 }
  0x24 LB: >> { %v1696_v55 = vld [vmem:[%s2112_s1 + $0x138] sm:$0xff]   ;;  %v1786_v56 = vmov 0.0   ;;  %vm1787_vm0 = vmmov 0   ;;  %v1699_v59 = vld [vmem:[%s2112_s1 + $0x130] sm:$0xff]   ;;  %v1702_v62 = vld [vmem:[%s2112_s1 + $0x128] sm:$0xff]   ;;  %s345_s6 = smul.u32 3, %s1782_s24  ;;  %s1265_s30 = scalar_lea.vmem %s1827_s23, %s1782_s24  ;;  %s1782_s24 = sphi %s1839_s24, %s344_s24  }
  0x25   : >> { %1616 = vmatprep.subr.bf16.mxu1 %v1786_v56  ;;  %v1697_v57 = vld [vmem:[%s2112_s1 + $0x178] sm:$0xff]   ;;  %1523 = vmatprep.subr.bf16.mxu0 %v1696_v55  ;;  %v1700_v60 = vld [vmem:[%s2112_s1 + $0x170] sm:$0xff]   ;;  %v1703_v63 = vld [vmem:[%s2112_s1 + $0x168] sm:$0xff]   ;;  %s344_s24 = sadd.s32 1, %s1782_s24  }
  0x26   : >> { %v1698_v58 = vld [vmem:[%s2112_s1 + $0xf8] sm:$0xff]   ;;  %1632 = vmatprep.mubr.msk.bf16.mxu1 %vm1787_vm0, %v1786_v56  ;;  %1617 = vmatpush3.bf16.msra.mxu1 %v1697_v57  ;;  %v1701_v61 = vld [vmem:[%s2112_s1 + $0xf0] sm:$0xff]   ;;  %v1704_v1 = vld [vmem:[%s2112_s1 + $0xe8] sm:$0xff]   ;;  %s1917_s18 = scalar_lea.vmem [#allocation2], %s345_s6  ;;  %p341_p4 = scmp.ge.s32.totalorder %s344_s24, 2  }
  0x27   : >> { %1524 = vmatpush3.bf16.msra.mxu0 %v1698_v58  ;;  %1618 = vmatprep.subr.bf16.mxu1 %v1786_v56  ;;  %v1705_v2 = vld [vmem:[%s2112_s1 + $0x120] sm:$0xff]   ;;  %v1708_v5 = vld [vmem:[%s2112_s1 + $0x118] sm:$0xff]   ;;  %v1711_v8 = vld [vmem:[%s2112_s1 + $0x110] sm:$0xff]  }
  0x28   : >> { %1525 = vmatprep.subr.bf16.mxu0 %v1699_v59  ;;  %v1706_v3 = vld [vmem:[%s2112_s1 + $0x160] sm:$0xff]   ;;  %v1709_v6 = vld [vmem:[%s2112_s1 + $0x158] sm:$0xff]   ;;  %v1712_v9 = vld [vmem:[%s2112_s1 + $0x150] sm:$0xff]  }
  0x29   : >> { %v1707_v4 = vld [vmem:[%s2112_s1 + $0xe0] sm:$0xff]   ;;  %v1710_v7 = vld [vmem:[%s2112_s1 + $0xd8] sm:$0xff]   ;;  %v1713_v10 = vld [vmem:[%s2112_s1 + $0xd0] sm:$0xff]  }
  0x2a   : >> { %1619 = vmatpush3.bf16.msra.mxu1 %v1700_v60  ;;  %v1714_v11 = vld [vmem:[%s2112_s1 + $0x108] sm:$0xff]   ;;  %v1395_v14 = vld.sshfl [vmem:[%s1917_s18 + $0x3] sm:$0x13 pattern:$0x75316420]  ;;  %v1720_v22 = vld [vmem:[%s2112_s1 + $0x78] sm:$0xff]  }
  0x2b   : >> { %1526 = vmatpush3.bf16.msra.mxu0 %v1701_v61  ;;  %1620 = vmatprep.subr.bf16.mxu1 %v1786_v56  ;;  %v1715_v12 = vld [vmem:[%s2112_s1 + $0x148] sm:$0xff]   ;;  %v1717_v15 = vld [vmem:[%s2112_s1 + $0x100] sm:$0xff]   ;;  %v457_v16 = vcombine.high %v1395_v14, %v1395_v14  ;;  %v464_v17 = vrot.slane %v1395_v14, %v1829_v20  ;;  %v1721_v24 = vld [vmem:[%s2112_s1 + $0xb8] sm:$0xff]  }
  0x2c   : >> { %1527 = vmatprep.subr.bf16.mxu0 %v1702_v62  ;;  %v1716_v13 = vld [vmem:[%s2112_s1 + $0xc8] sm:$0xff]   ;;  %v1718_v18 = vld [vmem:[%s2112_s1 + $0x140] sm:$0xff]   ;;  %v1722_v25 = vld [vmem:[%s2112_s1 + $0x38] sm:$0xff]  }
  0x2d   : >> { %v471_v19 = vrot.slane %v457_v16, %v1829_v20  ;;  %v1719_v21 = vld [vmem:[%s2112_s1 + $0xc0] sm:$0xff]   ;;  %v472_v23 = vcombine.high %v464_v17, %v464_v17  ;;  %v1723_v26 = vld [vmem:[%s2112_s1 + $0x70] sm:$0xff]   ;;  %v1726_v29 = vld [vmem:[%s2112_s1 + $0x68] sm:$0xff]  }
  0x2e   : >> { %1621 = vmatpush3.bf16.msra.mxu1 %v1703_v63  ;;  %v1724_v27 = vld [vmem:[%s2112_s1 + $0xb0] sm:$0xff]   ;;  %v1727_v30 = vld [vmem:[%s2112_s1 + $0xa8] sm:$0xff]   ;;  %v1729_v32 = vld [vmem:[%s2112_s1 + $0x60] sm:$0xff]  }
  0x2f   : >> { %1528 = vmatpush3.bf16.msra.mxu0 %v1704_v1  ;;  %1622 = vmatprep.subr.bf16.mxu1 %v1786_v56  ;;  %v1725_v28 = vld [vmem:[%s2112_s1 + $0x30] sm:$0xff]   ;;  %v1728_v31 = vld [vmem:[%s2112_s1 + $0x28] sm:$0xff]   ;;  %v1730_v33 = vld [vmem:[%s2112_s1 + $0xa0] sm:$0xff]  }
  0x30   : >> { %1529 = vmatprep.subr.bf16.mxu0 %v1705_v2  ;;  %652 = vmatprep.mubr.bf16.mxu0 %v471_v19  ;;  %v1731_v34 = vld [vmem:[%s2112_s1 + $0x20] sm:$0xff]   ;;  %v1732_v35 = vld [vmem:[%s2112_s1 + $0x58] sm:$0xff]   ;;  %v1735_v38 = vld [vmem:[%s2112_s1 + $0x50] sm:$0xff]  }
  0x31   : >> { %v1733_v36 = vld [vmem:[%s2112_s1 + $0x98] sm:$0xff]   ;;  %v1420_v39 = vld.sshfl [vmem:[%s1917_s18] sm:$0x13 pattern:$0x75316420]  ;;  %v1736_v41 = vld [vmem:[%s2112_s1 + $0x90] sm:$0xff]  }
  0x32   : >> { %1623 = vmatpush3.bf16.msra.mxu1 %v1706_v3  ;;  %v1734_v37 = vld [vmem:[%s2112_s1 + $0x18] sm:$0xff]   ;;  %v708_v40 = vcombine.high %v1420_v39, %v1420_v39  ;;  %v1737_v42 = vld [vmem:[%s2112_s1 + $0x10] sm:$0xff]   ;;  %v1738_v44 = vld [vmem:[%s2112_s1 + $0x48] sm:$0xff]   ;;  %v715_v48 = vrot.slane %v1420_v39, %v1829_v20 }
  0x33   : >> { %1530 = vmatpush3.bf16.msra.mxu0 %v1707_v4  ;;  %1624 = vmatprep.subr.bf16.mxu1 %v1786_v56  ;;  %v1739_v45 = vld [vmem:[%s2112_s1 + $0x88] sm:$0xff]   ;;  %v1741_v47 = vld [vmem:[%s2112_s1 + $0x40] sm:$0xff]   ;;  %v1744_v51 = vld [vmem:[%s2112_s1 + $0x1f8] sm:$0xff]  }
  0x34   : >> { %1531 = vmatprep.subr.bf16.mxu0 %v1708_v5  ;;  %v722_v43 = vrot.slane %v708_v40, %v1829_v20  ;;  %v1740_v46 = vld [vmem:[%s2112_s1 + $0x8] sm:$0xff]   ;;  %v1742_v49 = vld [vmem:[%s2112_s1 + $0x80] sm:$0xff]   ;;  %v723_v52 = vcombine.high %v715_v48, %v715_v48  ;;  %v1745_v53 = vld [vmem:[%s2112_s1 + $0x238] sm:$0xff]  }
  0x35   : >> { %v1743_v50 = vld [vmem:[%s2112_s1] sm:$0xff]   ;;  %v1746_v54 = vld [vmem:[%s2112_s1 + $0x1b8] sm:$0xff]   ;;  %v1747_v55 = vld [vmem:[%s2112_s1 + $0x1f0] sm:$0xff]  }
  0x36   : >> { %1625 = vmatpush3.bf16.msra.mxu1 %v1709_v6  ;;  %v1748_v57 = vld [vmem:[%s2112_s1 + $0x230] sm:$0xff]   ;;  %v1750_v59 = vld [vmem:[%s2112_s1 + $0x1e8] sm:$0xff]   ;;  %v1753_v62 = vld [vmem:[%s2112_s1 + $0x1e0] sm:$0xff]  }
  0x37   : >> { %1532 = vmatpush3.bf16.msra.mxu0 %v1710_v7  ;;  %1626 = vmatprep.subr.bf16.mxu1 %v1786_v56  ;;  %v1749_v58 = vld [vmem:[%s2112_s1 + $0x1b0] sm:$0xff]   ;;  %v1751_v60 = vld [vmem:[%s2112_s1 + $0x228] sm:$0xff]   ;;  %v1754_v2 = vld [vmem:[%s2112_s1 + $0x220] sm:$0xff]  }
  0x38   : >> { %1533 = vmatprep.subr.bf16.mxu0 %v1711_v8  ;;  %v1752_v61 = vld [vmem:[%s2112_s1 + $0x1a8] sm:$0xff]   ;;  %v1755_v3 = vld [vmem:[%s2112_s1 + $0x1a0] sm:$0xff]   ;;  %v1756_v5 = vld [vmem:[%s2112_s1 + $0x1d8] sm:$0xff]  }
  0x39   : >> { %v1494_v63 = vld.sshfl [vmem:[%s1917_s18 + $0x6] sm:$0x13 pattern:$0x75316420]  ;;  %v1757_v6 = vld [vmem:[%s2112_s1 + $0x218] sm:$0xff]   ;;  %v1759_v8 = vld [vmem:[%s2112_s1 + $0x1d0] sm:$0xff]  }
  0x3a   : >> { %1627 = vmatpush3.bf16.msra.mxu1 %v1712_v9  ;;  %v1012_v1 = vcombine.high %v1494_v63, %v1494_v63  ;;  %v1758_v7 = vld [vmem:[%s2112_s1 + $0x198] sm:$0xff]   ;;  %v1760_v9 = vld [vmem:[%s2112_s1 + $0x210] sm:$0xff]   ;;  %v1765_v14 = vld [vmem:[%s2112_s1 + $0x1c0] sm:$0xff]  }
  0x3b   : >> { %1534 = vmatpush3.bf16.msra.mxu0 %v1713_v10  ;;  %1628 = vmatprep.subr.bf16.mxu1 %v1786_v56  ;;  %v1761_v10 = vld [vmem:[%s2112_s1 + $0x190] sm:$0xff]   ;;  %v1766_v16 = vld [vmem:[%s2112_s1 + $0x200] sm:$0xff]  }
  0x3c   : >> { %1535 = vmatprep.subr.bf16.mxu0 %v1714_v11  ;;  %v1026_v4 = vrot.slane %v1012_v1, %v1829_v20  ;;  %v1762_v11 = vld [vmem:[%s2112_s1 + $0x1c8] sm:$0xff]  }
  0x3e   : >> { %1629 = vmatpush3.bf16.msra.mxu1 %v1715_v12  ;;  %v1763_v12 = vld [vmem:[%s2112_s1 + $0x208] sm:$0xff]  }
  0x3f   : >> { %1536 = vmatpush3.bf16.msra.mxu0 %v1716_v13  ;;  %1630 = vmatprep.subr.bf16.mxu1 %v1786_v56  ;;  %v1764_v13 = vld [vmem:[%s2112_s1 + $0x188] sm:$0xff]  }
  0x40   : >> { %1537 = vmatprep.subr.bf16.mxu0 %v1717_v15  ;;  %v1019_v15 = vrot.slane %v1494_v63, %v1829_v20 }
  0x42   : >> { %1631 = vmatpush3.bf16.msra.mxu1 %v1718_v18  ;;  %v1027_v18 = vcombine.high %v1019_v15, %v1019_v15 }
  0x43   : >> { %1538 = vmatpush3.bf16.msra.mxu0 %v1719_v21  ;;  %1636 = vmatprep.subr.bf16.mxu1 %v1786_v56 }
  0x44   : >> { %1554 = vmatprep.subr.bf16.mxu0 %v1720_v22 }
  0x45   : >> { %1633 = vmatmul.mubr.bf16.vlgmr.msra.gmra.mxu1 %v472_v23 }
  0x46   : >> { %653 = vmatmul.mubr.bf16.vlgmr.msra.gmra.mxu0 %v464_v17  ;;  %1637 = vmatpush3.bf16.msra.mxu1 %v1721_v24  ;;  %v1767_v17 = vld [vmem:[%s2112_s1 + $0x180] sm:$0xff]  }
  0x47   : >> { %1555 = vmatpush3.bf16.msra.mxu0 %v1722_v25  ;;  %1638 = vmatprep.subr.bf16.mxu1 %v1786_v56 }
  0x48   : >> { %1556 = vmatprep.subr.bf16.mxu0 %v1723_v26  ;;  %1652 = vmatprep.mubr.msk.bf16.mxu1 %vm1787_vm0, %v1786_v56 }
  0x49   : >> { %903 = vmatprep.mubr.bf16.mxu0 %v722_v43 }
  0x4a   : >> { %1639 = vmatpush3.bf16.msra.mxu1 %v1724_v27 }
  0x4b   : >> { %1557 = vmatpush3.bf16.msra.mxu0 %v1725_v28  ;;  %1640 = vmatprep.subr.bf16.mxu1 %v1786_v56 }
  0x4c   : >> { %1558 = vmatprep.subr.bf16.mxu0 %v1726_v29 }
  0x4e   : >> { %1641 = vmatpush3.bf16.msra.mxu1 %v1727_v30 }
  0x4f   : >> { %1559 = vmatpush3.bf16.msra.mxu0 %v1728_v31  ;;  %1642 = vmatprep.subr.bf16.mxu1 %v1786_v56 }
  0x50   : >> { %1560 = vmatprep.subr.bf16.mxu0 %v1729_v32 }
  0x52   : >> { %1643 = vmatpush3.bf16.msra.mxu1 %v1730_v33 }
  0x53   : >> { %1561 = vmatpush3.bf16.msra.mxu0 %v1731_v34  ;;  %1644 = vmatprep.subr.bf16.mxu1 %v1786_v56 }
  0x54   : >> { %1562 = vmatprep.subr.bf16.mxu0 %v1732_v35 }
  0x56   : >> { %1645 = vmatpush3.bf16.msra.mxu1 %v1733_v36 }
  0x57   : >> { %1563 = vmatpush3.bf16.msra.mxu0 %v1734_v37  ;;  %1646 = vmatprep.subr.bf16.mxu1 %v1786_v56 }
  0x58   : >> { %1564 = vmatprep.subr.bf16.mxu0 %v1735_v38 }
  0x5a   : >> { %1647 = vmatpush3.bf16.msra.mxu1 %v1736_v41 }
  0x5b   : >> { %1565 = vmatpush3.bf16.msra.mxu0 %v1737_v42  ;;  %1648 = vmatprep.subr.bf16.mxu1 %v1786_v56 }
  0x5c   : >> { %1566 = vmatprep.subr.bf16.mxu0 %v1738_v44 }
  0x5e   : >> { %1649 = vmatpush3.bf16.msra.mxu1 %v1739_v45 }
  0x5f   : >> { %1567 = vmatpush3.bf16.msra.mxu0 %v1740_v46  ;;  %1650 = vmatprep.subr.bf16.mxu1 %v1786_v56 }
  0x60   : >> { %1568 = vmatprep.subr.bf16.mxu0 %v1741_v47 }
  0x62   : >> { %1651 = vmatpush3.bf16.msra.mxu1 %v1742_v49 }
  0x63   : >> { %1569 = vmatpush3.bf16.msra.mxu0 %v1743_v50  ;;  %1656 = vmatprep.subr.bf16.mxu1 %v1786_v56 }
  0x64   : >> { %1585 = vmatprep.subr.bf16.mxu0 %v1744_v51 }
  0x65   : >> { %1653 = vmatmul.mubr.bf16.vlgmr.msra.gmra.mxu1 %v723_v52 }
  0x66   : >> { %904 = vmatmul.mubr.bf16.vlgmr.msra.gmra.mxu0 %v715_v48  ;;  %1657 = vmatpush3.bf16.msra.mxu1 %v1745_v53 }
  0x67   : >> { %1586 = vmatpush3.bf16.msra.mxu0 %v1746_v54  ;;  %1658 = vmatprep.subr.bf16.mxu1 %v1786_v56 }
  0x68   : >> { %1587 = vmatprep.subr.bf16.mxu0 %v1747_v55  ;;  %1672 = vmatprep.mubr.msk.bf16.mxu1 %vm1787_vm0, %v1786_v56 }
  0x69   : >> { %1207 = vmatprep.mubr.bf16.mxu0 %v1026_v4 }
  0x6a   : >> { %1659 = vmatpush3.bf16.msra.mxu1 %v1748_v57 }
  0x6b   : >> { %1588 = vmatpush3.bf16.msra.mxu0 %v1749_v58  ;;  %1660 = vmatprep.subr.bf16.mxu1 %v1786_v56 }
  0x6c   : >> { %1589 = vmatprep.subr.bf16.mxu0 %v1750_v59 }
  0x6e   : >> { %1661 = vmatpush3.bf16.msra.mxu1 %v1751_v60 }
  0x6f   : >> { %1590 = vmatpush3.bf16.msra.mxu0 %v1752_v61  ;;  %1662 = vmatprep.subr.bf16.mxu1 %v1786_v56 }
  0x70   : >> { %1591 = vmatprep.subr.bf16.mxu0 %v1753_v62 }
  0x72   : >> { %1663 = vmatpush3.bf16.msra.mxu1 %v1754_v2 }
  0x73   : >> { %1592 = vmatpush3.bf16.msra.mxu0 %v1755_v3  ;;  %1664 = vmatprep.subr.bf16.mxu1 %v1786_v56 }
  0x74   : >> { %1593 = vmatprep.subr.bf16.mxu0 %v1756_v5 }
  0x76   : >> { %1665 = vmatpush3.bf16.msra.mxu1 %v1757_v6 }
  0x77   : >> { %1594 = vmatpush3.bf16.msra.mxu0 %v1758_v7  ;;  %1666 = vmatprep.subr.bf16.mxu1 %v1786_v56 }
  0x78   : >> { %1595 = vmatprep.subr.bf16.mxu0 %v1759_v8 }
  0x7a   : >> { %1667 = vmatpush3.bf16.msra.mxu1 %v1760_v9 }
  0x7b   : >> { %1596 = vmatpush3.bf16.msra.mxu0 %v1761_v10  ;;  %1668 = vmatprep.subr.bf16.mxu1 %v1786_v56 }
  0x7c   : >> { %1597 = vmatprep.subr.bf16.mxu0 %v1762_v11 }
  0x7e   : >> { %1669 = vmatpush3.bf16.msra.mxu1 %v1763_v12 }
  0x7f   : >> { %1598 = vmatpush3.bf16.msra.mxu0 %v1764_v13  ;;  %1670 = vmatprep.subr.bf16.mxu1 %v1786_v56 }
  0x80   : >> { %1599 = vmatprep.subr.bf16.mxu0 %v1765_v14 }
  0x82   : >> { %1671 = vmatpush3.bf16.msra.mxu1 %v1766_v16 }
  0x83   : >> { %1600 = vmatpush3.bf16.msra.mxu0 %v1767_v17 }
  0x85   : >> { %1673 = vmatmul.mubr.bf16.vlgmr.msra.gmra.mxu1 %v1027_v18 }
  0x86   : >> { %1208 = vmatmul.mubr.bf16.vlgmr.msra.gmra.mxu0 %v1019_v15 }
 0x105   : >> { %v694_v19 = vpop.f32.mrf.mxu1 }
 0x106   : >> { %v1539_v21 = vpop.f32.mrf.mxu0 }
 0x107   : >> { %v1634_v22 = vpop.f32.mrf.mxu1 }
 0x108   : >> { %v1540_v23 = vpop.f32.mrf.mxu0 }
 0x109   : >> { %v697_v24 = vpop.f32.mrf.mxu1  ;;  %v1541_v35 = vadd.f32 %v1540_v23, %v1539_v21 }
 0x10a   : >> { %v1542_v25 = vpop.f32.mrf.mxu0 }
 0x10b   : >> { %v1635_v26 = vpop.f32.mrf.mxu1  ;;  %v695_v37 = vadd.f32 %v1541_v35, %v694_v19 }
 0x10c   : >> { %v1543_v27 = vpop.f32.mrf.mxu0 }
 0x125   : >> { %v945_v28 = vpop.f32.mrf.mxu1 }
 0x126   : >> { %v1570_v56 = vpop.f32.mrf.mxu0 }
 0x127   : >> { %v1654_v29 = vpop.f32.mrf.mxu1 }
 0x128   : >> { %v1571_v30 = vpop.f32.mrf.mxu0 }
 0x129   : >> { %v948_v31 = vpop.f32.mrf.mxu1  ;;  %v1572_v36 = vadd.f32 %v1571_v30, %v1570_v56 }
 0x12a   : >> { %v1573_v32 = vpop.f32.mrf.mxu0 }
 0x12b   : >> { %v1655_v33 = vpop.f32.mrf.mxu1  ;;  %v906_v40 = vadd.f32 %v1572_v36, %v695_v37 }
 0x12c   : >> { %v1574_v34 = vpop.f32.mrf.mxu0 }
 0x12d   : >> { %v946_v46 = vadd.f32 %v945_v28, %v906_v40 }
 0x145   : >> { %v1249_v38 = vpop.f32.mrf.mxu1 }
 0x146   : >> { %v1601_v39 = vpop.f32.mrf.mxu0 }
 0x147   : >> { %v1674_v41 = vpop.f32.mrf.mxu1 }
 0x148   : >> { %v1602_v42 = vpop.f32.mrf.mxu0 }
 0x149   : >> { %v1603_v43 = vadd.f32 %v1602_v42, %v1601_v39  ;;  %v1252_v44 = vpop.f32.mrf.mxu1 }
 0x14a   : >> { %v1604_v45 = vpop.f32.mrf.mxu0 }
 0x14b   : >> { %v1250_v47 = vadd.f32 %v1603_v43, %v1249_v38  ;;  %v1675_v48 = vpop.f32.mrf.mxu1 }
 0x14c   : >> { %v1605_v49 = vpop.f32.mrf.mxu0 }
 0x14d   : >> { %v1255_v50 = vadd.f32 %v1250_v47, %v946_v46 }
 0x14f   : >> { %v1262_v51 = vadd.f32 %v1819_v0, %v1255_v50 }
 0x151   : >> { %v1263_v52 = vmax.f32 %v1262_v51, 0.0  ;;  %343 = sbr.rel (!%p341_p4) target bundleno = 36 (0x24), region = 75 }
 0x153   : >> { %v1264_v53 = vpack.c.bf16 %v1263_v52, %v1263_v52 }
 0x155   : >> { %1266 = vst [vmem:[%s1265_s30] sm:$0x1] %v1264_v53 }
 0x156 PF: > { %s13_s12 = sadd.s32 1, %s1778_s12  }
 0x157   : > { %p10_p5 = scmp.ge.s32.totalorder %s13_s12, 4  }
 0x159   :  { %12 = sbr.rel (!%p10_p5) target bundleno = 1 (0x1), region = 86 }

// kernel: homography_forward.15
= control target key start
LH: loop header
LB: loop body
LE: loop exit
PB: predicated region body
PF: predicated region fallthrough
CT: control target
= control target key end

     0   :  { %s2434_s12 = smov 0   ;;  %s3103_s0 = inlined_call_operand.vmem [shape: bf16[2,6,6,128], index: 0, kind: input, shape index: {}]   ;;  %s3104_s1 = inlined_call_operand.vmem [shape: bf16[3,384,128], index: 1, kind: input, shape index: {}]   ;;  %s3105_s2 = inlined_call_operand.vmem [shape: f32[1,128], index: 2, kind: input, shape index: {}]   ;;  %s3106_s3 = inlined_call_operand.vmem [shape: bf16[2,2,2,128], index: 3, kind: output, shape index: {}]  }
   0x1 LB: > { %s1768_s13 = sadd.s32 4294967295, %s2404_s12   ;;  %p1772_p0 = scmp.ge.s32.totalorder %s2404_s12, 1  ;;  %s2404_s12 = sphi %s2434_s12, %s13_s12  }
   0x2   : > { %p137_p1 = scmp.lt.s32.totalorder %s2404_s12, 3 }
   0x4   : > { %p138_p2 = pnand %p1772_p0, %p137_p1 }
   0x5   : > { %p160_p3 = scmp.lt.s32.totalorder (!%p138_p2), %s1768_s13, 1  ;;  %s2481_s24 = smov (!%p138_p2), 0  }
   0x6   : > { %141 = sbr.rel (%p138_p2) target bundleno = 640 (0x280), region = 32 }
   0xb   : > { %v2445_v0 = vld [vmem:[%s3105_s2] ss:$0 sm:$0xff]  ;;  %v247_v1 = vlaneseq  ;;  %v2410_v2 = vmov 1983009808   ;;  %s3169_s13 = smov (!%p160_p3, %s1768_s13), 1  ;;  %v2411_v10 = vmov 0.0  }
   0xc   : > { %3127 = vst [vmem:[#allocation3_spill] sm:$0xff] %v2445_v0  ;;  %v245_v3 = vunpack.c.l.s4 %v2410_v2  ;;  %s2291_s16 = smul.u32 24, %s3169_s13  ;;  %s1774_s17 = sshll.u32 %s3169_s13, 1 }
   0xd   : > { %v248_v4 = vshrl.u32 %v247_v1, 7  ;;  %v354_v5 = vand.u32 127, %v247_v1  ;;  %s2450_s20 = scalar_lea.vmem %s3106_s3, %s1774_s17 }
   0xe   : > { %v246_v6 = vunpack.c.0.s8 %v245_v3  ;;  %s2455_s23 = scalar_lea.vmem %s3103_s0, %s2291_s16 }
   0xf   : > { %v355_v7 = vmul.u32 2, %v248_v4  ;;  %v171_v9 = vld [vmem:[%s2455_s23] sm:$0x7]  ;;  %v172_v12 = vld [vmem:[%s2455_s23 + $0x4] sm:$0x7] }
  0x10   : > { %v1775_v13 = vcombine.low %v171_v9, %v171_v9  ;;  %v2461_v14 = vsub.s32 %v246_v6, %v248_v4  ;;  %v1776_v15 = vcombine.low %v172_v12, %v172_v12  ;;  %v173_v16 = vld [vmem:[%s2455_s23 + $0x8] sm:$0x7]  ;;  %v174_v17 = vld [vmem:[%s2455_s23 + $0xc] sm:$0x7]  ;;  %v175_v18 = vld [vmem:[%s2455_s23 + $0x10] sm:$0x7] }
  0x11   : > { %vm356_vm0 = vcmp.eq.s32.totalorder %v354_v5, %v355_v7  ;;  %v359_v8 = vadd.s32 1, %v355_v7  ;;  %v1777_v20 = vcombine.low %v173_v16, %v173_v16  ;;  %v1778_v21 = vcombine.low %v174_v17, %v174_v17  ;;  %v176_v38 = vld [vmem:[%s2455_s23 + $0x14] sm:$0x7] }
  0x12   : > { %v2458_v11 = vsel %vm356_vm0, 1.0, %v2411_v10  ;;  %v1779_v22 = vcombine.low %v175_v18, %v175_v18  ;;  %v196_v23 = vshrl.u32 %v1775_v13, 16  ;;  %v198_v24 = vshll.u32 %v1775_v13, 16 }
  0x13   : > { %3128 = vst [vmem:[#allocation4_spill] sm:$0xff] %v2458_v11  ;;  %vm360_vm1 = vcmp.eq.s32.totalorder %v354_v5, %v359_v8  ;;  %v237_v25 = vrot.slane %v1775_v13, 1  ;;  %v203_v26 = vshrl.u32 %v1776_v15, 16  ;;  %v205_v27 = vshll.u32 %v1776_v15, 16 }
  0x14   : > { %v2466_v19 = vsel %vm360_vm1, 1.0, %v2411_v10  ;;  %v238_v28 = vrot.slane %v1776_v15, 1  ;;  %v210_v29 = vshrl.u32 %v1777_v20, 16  ;;  %v212_v30 = vshll.u32 %v1777_v20, 16 }
  0x15   : > { %3129 = vst [vmem:[#allocation5_spill] sm:$0xff] %v2466_v19  ;;  %v200_v31 = vrot.slane %v198_v24, 1  ;;  %v257_v32 = vrot.slane %v237_v25, %v2461_v14  ;;  %v239_v33 = vrot.slane %v1777_v20, 1  ;;  %v207_v34 = vrot.slane %v205_v27, 1 }
  0x16   : > { %v214_v35 = vrot.slane %v212_v30, 1  ;;  %v217_v36 = vshrl.u32 %v1778_v21, 16  ;;  %v219_v37 = vshll.u32 %v1778_v21, 16  ;;  %v273_v40 = vrot.slane %v238_v28, %v2461_v14 }
  0x17   : > { %v201_v39 = vor.u32 %v200_v31, %v196_v23  ;;  %v240_v41 = vrot.slane %v1778_v21, 1  ;;  %v224_v42 = vshrl.u32 %v1779_v22, 16  ;;  %v208_v43 = vor.u32 %v207_v34, %v203_v26 }
  0x18   : > { %v215_v44 = vor.u32 %v214_v35, %v210_v29  ;;  %v221_v45 = vrot.slane %v219_v37, 1  ;;  %v226_v46 = vshll.u32 %v1779_v22, 16  ;;  %v289_v48 = vrot.slane %v239_v33, %v2461_v14 }
  0x19   : > { %v243_v47 = vcombine.low %v171_v9, %v201_v39  ;;  %v241_v49 = vrot.slane %v1779_v22, 1  ;;  %v1780_v50 = vcombine.low %v176_v38, %v176_v38  ;;  %v259_v51 = vcombine.low %v172_v12, %v208_v43 }
  0x1a   : > { %v275_v52 = vcombine.low %v173_v16, %v215_v44  ;;  %v222_v53 = vor.u32 %v221_v45, %v217_v36  ;;  %v228_v54 = vrot.slane %v226_v46, 1  ;;  %v305_v56 = vrot.slane %v240_v41, %v2461_v14 }
  0x1b   : > { %v250_v55 = vrot.slane %v243_v47, %v2461_v14  ;;  %v231_v57 = vshrl.u32 %v1780_v50, 16  ;;  %v233_v58 = vshll.u32 %v1780_v50, 16  ;;  %v266_v59 = vrot.slane %v259_v51, %v2461_v14 }
  0x1c   : > { %v282_v60 = vrot.slane %v275_v52, %v2461_v14  ;;  %v291_v61 = vcombine.low %v174_v17, %v222_v53  ;;  %v229_v62 = vor.u32 %v228_v54, %v224_v42  ;;  %v321_v1 = vrot.slane %v241_v49, %v2461_v14 }
  0x1d   : > { %v258_v63 = vcombine.low %v250_v55, %v257_v32  ;;  %v235_v2 = vrot.slane %v233_v58, 1  ;;  %v242_v3 = vrot.slane %v1780_v50, 1  ;;  %v274_v4 = vcombine.low %v266_v59, %v273_v40 }
  0x1e   : > { %v290_v5 = vcombine.low %v282_v60, %v289_v48  ;;  %v298_v6 = vrot.slane %v291_v61, %v2461_v14  ;;  %v307_v7 = vcombine.low %v175_v18, %v229_v62 }
  0x1f   : > { %345 = vst [vmem:[#allocation2] sm:$0x3f] %v258_v63  ;;  %v236_v8 = vor.u32 %v235_v2, %v231_v57  ;;  %346 = vst [vmem:[#allocation2 + $0x6] sm:$0x3f] %v274_v4  ;;  %v337_v13 = vrot.slane %v242_v3, %v2461_v14 }
  0x20   : > { %347 = vst [vmem:[#allocation2 + $0xc] sm:$0x3f] %v290_v5  ;;  %v306_v9 = vcombine.low %v298_v6, %v305_v56  ;;  %v314_v10 = vrot.slane %v307_v7, %v2461_v14 }
  0x21   : > { %v323_v12 = vcombine.low %v176_v38, %v236_v8 }
  0x22   : > { %348 = vst [vmem:[#allocation2 + $0x12] sm:$0x3f] %v306_v9  ;;  %v322_v15 = vcombine.low %v314_v10, %v321_v1 }
  0x23   : > { %v330_v16 = vrot.slane %v323_v12, %v2461_v14 }
  0x24   : > { %349 = vst [vmem:[#allocation2 + $0x18] sm:$0x3f] %v322_v15 }
  0x25   : > { %v338_v17 = vcombine.low %v330_v16, %v337_v13 }
  0x27   : > { %350 = vst [vmem:[#allocation2 + $0x1e] sm:$0x3f] %v338_v17 }
  0x28 LB: >> { %v2489_v18 = vld [vmem:[%s3104_s1 + $0x138] sm:$0xff]   ;;  %v3109_v20 = vmov 0.0   ;;  %vm2413_vm2 = vmmov 0   ;;  %v2509_v23 = vld [vmem:[%s3104_s1 + $0x130] sm:$0xff]   ;;  %v2527_v26 = vld [vmem:[%s3104_s1 + $0x128] sm:$0xff]   ;;  %s1970_s6 = smul.u32 12, %s2408_s24  ;;  %s2408_s24 = sphi %s2481_s24, %s368_s24  }
  0x29   : >> { %2161 = vmatprep.subr.bf16.mxu1 %v3109_v20  ;;  %v2495_v21 = vld [vmem:[%s3104_s1 + $0x178] sm:$0xff]   ;;  %1971 = vmatprep.subr.bf16.mxu0 %v2489_v18  ;;  %v2516_v24 = vld [vmem:[%s3104_s1 + $0x170] sm:$0xff]   ;;  %v2533_v27 = vld [vmem:[%s3104_s1 + $0x168] sm:$0xff]   ;;  %vm1544_vm3 = vcmask 1043456   ;;  %vm1540_vm4 = vcmask 31744  }
  0x2a   : >> { %v2501_v22 = vld [vmem:[%s3104_s1 + $0xf8] sm:$0xff]   ;;  %2177 = vmatprep.mubr.msk.bf16.mxu1 %vm2413_vm2, %v3109_v20  ;;  %2162 = vmatpush3.bf16.msra.mxu1 %v2495_v21  ;;  %v2522_v25 = vld [vmem:[%s3104_s1 + $0xf0] sm:$0xff]   ;;  %v2540_v28 = vld [vmem:[%s3104_s1 + $0xe8] sm:$0xff]   ;;  %s2619_s18 = scalar_lea.vmem [#allocation2], %s1970_s6 }
  0x2b   : >> { %1972 = vmatpush3.bf16.msra.mxu0 %v2501_v22  ;;  %2163 = vmatprep.subr.bf16.mxu1 %v3109_v20  ;;  %v2546_v29 = vld [vmem:[%s3104_s1 + $0x120] sm:$0xff]   ;;  %v2565_v32 = vld [vmem:[%s3104_s1 + $0x118] sm:$0xff]   ;;  %v2584_v35 = vld [vmem:[%s3104_s1 + $0x110] sm:$0xff]  }
  0x2c   : >> { %1973 = vmatprep.subr.bf16.mxu0 %v2509_v23  ;;  %v2552_v30 = vld [vmem:[%s3104_s1 + $0x160] sm:$0xff]   ;;  %v2571_v33 = vld [vmem:[%s3104_s1 + $0x158] sm:$0xff]   ;;  %v2591_v36 = vld [vmem:[%s3104_s1 + $0x150] sm:$0xff]  }
  0x2d   : >> { %v2559_v31 = vld [vmem:[%s3104_s1 + $0xe0] sm:$0xff]   ;;  %v2578_v34 = vld [vmem:[%s3104_s1 + $0xd8] sm:$0xff]   ;;  %v2598_v37 = vld [vmem:[%s3104_s1 + $0xd0] sm:$0xff]  }
  0x2e   : >> { %2164 = vmatpush3.bf16.msra.mxu1 %v2516_v24  ;;  %v2604_v38 = vld [vmem:[%s3104_s1 + $0x108] sm:$0xff]   ;;  %v2626_v42 = vld [vmem:[%s3104_s1 + $0x100] sm:$0xff]   ;;  %v2653_v48 = vld [vmem:[%s3104_s1 + $0x78] sm:$0xff]  }
  0x2f   : >> { %1974 = vmatpush3.bf16.msra.mxu0 %v2522_v25  ;;  %2165 = vmatprep.subr.bf16.mxu1 %v3109_v20  ;;  %v2609_v39 = vld [vmem:[%s3104_s1 + $0x148] sm:$0xff]   ;;  %v2635_v45 = vld [vmem:[%s3104_s1 + $0x140] sm:$0xff]   ;;  %v2662_v50 = vld [vmem:[%s3104_s1 + $0xb8] sm:$0xff]  }
  0x30   : >> { %1975 = vmatprep.subr.bf16.mxu0 %v2527_v26  ;;  %v2615_v40 = vld [vmem:[%s3104_s1 + $0xc8] sm:$0xff]   ;;  %v2646_v47 = vld [vmem:[%s3104_s1 + $0xc0] sm:$0xff]   ;;  %v2669_v51 = vld [vmem:[%s3104_s1 + $0x38] sm:$0xff]  }
  0x31   : >> { %v1788_v41 = vld [vmem:[%s2619_s18 + $0x6] sm:$0x3f]  ;;  %v2675_v52 = vld [vmem:[%s3104_s1 + $0x70] sm:$0xff]   ;;  %v2736_v61 = vld [vmem:[%s3104_s1 + $0x58] sm:$0xff]  }
  0x32   : >> { %2166 = vmatpush3.bf16.msra.mxu1 %v2533_v27  ;;  %v2629_v43 = vrot.slane %v1788_v41, %v2461_v14  ;;  %v477_v44 = vcombine.high %v1788_v41, %v1788_v41  ;;  %v2683_v53 = vld [vmem:[%s3104_s1 + $0xb0] sm:$0xff]   ;;  %v2696_v55 = vld [vmem:[%s3104_s1 + $0x68] sm:$0xff]   ;;  %v2717_v58 = vld [vmem:[%s3104_s1 + $0x60] sm:$0xff]  }
  0x33   : >> { %1976 = vmatpush3.bf16.msra.mxu0 %v2540_v28  ;;  %2167 = vmatprep.subr.bf16.mxu1 %v3109_v20  ;;  %v2690_v54 = vld [vmem:[%s3104_s1 + $0x30] sm:$0xff]   ;;  %v2704_v56 = vld [vmem:[%s3104_s1 + $0xa8] sm:$0xff]   ;;  %v2723_v59 = vld [vmem:[%s3104_s1 + $0xa0] sm:$0xff]  }
  0x34   : >> { %1977 = vmatprep.subr.bf16.mxu0 %v2546_v29  ;;  %v2639_v46 = vcombine.high %v2629_v43, %v2629_v43  ;;  %v2656_v49 = vrot.slane %v477_v44, %v2461_v14  ;;  %v2711_v57 = vld [vmem:[%s3104_s1 + $0x28] sm:$0xff]   ;;  %v2730_v60 = vld [vmem:[%s3104_s1 + $0x20] sm:$0xff]   ;;  %v2742_v62 = vld [vmem:[%s3104_s1 + $0x98] sm:$0xff]  }
  0x35   : >> { %v2749_v63 = vld [vmem:[%s3104_s1 + $0x18] sm:$0xff]   ;;  %v373_v1 = vld [vmem:[%s2619_s18] sm:$0x3f]  ;;  %v2756_v2 = vld [vmem:[%s3104_s1 + $0x50] sm:$0xff]  }
  0x36   : >> { %2168 = vmatpush3.bf16.msra.mxu1 %v2552_v30  ;;  %672 = vmatprep.mubr.bf16.mxu0 %v2639_v46  ;;  %v728_v3 = vrot.slane %v373_v1, %v2461_v14  ;;  %v2763_v4 = vld [vmem:[%s3104_s1 + $0x90] sm:$0xff]   ;;  %v2776_v7 = vld [vmem:[%s3104_s1 + $0x48] sm:$0xff]   ;;  %v2795_v10 = vld [vmem:[%s3104_s1 + $0x40] sm:$0xff]   ;;  %v721_v12 = vcombine.high %v373_v1, %v373_v1 }
  0x37   : >> { %1978 = vmatpush3.bf16.msra.mxu0 %v2559_v31  ;;  %2169 = vmatprep.subr.bf16.mxu1 %v3109_v20  ;;  %v2770_v6 = vld [vmem:[%s3104_s1 + $0x10] sm:$0xff]   ;;  %v2782_v8 = vld [vmem:[%s3104_s1 + $0x88] sm:$0xff]   ;;  %v2801_v13 = vld [vmem:[%s3104_s1 + $0x80] sm:$0xff]  }
  0x38   : >> { %1979 = vmatprep.subr.bf16.mxu0 %v2565_v32  ;;  %v736_v5 = vcombine.high %v728_v3, %v728_v3  ;;  %v2789_v9 = vld [vmem:[%s3104_s1 + $0x8] sm:$0xff]   ;;  %v2808_v15 = vld [vmem:[%s3104_s1] sm:$0xff]   ;;  %v2814_v16 = vld [vmem:[%s3104_s1 + $0x1f8] sm:$0xff]   ;;  %v735_v17 = vrot.slane %v721_v12, %v2461_v14 }
  0x39   : >> { %v2821_v41 = vld [vmem:[%s3104_s1 + $0x238] sm:$0xff]   ;;  %v2834_v1 = vld [vmem:[%s3104_s1 + $0x1f0] sm:$0xff]   ;;  %v2868_v19 = vld [vmem:[%s3104_s1 + $0x1a8] sm:$0xff]  }
  0x3a   : >> { %2170 = vmatpush3.bf16.msra.mxu1 %v2571_v33  ;;  %v2828_v44 = vld [vmem:[%s3104_s1 + $0x1b8] sm:$0xff]   ;;  %3131 = vst [vmem:[#allocation7_spill] sm:$0xff] %v2834_v1  ;;  %v2847_v12 = vld [vmem:[%s3104_s1 + $0x1b0] sm:$0xff]   ;;  %3136 = vst [vmem:[#allocation12_spill] sm:$0xff] %v2868_v19 }
  0x3b   : >> { %1980 = vmatpush3.bf16.msra.mxu0 %v2578_v34  ;;  %2171 = vmatprep.subr.bf16.mxu1 %v3109_v20  ;;  %3130 = vst [vmem:[#allocation6_spill] sm:$0xff] %v2828_v44  ;;  %3133 = vst [vmem:[#allocation9_spill] sm:$0xff] %v2847_v12  ;;  %v1887_v11 = vld [vmem:[%s2619_s18 + $0xc] sm:$0x3f]  ;;  %v2875_v0 = vld [vmem:[%s3104_s1 + $0x1e0] sm:$0xff]  }
  0x3c   : >> { %1981 = vmatprep.subr.bf16.mxu0 %v2584_v35  ;;  %3137 = vst [vmem:[#allocation13_spill] sm:$0xff] %v2875_v0 }
  0x3e   : >> { %2172 = vmatpush3.bf16.msra.mxu1 %v2591_v36 }
  0x3f   : >> { %1982 = vmatpush3.bf16.msra.mxu0 %v2598_v37  ;;  %2173 = vmatprep.subr.bf16.mxu1 %v3109_v20 }
  0x40   : >> { %1983 = vmatprep.subr.bf16.mxu0 %v2604_v38 }
  0x42   : >> { %2174 = vmatpush3.bf16.msra.mxu1 %v2609_v39 }
  0x43   : >> { %1984 = vmatpush3.bf16.msra.mxu0 %v2615_v40  ;;  %2175 = vmatprep.subr.bf16.mxu1 %v3109_v20 }
  0x44   : >> { %1985 = vmatprep.subr.bf16.mxu0 %v2626_v42 }
  0x46   : >> { %2176 = vmatpush3.bf16.msra.mxu1 %v2635_v45 }
  0x47   : >> { %1986 = vmatpush3.bf16.msra.mxu0 %v2646_v47  ;;  %2181 = vmatprep.subr.bf16.mxu1 %v3109_v20 }
  0x48   : >> { %2002 = vmatprep.subr.bf16.mxu0 %v2653_v48 }
  0x49   : >> { %2178 = vmatmul.mubr.bf16.vlgmr.msra.gmra.mxu1 %v2656_v49 }
  0x4a   : >> { %673 = vmatmul.mubr.bf16.vlgmr.msra.gmra.mxu0 %v2629_v43  ;;  %2182 = vmatpush3.bf16.msra.mxu1 %v2662_v50 }
  0x4b   : >> { %2003 = vmatpush3.bf16.msra.mxu0 %v2669_v51  ;;  %2183 = vmatprep.subr.bf16.mxu1 %v3109_v20 }
  0x4c   : >> { %2004 = vmatprep.subr.bf16.mxu0 %v2675_v52  ;;  %2197 = vmatprep.mubr.msk.bf16.mxu1 %vm2413_vm2, %v3109_v20 }
  0x4d   : >> { %916 = vmatprep.mubr.bf16.mxu0 %v736_v5  ;;  %v2840_v5 = vld [vmem:[%s3104_s1 + $0x230] sm:$0xff]  }
  0x4e   : >> { %2184 = vmatpush3.bf16.msra.mxu1 %v2683_v53  ;;  %3132 = vst [vmem:[#allocation8_spill] sm:$0xff] %v2840_v5 }
  0x4f   : >> { %2005 = vmatpush3.bf16.msra.mxu0 %v2690_v54  ;;  %2185 = vmatprep.subr.bf16.mxu1 %v3109_v20 }
  0x50   : >> { %2006 = vmatprep.subr.bf16.mxu0 %v2696_v55 }
  0x52   : >> { %2186 = vmatpush3.bf16.msra.mxu1 %v2704_v56 }
  0x53   : >> { %2007 = vmatpush3.bf16.msra.mxu0 %v2711_v57  ;;  %2187 = vmatprep.subr.bf16.mxu1 %v3109_v20 }
  0x54   : >> { %2008 = vmatprep.subr.bf16.mxu0 %v2717_v58 }
  0x56   : >> { %2188 = vmatpush3.bf16.msra.mxu1 %v2723_v59 }
  0x57   : >> { %2009 = vmatpush3.bf16.msra.mxu0 %v2730_v60  ;;  %2189 = vmatprep.subr.bf16.mxu1 %v3109_v20 }
  0x58   : >> { %2010 = vmatprep.subr.bf16.mxu0 %v2736_v61 }
  0x5a   : >> { %2190 = vmatpush3.bf16.msra.mxu1 %v2742_v62 }
  0x5b   : >> { %2011 = vmatpush3.bf16.msra.mxu0 %v2749_v63  ;;  %2191 = vmatprep.subr.bf16.mxu1 %v3109_v20 }
  0x5c   : >> { %2012 = vmatprep.subr.bf16.mxu0 %v2756_v2 }
  0x5e   : >> { %2192 = vmatpush3.bf16.msra.mxu1 %v2763_v4 }
  0x5f   : >> { %2013 = vmatpush3.bf16.msra.mxu0 %v2770_v6  ;;  %2193 = vmatprep.subr.bf16.mxu1 %v3109_v20 }
  0x60   : >> { %2014 = vmatprep.subr.bf16.mxu0 %v2776_v7 }
  0x62   : >> { %2194 = vmatpush3.bf16.msra.mxu1 %v2782_v8 }
  0x63   : >> { %2015 = vmatpush3.bf16.msra.mxu0 %v2789_v9  ;;  %2195 = vmatprep.subr.bf16.mxu1 %v3109_v20 }
  0x64   : >> { %2016 = vmatprep.subr.bf16.mxu0 %v2795_v10 }
  0x66   : >> { %2196 = vmatpush3.bf16.msra.mxu1 %v2801_v13 }
  0x67   : >> { %2017 = vmatpush3.bf16.msra.mxu0 %v2808_v15  ;;  %2201 = vmatprep.subr.bf16.mxu1 %v3109_v20 }
  0x68   : >> { %2033 = vmatprep.subr.bf16.mxu0 %v2814_v16 }
  0x69   : >> { %2198 = vmatmul.mubr.bf16.vlgmr.msra.gmra.mxu1 %v735_v17  ;;  %v2861_v17 = vld [vmem:[%s3104_s1 + $0x228] sm:$0xff]  }
  0x6a   : >> { %917 = vmatmul.mubr.bf16.vlgmr.msra.gmra.mxu0 %v728_v3  ;;  %2202 = vmatpush3.bf16.msra.mxu1 %v2821_v41  ;;  %v2853_v3 = vld [vmem:[%s3104_s1 + $0x1e8] sm:$0xff]   ;;  %3135 = vst [vmem:[#allocation11_spill] sm:$0xff] %v2861_v17 }
  0x6b   : >> { %2034 = vmatpush3.bf16.msra.mxu0 %v2828_v44  ;;  %2203 = vmatprep.subr.bf16.mxu1 %v3109_v20  ;;  %3134 = vst [vmem:[#allocation10_spill] sm:$0xff] %v2853_v3  ;;  %v1019_v44 = vcombine.high %v1887_v11, %v1887_v11 }
  0x6c   : >> { %2035 = vmatprep.subr.bf16.mxu0 %v2834_v1  ;;  %2217 = vmatprep.mubr.msk.bf16.mxu1 %vm2413_vm2, %v3109_v20  ;;  %v2893_v1 = vld [vmem:[%s3104_s1 + $0x1a0] sm:$0xff]  }
  0x6d   : >> { %3140 = vst [vmem:[#allocation15_spill] sm:$0xff] %v2893_v1 }
  0x6e   : >> { %2204 = vmatpush3.bf16.msra.mxu1 %v2840_v5  ;;  %v2878_v5 = vrot.slane %v1887_v11, %v2461_v14  ;;  %v1033_v11 = vrot.slane %v1019_v44, %v2461_v14 }
  0x6f   : >> { %2036 = vmatpush3.bf16.msra.mxu0 %v2847_v12  ;;  %2205 = vmatprep.subr.bf16.mxu1 %v3109_v20  ;;  %v2884_v20 = vld [vmem:[%s3104_s1 + $0x220] sm:$0xff]  }
  0x70   : >> { %2037 = vmatprep.subr.bf16.mxu0 %v2853_v3  ;;  %3138 = vst [vmem:[#allocation14_spill] sm:$0xff] %v2884_v20  ;;  %v1034_v12 = vcombine.high %v2878_v5, %v2878_v5  ;;  %v3139_v3 = vmov 0.0  }
  0x72   : >> { %2206 = vmatpush3.bf16.msra.mxu1 %v2861_v17  ;;  %v2899_v17 = vld [vmem:[%s3104_s1 + $0x1d8] sm:$0xff]   ;;  %1214 = vmatprep.mubr.bf16.mxu0 %v1034_v12 }
  0x73   : >> { %2038 = vmatpush3.bf16.msra.mxu0 %v2868_v19  ;;  %2207 = vmatprep.subr.bf16.mxu1 %v3139_v3  ;;  %3141 = vst [vmem:[#allocation16_spill] sm:$0xff] %v2899_v17  ;;  %v2905_v19 = vld [vmem:[%s3104_s1 + $0x218] sm:$0xff]  }
  0x74   : >> { %2039 = vmatprep.subr.bf16.mxu0 %v2875_v0  ;;  %3142 = vst [vmem:[#allocation17_spill] sm:$0xff] %v2905_v19  ;;  %v2912_v0 = vld [vmem:[%s3104_s1 + $0x198] sm:$0xff]  }
  0x75   : >> { %3143 = vst [vmem:[#allocation18_spill] sm:$0xff] %v2912_v0 }
  0x76   : >> { %2208 = vmatpush3.bf16.msra.mxu1 %v2884_v20  ;;  %v2918_v20 = vld [vmem:[%s3104_s1 + $0x1d0] sm:$0xff]  }
  0x77   : >> { %2040 = vmatpush3.bf16.msra.mxu0 %v2893_v1  ;;  %2209 = vmatprep.subr.bf16.mxu1 %v3139_v3  ;;  %3144 = vst [vmem:[#allocation19_spill] sm:$0xff] %v2918_v20  ;;  %v2924_v1 = vld [vmem:[%s3104_s1 + $0x210] sm:$0xff]  }
  0x78   : >> { %2041 = vmatprep.subr.bf16.mxu0 %v2899_v17  ;;  %3145 = vst [vmem:[#allocation20_spill] sm:$0xff] %v2924_v1  ;;  %v2931_v17 = vld [vmem:[%s3104_s1 + $0x190] sm:$0xff]  }
  0x79   : >> { %3146 = vst [vmem:[#allocation21_spill] sm:$0xff] %v2931_v17 }
  0x7a   : >> { %2210 = vmatpush3.bf16.msra.mxu1 %v2905_v19  ;;  %v2937_v19 = vld [vmem:[%s3104_s1 + $0x1c8] sm:$0xff]  }
  0x7b   : >> { %2042 = vmatpush3.bf16.msra.mxu0 %v2912_v0  ;;  %2211 = vmatprep.subr.bf16.mxu1 %v3139_v3  ;;  %3147 = vst [vmem:[#allocation22_spill] sm:$0xff] %v2937_v19  ;;  %v2943_v0 = vld [vmem:[%s3104_s1 + $0x208] sm:$0xff]  }
  0x7c   : >> { %2043 = vmatprep.subr.bf16.mxu0 %v2918_v20  ;;  %v2950_v20 = vld [vmem:[%s3104_s1 + $0x188] sm:$0xff]  }
  0x7e   : >> { %2212 = vmatpush3.bf16.msra.mxu1 %v2924_v1  ;;  %v2956_v1 = vld [vmem:[%s3104_s1 + $0x1c0] sm:$0xff]  }
  0x7f   : >> { %2044 = vmatpush3.bf16.msra.mxu0 %v2931_v17  ;;  %2213 = vmatprep.subr.bf16.mxu1 %v3139_v3  ;;  %v2962_v17 = vld [vmem:[%s3104_s1 + $0x200] sm:$0xff]  }
  0x80   : >> { %2045 = vmatprep.subr.bf16.mxu0 %v2937_v19  ;;  %v2969_v19 = vld [vmem:[%s3104_s1 + $0x180] sm:$0xff]  }
  0x82   : >> { %2214 = vmatpush3.bf16.msra.mxu1 %v2943_v0 }
  0x83   : >> { %2046 = vmatpush3.bf16.msra.mxu0 %v2950_v20  ;;  %2215 = vmatprep.subr.bf16.mxu1 %v3139_v3 }
  0x84   : >> { %2047 = vmatprep.subr.bf16.mxu0 %v2956_v1 }
  0x86   : >> { %2216 = vmatpush3.bf16.msra.mxu1 %v2962_v17 }
  0x87   : >> { %2048 = vmatpush3.bf16.msra.mxu0 %v2969_v19  ;;  %2221 = vmatprep.subr.bf16.mxu1 %v3139_v3 }
  0x88   : >> { %2064 = vmatprep.subr.bf16.mxu0 %v2489_v18  ;;  %v1963_v18 = vld [vmem:[%s2619_s18 + $0x12] sm:$0x3f]  ;;  %s1693_s18 = scalar_lea.vmem %s2450_s20, %s2408_s24  ;;  %s368_s24 = sadd.s32 1, %s2408_s24  }
  0x89   : >> { %2218 = vmatmul.mubr.bf16.vlgmr.msra.gmra.mxu1 %v1033_v11  ;;  %p365_p4 = scmp.ge.s32.totalorder %s368_s24, 2  }
  0x8a   : >> { %1215 = vmatmul.mubr.bf16.vlgmr.msra.gmra.mxu0 %v2878_v5  ;;  %2222 = vmatpush3.bf16.msra.mxu1 %v2495_v21  ;;  %v1444_v21 = vrot.slane %v1963_v18, %v2461_v14 }
  0x8b   : >> { %2065 = vmatpush3.bf16.msra.mxu0 %v2501_v22  ;;  %2223 = vmatprep.subr.bf16.mxu1 %v3139_v3 }
  0x8c   : >> { %2066 = vmatprep.subr.bf16.mxu0 %v2509_v23  ;;  %2237 = vmatprep.mubr.msk.bf16.mxu1 %vm2413_vm2, %v3139_v3  ;;  %v1452_v22 = vcombine.high %v1444_v21, %v1444_v21  ;;  %v3148_v23 = vld [vmem:[#allocation6_spill] sm:$0xff] }
  0x8d   : >> { %1303 = vmatprep.mubr.bf16.mxu0 %v1034_v12 }
  0x8e   : >> { %2224 = vmatpush3.bf16.msra.mxu1 %v2516_v24  ;;  %v3149_v24 = vld [vmem:[#allocation7_spill] sm:$0xff] }
  0x8f   : >> { %2067 = vmatpush3.bf16.msra.mxu0 %v2522_v25  ;;  %2225 = vmatprep.subr.bf16.mxu1 %v3139_v3  ;;  %v3150_v25 = vld [vmem:[#allocation8_spill] sm:$0xff] }
  0x90   : >> { %2068 = vmatprep.subr.bf16.mxu0 %v2527_v26  ;;  %v3151_v26 = vld [vmem:[#allocation9_spill] sm:$0xff] }
  0x92   : >> { %2226 = vmatpush3.bf16.msra.mxu1 %v2533_v27  ;;  %v3152_v27 = vld [vmem:[#allocation10_spill] sm:$0xff] }
  0x93   : >> { %2069 = vmatpush3.bf16.msra.mxu0 %v2540_v28  ;;  %2227 = vmatprep.subr.bf16.mxu1 %v3139_v3  ;;  %v3153_v28 = vld [vmem:[#allocation11_spill] sm:$0xff] }
  0x94   : >> { %2070 = vmatprep.subr.bf16.mxu0 %v2546_v29  ;;  %v3154_v29 = vld [vmem:[#allocation12_spill] sm:$0xff] }
  0x96   : >> { %2228 = vmatpush3.bf16.msra.mxu1 %v2552_v30  ;;  %v3155_v30 = vld [vmem:[#allocation13_spill] sm:$0xff] }
  0x97   : >> { %2071 = vmatpush3.bf16.msra.mxu0 %v2559_v31  ;;  %2229 = vmatprep.subr.bf16.mxu1 %v3139_v3  ;;  %v3156_v31 = vld [vmem:[#allocation14_spill] sm:$0xff] }
  0x98   : >> { %2072 = vmatprep.subr.bf16.mxu0 %v2565_v32  ;;  %v3157_v32 = vld [vmem:[#allocation15_spill] sm:$0xff] }
  0x9a   : >> { %2230 = vmatpush3.bf16.msra.mxu1 %v2571_v33  ;;  %v3158_v33 = vld [vmem:[#allocation16_spill] sm:$0xff] }
  0x9b   : >> { %2073 = vmatpush3.bf16.msra.mxu0 %v2578_v34  ;;  %2231 = vmatprep.subr.bf16.mxu1 %v3139_v3  ;;  %v3159_v34 = vld [vmem:[#allocation17_spill] sm:$0xff] }
  0x9c   : >> { %2074 = vmatprep.subr.bf16.mxu0 %v2584_v35  ;;  %v3160_v35 = vld [vmem:[#allocation18_spill] sm:$0xff] }
  0x9e   : >> { %2232 = vmatpush3.bf16.msra.mxu1 %v2591_v36  ;;  %v3161_v36 = vld [vmem:[#allocation19_spill] sm:$0xff] }
  0x9f   : >> { %2075 = vmatpush3.bf16.msra.mxu0 %v2598_v37  ;;  %2233 = vmatprep.subr.bf16.mxu1 %v3139_v3  ;;  %v3162_v37 = vld [vmem:[#allocation20_spill] sm:$0xff] }
  0xa0   : >> { %2076 = vmatprep.subr.bf16.mxu0 %v2604_v38  ;;  %v3163_v38 = vld [vmem:[#allocation21_spill] sm:$0xff] }
  0xa2   : >> { %2234 = vmatpush3.bf16.msra.mxu1 %v2609_v39  ;;  %v3164_v39 = vld [vmem:[#allocation22_spill] sm:$0xff] }
  0xa3   : >> { %2077 = vmatpush3.bf16.msra.mxu0 %v2615_v40  ;;  %2235 = vmatprep.subr.bf16.mxu1 %v3139_v3  ;;  %v1437_v40 = vcombine.high %v1963_v18, %v1963_v18 }
  0xa4   : >> { %2078 = vmatprep.subr.bf16.mxu0 %v2626_v42 }
  0xa5   : >> { %v1451_v42 = vrot.slane %v1437_v40, %v2461_v14 }
  0xa6   : >> { %2236 = vmatpush3.bf16.msra.mxu1 %v2635_v45 }
  0xa7   : >> { %2079 = vmatpush3.bf16.msra.mxu0 %v2646_v47  ;;  %2241 = vmatprep.subr.bf16.mxu1 %v3139_v3 }
  0xa8   : >> { %2095 = vmatprep.subr.bf16.mxu0 %v2653_v48 }
  0xa9   : >> { %2238 = vmatmul.mubr.bf16.vlgmr.msra.gmra.mxu1 %v1033_v11 }
  0xaa   : >> { %1304 = vmatmul.mubr.bf16.vlgmr.msra.gmra.mxu0 %v2878_v5  ;;  %2242 = vmatpush3.bf16.msra.mxu1 %v2662_v50 }
  0xab   : >> { %2096 = vmatpush3.bf16.msra.mxu0 %v2669_v51  ;;  %2243 = vmatprep.subr.bf16.mxu1 %v3139_v3 }
  0xac   : >> { %2097 = vmatprep.subr.bf16.mxu0 %v2675_v52  ;;  %2257 = vmatprep.mubr.msk.bf16.mxu1 %vm2413_vm2, %v3139_v3 }
  0xad   : >> { %1383 = vmatprep.mubr.bf16.mxu0 %v2639_v46 }
  0xae   : >> { %2244 = vmatpush3.bf16.msra.mxu1 %v2683_v53 }
  0xaf   : >> { %2098 = vmatpush3.bf16.msra.mxu0 %v2690_v54  ;;  %2245 = vmatprep.subr.bf16.mxu1 %v3139_v3 }
  0xb0   : >> { %2099 = vmatprep.subr.bf16.mxu0 %v2696_v55 }
  0xb2   : >> { %2246 = vmatpush3.bf16.msra.mxu1 %v2704_v56 }
  0xb3   : >> { %2100 = vmatpush3.bf16.msra.mxu0 %v2711_v57  ;;  %2247 = vmatprep.subr.bf16.mxu1 %v3139_v3 }
  0xb4   : >> { %2101 = vmatprep.subr.bf16.mxu0 %v2717_v58 }
  0xb6   : >> { %2248 = vmatpush3.bf16.msra.mxu1 %v2723_v59 }
  0xb7   : >> { %2102 = vmatpush3.bf16.msra.mxu0 %v2730_v60  ;;  %2249 = vmatprep.subr.bf16.mxu1 %v3139_v3 }
  0xb8   : >> { %2103 = vmatprep.subr.bf16.mxu0 %v2736_v61 }
  0xba   : >> { %2250 = vmatpush3.bf16.msra.mxu1 %v2742_v62 }
  0xbb   : >> { %2104 = vmatpush3.bf16.msra.mxu0 %v2749_v63  ;;  %2251 = vmatprep.subr.bf16.mxu1 %v3139_v3 }
  0xbc   : >> { %2105 = vmatprep.subr.bf16.mxu0 %v2756_v2 }
  0xbe   : >> { %2252 = vmatpush3.bf16.msra.mxu1 %v2763_v4 }
  0xbf   : >> { %2106 = vmatpush3.bf16.msra.mxu0 %v2770_v6  ;;  %2253 = vmatprep.subr.bf16.mxu1 %v3139_v3 }
  0xc0   : >> { %2107 = vmatprep.subr.bf16.mxu0 %v2776_v7 }
  0xc2   : >> { %2254 = vmatpush3.bf16.msra.mxu1 %v2782_v8 }
  0xc3   : >> { %2108 = vmatpush3.bf16.msra.mxu0 %v2789_v9  ;;  %2255 = vmatprep.subr.bf16.mxu1 %v3139_v3 }
  0xc4   : >> { %2109 = vmatprep.subr.bf16.mxu0 %v2795_v10 }
  0xc6   : >> { %2256 = vmatpush3.bf16.msra.mxu1 %v2801_v13 }
  0xc7   : >> { %2110 = vmatpush3.bf16.msra.mxu0 %v2808_v15  ;;  %2261 = vmatprep.subr.bf16.mxu1 %v3139_v3 }
  0xc8   : >> { %2126 = vmatprep.subr.bf16.mxu0 %v2814_v16 }
  0xc9   : >> { %2258 = vmatmul.mubr.bf16.vlgmr.msra.gmra.mxu1 %v2656_v49 }
  0xca   : >> { %1384 = vmatmul.mubr.bf16.vlgmr.msra.gmra.mxu0 %v2629_v43  ;;  %2262 = vmatpush3.bf16.msra.mxu1 %v2821_v41 }
  0xcb   : >> { %2127 = vmatpush3.bf16.msra.mxu0 %v3148_v23  ;;  %2263 = vmatprep.subr.bf16.mxu1 %v3139_v3 }
  0xcc   : >> { %2128 = vmatprep.subr.bf16.mxu0 %v3149_v24  ;;  %2277 = vmatprep.mubr.msk.bf16.mxu1 %vm2413_vm2, %v3139_v3 }
  0xcd   : >> { %1488 = vmatprep.mubr.bf16.mxu0 %v1452_v22 }
  0xce   : >> { %2264 = vmatpush3.bf16.msra.mxu1 %v3150_v25 }
  0xcf   : >> { %2129 = vmatpush3.bf16.msra.mxu0 %v3151_v26  ;;  %2265 = vmatprep.subr.bf16.mxu1 %v3139_v3 }
  0xd0   : >> { %2130 = vmatprep.subr.bf16.mxu0 %v3152_v27 }
  0xd2   : >> { %2266 = vmatpush3.bf16.msra.mxu1 %v3153_v28 }
  0xd3   : >> { %2131 = vmatpush3.bf16.msra.mxu0 %v3154_v29  ;;  %2267 = vmatprep.subr.bf16.mxu1 %v3139_v3 }
  0xd4   : >> { %2132 = vmatprep.subr.bf16.mxu0 %v3155_v30 }
  0xd6   : >> { %2268 = vmatpush3.bf16.msra.mxu1 %v3156_v31 }
  0xd7   : >> { %2133 = vmatpush3.bf16.msra.mxu0 %v3157_v32  ;;  %2269 = vmatprep.subr.bf16.mxu1 %v3139_v3 }
  0xd8   : >> { %2134 = vmatprep.subr.bf16.mxu0 %v3158_v33 }
  0xda   : >> { %2270 = vmatpush3.bf16.msra.mxu1 %v3159_v34 }
  0xdb   : >> { %2135 = vmatpush3.bf16.msra.mxu0 %v3160_v35  ;;  %2271 = vmatprep.subr.bf16.mxu1 %v3139_v3 }
  0xdc   : >> { %2136 = vmatprep.subr.bf16.mxu0 %v3161_v36 }
  0xde   : >> { %2272 = vmatpush3.bf16.msra.mxu1 %v3162_v37 }
  0xdf   : >> { %2137 = vmatpush3.bf16.msra.mxu0 %v3163_v38  ;;  %2273 = vmatprep.subr.bf16.mxu1 %v3139_v3 }
  0xe0   : >> { %2138 = vmatprep.subr.bf16.mxu0 %v3164_v39 }
  0xe2   : >> { %2274 = vmatpush3.bf16.msra.mxu1 %v2943_v0 }
  0xe3   : >> { %2139 = vmatpush3.bf16.msra.mxu0 %v2950_v20  ;;  %2275 = vmatprep.subr.bf16.mxu1 %v3139_v3 }
  0xe4   : >> { %2140 = vmatprep.subr.bf16.mxu0 %v2956_v1 }
  0xe6   : >> { %2276 = vmatpush3.bf16.msra.mxu1 %v2962_v17 }
  0xe7   : >> { %2141 = vmatpush3.bf16.msra.mxu0 %v2969_v19  ;;  %2286 = vmatprep.subr.mxu1 %v3139_v3 }
  0xe8   : >> { %2281 = vmatprep.subr.mxu0 %v3139_v3 }
  0xe9   : >> { %2278 = vmatmul.mubr.bf16.vlgmr.msra.gmra.mxu1 %v1451_v42 }
  0xea   : >> { %1489 = vmatmul.mubr.bf16.vlgmr.msra.gmra.mxu0 %v1444_v21  ;;  %2288 = vmatprep.mubr.msk.f32.mxu1 %vm2413_vm2, %v3139_v3 }
  0xeb   : >> { %2283 = vmatprep.mubr.msk.f32.mxu0 %vm2413_vm2, %v3139_v3 }
 0x109   : >> { %v714_v0 = vpop.f32.mrf.mxu1 }
 0x10a   : >> { %v1987_v20 = vpop.f32.mrf.mxu0 }
 0x10b   : >> { %v2179_v43 = vpop.f32.mrf.mxu1 }
 0x10c   : >> { %v1988_v45 = vpop.f32.mrf.mxu0 }
 0x10d   : >> { %v1989_v46 = vadd.f32 %v1988_v45, %v1987_v20  ;;  %v717_v47 = vpop.f32.mrf.mxu1 }
 0x10e   : >> { %v1990_v48 = vpop.f32.mrf.mxu0 }
 0x10f   : >> { %v715_v19 = vadd.f32 %v1989_v46, %v714_v0  ;;  %v2180_v49 = vpop.f32.mrf.mxu1  ;;  %v3165_v0 = vld [vmem:[#allocation3_spill] sm:$0xff] }
 0x110   : >> { %v1991_v50 = vpop.f32.mrf.mxu0  ;;  %v3167_v49 = vld [vmem:[#allocation5_spill] sm:$0xff] }
 0x129   : >> { %v958_v51 = vpop.f32.mrf.mxu1 }
 0x12a   : >> { %v2018_v52 = vpop.f32.mrf.mxu0 }
 0x12b   : >> { %v2199_v53 = vpop.f32.mrf.mxu1 }
 0x12c   : >> { %v2019_v54 = vpop.f32.mrf.mxu0 }
 0x12d   : >> { %v2020_v55 = vadd.f32 %v2019_v54, %v2018_v52  ;;  %v961_v56 = vpop.f32.mrf.mxu1 }
 0x12e   : >> { %v2021_v57 = vpop.f32.mrf.mxu0 }
 0x12f   : >> { %v919_v58 = vadd.f32 %v2020_v55, %v715_v19  ;;  %v2200_v59 = vpop.f32.mrf.mxu1  ;;  %v3166_v19 = vld [vmem:[#allocation4_spill] sm:$0xff] }
 0x130   : >> { %v2022_v60 = vpop.f32.mrf.mxu0 }
 0x131   : >> { %v959_v61 = vadd.f32 %v958_v51, %v919_v58 }
 0x149   : >> { %v1256_v62 = vpop.f32.mrf.mxu1 }
 0x14a   : >> { %v2049_v63 = vpop.f32.mrf.mxu0 }
 0x14b   : >> { %v2219_v2 = vpop.f32.mrf.mxu1 }
 0x14c   : >> { %v2050_v4 = vpop.f32.mrf.mxu0 }
 0x14d   : >> { %v2051_v6 = vadd.f32 %v2050_v4, %v2049_v63  ;;  %v1259_v7 = vpop.f32.mrf.mxu1 }
 0x14e   : >> { %v2052_v8 = vpop.f32.mrf.mxu0 }
 0x14f   : >> { %v1257_v9 = vadd.f32 %v2051_v6, %v1256_v62  ;;  %v2220_v10 = vpop.f32.mrf.mxu1 }
 0x150   : >> { %v2053_v13 = vpop.f32.mrf.mxu0 }
 0x151   : >> { %v1262_v15 = vadd.f32 %v1257_v9, %v959_v61 }
 0x153   : >> { %v1269_v20 = vadd.f32 %v3165_v0, %v1262_v15 }
 0x155   : >> { %v1270_v46 = vmax.f32 %v1269_v20, 0.0 }
 0x169   : >> { %v1345_v16 = vpop.f32.mrf.mxu1 }
 0x16a   : >> { %v2080_v41 = vpop.f32.mrf.mxu0 }
 0x16b   : >> { %v2239_v44 = vpop.f32.mrf.mxu1 }
 0x16c   : >> { %v2081_v1 = vpop.f32.mrf.mxu0 }
 0x16d   : >> { %v1348_v5 = vpop.f32.mrf.mxu1  ;;  %v2082_v27 = vadd.f32 %v2081_v1, %v2080_v41 }
 0x16e   : >> { %v2083_v12 = vpop.f32.mrf.mxu0 }
 0x16f   : >> { %v2240_v3 = vpop.f32.mrf.mxu1  ;;  %v1346_v29 = vadd.f32 %v2082_v27, %v1345_v16 }
 0x170   : >> { %v2084_v17 = vpop.f32.mrf.mxu0 }
 0x189   : >> { %v1425_v11 = vpop.f32.mrf.mxu1 }
 0x18a   : >> { %v2111_v18 = vpop.f32.mrf.mxu0 }
 0x18b   : >> { %v2259_v21 = vpop.f32.mrf.mxu1 }
 0x18c   : >> { %v2112_v22 = vpop.f32.mrf.mxu0 }
 0x18d   : >> { %v1428_v23 = vpop.f32.mrf.mxu1  ;;  %v2113_v28 = vadd.f32 %v2112_v22, %v2111_v18 }
 0x18e   : >> { %v2114_v24 = vpop.f32.mrf.mxu0 }
 0x18f   : >> { %v2260_v25 = vpop.f32.mrf.mxu1  ;;  %v1386_v32 = vadd.f32 %v2113_v28, %v1346_v29 }
 0x190   : >> { %v2115_v26 = vpop.f32.mrf.mxu0 }
 0x191   : >> { %v1426_v38 = vadd.f32 %v1425_v11, %v1386_v32 }
 0x1a9   : >> { %v1530_v30 = vpop.f32.mrf.mxu1 }
 0x1aa   : >> { %v2142_v31 = vpop.f32.mrf.mxu0 }
 0x1ab   : >> { %v2279_v33 = vpop.f32.mrf.mxu1 }
 0x1ac   : >> { %v2143_v34 = vpop.f32.mrf.mxu0 }
 0x1ad   : >> { %v2144_v35 = vadd.f32 %v2143_v34, %v2142_v31  ;;  %v1533_v36 = vpop.f32.mrf.mxu1 }
 0x1ae   : >> { %v2145_v37 = vpop.f32.mrf.mxu0 }
 0x1af   : >> { %v1531_v39 = vadd.f32 %v2144_v35, %v1530_v30  ;;  %v2280_v40 = vpop.f32.mrf.mxu1 }
 0x1b0   : >> { %v2146_v42 = vpop.f32.mrf.mxu0 }
 0x1b1   : >> { %v1536_v43 = vadd.f32 %v1531_v39, %v1426_v38 }
 0x1b3   : >> { %v1537_v45 = vadd.f32 %v3165_v0, %v1536_v43 }
 0x1b5   : >> { %v1538_v47 = vmax.f32 %v1537_v45, 0.0 }
 0x1b7   : >> { %v1539_v48 = vmax.f32 %v1270_v46, %v1538_v47 }
 0x1b9   : >> { %2282 = vmatpush3.msk.msra.mxu0 %vm1544_vm3, %v1539_v48  ;;  %2287 = vmatpush3.msk.msra.mxu1 %vm1544_vm3, %v1539_v48 }
 0x1ba   : >> { %2284 = vmatmul.mubr.msk.f32.vlgmr.msra.gmra.mxu0 %vm1540_vm4, %v3166_v19  ;;  %2289 = vmatmul.mubr.msk.f32.vlgmr.msra.gmra.mxu1 %vm1540_vm4, %v3167_v49 }
 0x27a   : >> { %v1614_v50 = vpop.f32.mrf.mxu0  ;;  %v1687_v51 = vpop.f32.mrf.mxu1 }
 0x27b   : >> { %v1691_v52 = vmax.f32 %v1614_v50, %v1687_v51  ;;  %367 = sbr.rel (!%p365_p4) target bundleno = 40 (0x28), region = 76 }
 0x27c   : >> { %v2285_v53 = vpop.f32.mrf.mxu0  ;;  %v2290_v54 = vpop.f32.mrf.mxu1 }
 0x27d   : >> { %v1692_v55 = vpack.c.bf16 %v1691_v52, %v1691_v52 }
 0x27f   : >> { %1694 = vst [vmem:[%s1693_s18] sm:$0x1] %v1692_v55 }
 0x280 PF: > { %s13_s12 = sadd.s32 1, %s2404_s12  }
 0x281   : > { %p10_p5 = scmp.ge.s32.totalorder %s13_s12, 4  }
 0x283   :  { %12 = sbr.rel (!%p10_p5) target bundleno = 1 (0x1), region = 87 }

// kernel: homography_forward.18
= control target key start
LH: loop header
LB: loop body
LE: loop exit
PB: predicated region body
PF: predicated region fallthrough
CT: control target
= control target key end

     0   :  { %s2179_s12 = smov 0   ;;  %s2181_s13 = smov 0   ;;  %s2683_s0 = inlined_call_operand.vmem [shape: bf16[2,512], index: 0, kind: input, shape index: {}]   ;;  %s2684_s1 = inlined_call_operand.vmem [shape: bf16[512,1024], index: 1, kind: input, shape index: {}]   ;;  %s2685_s2 = inlined_call_operand.vmem [shape: f32[1,1024], index: 2, kind: input, shape index: {}]   ;;  %s2686_s3 = inlined_call_operand.vmem [shape: bf16[2,1024], index: 3, kind: output, shape index: {}]  }
   0x1   :  { %s2183_s14 = smov 0   ;;  %s2185_s15 = smov 0  }
   0x2   :  { %s2187_s16 = smov 0  }
   0x3 LB: > { %s28_s17 = sadd.s32 1, %s2151_s15  ;;  %p76_p1 = scmp.ne.s32.totalorder %s2143_s13, %s2139_s12  ;;  %s2155_s16 = sphi %s2187_s16, %s13_s16   ;;  %s2151_s15 = sphi %s2185_s15, %s2690_s15   ;;  %s2147_s14 = sphi %s2183_s14, %s2689_s14   ;;  %s2143_s13 = sphi %s2181_s13, %s2688_s13   ;;  %s2139_s12 = sphi %s2179_s12, %s2687_s12  }
   0x4   : > { %p30_p0 = scmp.ge.s32.totalorder %s28_s17, 2  ;;  %p77_p2 = scmp.eq.s32.totalorder %s2155_s16, 0 }
   0x5   : > { %s69_s19 = sadd.s32 1, %s2143_s13  ;;  %p1740_p5 = scmp.ge.s32.totalorder %s2155_s16, 2 }
   0x6   : > { %s2692_s17 = smov (%p30_p0, %s28_s17), 0  ;;  %p78_p3 = por %p77_p2, %p76_p1 }
   0x7   : > { %s65_s18 = ssub.s32 %s2151_s15, %s2692_s17  ;;  %168 = sbr.rel (%p1740_p5) target bundleno = 80 (0x50), region = 20 }
   0x8   : > { %p67_p4 = scmp.eq.s32.totalorder %s65_s18, 0 }
   0xa   : > { %s2214_s20 = scalar_select %p67_p4, %s2143_s13, %s69_s19  }
   0xc   : > { %171 = sbr.rel (!%p78_p3) target bundleno = 80 (0x50), region = 24  ;;  %s173_s21 = sand.u32 (%p78_p3), 1, %s2143_s13  }
   0xd   : > { %s1882_s22 = sshll.u32 (%p78_p3), %s2151_s15, 4  ;;  %s1741_s23 = sshll.u32 (%p78_p3), %s173_s21, 10 }
   0xe   : > { %s2222_s26 = scalar_lea.vmem (%p78_p3), %s2684_s1, %s1882_s22  ;;  %s2227_s27 = scalar_lea.vmem (%p78_p3), [#allocation3], %s1741_s23 }
   0xf   : > { %v194_v0 = vld [vmem:[%s2222_s26] sm:$0xff] (%p78_p3)  ;;  %v196_v1 = vld [vmem:[%s2222_s26 + $0x8] sm:$0xff] (%p78_p3) }
  0x10   : > { %v198_v2 = vld [vmem:[%s2222_s26 + $0x20] sm:$0xff] (%p78_p3)  ;;  %195 = vst [vmem:[%s2227_s27] sm:$0xff] (%p78_p3), %v194_v0  ;;  %197 = vst [vmem:[%s2227_s27 + $0x8] sm:$0xff] (%p78_p3), %v196_v1  ;;  %v200_v3 = vld [vmem:[%s2222_s26 + $0x28] sm:$0xff] (%p78_p3) }
  0x11   : > { %199 = vst [vmem:[%s2227_s27 + $0x10] sm:$0xff] %v198_v2  ;;  %v202_v4 = vld [vmem:[%s2222_s26 + $0x40] sm:$0xff]  ;;  %v204_v5 = vld [vmem:[%s2222_s26 + $0x48] sm:$0xff]  ;;  %201 = vst [vmem:[%s2227_s27 + $0x18] sm:$0xff] %v200_v3 }
  0x12   : > { %203 = vst [vmem:[%s2227_s27 + $0x20] sm:$0xff] %v202_v4  ;;  %205 = vst [vmem:[%s2227_s27 + $0x28] sm:$0xff] %v204_v5  ;;  %v206_v6 = vld [vmem:[%s2222_s26 + $0x60] sm:$0xff]  ;;  %v208_v7 = vld [vmem:[%s2222_s26 + $0x68] sm:$0xff] }
  0x13   : > { %v210_v8 = vld [vmem:[%s2222_s26 + $0x80] sm:$0xff]  ;;  %207 = vst [vmem:[%s2227_s27 + $0x30] sm:$0xff] %v206_v6  ;;  %209 = vst [vmem:[%s2227_s27 + $0x38] sm:$0xff] %v208_v7  ;;  %v212_v9 = vld [vmem:[%s2222_s26 + $0x88] sm:$0xff] }
  0x14   : > { %211 = vst [vmem:[%s2227_s27 + $0x40] sm:$0xff] %v210_v8  ;;  %v214_v10 = vld [vmem:[%s2222_s26 + $0xa0] sm:$0xff]  ;;  %v216_v11 = vld [vmem:[%s2222_s26 + $0xa8] sm:$0xff]  ;;  %213 = vst [vmem:[%s2227_s27 + $0x48] sm:$0xff] %v212_v9 }
  0x15   : > { %215 = vst [vmem:[%s2227_s27 + $0x50] sm:$0xff] %v214_v10  ;;  %217 = vst [vmem:[%s2227_s27 + $0x58] sm:$0xff] %v216_v11  ;;  %v218_v12 = vld [vmem:[%s2222_s26 + $0xc0] sm:$0xff]  ;;  %v220_v13 = vld [vmem:[%s2222_s26 + $0xc8] sm:$0xff] }
  0x16   : > { %v222_v14 = vld [vmem:[%s2222_s26 + $0xe0] sm:$0xff]  ;;  %219 = vst [vmem:[%s2227_s27 + $0x60] sm:$0xff] %v218_v12  ;;  %221 = vst [vmem:[%s2227_s27 + $0x68] sm:$0xff] %v220_v13  ;;  %v224_v15 = vld [vmem:[%s2222_s26 + $0xe8] sm:$0xff] }
  0x17   : > { %223 = vst [vmem:[%s2227_s27 + $0x70] sm:$0xff] %v222_v14  ;;  %v226_v16 = vld [vmem:[%s2222_s26 + $0x100] sm:$0xff]  ;;  %v228_v17 = vld [vmem:[%s2222_s26 + $0x108] sm:$0xff]  ;;  %225 = vst [vmem:[%s2227_s27 + $0x78] sm:$0xff] %v224_v15 }
  0x18   : > { %227 = vst [vmem:[%s2227_s27 + $0x80] sm:$0xff] %v226_v16  ;;  %229 = vst [vmem:[%s2227_s27 + $0x88] sm:$0xff] %v228_v17  ;;  %v230_v18 = vld [vmem:[%s2222_s26 + $0x120] sm:$0xff]  ;;  %v232_v19 = vld [vmem:[%s2222_s26 + $0x128] sm:$0xff] }
  0x19   : > { %v234_v20 = vld [vmem:[%s2222_s26 + $0x140] sm:$0xff]  ;;  %231 = vst [vmem:[%s2227_s27 + $0x90] sm:$0xff] %v230_v18  ;;  %233 = vst [vmem:[%s2227_s27 + $0x98] sm:$0xff] %v232_v19  ;;  %v236_v21 = vld [vmem:[%s2222_s26 + $0x148] sm:$0xff] }
  0x1a   : > { %235 = vst [vmem:[%s2227_s27 + $0xa0] sm:$0xff] %v234_v20  ;;  %v238_v22 = vld [vmem:[%s2222_s26 + $0x160] sm:$0xff]  ;;  %v240_v23 = vld [vmem:[%s2222_s26 + $0x168] sm:$0xff]  ;;  %237 = vst [vmem:[%s2227_s27 + $0xa8] sm:$0xff] %v236_v21 }
  0x1b   : > { %239 = vst [vmem:[%s2227_s27 + $0xb0] sm:$0xff] %v238_v22  ;;  %241 = vst [vmem:[%s2227_s27 + $0xb8] sm:$0xff] %v240_v23  ;;  %v242_v24 = vld [vmem:[%s2222_s26 + $0x180] sm:$0xff]  ;;  %v244_v25 = vld [vmem:[%s2222_s26 + $0x188] sm:$0xff] }
  0x1c   : > { %v246_v26 = vld [vmem:[%s2222_s26 + $0x1a0] sm:$0xff]  ;;  %243 = vst [vmem:[%s2227_s27 + $0xc0] sm:$0xff] %v242_v24  ;;  %245 = vst [vmem:[%s2227_s27 + $0xc8] sm:$0xff] %v244_v25  ;;  %v248_v27 = vld [vmem:[%s2222_s26 + $0x1a8] sm:$0xff] }
  0x1d   : > { %247 = vst [vmem:[%s2227_s27 + $0xd0] sm:$0xff] %v246_v26  ;;  %v250_v28 = vld [vmem:[%s2222_s26 + $0x1c0] sm:$0xff]  ;;  %v252_v29 = vld [vmem:[%s2222_s26 + $0x1c8] sm:$0xff]  ;;  %249 = vst [vmem:[%s2227_s27 + $0xd8] sm:$0xff] %v248_v27 }
  0x1e   : > { %251 = vst [vmem:[%s2227_s27 + $0xe0] sm:$0xff] %v250_v28  ;;  %253 = vst [vmem:[%s2227_s27 + $0xe8] sm:$0xff] %v252_v29  ;;  %v254_v30 = vld [vmem:[%s2222_s26 + $0x1e0] sm:$0xff]  ;;  %v256_v31 = vld [vmem:[%s2222_s26 + $0x1e8] sm:$0xff] }
  0x1f   : > { %v258_v32 = vld [vmem:[%s2222_s26 + $0x200] sm:$0xff]  ;;  %255 = vst [vmem:[%s2227_s27 + $0xf0] sm:$0xff] %v254_v30  ;;  %257 = vst [vmem:[%s2227_s27 + $0xf8] sm:$0xff] %v256_v31  ;;  %v260_v33 = vld [vmem:[%s2222_s26 + $0x208] sm:$0xff] }
  0x20   : > { %259 = vst [vmem:[%s2227_s27 + $0x100] sm:$0xff] %v258_v32  ;;  %v262_v34 = vld [vmem:[%s2222_s26 + $0x220] sm:$0xff]  ;;  %v264_v35 = vld [vmem:[%s2222_s26 + $0x228] sm:$0xff]  ;;  %261 = vst [vmem:[%s2227_s27 + $0x108] sm:$0xff] %v260_v33 }
  0x21   : > { %263 = vst [vmem:[%s2227_s27 + $0x110] sm:$0xff] %v262_v34  ;;  %265 = vst [vmem:[%s2227_s27 + $0x118] sm:$0xff] %v264_v35  ;;  %v266_v36 = vld [vmem:[%s2222_s26 + $0x240] sm:$0xff]  ;;  %v268_v37 = vld [vmem:[%s2222_s26 + $0x248] sm:$0xff] }
  0x22   : > { %v270_v38 = vld [vmem:[%s2222_s26 + $0x260] sm:$0xff]  ;;  %267 = vst [vmem:[%s2227_s27 + $0x120] sm:$0xff] %v266_v36  ;;  %269 = vst [vmem:[%s2227_s27 + $0x128] sm:$0xff] %v268_v37  ;;  %v272_v39 = vld [vmem:[%s2222_s26 + $0x268] sm:$0xff] }
  0x23   : > { %271 = vst [vmem:[%s2227_s27 + $0x130] sm:$0xff] %v270_v38  ;;  %v274_v40 = vld [vmem:[%s2222_s26 + $0x280] sm:$0xff]  ;;  %v276_v41 = vld [vmem:[%s2222_s26 + $0x288] sm:$0xff]  ;;  %273 = vst [vmem:[%s2227_s27 + $0x138] sm:$0xff] %v272_v39 }
  0x24   : > { %275 = vst [vmem:[%s2227_s27 + $0x140] sm:$0xff] %v274_v40  ;;  %277 = vst [vmem:[%s2227_s27 + $0x148] sm:$0xff] %v276_v41  ;;  %v278_v42 = vld [vmem:[%s2222_s26 + $0x2a0] sm:$0xff]  ;;  %v280_v43 = vld [vmem:[%s2222_s26 + $0x2a8] sm:$0xff] }
  0x25   : > { %v282_v44 = vld [vmem:[%s2222_s26 + $0x2c0] sm:$0xff]  ;;  %279 = vst [vmem:[%s2227_s27 + $0x150] sm:$0xff] %v278_v42  ;;  %281 = vst [vmem:[%s2227_s27 + $0x158] sm:$0xff] %v280_v43  ;;  %v284_v45 = vld [vmem:[%s2222_s26 + $0x2c8] sm:$0xff] }
  0x26   : > { %283 = vst [vmem:[%s2227_s27 + $0x160] sm:$0xff] %v282_v44  ;;  %v286_v46 = vld [vmem:[%s2222_s26 + $0x2e0] sm:$0xff]  ;;  %v288_v47 = vld [vmem:[%s2222_s26 + $0x2e8] sm:$0xff]  ;;  %285 = vst [vmem:[%s2227_s27 + $0x168] sm:$0xff] %v284_v45 }
  0x27   : > { %287 = vst [vmem:[%s2227_s27 + $0x170] sm:$0xff] %v286_v46  ;;  %289 = vst [vmem:[%s2227_s27 + $0x178] sm:$0xff] %v288_v47  ;;  %v290_v48 = vld [vmem:[%s2222_s26 + $0x300] sm:$0xff]  ;;  %v292_v49 = vld [vmem:[%s2222_s26 + $0x308] sm:$0xff] }
  0x28   : > { %v294_v50 = vld [vmem:[%s2222_s26 + $0x320] sm:$0xff]  ;;  %291 = vst [vmem:[%s2227_s27 + $0x180] sm:$0xff] %v290_v48  ;;  %293 = vst [vmem:[%s2227_s27 + $0x188] sm:$0xff] %v292_v49  ;;  %v296_v51 = vld [vmem:[%s2222_s26 + $0x328] sm:$0xff] }
  0x29   : > { %295 = vst [vmem:[%s2227_s27 + $0x190] sm:$0xff] %v294_v50  ;;  %v298_v52 = vld [vmem:[%s2222_s26 + $0x340] sm:$0xff]  ;;  %v300_v53 = vld [vmem:[%s2222_s26 + $0x348] sm:$0xff]  ;;  %297 = vst [vmem:[%s2227_s27 + $0x198] sm:$0xff] %v296_v51 }
  0x2a   : > { %299 = vst [vmem:[%s2227_s27 + $0x1a0] sm:$0xff] %v298_v52  ;;  %301 = vst [vmem:[%s2227_s27 + $0x1a8] sm:$0xff] %v300_v53  ;;  %v302_v54 = vld [vmem:[%s2222_s26 + $0x360] sm:$0xff]  ;;  %v304_v55 = vld [vmem:[%s2222_s26 + $0x368] sm:$0xff] }
  0x2b   : > { %v306_v56 = vld [vmem:[%s2222_s26 + $0x380] sm:$0xff]  ;;  %303 = vst [vmem:[%s2227_s27 + $0x1b0] sm:$0xff] %v302_v54  ;;  %305 = vst [vmem:[%s2227_s27 + $0x1b8] sm:$0xff] %v304_v55  ;;  %v308_v57 = vld [vmem:[%s2222_s26 + $0x388] sm:$0xff] }
  0x2c   : > { %307 = vst [vmem:[%s2227_s27 + $0x1c0] sm:$0xff] %v306_v56  ;;  %v310_v58 = vld [vmem:[%s2222_s26 + $0x3a0] sm:$0xff]  ;;  %v312_v59 = vld [vmem:[%s2222_s26 + $0x3a8] sm:$0xff]  ;;  %309 = vst [vmem:[%s2227_s27 + $0x1c8] sm:$0xff] %v308_v57 }
  0x2d   : > { %311 = vst [vmem:[%s2227_s27 + $0x1d0] sm:$0xff] %v310_v58  ;;  %313 = vst [vmem:[%s2227_s27 + $0x1d8] sm:$0xff] %v312_v59  ;;  %v314_v60 = vld [vmem:[%s2222_s26 + $0x3c0] sm:$0xff]  ;;  %v316_v61 = vld [vmem:[%s2222_s26 + $0x3c8] sm:$0xff] }
  0x2e   : > { %v318_v62 = vld [vmem:[%s2222_s26 + $0x3e0] sm:$0xff]  ;;  %315 = vst [vmem:[%s2227_s27 + $0x1e0] sm:$0xff] %v314_v60  ;;  %317 = vst [vmem:[%s2227_s27 + $0x1e8] sm:$0xff] %v316_v61  ;;  %v320_v63 = vld [vmem:[%s2222_s26 + $0x3e8] sm:$0xff] }
  0x2f   : > { %319 = vst [vmem:[%s2227_s27 + $0x1f0] sm:$0xff] %v318_v62  ;;  %v322_v0 = vld [vmem:[%s2222_s26 + $0x400] sm:$0xff]  ;;  %v324_v1 = vld [vmem:[%s2222_s26 + $0x408] sm:$0xff]  ;;  %321 = vst [vmem:[%s2227_s27 + $0x1f8] sm:$0xff] %v320_v63 }
  0x30   : > { %323 = vst [vmem:[%s2227_s27 + $0x200] sm:$0xff] %v322_v0  ;;  %325 = vst [vmem:[%s2227_s27 + $0x208] sm:$0xff] %v324_v1  ;;  %v326_v2 = vld [vmem:[%s2222_s26 + $0x420] sm:$0xff]  ;;  %v328_v3 = vld [vmem:[%s2222_s26 + $0x428] sm:$0xff] }
  0x31   : > { %v330_v4 = vld [vmem:[%s2222_s26 + $0x440] sm:$0xff]  ;;  %327 = vst [vmem:[%s2227_s27 + $0x210] sm:$0xff] %v326_v2  ;;  %329 = vst [vmem:[%s2227_s27 + $0x218] sm:$0xff] %v328_v3  ;;  %v332_v5 = vld [vmem:[%s2222_s26 + $0x448] sm:$0xff] }
  0x32   : > { %331 = vst [vmem:[%s2227_s27 + $0x220] sm:$0xff] %v330_v4  ;;  %v334_v6 = vld [vmem:[%s2222_s26 + $0x460] sm:$0xff]  ;;  %v336_v7 = vld [vmem:[%s2222_s26 + $0x468] sm:$0xff]  ;;  %333 = vst [vmem:[%s2227_s27 + $0x228] sm:$0xff] %v332_v5 }
  0x33   : > { %335 = vst [vmem:[%s2227_s27 + $0x230] sm:$0xff] %v334_v6  ;;  %337 = vst [vmem:[%s2227_s27 + $0x238] sm:$0xff] %v336_v7  ;;  %v338_v8 = vld [vmem:[%s2222_s26 + $0x480] sm:$0xff]  ;;  %v340_v9 = vld [vmem:[%s2222_s26 + $0x488] sm:$0xff] }
  0x34   : > { %v342_v10 = vld [vmem:[%s2222_s26 + $0x4a0] sm:$0xff]  ;;  %339 = vst [vmem:[%s2227_s27 + $0x240] sm:$0xff] %v338_v8  ;;  %341 = vst [vmem:[%s2227_s27 + $0x248] sm:$0xff] %v340_v9  ;;  %v344_v11 = vld [vmem:[%s2222_s26 + $0x4a8] sm:$0xff] }
  0x35   : > { %343 = vst [vmem:[%s2227_s27 + $0x250] sm:$0xff] %v342_v10  ;;  %v346_v12 = vld [vmem:[%s2222_s26 + $0x4c0] sm:$0xff]  ;;  %v348_v13 = vld [vmem:[%s2222_s26 + $0x4c8] sm:$0xff]  ;;  %345 = vst [vmem:[%s2227_s27 + $0x258] sm:$0xff] %v344_v11 }
  0x36   : > { %347 = vst [vmem:[%s2227_s27 + $0x260] sm:$0xff] %v346_v12  ;;  %349 = vst [vmem:[%s2227_s27 + $0x268] sm:$0xff] %v348_v13  ;;  %v350_v14 = vld [vmem:[%s2222_s26 + $0x4e0] sm:$0xff]  ;;  %v352_v15 = vld [vmem:[%s2222_s26 + $0x4e8] sm:$0xff] }
  0x37   : > { %v354_v16 = vld [vmem:[%s2222_s26 + $0x500] sm:$0xff]  ;;  %351 = vst [vmem:[%s2227_s27 + $0x270] sm:$0xff] %v350_v14  ;;  %353 = vst [vmem:[%s2227_s27 + $0x278] sm:$0xff] %v352_v15  ;;  %v356_v17 = vld [vmem:[%s2222_s26 + $0x508] sm:$0xff] }
  0x38   : > { %355 = vst [vmem:[%s2227_s27 + $0x280] sm:$0xff] %v354_v16  ;;  %v358_v18 = vld [vmem:[%s2222_s26 + $0x520] sm:$0xff]  ;;  %v360_v19 = vld [vmem:[%s2222_s26 + $0x528] sm:$0xff]  ;;  %357 = vst [vmem:[%s2227_s27 + $0x288] sm:$0xff] %v356_v17 }
  0x39   : > { %359 = vst [vmem:[%s2227_s27 + $0x290] sm:$0xff] %v358_v18  ;;  %361 = vst [vmem:[%s2227_s27 + $0x298] sm:$0xff] %v360_v19  ;;  %v362_v20 = vld [vmem:[%s2222_s26 + $0x540] sm:$0xff]  ;;  %v364_v21 = vld [vmem:[%s2222_s26 + $0x548] sm:$0xff] }
  0x3a   : > { %v366_v22 = vld [vmem:[%s2222_s26 + $0x560] sm:$0xff]  ;;  %363 = vst [vmem:[%s2227_s27 + $0x2a0] sm:$0xff] %v362_v20  ;;  %365 = vst [vmem:[%s2227_s27 + $0x2a8] sm:$0xff] %v364_v21  ;;  %v368_v23 = vld [vmem:[%s2222_s26 + $0x568] sm:$0xff] }
  0x3b   : > { %367 = vst [vmem:[%s2227_s27 + $0x2b0] sm:$0xff] %v366_v22  ;;  %v370_v24 = vld [vmem:[%s2222_s26 + $0x580] sm:$0xff]  ;;  %v372_v25 = vld [vmem:[%s2222_s26 + $0x588] sm:$0xff]  ;;  %369 = vst [vmem:[%s2227_s27 + $0x2b8] sm:$0xff] %v368_v23 }
  0x3c   : > { %371 = vst [vmem:[%s2227_s27 + $0x2c0] sm:$0xff] %v370_v24  ;;  %373 = vst [vmem:[%s2227_s27 + $0x2c8] sm:$0xff] %v372_v25  ;;  %v374_v26 = vld [vmem:[%s2222_s26 + $0x5a0] sm:$0xff]  ;;  %v376_v27 = vld [vmem:[%s2222_s26 + $0x5a8] sm:$0xff] }
  0x3d   : > { %v378_v28 = vld [vmem:[%s2222_s26 + $0x5c0] sm:$0xff]  ;;  %375 = vst [vmem:[%s2227_s27 + $0x2d0] sm:$0xff] %v374_v26  ;;  %377 = vst [vmem:[%s2227_s27 + $0x2d8] sm:$0xff] %v376_v27  ;;  %v380_v29 = vld [vmem:[%s2222_s26 + $0x5c8] sm:$0xff] }
  0x3e   : > { %379 = vst [vmem:[%s2227_s27 + $0x2e0] sm:$0xff] %v378_v28  ;;  %v382_v30 = vld [vmem:[%s2222_s26 + $0x5e0] sm:$0xff]  ;;  %v384_v31 = vld [vmem:[%s2222_s26 + $0x5e8] sm:$0xff]  ;;  %381 = vst [vmem:[%s2227_s27 + $0x2e8] sm:$0xff] %v380_v29 }
  0x3f   : > { %383 = vst [vmem:[%s2227_s27 + $0x2f0] sm:$0xff] %v382_v30  ;;  %385 = vst [vmem:[%s2227_s27 + $0x2f8] sm:$0xff] %v384_v31  ;;  %v386_v32 = vld [vmem:[%s2222_s26 + $0x600] sm:$0xff]  ;;  %v388_v33 = vld [vmem:[%s2222_s26 + $0x608] sm:$0xff] }
  0x40   : > { %v390_v34 = vld [vmem:[%s2222_s26 + $0x620] sm:$0xff]  ;;  %387 = vst [vmem:[%s2227_s27 + $0x300] sm:$0xff] %v386_v32  ;;  %389 = vst [vmem:[%s2227_s27 + $0x308] sm:$0xff] %v388_v33  ;;  %v392_v35 = vld [vmem:[%s2222_s26 + $0x628] sm:$0xff] }
  0x41   : > { %391 = vst [vmem:[%s2227_s27 + $0x310] sm:$0xff] %v390_v34  ;;  %v394_v36 = vld [vmem:[%s2222_s26 + $0x640] sm:$0xff]  ;;  %v396_v37 = vld [vmem:[%s2222_s26 + $0x648] sm:$0xff]  ;;  %393 = vst [vmem:[%s2227_s27 + $0x318] sm:$0xff] %v392_v35 }
  0x42   : > { %395 = vst [vmem:[%s2227_s27 + $0x320] sm:$0xff] %v394_v36  ;;  %397 = vst [vmem:[%s2227_s27 + $0x328] sm:$0xff] %v396_v37  ;;  %v398_v38 = vld [vmem:[%s2222_s26 + $0x660] sm:$0xff]  ;;  %v400_v39 = vld [vmem:[%s2222_s26 + $0x668] sm:$0xff] }
  0x43   : > { %v402_v40 = vld [vmem:[%s2222_s26 + $0x680] sm:$0xff]  ;;  %399 = vst [vmem:[%s2227_s27 + $0x330] sm:$0xff] %v398_v38  ;;  %401 = vst [vmem:[%s2227_s27 + $0x338] sm:$0xff] %v400_v39  ;;  %v404_v41 = vld [vmem:[%s2222_s26 + $0x688] sm:$0xff] }
  0x44   : > { %403 = vst [vmem:[%s2227_s27 + $0x340] sm:$0xff] %v402_v40  ;;  %v406_v42 = vld [vmem:[%s2222_s26 + $0x6a0] sm:$0xff]  ;;  %v408_v43 = vld [vmem:[%s2222_s26 + $0x6a8] sm:$0xff]  ;;  %405 = vst [vmem:[%s2227_s27 + $0x348] sm:$0xff] %v404_v41 }
  0x45   : > { %407 = vst [vmem:[%s2227_s27 + $0x350] sm:$0xff] %v406_v42  ;;  %409 = vst [vmem:[%s2227_s27 + $0x358] sm:$0xff] %v408_v43  ;;  %v410_v44 = vld [vmem:[%s2222_s26 + $0x6c0] sm:$0xff]  ;;  %v412_v45 = vld [vmem:[%s2222_s26 + $0x6c8] sm:$0xff] }
  0x46   : > { %v414_v46 = vld [vmem:[%s2222_s26 + $0x6e0] sm:$0xff]  ;;  %411 = vst [vmem:[%s2227_s27 + $0x360] sm:$0xff] %v410_v44  ;;  %413 = vst [vmem:[%s2227_s27 + $0x368] sm:$0xff] %v412_v45  ;;  %v416_v47 = vld [vmem:[%s2222_s26 + $0x6e8] sm:$0xff] }
  0x47   : > { %415 = vst [vmem:[%s2227_s27 + $0x370] sm:$0xff] %v414_v46  ;;  %v418_v48 = vld [vmem:[%s2222_s26 + $0x700] sm:$0xff]  ;;  %v420_v49 = vld [vmem:[%s2222_s26 + $0x708] sm:$0xff]  ;;  %417 = vst [vmem:[%s2227_s27 + $0x378] sm:$0xff] %v416_v47 }
  0x48   : > { %419 = vst [vmem:[%s2227_s27 + $0x380] sm:$0xff] %v418_v48  ;;  %421 = vst [vmem:[%s2227_s27 + $0x388] sm:$0xff] %v420_v49  ;;  %v422_v50 = vld [vmem:[%s2222_s26 + $0x720] sm:$0xff]  ;;  %v424_v51 = vld [vmem:[%s2222_s26 + $0x728] sm:$0xff] }
  0x49   : > { %v426_v52 = vld [vmem:[%s2222_s26 + $0x740] sm:$0xff]  ;;  %423 = vst [vmem:[%s2227_s27 + $0x390] sm:$0xff] %v422_v50  ;;  %425 = vst [vmem:[%s2227_s27 + $0x398] sm:$0xff] %v424_v51  ;;  %v428_v53 = vld [vmem:[%s2222_s26 + $0x748] sm:$0xff] }
  0x4a   : > { %427 = vst [vmem:[%s2227_s27 + $0x3a0] sm:$0xff] %v426_v52  ;;  %v430_v54 = vld [vmem:[%s2222_s26 + $0x760] sm:$0xff]  ;;  %v432_v55 = vld [vmem:[%s2222_s26 + $0x768] sm:$0xff]  ;;  %429 = vst [vmem:[%s2227_s27 + $0x3a8] sm:$0xff] %v428_v53 }
  0x4b   : > { %431 = vst [vmem:[%s2227_s27 + $0x3b0] sm:$0xff] %v430_v54  ;;  %433 = vst [vmem:[%s2227_s27 + $0x3b8] sm:$0xff] %v432_v55  ;;  %v434_v56 = vld [vmem:[%s2222_s26 + $0x780] sm:$0xff]  ;;  %v436_v57 = vld [vmem:[%s2222_s26 + $0x788] sm:$0xff] }
  0x4c   : > { %v438_v58 = vld [vmem:[%s2222_s26 + $0x7a0] sm:$0xff]  ;;  %435 = vst [vmem:[%s2227_s27 + $0x3c0] sm:$0xff] %v434_v56  ;;  %437 = vst [vmem:[%s2227_s27 + $0x3c8] sm:$0xff] %v436_v57  ;;  %v440_v59 = vld [vmem:[%s2222_s26 + $0x7a8] sm:$0xff] }
  0x4d   : > { %439 = vst [vmem:[%s2227_s27 + $0x3d0] sm:$0xff] %v438_v58  ;;  %v442_v60 = vld [vmem:[%s2222_s26 + $0x7c0] sm:$0xff]  ;;  %v444_v61 = vld [vmem:[%s2222_s26 + $0x7c8] sm:$0xff]  ;;  %441 = vst [vmem:[%s2227_s27 + $0x3d8] sm:$0xff] %v440_v59 }
  0x4e   : > { %443 = vst [vmem:[%s2227_s27 + $0x3e0] sm:$0xff] %v442_v60  ;;  %445 = vst [vmem:[%s2227_s27 + $0x3e8] sm:$0xff] %v444_v61  ;;  %v446_v62 = vld [vmem:[%s2222_s26 + $0x7e0] sm:$0xff]  ;;  %v448_v63 = vld [vmem:[%s2222_s26 + $0x7e8] sm:$0xff] }
  0x4f   : > { %447 = vst [vmem:[%s2227_s27 + $0x3f0] sm:$0xff] %v446_v62  ;;  %449 = vst [vmem:[%s2227_s27 + $0x3f8] sm:$0xff] %v448_v63 }
  0x50 PF: > { %p1744_p6 = scmp.ge.s32.totalorder %s2155_s16, 1  ;;  %p462_p7 = scmp.lt.s32.totalorder %s2155_s16, 3 }
  0x52   : > { %p463_p8 = pnand %p1744_p6, %p462_p7 }
  0x53   : > { %s469_s28 = sand.u32 (!%p463_p8), 1, %s2139_s12   ;;  %s1746_s6 = sshll.u32 (!%p463_p8), %s2147_s14, 2 }
  0x54   : > { %466 = sbr.rel (%p463_p8) target bundleno = 440 (0x1b8), region = 51  ;;  %s1745_s4 = sshll.u32 (!%p463_p8), %s469_s28, 10 }
  0x55   : > { %s2492_s5 = scalar_lea.vmem (!%p463_p8), [#allocation3], %s1745_s4  ;;  %p519_p9 = scmp.lt.s32.totalorder (!%p463_p8), %s1746_s6, 7 }
  0x59   : > { %v2488_v0 = vld.sshfl [vmem:[%s2683_s0] sm:$0x33 pattern:$0x75316420]  ;;  %v679_v1 = vlaneseq  ;;  %v2157_v2 = vmov 1966171168  }
  0x5a   : > { %v677_v3 = vunpack.c.l.s4 %v2157_v2  ;;  %v1925_v5 = vld [vmem:[%s2492_s5 + $0xe4] ss:$16 sps:$4 sm:$0xff]   ;;  %v675_v7 = vcombine.high %v2488_v0, %v2488_v0  ;;  %v1929_v9 = vld [vmem:[%s2492_s5 + $0xe0] ss:$16 sps:$4 sm:$0xff]   ;;  %s2694_s6 = smov (!%p519_p9, %s1746_s6), 7 }
  0x5b   : > { %v2490_v4 = vshrl.u32 %v679_v1, 7  ;;  %v1927_v6 = vld [vmem:[%s2492_s5 + $0x2e4] ss:$16 sps:$4 sm:$0xff]   ;;  %1336 = vmatprep.subr.bf16.mxu0 %v1925_v5  ;;  %v1930_v10 = vld [vmem:[%s2492_s5 + $0x2e0] ss:$16 sps:$4 sm:$0xff]   ;;  %s521_s9 = scalar_lea.vmem %s2685_s2, %s2694_s6  ;;  %s530_s12 = scalar_lea.vmem %s2686_s3, %s2694_s6 }
  0x5c   : > { %v678_v8 = vunpack.c.0.s8 %v677_v3  ;;  %1377 = vmatprep.subr.bf16.mxu1 %v1927_v6  ;;  %v1931_v11 = vld [vmem:[%s2492_s5 + $0xc4] ss:$16 sps:$4 sm:$0xff]   ;;  %1337 = vmatpush1.bf16.msra.mxu0 %v1929_v9  ;;  %v1935_v14 = vld [vmem:[%s2492_s5 + $0xc0] ss:$16 sps:$4 sm:$0xff]  }
  0x5d   : > { %1378 = vmatpush1.bf16.msra.mxu1 %v1930_v10  ;;  %v1933_v13 = vld [vmem:[%s2492_s5 + $0x2c4] ss:$16 sps:$4 sm:$0xff]   ;;  %1338 = vmatprep.subr.bf16.mxu0 %v1931_v11  ;;  %v1936_v15 = vld [vmem:[%s2492_s5 + $0x2c0] ss:$16 sps:$4 sm:$0xff]  }
  0x5e   : > { %v2502_v12 = vsub.s32 %v678_v8, %v2490_v4  ;;  %1379 = vmatprep.subr.bf16.mxu1 %v1933_v13  ;;  %v1937_v17 = vld [vmem:[%s2492_s5 + $0xa4] ss:$16 sps:$4 sm:$0xff]   ;;  %v1941_v19 = vld [vmem:[%s2492_s5 + $0xa0] ss:$16 sps:$4 sm:$0xff]  }
  0x5f   : > { %v1939_v18 = vld [vmem:[%s2492_s5 + $0x2a4] ss:$16 sps:$4 sm:$0xff]   ;;  %v1942_v20 = vld [vmem:[%s2492_s5 + $0x2a0] ss:$16 sps:$4 sm:$0xff]  }
  0x60   : > { %v2508_v16 = vrot.slane %v675_v7, %v2502_v12  ;;  %1339 = vmatpush1.bf16.msra.mxu0 %v1935_v14  ;;  %v1943_v22 = vld [vmem:[%s2492_s5 + $0x84] ss:$16 sps:$4 sm:$0xff]   ;;  %v1947_v24 = vld [vmem:[%s2492_s5 + $0x80] ss:$16 sps:$4 sm:$0xff]   ;;  %v2574_v13 = vrot.slane %v2488_v0, %v2502_v12  ;;  %v2023_v14 = vld [vmem:[%s2492_s5 + $0xec] ss:$16 sps:$4 sm:$0xff]  }
  0x61   : > { %1380 = vmatpush1.bf16.msra.mxu1 %v1936_v15  ;;  %1340 = vmatprep.subr.bf16.mxu0 %v1937_v17  ;;  %v1945_v23 = vld [vmem:[%s2492_s5 + $0x284] ss:$16 sps:$4 sm:$0xff]   ;;  %v1948_v25 = vld [vmem:[%s2492_s5 + $0x280] ss:$16 sps:$4 sm:$0xff]   ;;  %v2026_v15 = vld [vmem:[%s2492_s5 + $0x2ec] ss:$16 sps:$4 sm:$0xff]  }
  0x62   : > { %1368 = vmatprep.mubr.bf16.mxu0 %v2508_v16  ;;  %v2517_v21 = vcombine.high %v2508_v16, %v2508_v16  ;;  %1381 = vmatprep.subr.bf16.mxu1 %v1939_v18  ;;  %v1949_v26 = vld [vmem:[%s2492_s5 + $0x64] ss:$16 sps:$4 sm:$0xff]   ;;  %v1953_v28 = vld [vmem:[%s2492_s5 + $0x60] ss:$16 sps:$4 sm:$0xff]   ;;  %v2580_v17 = vcombine.high %v2574_v13, %v2574_v13  ;;  %v2021_v18 = vld [vmem:[%s2492_s5 + $0xe8] ss:$16 sps:$4 sm:$0xff]  }
  0x63   : > { %v1951_v27 = vld [vmem:[%s2492_s5 + $0x264] ss:$16 sps:$4 sm:$0xff]   ;;  %v1954_v29 = vld [vmem:[%s2492_s5 + $0x260] ss:$16 sps:$4 sm:$0xff]   ;;  %v2029_v0 = vld [vmem:[%s2492_s5 + $0xcc] ss:$16 sps:$4 sm:$0xff]  }
  0x64   : > { %1409 = vmatprep.mubr.bf16.mxu1 %v2517_v21  ;;  %1341 = vmatpush1.bf16.msra.mxu0 %v1941_v19  ;;  %v1955_v30 = vld [vmem:[%s2492_s5 + $0x44] ss:$16 sps:$4 sm:$0xff]   ;;  %v1959_v32 = vld [vmem:[%s2492_s5 + $0x40] ss:$16 sps:$4 sm:$0xff]   ;;  %v2024_v19 = vld [vmem:[%s2492_s5 + $0x2e8] ss:$16 sps:$4 sm:$0xff]  }
  0x65   : > { %1382 = vmatpush1.bf16.msra.mxu1 %v1942_v20  ;;  %1342 = vmatprep.subr.bf16.mxu0 %v1943_v22  ;;  %v1957_v31 = vld [vmem:[%s2492_s5 + $0x244] ss:$16 sps:$4 sm:$0xff]   ;;  %v1960_v33 = vld [vmem:[%s2492_s5 + $0x240] ss:$16 sps:$4 sm:$0xff]   ;;  %v2032_v20 = vld [vmem:[%s2492_s5 + $0x2cc] ss:$16 sps:$4 sm:$0xff]  }
  0x66   : > { %1383 = vmatprep.subr.bf16.mxu1 %v1945_v23  ;;  %v1961_v34 = vld [vmem:[%s2492_s5 + $0x24] ss:$16 sps:$4 sm:$0xff]   ;;  %v1965_v36 = vld [vmem:[%s2492_s5 + $0x20] ss:$16 sps:$4 sm:$0xff]   ;;  %v2027_v22 = vld [vmem:[%s2492_s5 + $0xc8] ss:$16 sps:$4 sm:$0xff]  }
  0x67   : > { %v1963_v35 = vld [vmem:[%s2492_s5 + $0x224] ss:$16 sps:$4 sm:$0xff]   ;;  %v1966_v37 = vld [vmem:[%s2492_s5 + $0x220] ss:$16 sps:$4 sm:$0xff]   ;;  %v2030_v23 = vld [vmem:[%s2492_s5 + $0x2c8] ss:$16 sps:$4 sm:$0xff]  }
  0x68   : > { %1343 = vmatpush1.bf16.msra.mxu0 %v1947_v24  ;;  %v1967_v38 = vld [vmem:[%s2492_s5 + $0x4] ss:$16 sps:$4 sm:$0xff]   ;;  %v1971_v40 = vld [vmem:[%s2492_s5] ss:$16 sps:$4 sm:$0xff]   ;;  %v2035_v24 = vld [vmem:[%s2492_s5 + $0xac] ss:$16 sps:$4 sm:$0xff]  }
  0x69   : > { %1384 = vmatpush1.bf16.msra.mxu1 %v1948_v25  ;;  %1344 = vmatprep.subr.bf16.mxu0 %v1949_v26  ;;  %v1969_v39 = vld [vmem:[%s2492_s5 + $0x204] ss:$16 sps:$4 sm:$0xff]   ;;  %v1972_v41 = vld [vmem:[%s2492_s5 + $0x200] ss:$16 sps:$4 sm:$0xff]   ;;  %v2038_v25 = vld [vmem:[%s2492_s5 + $0x2ac] ss:$16 sps:$4 sm:$0xff]  }
  0x6a   : > { %1385 = vmatprep.subr.bf16.mxu1 %v1951_v27  ;;  %v1973_v42 = vld [vmem:[%s2492_s5 + $0x1e4] ss:$16 sps:$4 sm:$0xff]   ;;  %v1977_v44 = vld [vmem:[%s2492_s5 + $0x1e0] ss:$16 sps:$4 sm:$0xff]   ;;  %v2033_v26 = vld [vmem:[%s2492_s5 + $0xa8] ss:$16 sps:$4 sm:$0xff]  }
  0x6b   : > { %v1975_v43 = vld [vmem:[%s2492_s5 + $0x3e4] ss:$16 sps:$4 sm:$0xff]   ;;  %v1978_v45 = vld [vmem:[%s2492_s5 + $0x3e0] ss:$16 sps:$4 sm:$0xff]   ;;  %v2036_v27 = vld [vmem:[%s2492_s5 + $0x2a8] ss:$16 sps:$4 sm:$0xff]  }
  0x6c   : > { %1345 = vmatpush1.bf16.msra.mxu0 %v1953_v28  ;;  %v1979_v46 = vld [vmem:[%s2492_s5 + $0x1c4] ss:$16 sps:$4 sm:$0xff]   ;;  %v1983_v48 = vld [vmem:[%s2492_s5 + $0x1c0] ss:$16 sps:$4 sm:$0xff]   ;;  %v2041_v28 = vld [vmem:[%s2492_s5 + $0x8c] ss:$16 sps:$4 sm:$0xff]  }
  0x6d   : > { %1386 = vmatpush1.bf16.msra.mxu1 %v1954_v29  ;;  %1346 = vmatprep.subr.bf16.mxu0 %v1955_v30  ;;  %v1981_v47 = vld [vmem:[%s2492_s5 + $0x3c4] ss:$16 sps:$4 sm:$0xff]   ;;  %v1984_v49 = vld [vmem:[%s2492_s5 + $0x3c0] ss:$16 sps:$4 sm:$0xff]   ;;  %v2044_v29 = vld [vmem:[%s2492_s5 + $0x28c] ss:$16 sps:$4 sm:$0xff]  }
  0x6e   : > { %1387 = vmatprep.subr.bf16.mxu1 %v1957_v31  ;;  %v1985_v50 = vld [vmem:[%s2492_s5 + $0x1a4] ss:$16 sps:$4 sm:$0xff]   ;;  %v1989_v52 = vld [vmem:[%s2492_s5 + $0x1a0] ss:$16 sps:$4 sm:$0xff]   ;;  %v2039_v30 = vld [vmem:[%s2492_s5 + $0x88] ss:$16 sps:$4 sm:$0xff]  }
  0x6f   : > { %v1987_v51 = vld [vmem:[%s2492_s5 + $0x3a4] ss:$16 sps:$4 sm:$0xff]   ;;  %v1990_v53 = vld [vmem:[%s2492_s5 + $0x3a0] ss:$16 sps:$4 sm:$0xff]   ;;  %v2042_v31 = vld [vmem:[%s2492_s5 + $0x288] ss:$16 sps:$4 sm:$0xff]  }
  0x70   : > { %1347 = vmatpush1.bf16.msra.mxu0 %v1959_v32  ;;  %v1991_v54 = vld [vmem:[%s2492_s5 + $0x184] ss:$16 sps:$4 sm:$0xff]   ;;  %v1995_v56 = vld [vmem:[%s2492_s5 + $0x180] ss:$16 sps:$4 sm:$0xff]   ;;  %v2045_v32 = vld [vmem:[%s2492_s5 + $0x68] ss:$16 sps:$4 sm:$0xff]  }
  0x71   : > { %1388 = vmatpush1.bf16.msra.mxu1 %v1960_v33  ;;  %1348 = vmatprep.subr.bf16.mxu0 %v1961_v34  ;;  %v1993_v55 = vld [vmem:[%s2492_s5 + $0x384] ss:$16 sps:$4 sm:$0xff]   ;;  %v1996_v57 = vld [vmem:[%s2492_s5 + $0x380] ss:$16 sps:$4 sm:$0xff]   ;;  %v2048_v33 = vld [vmem:[%s2492_s5 + $0x268] ss:$16 sps:$4 sm:$0xff]  }
  0x72   : > { %1389 = vmatprep.subr.bf16.mxu1 %v1963_v35  ;;  %v1997_v58 = vld [vmem:[%s2492_s5 + $0x164] ss:$16 sps:$4 sm:$0xff]   ;;  %v2001_v60 = vld [vmem:[%s2492_s5 + $0x160] ss:$16 sps:$4 sm:$0xff]   ;;  %v2053_v34 = vld [vmem:[%s2492_s5 + $0x4c] ss:$16 sps:$4 sm:$0xff]  }
  0x73   : > { %v1999_v59 = vld [vmem:[%s2492_s5 + $0x364] ss:$16 sps:$4 sm:$0xff]   ;;  %v2002_v61 = vld [vmem:[%s2492_s5 + $0x360] ss:$16 sps:$4 sm:$0xff]   ;;  %v2056_v35 = vld [vmem:[%s2492_s5 + $0x24c] ss:$16 sps:$4 sm:$0xff]  }
  0x74   : > { %1349 = vmatpush1.bf16.msra.mxu0 %v1965_v36  ;;  %v2003_v62 = vld [vmem:[%s2492_s5 + $0x144] ss:$16 sps:$4 sm:$0xff]   ;;  %v2007_v1 = vld [vmem:[%s2492_s5 + $0x140] ss:$16 sps:$4 sm:$0xff]   ;;  %v2051_v36 = vld [vmem:[%s2492_s5 + $0x48] ss:$16 sps:$4 sm:$0xff]  }
  0x75   : > { %1390 = vmatpush1.bf16.msra.mxu1 %v1966_v37  ;;  %1350 = vmatprep.subr.bf16.mxu0 %v1967_v38  ;;  %v2005_v63 = vld [vmem:[%s2492_s5 + $0x344] ss:$16 sps:$4 sm:$0xff]   ;;  %v2008_v2 = vld [vmem:[%s2492_s5 + $0x340] ss:$16 sps:$4 sm:$0xff]   ;;  %v2054_v37 = vld [vmem:[%s2492_s5 + $0x248] ss:$16 sps:$4 sm:$0xff]  }
  0x76   : > { %1391 = vmatprep.subr.bf16.mxu1 %v1969_v39  ;;  %v2009_v3 = vld [vmem:[%s2492_s5 + $0x124] ss:$16 sps:$4 sm:$0xff]   ;;  %v2013_v6 = vld [vmem:[%s2492_s5 + $0x120] ss:$16 sps:$4 sm:$0xff]   ;;  %v2059_v38 = vld [vmem:[%s2492_s5 + $0x2c] ss:$16 sps:$4 sm:$0xff]  }
  0x77   : > { %v2011_v5 = vld [vmem:[%s2492_s5 + $0x324] ss:$16 sps:$4 sm:$0xff]   ;;  %v2014_v7 = vld [vmem:[%s2492_s5 + $0x320] ss:$16 sps:$4 sm:$0xff]   ;;  %v2062_v39 = vld [vmem:[%s2492_s5 + $0x22c] ss:$16 sps:$4 sm:$0xff]  }
  0x78   : > { %1351 = vmatpush1.bf16.msra.mxu0 %v1971_v40  ;;  %v2015_v8 = vld [vmem:[%s2492_s5 + $0x104] ss:$16 sps:$4 sm:$0xff]   ;;  %v2019_v10 = vld [vmem:[%s2492_s5 + $0x100] ss:$16 sps:$4 sm:$0xff]   ;;  %v2057_v40 = vld [vmem:[%s2492_s5 + $0x28] ss:$16 sps:$4 sm:$0xff]  }
  0x79   : > { %1392 = vmatpush1.bf16.msra.mxu1 %v1972_v41  ;;  %1352 = vmatprep.subr.bf16.mxu0 %v1973_v42  ;;  %v2017_v9 = vld [vmem:[%s2492_s5 + $0x304] ss:$16 sps:$4 sm:$0xff]   ;;  %v2020_v11 = vld [vmem:[%s2492_s5 + $0x300] ss:$16 sps:$4 sm:$0xff]   ;;  %v2060_v41 = vld [vmem:[%s2492_s5 + $0x228] ss:$16 sps:$4 sm:$0xff]  }
  0x7a   : > { %1393 = vmatprep.subr.bf16.mxu1 %v1975_v43  ;;  %v2065_v42 = vld [vmem:[%s2492_s5 + $0xc] ss:$16 sps:$4 sm:$0xff]  }
  0x7b   : > { %v2068_v43 = vld [vmem:[%s2492_s5 + $0x20c] ss:$16 sps:$4 sm:$0xff]  }
  0x7c   : > { %1353 = vmatpush2.bf16.msra.mxu0 %v1977_v44  ;;  %v2063_v44 = vld [vmem:[%s2492_s5 + $0x8] ss:$16 sps:$4 sm:$0xff]  }
  0x7d   : > { %1394 = vmatpush2.bf16.msra.mxu1 %v1978_v45  ;;  %1354 = vmatprep.subr.bf16.mxu0 %v1979_v46  ;;  %v2066_v45 = vld [vmem:[%s2492_s5 + $0x208] ss:$16 sps:$4 sm:$0xff]   ;;  %v2071_v46 = vld [vmem:[%s2492_s5 + $0x1ec] ss:$16 sps:$4 sm:$0xff]  }
  0x7e   : > { %1395 = vmatprep.subr.bf16.mxu1 %v1981_v47  ;;  %v2074_v47 = vld [vmem:[%s2492_s5 + $0x3ec] ss:$16 sps:$4 sm:$0xff]  }
  0x80   : > { %1355 = vmatpush2.bf16.msra.mxu0 %v1983_v48  ;;  %v2069_v48 = vld [vmem:[%s2492_s5 + $0x1e8] ss:$16 sps:$4 sm:$0xff]  }
  0x81   : > { %1396 = vmatpush2.bf16.msra.mxu1 %v1984_v49  ;;  %1356 = vmatprep.subr.bf16.mxu0 %v1985_v50  ;;  %v2072_v49 = vld [vmem:[%s2492_s5 + $0x3e8] ss:$16 sps:$4 sm:$0xff]   ;;  %v2077_v50 = vld [vmem:[%s2492_s5 + $0x1cc] ss:$16 sps:$4 sm:$0xff]  }
  0x82   : > { %1397 = vmatprep.subr.bf16.mxu1 %v1987_v51  ;;  %v2080_v51 = vld [vmem:[%s2492_s5 + $0x3cc] ss:$16 sps:$4 sm:$0xff]  }
  0x84   : > { %1357 = vmatpush2.bf16.msra.mxu0 %v1989_v52  ;;  %v2075_v52 = vld [vmem:[%s2492_s5 + $0x1c8] ss:$16 sps:$4 sm:$0xff]  }
  0x85   : > { %1398 = vmatpush2.bf16.msra.mxu1 %v1990_v53  ;;  %1358 = vmatprep.subr.bf16.mxu0 %v1991_v54  ;;  %v2078_v53 = vld [vmem:[%s2492_s5 + $0x3c8] ss:$16 sps:$4 sm:$0xff]   ;;  %v2083_v54 = vld [vmem:[%s2492_s5 + $0x1ac] ss:$16 sps:$4 sm:$0xff]  }
  0x86   : > { %1399 = vmatprep.subr.bf16.mxu1 %v1993_v55  ;;  %v2086_v55 = vld [vmem:[%s2492_s5 + $0x3ac] ss:$16 sps:$4 sm:$0xff]  }
  0x88   : > { %1359 = vmatpush2.bf16.msra.mxu0 %v1995_v56  ;;  %v2081_v56 = vld [vmem:[%s2492_s5 + $0x1a8] ss:$16 sps:$4 sm:$0xff]  }
  0x89   : > { %1400 = vmatpush2.bf16.msra.mxu1 %v1996_v57  ;;  %1360 = vmatprep.subr.bf16.mxu0 %v1997_v58  ;;  %v2084_v57 = vld [vmem:[%s2492_s5 + $0x3a8] ss:$16 sps:$4 sm:$0xff]   ;;  %v2089_v58 = vld [vmem:[%s2492_s5 + $0x18c] ss:$16 sps:$4 sm:$0xff]  }
  0x8a   : > { %1401 = vmatprep.subr.bf16.mxu1 %v1999_v59  ;;  %v2092_v59 = vld [vmem:[%s2492_s5 + $0x38c] ss:$16 sps:$4 sm:$0xff]  }
  0x8c   : > { %1361 = vmatpush2.bf16.msra.mxu0 %v2001_v60  ;;  %v2087_v60 = vld [vmem:[%s2492_s5 + $0x188] ss:$16 sps:$4 sm:$0xff]  }
  0x8d   : > { %1402 = vmatpush2.bf16.msra.mxu1 %v2002_v61  ;;  %1362 = vmatprep.subr.bf16.mxu0 %v2003_v62  ;;  %v2090_v61 = vld [vmem:[%s2492_s5 + $0x388] ss:$16 sps:$4 sm:$0xff]   ;;  %v2095_v62 = vld [vmem:[%s2492_s5 + $0x16c] ss:$16 sps:$4 sm:$0xff]  }
  0x8e   : > { %1403 = vmatprep.subr.bf16.mxu1 %v2005_v63  ;;  %v2098_v63 = vld [vmem:[%s2492_s5 + $0x36c] ss:$16 sps:$4 sm:$0xff]  }
  0x90   : > { %1363 = vmatpush2.bf16.msra.mxu0 %v2007_v1  ;;  %v2093_v1 = vld [vmem:[%s2492_s5 + $0x168] ss:$16 sps:$4 sm:$0xff]  }
  0x91   : > { %1404 = vmatpush2.bf16.msra.mxu1 %v2008_v2  ;;  %1364 = vmatprep.subr.bf16.mxu0 %v2009_v3  ;;  %v2096_v2 = vld [vmem:[%s2492_s5 + $0x368] ss:$16 sps:$4 sm:$0xff]   ;;  %v2101_v3 = vld [vmem:[%s2492_s5 + $0x14c] ss:$16 sps:$4 sm:$0xff]  }
  0x92   : > { %1405 = vmatprep.subr.bf16.mxu1 %v2011_v5  ;;  %v2104_v5 = vld [vmem:[%s2492_s5 + $0x34c] ss:$16 sps:$4 sm:$0xff]  }
  0x94   : > { %1365 = vmatpush2.bf16.msra.mxu0 %v2013_v6  ;;  %v2099_v6 = vld [vmem:[%s2492_s5 + $0x148] ss:$16 sps:$4 sm:$0xff]  }
  0x95   : > { %1406 = vmatpush2.bf16.msra.mxu1 %v2014_v7  ;;  %1366 = vmatprep.subr.bf16.mxu0 %v2015_v8  ;;  %v2102_v7 = vld [vmem:[%s2492_s5 + $0x348] ss:$16 sps:$4 sm:$0xff]   ;;  %v2107_v8 = vld [vmem:[%s2492_s5 + $0x12c] ss:$16 sps:$4 sm:$0xff]  }
  0x96   : > { %1407 = vmatprep.subr.bf16.mxu1 %v2017_v9  ;;  %v2110_v9 = vld [vmem:[%s2492_s5 + $0x32c] ss:$16 sps:$4 sm:$0xff]  }
  0x98   : > { %1367 = vmatpush2.bf16.msra.mxu0 %v2019_v10  ;;  %v2105_v10 = vld [vmem:[%s2492_s5 + $0x128] ss:$16 sps:$4 sm:$0xff]  }
  0x99   : > { %1408 = vmatpush2.bf16.msra.mxu1 %v2020_v11  ;;  %1418 = vmatprep.subr.bf16.mxu0 %v2023_v14  ;;  %v2108_v11 = vld [vmem:[%s2492_s5 + $0x328] ss:$16 sps:$4 sm:$0xff]   ;;  %v2113_v14 = vld [vmem:[%s2492_s5 + $0x10c] ss:$16 sps:$4 sm:$0xff]  }
  0x9a   : > { %1459 = vmatprep.subr.bf16.mxu1 %v2026_v15  ;;  %v2116_v15 = vld [vmem:[%s2492_s5 + $0x30c] ss:$16 sps:$4 sm:$0xff]  }
  0x9b   : > { %1369 = vmatmul.mubr.bf16.vlgmr.msra.gmra.mxu0 %v2574_v13 }
  0x9c   : > { %1410 = vmatmul.mubr.bf16.vlgmr.msra.gmra.mxu1 %v2580_v17  ;;  %1419 = vmatpush1.bf16.msra.mxu0 %v2021_v18  ;;  %v2111_v18 = vld [vmem:[%s2492_s5 + $0x108] ss:$16 sps:$4 sm:$0xff]  }
  0x9d   : > { %1460 = vmatpush1.bf16.msra.mxu1 %v2024_v19  ;;  %1420 = vmatprep.subr.bf16.mxu0 %v2029_v0  ;;  %v2114_v19 = vld [vmem:[%s2492_s5 + $0x308] ss:$16 sps:$4 sm:$0xff]  }
  0x9e   : > { %1461 = vmatprep.subr.bf16.mxu1 %v2032_v20  ;;  %1450 = vmatprep.mubr.bf16.mxu0 %v2508_v16  ;;  %v2047_v16 = vld [vmem:[%s2492_s5 + $0x6c] ss:$16 sps:$4 sm:$0xff]  }
  0x9f   : > { %1491 = vmatprep.mubr.bf16.mxu1 %v2517_v21  ;;  %v2050_v21 = vld [vmem:[%s2492_s5 + $0x26c] ss:$16 sps:$4 sm:$0xff]  }
  0xa0   : > { %1421 = vmatpush1.bf16.msra.mxu0 %v2027_v22 }
  0xa1   : > { %1462 = vmatpush1.bf16.msra.mxu1 %v2030_v23  ;;  %1422 = vmatprep.subr.bf16.mxu0 %v2035_v24 }
  0xa2   : > { %1463 = vmatprep.subr.bf16.mxu1 %v2038_v25 }
  0xa4   : > { %1423 = vmatpush1.bf16.msra.mxu0 %v2033_v26 }
  0xa5   : > { %1464 = vmatpush1.bf16.msra.mxu1 %v2036_v27  ;;  %1424 = vmatprep.subr.bf16.mxu0 %v2041_v28 }
  0xa6   : > { %1465 = vmatprep.subr.bf16.mxu1 %v2044_v29 }
  0xa8   : > { %1425 = vmatpush1.bf16.msra.mxu0 %v2039_v30 }
  0xa9   : > { %1466 = vmatpush1.bf16.msra.mxu1 %v2042_v31  ;;  %1426 = vmatprep.subr.bf16.mxu0 %v2047_v16  ;;  %v1540_v31 = vsub.s32 2, %v2490_v4  ;;  %v1544_v16 = vsub.s32 3, %v2490_v4 }
  0xaa   : > { %1467 = vmatprep.subr.bf16.mxu1 %v2050_v21  ;;  %v1528_v21 = vld [vmem:[%s521_s9] sm:$0xf] }
  0xac   : > { %1427 = vmatpush1.bf16.msra.mxu0 %v2045_v32  ;;  %v2158_v32 = vmov 1983009808  }
  0xad   : > { %1468 = vmatpush1.bf16.msra.mxu1 %v2048_v33  ;;  %1428 = vmatprep.subr.bf16.mxu0 %v2053_v34  ;;  %v1507_v33 = vunpack.c.l.s4 %v2158_v32 }
  0xae   : > { %1469 = vmatprep.subr.bf16.mxu1 %v2056_v35 }
  0xb0   : > { %1429 = vmatpush1.bf16.msra.mxu0 %v2051_v36  ;;  %v1541_v36 = vrot.slane %v1528_v21, %v1540_v31 }
  0xb1   : > { %1470 = vmatpush1.bf16.msra.mxu1 %v2054_v37  ;;  %1430 = vmatprep.subr.bf16.mxu0 %v2059_v38  ;;  %v1545_v37 = vrot.slane %v1528_v21, %v1544_v16  ;;  %v1508_v38 = vunpack.c.0.s8 %v1507_v33 }
  0xb2   : > { %1471 = vmatprep.subr.bf16.mxu1 %v2062_v39 }
  0xb4   : > { %1431 = vmatpush1.bf16.msra.mxu0 %v2057_v40  ;;  %v1547_v40 = vcombine.low %v1541_v36, %v1545_v37 }
  0xb5   : > { %1472 = vmatpush1.bf16.msra.mxu1 %v2060_v41  ;;  %1432 = vmatprep.subr.bf16.mxu0 %v2065_v42 }
  0xb6   : > { %1473 = vmatprep.subr.bf16.mxu1 %v2068_v43  ;;  %v1511_v43 = vsub.s32 %v1508_v38, %v2490_v4 }
  0xb8   : > { %1433 = vmatpush1.bf16.msra.mxu0 %v2063_v44 }
  0xb9   : > { %1474 = vmatpush1.bf16.msra.mxu1 %v2066_v45  ;;  %1434 = vmatprep.subr.bf16.mxu0 %v2071_v46 }
  0xba   : > { %1475 = vmatprep.subr.bf16.mxu1 %v2074_v47 }
  0xbc   : > { %1435 = vmatpush2.bf16.msra.mxu0 %v2069_v48 }
  0xbd   : > { %1476 = vmatpush2.bf16.msra.mxu1 %v2072_v49  ;;  %1436 = vmatprep.subr.bf16.mxu0 %v2077_v50  ;;  %v1561_v49 = vrot.slane %v1547_v40, %v1511_v43 }
  0xbe   : > { %1477 = vmatprep.subr.bf16.mxu1 %v2080_v51 }
  0xc0   : > { %1437 = vmatpush2.bf16.msra.mxu0 %v2075_v52 }
  0xc1   : > { %1478 = vmatpush2.bf16.msra.mxu1 %v2078_v53  ;;  %1438 = vmatprep.subr.bf16.mxu0 %v2083_v54 }
  0xc2   : > { %1479 = vmatprep.subr.bf16.mxu1 %v2086_v55 }
  0xc4   : > { %1439 = vmatpush2.bf16.msra.mxu0 %v2081_v56 }
  0xc5   : > { %1480 = vmatpush2.bf16.msra.mxu1 %v2084_v57  ;;  %1440 = vmatprep.subr.bf16.mxu0 %v2089_v58 }
  0xc6   : > { %1481 = vmatprep.subr.bf16.mxu1 %v2092_v59 }
  0xc8   : > { %1441 = vmatpush2.bf16.msra.mxu0 %v2087_v60 }
  0xc9   : > { %1482 = vmatpush2.bf16.msra.mxu1 %v2090_v61  ;;  %1442 = vmatprep.subr.bf16.mxu0 %v2095_v62 }
  0xca   : > { %1483 = vmatprep.subr.bf16.mxu1 %v2098_v63 }
  0xcc   : > { %1443 = vmatpush2.bf16.msra.mxu0 %v2093_v1 }
  0xcd   : > { %1484 = vmatpush2.bf16.msra.mxu1 %v2096_v2  ;;  %1444 = vmatprep.subr.bf16.mxu0 %v2101_v3 }
  0xce   : > { %1485 = vmatprep.subr.bf16.mxu1 %v2104_v5 }
  0xd0   : > { %1445 = vmatpush2.bf16.msra.mxu0 %v2099_v6 }
  0xd1   : > { %1486 = vmatpush2.bf16.msra.mxu1 %v2102_v7  ;;  %1446 = vmatprep.subr.bf16.mxu0 %v2107_v8 }
  0xd2   : > { %1487 = vmatprep.subr.bf16.mxu1 %v2110_v9 }
  0xd4   : > { %1447 = vmatpush2.bf16.msra.mxu0 %v2105_v10 }
  0xd5   : > { %1488 = vmatpush2.bf16.msra.mxu1 %v2108_v11  ;;  %1448 = vmatprep.subr.bf16.mxu0 %v2113_v14 }
  0xd6   : > { %1489 = vmatprep.subr.bf16.mxu1 %v2116_v15 }
  0xd8   : > { %1449 = vmatpush2.bf16.msra.mxu0 %v2111_v18 }
  0xd9   : > { %1490 = vmatpush2.bf16.msra.mxu1 %v2114_v19 }
  0xdb   : > { %1451 = vmatmul.mubr.bf16.vlgmr.msra.gmra.mxu0 %v2574_v13  ;;  %v1532_v13 = vsub.s32 0, %v2490_v4 }
  0xdc   : > { %1492 = vmatmul.mubr.bf16.vlgmr.msra.gmra.mxu1 %v2580_v17  ;;  %v1536_v17 = vsub.s32 1, %v2490_v4 }
  0xdd   : > { %v1533_v34 = vrot.slane %v1528_v21, %v1532_v13 }
  0xde   : > { %v1537_v35 = vrot.slane %v1528_v21, %v1536_v17 }
  0xe0   : > { %v1546_v39 = vcombine.low %v1533_v34, %v1537_v35 }
  0xe2   : > { %v1554_v48 = vrot.slane %v1546_v39, %v1511_v43 }
  0xe4   : > { %v1562_v57 = vcombine.low %v1554_v48, %v1561_v49 }
 0x15b   : > { %v1370_v0 = vpop.f32.mrf.mxu0 }
 0x15c   : > { %v1411_v20 = vpop.f32.mrf.mxu1 }
 0x15d   : > { %v1412_v22 = vadd.f32 %v1411_v20, %v1370_v0  ;;  %v1372_v23 = vpop.f32.mrf.mxu0 }
 0x15e   : > { %v1413_v24 = vpop.f32.mrf.mxu1 }
 0x15f   : > { %v1414_v25 = vadd.f32 %v1413_v24, %v1372_v23  ;;  %v1374_v26 = vpop.f32.mrf.mxu0 }
 0x160   : > { %v1415_v27 = vpop.f32.mrf.mxu1 }
 0x161   : > { %v1504_v28 = vcombine.low %v1412_v22, %v1414_v25  ;;  %v1375_v29 = vpop.f32.mrf.mxu0 }
 0x162   : > { %v1416_v30 = vpop.f32.mrf.mxu1 }
 0x163   : > { %v1512_v55 = vrot.slane %v1504_v28, %v1511_v43 }
 0x19b   : > { %v1452_v41 = vpop.f32.mrf.mxu0 }
 0x19c   : > { %v1493_v42 = vpop.f32.mrf.mxu1 }
 0x19d   : > { %v1454_v44 = vpop.f32.mrf.mxu0  ;;  %v1494_v46 = vadd.f32 %v1493_v42, %v1452_v41 }
 0x19e   : > { %v1495_v45 = vpop.f32.mrf.mxu1 }
 0x19f   : > { %v1496_v47 = vadd.f32 %v1495_v45, %v1454_v44  ;;  %v1456_v50 = vpop.f32.mrf.mxu0 }
 0x1a0   : > { %v1497_v51 = vpop.f32.mrf.mxu1 }
 0x1a1   : > { %v1505_v52 = vcombine.low %v1494_v46, %v1496_v47  ;;  %v1457_v53 = vpop.f32.mrf.mxu0 }
 0x1a2   : > { %v1498_v54 = vpop.f32.mrf.mxu1 }
 0x1a3   : > { %v1519_v56 = vrot.slane %v1505_v52, %v1511_v43 }
 0x1a5   : > { %v1520_v58 = vcombine.low %v1512_v55, %v1519_v56 }
 0x1a7   : > { %v1564_v59 = vadd.f32 %v1562_v57, %v1520_v58 }
 0x1a9   : > { %v1565_v60 = vmax.f32 %v1564_v59, 0.0 }
 0x1ab   : > { %v1567_v61 = vcombine.high %v1565_v60, %v1565_v60  ;;  %v1574_v4 = vrot.slane %v1565_v60, %v1511_v43 }
 0x1ad   : > { %v1581_v62 = vrot.slane %v1567_v61, %v1511_v43  ;;  %v1582_v63 = vcombine.high %v1574_v4, %v1574_v4 }
 0x1af   : > { %v1583_v1 = vcombine.high %v1581_v62, %v1581_v62  ;;  %v1877_v2 = vpack.c.bf16 %v1582_v63, %v1574_v4 }
 0x1b1   : > { %v1878_v3 = vpack.c.bf16 %v1583_v1, %v1581_v62  ;;  %v1604_v5 = vrot.slane %v1877_v2, %v2502_v12 }
 0x1b3   : > { %v1611_v6 = vrot.slane %v1878_v3, %v2502_v12 }
 0x1b5   : > { %v1612_v7 = vcombine.low %v1604_v5, %v1611_v6 }
 0x1b7   : > { %1879 = vst.sshfl [vmem:[%s530_s12] sm:$0x55 pattern:$0x73625140] %v1612_v7 }
 0x1b8 PF: > { %s13_s16 = sadd.s32 1, %s2155_s16   ;;  %s2687_s12 = smov %s2143_s13 }
 0x1b9   : > { %p10_p10 = scmp.ge.s32.totalorder %s13_s16, 4   ;;  %s2688_s13 = smov %s2214_s20 }
 0x1ba   : > { %s2689_s14 = smov %s2151_s15  ;;  %s2690_s15 = smov %s2692_s17 }
 0x1bb   :  { %12 = sbr.rel (!%p10_p10) target bundleno = 3 (0x3), region = 104 }

</bundles_post_ra>
